<compile_context>
chip_gen: v7x
topology: tpu7x:2x2x1
jax: 0.10.0
libtpu: 0.0.40
codegen_flags: <defaults>
</compile_context>

<pallas_src>
import numpy as np
import jax
import jax.numpy as jnp
from jax.experimental import pallas as pl
from jax.experimental.pallas import tpu as pltpu

H, W = 4, 9
HW = H * W            # 36 spatial positions
NCH = 128             # conv channel width
NOUT = 256            # final linear width
K1P = 256             # padded K for conv1 im2col (9 * C_in <= 256)

_TAPS = [(dy, dx) for dy in (-1, 0, 1) for dx in (-1, 0, 1)]   # kh*3+kw order


# ----------------------------------------------------------------------------
# The fused kernel.
# ----------------------------------------------------------------------------
def _make_net_kernel(batch, mp):
    # roll shift per tap so that rolled[m] = x[m + (dy*W + dx)*batch]
    shifts = [(-(dy * W + dx) * batch) % mp for (dy, dx) in _TAPS]

    def kernel(x0_ref, w1_ref, w2a_ref, w2b_ref, w3a_ref, w3b_ref,
               mask_ref, aff_ref, acc0_ref, wl_hbm, o_ref, wl_vmem, sem):
        # Kick off the big final-Linear weight DMA immediately; it overlaps
        # the whole conv chain and is waited on just before the linear loop.
        wl_copy = pltpu.make_async_copy(wl_hbm, wl_vmem, sem)
        wl_copy.start()

        relu = lambda v: jnp.maximum(v, 0.0)

        aff = aff_ref[...]                       # (8, 128) packed per-layer params
        b1, s2, t2, b2 = aff[0:1], aff[1:2], aff[2:3], aff[3:4]
        s3, t3, b3 = aff[4:5], aff[5:6], aff[6:7]

        def conv3x3(x, w_ref):
            # One fat bf16 matmul (mp,128)@(128,9*128) with fp32 accumulation,
            # then the 3x3 spatial shift as 9 XLU rolls + VPU boundary masks.
            xw = jnp.dot(x.astype(jnp.bfloat16), w_ref[...],
                         preferred_element_type=jnp.float32)        # (mp, 1152)
            acc = None
            for t in range(9):
                sl = xw[:, t * NCH:(t + 1) * NCH]                   # (mp, 128)
                if shifts[t] != 0:
                    sl = pltpu.roll(sl, shift=shifts[t], axis=0)
                    sl = sl * mask_ref[t]                           # zero OOB taps
                acc = sl if acc is None else acc + sl
            return acc

        # conv1 (+ bias + ReLU): single im2col matmul, K = 9*C_in (padded),
        # so no dead 128-wide channel padding is contracted.
        h1 = relu(jnp.dot(x0_ref[...], w1_ref[...],
                          preferred_element_type=jnp.float32) + b1)
        z = relu(conv3x3(h1, w2a_ref) * s2 + t2)      # conv2a + folded BN + ReLU
        h2 = relu(h1 + conv3x3(z, w2b_ref) + b2)      # residual block 2
        z = relu(conv3x3(h2, w3a_ref) * s3 + t3)      # conv3a + folded BN + ReLU
        h3 = relu(h2 + conv3x3(z, w3b_ref) + b3)      # residual block 3

        # Final Linear over the HWC-flattened state: per-position (128,256)
        # bf16 blocks.  h3 is cast once; rows are sliced as a value (static
        # Python offsets), no scratch round-trip.
        h3b = h3.astype(jnp.bfloat16)
        wl_copy.wait()                                # linear weights now in VMEM
        acc = acc0_ref[...]                           # emb @ W_emb + bias (XLA glue)
        for p in range(HW):
            acc = acc + jnp.dot(h3b[p * batch:(p + 1) * batch, :], wl_vmem[p],
                                preferred_element_type=jnp.float32)
        o_ref[...] = relu(acc)

    return kernel


# ----------------------------------------------------------------------------
# Parameter / constant preparation (one-time, offline).
# ----------------------------------------------------------------------------
def _fold_bn(gamma, beta, mean, var, eps=1e-5):
    # Eval-mode BN folded into per-channel scale/shift.  Exact because conv2a
    # / conv3a have bias=False (per the Conv() helper in the PyTorch spec).
    scale = gamma / jnp.sqrt(var + eps)
    return scale, beta - mean * scale


def _tap_masks(batch, mp):
    """(9, mp, 1) mask: 1 where output row m (position-major, m=(h*W+w)*B+b)
    has an in-bounds source for tap (dy,dx); 0 for OOB taps and dead rows."""
    m = np.zeros((9, mp, 1), np.float32)
    for t, (dy, dx) in enumerate(_TAPS):
        for h in range(H):
            for w in range(W):
                if 0 <= h + dy < H and 0 <= w + dx < W:
                    for b in range(batch):
                        m[t, (h * W + w) * batch + b, 0] = 1.0
    return jnp.asarray(m)


def _conv_fat(w_oihw):
    """PyTorch Conv2d weight (C_out, C_in, 3, 3) -> bf16 (C_in, 9*C_out), the
    9 tap weights concatenated along N in kh*3+kw order."""
    c_out, c_in, kh, kw = w_oihw.shape
    taps = jnp.transpose(w_oihw, (2, 3, 1, 0)).reshape(kh * kw, c_in, c_out)
    return jnp.transpose(taps, (1, 0, 2)).reshape(c_in, kh * kw * c_out).astype(jnp.bfloat16)


def init_params(c_in, key):
    assert 9 * c_in <= K1P
    ks = jax.random.split(key, 24)
    n = lambda k, shape, s=0.05: jax.random.normal(k, shape, jnp.float32) * s

    p = {}
    p["emb1"] = n(ks[0], (22, 8), 0.1)
    p["emb2"] = n(ks[1], (4, 8), 0.1)
    p["emb3"] = n(ks[2], (8, 8), 0.1)

    # conv1: Conv2d(c_in, 128, 3, 1, 1, bias=True) -> im2col weight (K1P, 128) bf16.
    w1 = n(ks[3], (NCH, c_in, 3, 3))
    w1_flat = jnp.transpose(w1, (2, 3, 1, 0)).reshape(9 * c_in, NCH)
    p["w1"] = jnp.pad(w1_flat, ((0, K1P - 9 * c_in), (0, 0))).astype(jnp.bfloat16)
    b1 = n(ks[4], (NCH,), 0.02)

    # conv2: Conv2d(128,128,bias=False) -> BN -> ReLU -> Conv2d(128,128,bias=True)
    p["w2a"] = _conv_fat(n(ks[5], (NCH, NCH, 3, 3)))
    s2, t2 = _fold_bn(1.0 + n(ks[6], (NCH,), 0.02), n(ks[7], (NCH,), 0.02),
                      n(ks[8], (NCH,), 0.02), 1.0 + jnp.abs(n(ks[9], (NCH,), 0.02)))
    p["w2b"] = _conv_fat(n(ks[10], (NCH, NCH, 3, 3)))
    b2 = n(ks[11], (NCH,), 0.02)

    # conv3: same structure as conv2.
    p["w3a"] = _conv_fat(n(ks[12], (NCH, NCH, 3, 3)))
    s3, t3 = _fold_bn(1.0 + n(ks[13], (NCH,), 0.02), n(ks[14], (NCH,), 0.02),
                      n(ks[15], (NCH,), 0.02), 1.0 + jnp.abs(n(ks[16], (NCH,), 0.02)))
    p["w3b"] = _conv_fat(n(ks[17], (NCH, NCH, 3, 3)))
    b3 = n(ks[18], (NCH,), 0.02)

    # All per-layer bias / folded-BN params packed into one (8, 128) slab.
    p["aff"] = jnp.stack([b1, s2, t2, b2, s3, t3, b3,
                          jnp.zeros((NCH,), jnp.float32)])

    # Final Linear(128*4*9 + 8*4, 256).  State part stored per spatial position
    # as (HW, 128, 256) bf16 blocks (a static row permutation of the PyTorch
    # NCHW-flatten weight, applied offline); embedding part kept fp32 in glue.
    p["wl_state"] = n(ks[19], (HW, NCH, NOUT), 0.02).astype(jnp.bfloat16)
    p["wl_emb"] = n(ks[20], (32, NOUT), 0.02)
    p["bl"] = n(ks[21], (1, NOUT), 0.02)
    return p


# ----------------------------------------------------------------------------
# Forward pass: tiny XLA glue (input im2col + embedding gathers) + one kernel.
# ----------------------------------------------------------------------------
def net_forward(params, obs_nchw, extra):
    """obs_nchw: (B, C_in, 4, 9) float32; extra: (B, 4) int32."""
    B, C = obs_nchw.shape[0], obs_nchw.shape[1]
    assert 9 * C <= K1P
    mp = ((B * HW + 7) // 8) * 8          # 72 for B=2 (no dead rows)

    # conv1 im2col rows, position-major (m = (h*W+w)*B + b), K padded, bf16.
    obs_p = jnp.pad(obs_nchw, ((0, 0), (0, 0), (1, 1), (1, 1)))
    patches = jnp.stack([obs_p[:, :, dy:dy + H, dx:dx + W]
                         for dy in range(3) for dx in range(3)], axis=0)  # (9,B,C,H,W)
    x0 = jnp.transpose(patches, (3, 4, 1, 0, 2)).reshape(B * HW, 9 * C)
    x0 = jnp.pad(x0, ((0, mp - B * HW), (0, K1P - 9 * C))).astype(jnp.bfloat16)

    masks = _tap_masks(B, mp)             # (9, mp, 1) fp32, ~2.6 KiB

    # Embedding gathers + the tiny emb part of the Linear stay in XLA glue
    # (data-dependent 8-wide lookups; fed to the kernel as an initial acc).
    # NOTE: embedding2 is used for both extra[:,1] and extra[:,2], exactly as
    # in the original PyTorch Net.forward.
    emb = jnp.concatenate([params["emb1"][extra[:, 0]],
                           params["emb2"][extra[:, 1]],
                           params["emb2"][extra[:, 2]],
                           params["emb3"][extra[:, 3]]], axis=1)          # (B, 32)
    acc0 = emb @ params["wl_emb"] + params["bl"]                          # (B, 256)

    vmem_specs = [pl.BlockSpec(memory_space=pltpu.MemorySpace.VMEM)
                  for _ in range(9)]
    return pl.pallas_call(
        _make_net_kernel(B, mp),
        out_shape=jax.ShapeDtypeStruct((B, NOUT), jnp.float32),
        in_specs=vmem_specs + [pl.BlockSpec(memory_space=pl.ANY)],   # wl_state in HBM
        out_specs=pl.BlockSpec(memory_space=pltpu.MemorySpace.VMEM),
        scratch_shapes=[pltpu.VMEM((HW, NCH, NOUT), jnp.bfloat16),   # wl landing buf
                        pltpu.SemaphoreType.DMA],
    )(x0, params["w1"], params["w2a"], params["w2b"], params["w3a"],
      params["w3b"], masks, params["aff"], acc0, params["wl_state"])


if __name__ == "__main__":
    key = jax.random.PRNGKey(0)
    k_obs, k_extra, k_params = jax.random.split(key, 3)

    B, C_IN = 2, 16  # state_shape = (B, 16, 4, 9)
    obs = jax.random.normal(k_obs, (B, C_IN, H, W), jnp.float32)
    ek = jax.random.split(k_extra, 4)
    extra = jnp.stack([
        jax.random.randint(ek[0], (B,), 0, 22),
        jax.random.randint(ek[1], (B,), 0, 4),
        jax.random.randint(ek[2], (B,), 0, 4),
        jax.random.randint(ek[3], (B,), 0, 8),
    ], axis=1).astype(jnp.int32)

    params = init_params(C_IN, k_params)

    fwd = jax.jit(net_forward)
    out = jax.block_until_ready(fwd(params, obs, extra))
    assert out.shape == (B, 256) and out.dtype == jnp.float32
    assert bool(jnp.all(jnp.isfinite(out)))
    print("KERNEL_OK")
</pallas_src>

<mosaic_0001>
module attributes {stable_mosaic.version = 11 : i64} {
  func.func @kernel(%arg0: memref<72x256xbf16, #tpu.memory_space<vmem>>, %arg1: memref<256x128xbf16, #tpu.memory_space<vmem>>, %arg2: memref<128x1152xbf16, #tpu.memory_space<vmem>>, %arg3: memref<128x1152xbf16, #tpu.memory_space<vmem>>, %arg4: memref<128x1152xbf16, #tpu.memory_space<vmem>>, %arg5: memref<128x1152xbf16, #tpu.memory_space<vmem>>, %arg6: memref<9x72x1xf32, #tpu.memory_space<vmem>>, %arg7: memref<8x128xf32, #tpu.memory_space<vmem>>, %arg8: memref<2x256xf32, #tpu.memory_space<vmem>>, %arg9: memref<36x128x256xbf16, #tpu.memory_space<any>>, %arg10: memref<2x256xf32, #tpu.memory_space<vmem>>, %arg11: memref<36x128x256xbf16, #tpu.memory_space<vmem>>, %arg12: memref<!tpu.dma_semaphore, #tpu.memory_space<semaphore_mem>>) attributes {dimension_semantics = [], scalar_prefetch = 0 : i64, scratch_operands = 2 : i64, tpu.core_type = #tpu.core_type<tc>} {
    tpu.enqueue_dma source(%arg9 : memref<36x128x256xbf16, #tpu.memory_space<any>>) target(%arg11 : memref<36x128x256xbf16, #tpu.memory_space<vmem>>) target_semaphore(%arg12 : memref<!tpu.dma_semaphore, #tpu.memory_space<semaphore_mem>>)
    %c0 = arith.constant 0 : index
    %c0_0 = arith.constant 0 : index
    %0 = vector.load %arg7[%c0, %c0_0] : memref<8x128xf32, #tpu.memory_space<vmem>>, vector<8x128xf32>
    %1 = vector.extract_strided_slice %0 {offsets = [0, 0], sizes = [1, 128], strides = [1, 1]} : vector<8x128xf32> to vector<1x128xf32>
    %2 = vector.extract_strided_slice %0 {offsets = [1, 0], sizes = [1, 128], strides = [1, 1]} : vector<8x128xf32> to vector<1x128xf32>
    %3 = vector.extract_strided_slice %0 {offsets = [2, 0], sizes = [1, 128], strides = [1, 1]} : vector<8x128xf32> to vector<1x128xf32>
    %4 = vector.extract_strided_slice %0 {offsets = [3, 0], sizes = [1, 128], strides = [1, 1]} : vector<8x128xf32> to vector<1x128xf32>
    %5 = vector.extract_strided_slice %0 {offsets = [4, 0], sizes = [1, 128], strides = [1, 1]} : vector<8x128xf32> to vector<1x128xf32>
    %6 = vector.extract_strided_slice %0 {offsets = [5, 0], sizes = [1, 128], strides = [1, 1]} : vector<8x128xf32> to vector<1x128xf32>
    %7 = vector.extract_strided_slice %0 {offsets = [6, 0], sizes = [1, 128], strides = [1, 1]} : vector<8x128xf32> to vector<1x128xf32>
    %c0_1 = arith.constant 0 : index
    %c0_2 = arith.constant 0 : index
    %8 = vector.load %arg0[%c0_1, %c0_2] : memref<72x256xbf16, #tpu.memory_space<vmem>>, vector<72x256xbf16>
    %c0_3 = arith.constant 0 : index
    %c0_4 = arith.constant 0 : index
    %9 = vector.load %arg1[%c0_3, %c0_4] : memref<256x128xbf16, #tpu.memory_space<vmem>>, vector<256x128xbf16>
    %cst = arith.constant dense<0.000000e+00> : vector<72x128xf32>
    %10 = tpu.matmul %8, %9, %cst {dimension_numbers = #tpu.dot_dimension_numbers<[1], [0], [0], [1], [0, 0, 1, 1], [], []>} : vector<72x256xbf16>, vector<256x128xbf16>, vector<72x128xf32> -> vector<72x128xf32>
    %11 = vector.broadcast %1 : vector<1x128xf32> to vector<72x128xf32>
    %12 = arith.addf %10, %11 : vector<72x128xf32>
    %cst_5 = arith.constant 0.000000e+00 : f32
    %13 = vector.broadcast %cst_5 : f32 to vector<72x128xf32>
    %14 = arith.maximumf %12, %13 : vector<72x128xf32>
    %15 = arith.truncf %14 : vector<72x128xf32> to vector<72x128xbf16>
    %c0_6 = arith.constant 0 : index
    %c0_7 = arith.constant 0 : index
    %16 = vector.load %arg2[%c0_6, %c0_7] : memref<128x1152xbf16, #tpu.memory_space<vmem>>, vector<128x1152xbf16>
    %cst_8 = arith.constant dense<0.000000e+00> : vector<72x1152xf32>
    %17 = tpu.matmul %15, %16, %cst_8 {dimension_numbers = #tpu.dot_dimension_numbers<[1], [0], [0], [1], [0, 0, 1, 1], [], []>} : vector<72x128xbf16>, vector<128x1152xbf16>, vector<72x1152xf32> -> vector<72x1152xf32>
    %18 = vector.extract_strided_slice %17 {offsets = [0, 0], sizes = [72, 128], strides = [1, 1]} : vector<72x1152xf32> to vector<72x128xf32>
    %c20_i32 = arith.constant 20 : i32
    %19 = tpu.dynamic_rotate %18 by %c20_i32 dim 0 : vector<72x128xf32>, i32 -> vector<72x128xf32>
    %c0_9 = arith.constant 0 : index
    %c0_10 = arith.constant 0 : index
    %c0_11 = arith.constant 0 : index
    %20 = vector.load %arg6[%c0_9, %c0_10, %c0_11] : memref<9x72x1xf32, #tpu.memory_space<vmem>>, vector<1x72x1xf32>
    %21 = vector.shape_cast %20 : vector<1x72x1xf32> to vector<72x1xf32>
    %22 = vector.broadcast %21 : vector<72x1xf32> to vector<72x128xf32>
    %23 = arith.mulf %19, %22 : vector<72x128xf32>
    %24 = vector.extract_strided_slice %17 {offsets = [0, 128], sizes = [72, 128], strides = [1, 1]} : vector<72x1152xf32> to vector<72x128xf32>
    %c18_i32 = arith.constant 18 : i32
    %25 = tpu.dynamic_rotate %24 by %c18_i32 dim 0 : vector<72x128xf32>, i32 -> vector<72x128xf32>
    %c1 = arith.constant 1 : index
    %c0_12 = arith.constant 0 : index
    %c0_13 = arith.constant 0 : index
    %26 = vector.load %arg6[%c1, %c0_12, %c0_13] : memref<9x72x1xf32, #tpu.memory_space<vmem>>, vector<1x72x1xf32>
    %27 = vector.shape_cast %26 : vector<1x72x1xf32> to vector<72x1xf32>
    %28 = vector.broadcast %27 : vector<72x1xf32> to vector<72x128xf32>
    %29 = arith.mulf %25, %28 : vector<72x128xf32>
    %30 = arith.addf %23, %29 : vector<72x128xf32>
    %31 = vector.extract_strided_slice %17 {offsets = [0, 256], sizes = [72, 128], strides = [1, 1]} : vector<72x1152xf32> to vector<72x128xf32>
    %c16_i32 = arith.constant 16 : i32
    %32 = tpu.dynamic_rotate %31 by %c16_i32 dim 0 : vector<72x128xf32>, i32 -> vector<72x128xf32>
    %c2 = arith.constant 2 : index
    %c0_14 = arith.constant 0 : index
    %c0_15 = arith.constant 0 : index
    %33 = vector.load %arg6[%c2, %c0_14, %c0_15] : memref<9x72x1xf32, #tpu.memory_space<vmem>>, vector<1x72x1xf32>
    %34 = vector.shape_cast %33 : vector<1x72x1xf32> to vector<72x1xf32>
    %35 = vector.broadcast %34 : vector<72x1xf32> to vector<72x128xf32>
    %36 = arith.mulf %32, %35 : vector<72x128xf32>
    %37 = arith.addf %30, %36 : vector<72x128xf32>
    %38 = vector.extract_strided_slice %17 {offsets = [0, 384], sizes = [72, 128], strides = [1, 1]} : vector<72x1152xf32> to vector<72x128xf32>
    %c2_i32 = arith.constant 2 : i32
    %39 = tpu.dynamic_rotate %38 by %c2_i32 dim 0 : vector<72x128xf32>, i32 -> vector<72x128xf32>
    %c3 = arith.constant 3 : index
    %c0_16 = arith.constant 0 : index
    %c0_17 = arith.constant 0 : index
    %40 = vector.load %arg6[%c3, %c0_16, %c0_17] : memref<9x72x1xf32, #tpu.memory_space<vmem>>, vector<1x72x1xf32>
    %41 = vector.shape_cast %40 : vector<1x72x1xf32> to vector<72x1xf32>
    %42 = vector.broadcast %41 : vector<72x1xf32> to vector<72x128xf32>
    %43 = arith.mulf %39, %42 : vector<72x128xf32>
    %44 = arith.addf %37, %43 : vector<72x128xf32>
    %45 = vector.extract_strided_slice %17 {offsets = [0, 512], sizes = [72, 128], strides = [1, 1]} : vector<72x1152xf32> to vector<72x128xf32>
    %46 = arith.addf %44, %45 : vector<72x128xf32>
    %47 = vector.extract_strided_slice %17 {offsets = [0, 640], sizes = [72, 128], strides = [1, 1]} : vector<72x1152xf32> to vector<72x128xf32>
    %c70_i32 = arith.constant 70 : i32
    %48 = tpu.dynamic_rotate %47 by %c70_i32 dim 0 : vector<72x128xf32>, i32 -> vector<72x128xf32>
    %c5 = arith.constant 5 : index
    %c0_18 = arith.constant 0 : index
    %c0_19 = arith.constant 0 : index
    %49 = vector.load %arg6[%c5, %c0_18, %c0_19] : memref<9x72x1xf32, #tpu.memory_space<vmem>>, vector<1x72x1xf32>
    %50 = vector.shape_cast %49 : vector<1x72x1xf32> to vector<72x1xf32>
    %51 = vector.broadcast %50 : vector<72x1xf32> to vector<72x128xf32>
    %52 = arith.mulf %48, %51 : vector<72x128xf32>
    %53 = arith.addf %46, %52 : vector<72x128xf32>
    %54 = vector.extract_strided_slice %17 {offsets = [0, 768], sizes = [72, 128], strides = [1, 1]} : vector<72x1152xf32> to vector<72x128xf32>
    %c56_i32 = arith.constant 56 : i32
    %55 = tpu.dynamic_rotate %54 by %c56_i32 dim 0 : vector<72x128xf32>, i32 -> vector<72x128xf32>
    %c6 = arith.constant 6 : index
    %c0_20 = arith.constant 0 : index
    %c0_21 = arith.constant 0 : index
    %56 = vector.load %arg6[%c6, %c0_20, %c0_21] : memref<9x72x1xf32, #tpu.memory_space<vmem>>, vector<1x72x1xf32>
    %57 = vector.shape_cast %56 : vector<1x72x1xf32> to vector<72x1xf32>
    %58 = vector.broadcast %57 : vector<72x1xf32> to vector<72x128xf32>
    %59 = arith.mulf %55, %58 : vector<72x128xf32>
    %60 = arith.addf %53, %59 : vector<72x128xf32>
    %61 = vector.extract_strided_slice %17 {offsets = [0, 896], sizes = [72, 128], strides = [1, 1]} : vector<72x1152xf32> to vector<72x128xf32>
    %c54_i32 = arith.constant 54 : i32
    %62 = tpu.dynamic_rotate %61 by %c54_i32 dim 0 : vector<72x128xf32>, i32 -> vector<72x128xf32>
    %c7 = arith.constant 7 : index
    %c0_22 = arith.constant 0 : index
    %c0_23 = arith.constant 0 : index
    %63 = vector.load %arg6[%c7, %c0_22, %c0_23] : memref<9x72x1xf32, #tpu.memory_space<vmem>>, vector<1x72x1xf32>
    %64 = vector.shape_cast %63 : vector<1x72x1xf32> to vector<72x1xf32>
    %65 = vector.broadcast %64 : vector<72x1xf32> to vector<72x128xf32>
    %66 = arith.mulf %62, %65 : vector<72x128xf32>
    %67 = arith.addf %60, %66 : vector<72x128xf32>
    %68 = vector.extract_strided_slice %17 {offsets = [0, 1024], sizes = [72, 128], strides = [1, 1]} : vector<72x1152xf32> to vector<72x128xf32>
    %c52_i32 = arith.constant 52 : i32
    %69 = tpu.dynamic_rotate %68 by %c52_i32 dim 0 : vector<72x128xf32>, i32 -> vector<72x128xf32>
    %c8 = arith.constant 8 : index
    %c0_24 = arith.constant 0 : index
    %c0_25 = arith.constant 0 : index
    %70 = vector.load %arg6[%c8, %c0_24, %c0_25] : memref<9x72x1xf32, #tpu.memory_space<vmem>>, vector<1x72x1xf32>
    %71 = vector.shape_cast %70 : vector<1x72x1xf32> to vector<72x1xf32>
    %72 = vector.broadcast %71 : vector<72x1xf32> to vector<72x128xf32>
    %73 = arith.mulf %69, %72 : vector<72x128xf32>
    %74 = arith.addf %67, %73 : vector<72x128xf32>
    %75 = vector.broadcast %2 : vector<1x128xf32> to vector<72x128xf32>
    %76 = arith.mulf %74, %75 : vector<72x128xf32>
    %77 = vector.broadcast %3 : vector<1x128xf32> to vector<72x128xf32>
    %78 = arith.addf %76, %77 : vector<72x128xf32>
    %cst_26 = arith.constant 0.000000e+00 : f32
    %79 = vector.broadcast %cst_26 : f32 to vector<72x128xf32>
    %80 = arith.maximumf %78, %79 : vector<72x128xf32>
    %81 = arith.truncf %80 : vector<72x128xf32> to vector<72x128xbf16>
    %c0_27 = arith.constant 0 : index
    %c0_28 = arith.constant 0 : index
    %82 = vector.load %arg3[%c0_27, %c0_28] : memref<128x1152xbf16, #tpu.memory_space<vmem>>, vector<128x1152xbf16>
    %cst_29 = arith.constant dense<0.000000e+00> : vector<72x1152xf32>
    %83 = tpu.matmul %81, %82, %cst_29 {dimension_numbers = #tpu.dot_dimension_numbers<[1], [0], [0], [1], [0, 0, 1, 1], [], []>} : vector<72x128xbf16>, vector<128x1152xbf16>, vector<72x1152xf32> -> vector<72x1152xf32>
    %84 = vector.extract_strided_slice %83 {offsets = [0, 0], sizes = [72, 128], strides = [1, 1]} : vector<72x1152xf32> to vector<72x128xf32>
    %c20_i32_30 = arith.constant 20 : i32
    %85 = tpu.dynamic_rotate %84 by %c20_i32_30 dim 0 : vector<72x128xf32>, i32 -> vector<72x128xf32>
    %c0_31 = arith.constant 0 : index
    %c0_32 = arith.constant 0 : index
    %c0_33 = arith.constant 0 : index
    %86 = vector.load %arg6[%c0_31, %c0_32, %c0_33] : memref<9x72x1xf32, #tpu.memory_space<vmem>>, vector<1x72x1xf32>
    %87 = vector.shape_cast %86 : vector<1x72x1xf32> to vector<72x1xf32>
    %88 = vector.broadcast %87 : vector<72x1xf32> to vector<72x128xf32>
    %89 = arith.mulf %85, %88 : vector<72x128xf32>
    %90 = vector.extract_strided_slice %83 {offsets = [0, 128], sizes = [72, 128], strides = [1, 1]} : vector<72x1152xf32> to vector<72x128xf32>
    %c18_i32_34 = arith.constant 18 : i32
    %91 = tpu.dynamic_rotate %90 by %c18_i32_34 dim 0 : vector<72x128xf32>, i32 -> vector<72x128xf32>
    %c1_35 = arith.constant 1 : index
    %c0_36 = arith.constant 0 : index
    %c0_37 = arith.constant 0 : index
    %92 = vector.load %arg6[%c1_35, %c0_36, %c0_37] : memref<9x72x1xf32, #tpu.memory_space<vmem>>, vector<1x72x1xf32>
    %93 = vector.shape_cast %92 : vector<1x72x1xf32> to vector<72x1xf32>
    %94 = vector.broadcast %93 : vector<72x1xf32> to vector<72x128xf32>
    %95 = arith.mulf %91, %94 : vector<72x128xf32>
    %96 = arith.addf %89, %95 : vector<72x128xf32>
    %97 = vector.extract_strided_slice %83 {offsets = [0, 256], sizes = [72, 128], strides = [1, 1]} : vector<72x1152xf32> to vector<72x128xf32>
    %c16_i32_38 = arith.constant 16 : i32
    %98 = tpu.dynamic_rotate %97 by %c16_i32_38 dim 0 : vector<72x128xf32>, i32 -> vector<72x128xf32>
    %c2_39 = arith.constant 2 : index
    %c0_40 = arith.constant 0 : index
    %c0_41 = arith.constant 0 : index
    %99 = vector.load %arg6[%c2_39, %c0_40, %c0_41] : memref<9x72x1xf32, #tpu.memory_space<vmem>>, vector<1x72x1xf32>
    %100 = vector.shape_cast %99 : vector<1x72x1xf32> to vector<72x1xf32>
    %101 = vector.broadcast %100 : vector<72x1xf32> to vector<72x128xf32>
    %102 = arith.mulf %98, %101 : vector<72x128xf32>
    %103 = arith.addf %96, %102 : vector<72x128xf32>
    %104 = vector.extract_strided_slice %83 {offsets = [0, 384], sizes = [72, 128], strides = [1, 1]} : vector<72x1152xf32> to vector<72x128xf32>
    %c2_i32_42 = arith.constant 2 : i32
    %105 = tpu.dynamic_rotate %104 by %c2_i32_42 dim 0 : vector<72x128xf32>, i32 -> vector<72x128xf32>
    %c3_43 = arith.constant 3 : index
    %c0_44 = arith.constant 0 : index
    %c0_45 = arith.constant 0 : index
    %106 = vector.load %arg6[%c3_43, %c0_44, %c0_45] : memref<9x72x1xf32, #tpu.memory_space<vmem>>, vector<1x72x1xf32>
    %107 = vector.shape_cast %106 : vector<1x72x1xf32> to vector<72x1xf32>
    %108 = vector.broadcast %107 : vector<72x1xf32> to vector<72x128xf32>
    %109 = arith.mulf %105, %108 : vector<72x128xf32>
    %110 = arith.addf %103, %109 : vector<72x128xf32>
    %111 = vector.extract_strided_slice %83 {offsets = [0, 512], sizes = [72, 128], strides = [1, 1]} : vector<72x1152xf32> to vector<72x128xf32>
    %112 = arith.addf %110, %111 : vector<72x128xf32>
    %113 = vector.extract_strided_slice %83 {offsets = [0, 640], sizes = [72, 128], strides = [1, 1]} : vector<72x1152xf32> to vector<72x128xf32>
    %c70_i32_46 = arith.constant 70 : i32
    %114 = tpu.dynamic_rotate %113 by %c70_i32_46 dim 0 : vector<72x128xf32>, i32 -> vector<72x128xf32>
    %c5_47 = arith.constant 5 : index
    %c0_48 = arith.constant 0 : index
    %c0_49 = arith.constant 0 : index
    %115 = vector.load %arg6[%c5_47, %c0_48, %c0_49] : memref<9x72x1xf32, #tpu.memory_space<vmem>>, vector<1x72x1xf32>
    %116 = vector.shape_cast %115 : vector<1x72x1xf32> to vector<72x1xf32>
    %117 = vector.broadcast %116 : vector<72x1xf32> to vector<72x128xf32>
    %118 = arith.mulf %114, %117 : vector<72x128xf32>
    %119 = arith.addf %112, %118 : vector<72x128xf32>
    %120 = vector.extract_strided_slice %83 {offsets = [0, 768], sizes = [72, 128], strides = [1, 1]} : vector<72x1152xf32> to vector<72x128xf32>
    %c56_i32_50 = arith.constant 56 : i32
    %121 = tpu.dynamic_rotate %120 by %c56_i32_50 dim 0 : vector<72x128xf32>, i32 -> vector<72x128xf32>
    %c6_51 = arith.constant 6 : index
    %c0_52 = arith.constant 0 : index
    %c0_53 = arith.constant 0 : index
    %122 = vector.load %arg6[%c6_51, %c0_52, %c0_53] : memref<9x72x1xf32, #tpu.memory_space<vmem>>, vector<1x72x1xf32>
    %123 = vector.shape_cast %122 : vector<1x72x1xf32> to vector<72x1xf32>
    %124 = vector.broadcast %123 : vector<72x1xf32> to vector<72x128xf32>
    %125 = arith.mulf %121, %124 : vector<72x128xf32>
    %126 = arith.addf %119, %125 : vector<72x128xf32>
    %127 = vector.extract_strided_slice %83 {offsets = [0, 896], sizes = [72, 128], strides = [1, 1]} : vector<72x1152xf32> to vector<72x128xf32>
    %c54_i32_54 = arith.constant 54 : i32
    %128 = tpu.dynamic_rotate %127 by %c54_i32_54 dim 0 : vector<72x128xf32>, i32 -> vector<72x128xf32>
    %c7_55 = arith.constant 7 : index
    %c0_56 = arith.constant 0 : index
    %c0_57 = arith.constant 0 : index
    %129 = vector.load %arg6[%c7_55, %c0_56, %c0_57] : memref<9x72x1xf32, #tpu.memory_space<vmem>>, vector<1x72x1xf32>
    %130 = vector.shape_cast %129 : vector<1x72x1xf32> to vector<72x1xf32>
    %131 = vector.broadcast %130 : vector<72x1xf32> to vector<72x128xf32>
    %132 = arith.mulf %128, %131 : vector<72x128xf32>
    %133 = arith.addf %126, %132 : vector<72x128xf32>
    %134 = vector.extract_strided_slice %83 {offsets = [0, 1024], sizes = [72, 128], strides = [1, 1]} : vector<72x1152xf32> to vector<72x128xf32>
    %c52_i32_58 = arith.constant 52 : i32
    %135 = tpu.dynamic_rotate %134 by %c52_i32_58 dim 0 : vector<72x128xf32>, i32 -> vector<72x128xf32>
    %c8_59 = arith.constant 8 : index
    %c0_60 = arith.constant 0 : index
    %c0_61 = arith.constant 0 : index
    %136 = vector.load %arg6[%c8_59, %c0_60, %c0_61] : memref<9x72x1xf32, #tpu.memory_space<vmem>>, vector<1x72x1xf32>
    %137 = vector.shape_cast %136 : vector<1x72x1xf32> to vector<72x1xf32>
    %138 = vector.broadcast %137 : vector<72x1xf32> to vector<72x128xf32>
    %139 = arith.mulf %135, %138 : vector<72x128xf32>
    %140 = arith.addf %133, %139 : vector<72x128xf32>
    %141 = arith.addf %14, %140 : vector<72x128xf32>
    %142 = vector.broadcast %4 : vector<1x128xf32> to vector<72x128xf32>
    %143 = arith.addf %141, %142 : vector<72x128xf32>
    %cst_62 = arith.constant 0.000000e+00 : f32
    %144 = vector.broadcast %cst_62 : f32 to vector<72x128xf32>
    %145 = arith.maximumf %143, %144 : vector<72x128xf32>
    %146 = arith.truncf %145 : vector<72x128xf32> to vector<72x128xbf16>
    %c0_63 = arith.constant 0 : index
    %c0_64 = arith.constant 0 : index
    %147 = vector.load %arg4[%c0_63, %c0_64] : memref<128x1152xbf16, #tpu.memory_space<vmem>>, vector<128x1152xbf16>
    %cst_65 = arith.constant dense<0.000000e+00> : vector<72x1152xf32>
    %148 = tpu.matmul %146, %147, %cst_65 {dimension_numbers = #tpu.dot_dimension_numbers<[1], [0], [0], [1], [0, 0, 1, 1], [], []>} : vector<72x128xbf16>, vector<128x1152xbf16>, vector<72x1152xf32> -> vector<72x1152xf32>
    %149 = vector.extract_strided_slice %148 {offsets = [0, 0], sizes = [72, 128], strides = [1, 1]} : vector<72x1152xf32> to vector<72x128xf32>
    %c20_i32_66 = arith.constant 20 : i32
    %150 = tpu.dynamic_rotate %149 by %c20_i32_66 dim 0 : vector<72x128xf32>, i32 -> vector<72x128xf32>
    %c0_67 = arith.constant 0 : index
    %c0_68 = arith.constant 0 : index
    %c0_69 = arith.constant 0 : index
    %151 = vector.load %arg6[%c0_67, %c0_68, %c0_69] : memref<9x72x1xf32, #tpu.memory_space<vmem>>, vector<1x72x1xf32>
    %152 = vector.shape_cast %151 : vector<1x72x1xf32> to vector<72x1xf32>
    %153 = vector.broadcast %152 : vector<72x1xf32> to vector<72x128xf32>
    %154 = arith.mulf %150, %153 : vector<72x128xf32>
    %155 = vector.extract_strided_slice %148 {offsets = [0, 128], sizes = [72, 128], strides = [1, 1]} : vector<72x1152xf32> to vector<72x128xf32>
    %c18_i32_70 = arith.constant 18 : i32
    %156 = tpu.dynamic_rotate %155 by %c18_i32_70 dim 0 : vector<72x128xf32>, i32 -> vector<72x128xf32>
    %c1_71 = arith.constant 1 : index
    %c0_72 = arith.constant 0 : index
    %c0_73 = arith.constant 0 : index
    %157 = vector.load %arg6[%c1_71, %c0_72, %c0_73] : memref<9x72x1xf32, #tpu.memory_space<vmem>>, vector<1x72x1xf32>
    %158 = vector.shape_cast %157 : vector<1x72x1xf32> to vector<72x1xf32>
    %159 = vector.broadcast %158 : vector<72x1xf32> to vector<72x128xf32>
    %160 = arith.mulf %156, %159 : vector<72x128xf32>
    %161 = arith.addf %154, %160 : vector<72x128xf32>
    %162 = vector.extract_strided_slice %148 {offsets = [0, 256], sizes = [72, 128], strides = [1, 1]} : vector<72x1152xf32> to vector<72x128xf32>
    %c16_i32_74 = arith.constant 16 : i32
    %163 = tpu.dynamic_rotate %162 by %c16_i32_74 dim 0 : vector<72x128xf32>, i32 -> vector<72x128xf32>
    %c2_75 = arith.constant 2 : index
    %c0_76 = arith.constant 0 : index
    %c0_77 = arith.constant 0 : index
    %164 = vector.load %arg6[%c2_75, %c0_76, %c0_77] : memref<9x72x1xf32, #tpu.memory_space<vmem>>, vector<1x72x1xf32>
    %165 = vector.shape_cast %164 : vector<1x72x1xf32> to vector<72x1xf32>
    %166 = vector.broadcast %165 : vector<72x1xf32> to vector<72x128xf32>
    %167 = arith.mulf %163, %166 : vector<72x128xf32>
    %168 = arith.addf %161, %167 : vector<72x128xf32>
    %169 = vector.extract_strided_slice %148 {offsets = [0, 384], sizes = [72, 128], strides = [1, 1]} : vector<72x1152xf32> to vector<72x128xf32>
    %c2_i32_78 = arith.constant 2 : i32
    %170 = tpu.dynamic_rotate %169 by %c2_i32_78 dim 0 : vector<72x128xf32>, i32 -> vector<72x128xf32>
    %c3_79 = arith.constant 3 : index
    %c0_80 = arith.constant 0 : index
    %c0_81 = arith.constant 0 : index
    %171 = vector.load %arg6[%c3_79, %c0_80, %c0_81] : memref<9x72x1xf32, #tpu.memory_space<vmem>>, vector<1x72x1xf32>
    %172 = vector.shape_cast %171 : vector<1x72x1xf32> to vector<72x1xf32>
    %173 = vector.broadcast %172 : vector<72x1xf32> to vector<72x128xf32>
    %174 = arith.mulf %170, %173 : vector<72x128xf32>
    %175 = arith.addf %168, %174 : vector<72x128xf32>
    %176 = vector.extract_strided_slice %148 {offsets = [0, 512], sizes = [72, 128], strides = [1, 1]} : vector<72x1152xf32> to vector<72x128xf32>
    %177 = arith.addf %175, %176 : vector<72x128xf32>
    %178 = vector.extract_strided_slice %148 {offsets = [0, 640], sizes = [72, 128], strides = [1, 1]} : vector<72x1152xf32> to vector<72x128xf32>
    %c70_i32_82 = arith.constant 70 : i32
    %179 = tpu.dynamic_rotate %178 by %c70_i32_82 dim 0 : vector<72x128xf32>, i32 -> vector<72x128xf32>
    %c5_83 = arith.constant 5 : index
    %c0_84 = arith.constant 0 : index
    %c0_85 = arith.constant 0 : index
    %180 = vector.load %arg6[%c5_83, %c0_84, %c0_85] : memref<9x72x1xf32, #tpu.memory_space<vmem>>, vector<1x72x1xf32>
    %181 = vector.shape_cast %180 : vector<1x72x1xf32> to vector<72x1xf32>
    %182 = vector.broadcast %181 : vector<72x1xf32> to vector<72x128xf32>
    %183 = arith.mulf %179, %182 : vector<72x128xf32>
    %184 = arith.addf %177, %183 : vector<72x128xf32>
    %185 = vector.extract_strided_slice %148 {offsets = [0, 768], sizes = [72, 128], strides = [1, 1]} : vector<72x1152xf32> to vector<72x128xf32>
    %c56_i32_86 = arith.constant 56 : i32
    %186 = tpu.dynamic_rotate %185 by %c56_i32_86 dim 0 : vector<72x128xf32>, i32 -> vector<72x128xf32>
    %c6_87 = arith.constant 6 : index
    %c0_88 = arith.constant 0 : index
    %c0_89 = arith.constant 0 : index
    %187 = vector.load %arg6[%c6_87, %c0_88, %c0_89] : memref<9x72x1xf32, #tpu.memory_space<vmem>>, vector<1x72x1xf32>
    %188 = vector.shape_cast %187 : vector<1x72x1xf32> to vector<72x1xf32>
    %189 = vector.broadcast %188 : vector<72x1xf32> to vector<72x128xf32>
    %190 = arith.mulf %186, %189 : vector<72x128xf32>
    %191 = arith.addf %184, %190 : vector<72x128xf32>
    %192 = vector.extract_strided_slice %148 {offsets = [0, 896], sizes = [72, 128], strides = [1, 1]} : vector<72x1152xf32> to vector<72x128xf32>
    %c54_i32_90 = arith.constant 54 : i32
    %193 = tpu.dynamic_rotate %192 by %c54_i32_90 dim 0 : vector<72x128xf32>, i32 -> vector<72x128xf32>
    %c7_91 = arith.constant 7 : index
    %c0_92 = arith.constant 0 : index
    %c0_93 = arith.constant 0 : index
    %194 = vector.load %arg6[%c7_91, %c0_92, %c0_93] : memref<9x72x1xf32, #tpu.memory_space<vmem>>, vector<1x72x1xf32>
    %195 = vector.shape_cast %194 : vector<1x72x1xf32> to vector<72x1xf32>
    %196 = vector.broadcast %195 : vector<72x1xf32> to vector<72x128xf32>
    %197 = arith.mulf %193, %196 : vector<72x128xf32>
    %198 = arith.addf %191, %197 : vector<72x128xf32>
    %199 = vector.extract_strided_slice %148 {offsets = [0, 1024], sizes = [72, 128], strides = [1, 1]} : vector<72x1152xf32> to vector<72x128xf32>
    %c52_i32_94 = arith.constant 52 : i32
    %200 = tpu.dynamic_rotate %199 by %c52_i32_94 dim 0 : vector<72x128xf32>, i32 -> vector<72x128xf32>
    %c8_95 = arith.constant 8 : index
    %c0_96 = arith.constant 0 : index
    %c0_97 = arith.constant 0 : index
    %201 = vector.load %arg6[%c8_95, %c0_96, %c0_97] : memref<9x72x1xf32, #tpu.memory_space<vmem>>, vector<1x72x1xf32>
    %202 = vector.shape_cast %201 : vector<1x72x1xf32> to vector<72x1xf32>
    %203 = vector.broadcast %202 : vector<72x1xf32> to vector<72x128xf32>
    %204 = arith.mulf %200, %203 : vector<72x128xf32>
    %205 = arith.addf %198, %204 : vector<72x128xf32>
    %206 = vector.broadcast %5 : vector<1x128xf32> to vector<72x128xf32>
    %207 = arith.mulf %205, %206 : vector<72x128xf32>
    %208 = vector.broadcast %6 : vector<1x128xf32> to vector<72x128xf32>
    %209 = arith.addf %207, %208 : vector<72x128xf32>
    %cst_98 = arith.constant 0.000000e+00 : f32
    %210 = vector.broadcast %cst_98 : f32 to vector<72x128xf32>
    %211 = arith.maximumf %209, %210 : vector<72x128xf32>
    %212 = arith.truncf %211 : vector<72x128xf32> to vector<72x128xbf16>
    %c0_99 = arith.constant 0 : index
    %c0_100 = arith.constant 0 : index
    %213 = vector.load %arg5[%c0_99, %c0_100] : memref<128x1152xbf16, #tpu.memory_space<vmem>>, vector<128x1152xbf16>
    %cst_101 = arith.constant dense<0.000000e+00> : vector<72x1152xf32>
    %214 = tpu.matmul %212, %213, %cst_101 {dimension_numbers = #tpu.dot_dimension_numbers<[1], [0], [0], [1], [0, 0, 1, 1], [], []>} : vector<72x128xbf16>, vector<128x1152xbf16>, vector<72x1152xf32> -> vector<72x1152xf32>
    %215 = vector.extract_strided_slice %214 {offsets = [0, 0], sizes = [72, 128], strides = [1, 1]} : vector<72x1152xf32> to vector<72x128xf32>
    %c20_i32_102 = arith.constant 20 : i32
    %216 = tpu.dynamic_rotate %215 by %c20_i32_102 dim 0 : vector<72x128xf32>, i32 -> vector<72x128xf32>
    %c0_103 = arith.constant 0 : index
    %c0_104 = arith.constant 0 : index
    %c0_105 = arith.constant 0 : index
    %217 = vector.load %arg6[%c0_103, %c0_104, %c0_105] : memref<9x72x1xf32, #tpu.memory_space<vmem>>, vector<1x72x1xf32>
    %218 = vector.shape_cast %217 : vector<1x72x1xf32> to vector<72x1xf32>
    %219 = vector.broadcast %218 : vector<72x1xf32> to vector<72x128xf32>
    %220 = arith.mulf %216, %219 : vector<72x128xf32>
    %221 = vector.extract_strided_slice %214 {offsets = [0, 128], sizes = [72, 128], strides = [1, 1]} : vector<72x1152xf32> to vector<72x128xf32>
    %c18_i32_106 = arith.constant 18 : i32
    %222 = tpu.dynamic_rotate %221 by %c18_i32_106 dim 0 : vector<72x128xf32>, i32 -> vector<72x128xf32>
    %c1_107 = arith.constant 1 : index
    %c0_108 = arith.constant 0 : index
    %c0_109 = arith.constant 0 : index
    %223 = vector.load %arg6[%c1_107, %c0_108, %c0_109] : memref<9x72x1xf32, #tpu.memory_space<vmem>>, vector<1x72x1xf32>
    %224 = vector.shape_cast %223 : vector<1x72x1xf32> to vector<72x1xf32>
    %225 = vector.broadcast %224 : vector<72x1xf32> to vector<72x128xf32>
    %226 = arith.mulf %222, %225 : vector<72x128xf32>
    %227 = arith.addf %220, %226 : vector<72x128xf32>
    %228 = vector.extract_strided_slice %214 {offsets = [0, 256], sizes = [72, 128], strides = [1, 1]} : vector<72x1152xf32> to vector<72x128xf32>
    %c16_i32_110 = arith.constant 16 : i32
    %229 = tpu.dynamic_rotate %228 by %c16_i32_110 dim 0 : vector<72x128xf32>, i32 -> vector<72x128xf32>
    %c2_111 = arith.constant 2 : index
    %c0_112 = arith.constant 0 : index
    %c0_113 = arith.constant 0 : index
    %230 = vector.load %arg6[%c2_111, %c0_112, %c0_113] : memref<9x72x1xf32, #tpu.memory_space<vmem>>, vector<1x72x1xf32>
    %231 = vector.shape_cast %230 : vector<1x72x1xf32> to vector<72x1xf32>
    %232 = vector.broadcast %231 : vector<72x1xf32> to vector<72x128xf32>
    %233 = arith.mulf %229, %232 : vector<72x128xf32>
    %234 = arith.addf %227, %233 : vector<72x128xf32>
    %235 = vector.extract_strided_slice %214 {offsets = [0, 384], sizes = [72, 128], strides = [1, 1]} : vector<72x1152xf32> to vector<72x128xf32>
    %c2_i32_114 = arith.constant 2 : i32
    %236 = tpu.dynamic_rotate %235 by %c2_i32_114 dim 0 : vector<72x128xf32>, i32 -> vector<72x128xf32>
    %c3_115 = arith.constant 3 : index
    %c0_116 = arith.constant 0 : index
    %c0_117 = arith.constant 0 : index
    %237 = vector.load %arg6[%c3_115, %c0_116, %c0_117] : memref<9x72x1xf32, #tpu.memory_space<vmem>>, vector<1x72x1xf32>
    %238 = vector.shape_cast %237 : vector<1x72x1xf32> to vector<72x1xf32>
    %239 = vector.broadcast %238 : vector<72x1xf32> to vector<72x128xf32>
    %240 = arith.mulf %236, %239 : vector<72x128xf32>
    %241 = arith.addf %234, %240 : vector<72x128xf32>
    %242 = vector.extract_strided_slice %214 {offsets = [0, 512], sizes = [72, 128], strides = [1, 1]} : vector<72x1152xf32> to vector<72x128xf32>
    %243 = arith.addf %241, %242 : vector<72x128xf32>
    %244 = vector.extract_strided_slice %214 {offsets = [0, 640], sizes = [72, 128], strides = [1, 1]} : vector<72x1152xf32> to vector<72x128xf32>
    %c70_i32_118 = arith.constant 70 : i32
    %245 = tpu.dynamic_rotate %244 by %c70_i32_118 dim 0 : vector<72x128xf32>, i32 -> vector<72x128xf32>
    %c5_119 = arith.constant 5 : index
    %c0_120 = arith.constant 0 : index
    %c0_121 = arith.constant 0 : index
    %246 = vector.load %arg6[%c5_119, %c0_120, %c0_121] : memref<9x72x1xf32, #tpu.memory_space<vmem>>, vector<1x72x1xf32>
    %247 = vector.shape_cast %246 : vector<1x72x1xf32> to vector<72x1xf32>
    %248 = vector.broadcast %247 : vector<72x1xf32> to vector<72x128xf32>
    %249 = arith.mulf %245, %248 : vector<72x128xf32>
    %250 = arith.addf %243, %249 : vector<72x128xf32>
    %251 = vector.extract_strided_slice %214 {offsets = [0, 768], sizes = [72, 128], strides = [1, 1]} : vector<72x1152xf32> to vector<72x128xf32>
    %c56_i32_122 = arith.constant 56 : i32
    %252 = tpu.dynamic_rotate %251 by %c56_i32_122 dim 0 : vector<72x128xf32>, i32 -> vector<72x128xf32>
    %c6_123 = arith.constant 6 : index
    %c0_124 = arith.constant 0 : index
    %c0_125 = arith.constant 0 : index
    %253 = vector.load %arg6[%c6_123, %c0_124, %c0_125] : memref<9x72x1xf32, #tpu.memory_space<vmem>>, vector<1x72x1xf32>
    %254 = vector.shape_cast %253 : vector<1x72x1xf32> to vector<72x1xf32>
    %255 = vector.broadcast %254 : vector<72x1xf32> to vector<72x128xf32>
    %256 = arith.mulf %252, %255 : vector<72x128xf32>
    %257 = arith.addf %250, %256 : vector<72x128xf32>
    %258 = vector.extract_strided_slice %214 {offsets = [0, 896], sizes = [72, 128], strides = [1, 1]} : vector<72x1152xf32> to vector<72x128xf32>
    %c54_i32_126 = arith.constant 54 : i32
    %259 = tpu.dynamic_rotate %258 by %c54_i32_126 dim 0 : vector<72x128xf32>, i32 -> vector<72x128xf32>
    %c7_127 = arith.constant 7 : index
    %c0_128 = arith.constant 0 : index
    %c0_129 = arith.constant 0 : index
    %260 = vector.load %arg6[%c7_127, %c0_128, %c0_129] : memref<9x72x1xf32, #tpu.memory_space<vmem>>, vector<1x72x1xf32>
    %261 = vector.shape_cast %260 : vector<1x72x1xf32> to vector<72x1xf32>
    %262 = vector.broadcast %261 : vector<72x1xf32> to vector<72x128xf32>
    %263 = arith.mulf %259, %262 : vector<72x128xf32>
    %264 = arith.addf %257, %263 : vector<72x128xf32>
    %265 = vector.extract_strided_slice %214 {offsets = [0, 1024], sizes = [72, 128], strides = [1, 1]} : vector<72x1152xf32> to vector<72x128xf32>
    %c52_i32_130 = arith.constant 52 : i32
    %266 = tpu.dynamic_rotate %265 by %c52_i32_130 dim 0 : vector<72x128xf32>, i32 -> vector<72x128xf32>
    %c8_131 = arith.constant 8 : index
    %c0_132 = arith.constant 0 : index
    %c0_133 = arith.constant 0 : index
    %267 = vector.load %arg6[%c8_131, %c0_132, %c0_133] : memref<9x72x1xf32, #tpu.memory_space<vmem>>, vector<1x72x1xf32>
    %268 = vector.shape_cast %267 : vector<1x72x1xf32> to vector<72x1xf32>
    %269 = vector.broadcast %268 : vector<72x1xf32> to vector<72x128xf32>
    %270 = arith.mulf %266, %269 : vector<72x128xf32>
    %271 = arith.addf %264, %270 : vector<72x128xf32>
    %272 = arith.addf %145, %271 : vector<72x128xf32>
    %273 = vector.broadcast %7 : vector<1x128xf32> to vector<72x128xf32>
    %274 = arith.addf %272, %273 : vector<72x128xf32>
    %cst_134 = arith.constant 0.000000e+00 : f32
    %275 = vector.broadcast %cst_134 : f32 to vector<72x128xf32>
    %276 = arith.maximumf %274, %275 : vector<72x128xf32>
    %277 = arith.truncf %276 : vector<72x128xf32> to vector<72x128xbf16>
    tpu.wait_dma2 semaphore(%arg12 : memref<!tpu.dma_semaphore, #tpu.memory_space<semaphore_mem>>) src(%arg9 : memref<36x128x256xbf16, #tpu.memory_space<any>>) dst(%arg11 : memref<36x128x256xbf16, #tpu.memory_space<vmem>>)
    %c0_135 = arith.constant 0 : index
    %c0_136 = arith.constant 0 : index
    %278 = vector.load %arg8[%c0_135, %c0_136] : memref<2x256xf32, #tpu.memory_space<vmem>>, vector<2x256xf32>
    %279 = vector.extract_strided_slice %277 {offsets = [0, 0], sizes = [2, 128], strides = [1, 1]} : vector<72x128xbf16> to vector<2x128xbf16>
    %c0_137 = arith.constant 0 : index
    %c0_138 = arith.constant 0 : index
    %c0_139 = arith.constant 0 : index
    %280 = vector.load %arg11[%c0_137, %c0_138, %c0_139] : memref<36x128x256xbf16, #tpu.memory_space<vmem>>, vector<1x128x256xbf16>
    %281 = vector.shape_cast %280 : vector<1x128x256xbf16> to vector<128x256xbf16>
    %cst_140 = arith.constant dense<0.000000e+00> : vector<2x256xf32>
    %282 = tpu.matmul %279, %281, %cst_140 {dimension_numbers = #tpu.dot_dimension_numbers<[1], [0], [0], [1], [0, 0, 1, 1], [], []>} : vector<2x128xbf16>, vector<128x256xbf16>, vector<2x256xf32> -> vector<2x256xf32>
    %283 = arith.addf %278, %282 : vector<2x256xf32>
    %284 = vector.extract_strided_slice %277 {offsets = [2, 0], sizes = [2, 128], strides = [1, 1]} : vector<72x128xbf16> to vector<2x128xbf16>
    %c1_141 = arith.constant 1 : index
    %c0_142 = arith.constant 0 : index
    %c0_143 = arith.constant 0 : index
    %285 = vector.load %arg11[%c1_141, %c0_142, %c0_143] : memref<36x128x256xbf16, #tpu.memory_space<vmem>>, vector<1x128x256xbf16>
    %286 = vector.shape_cast %285 : vector<1x128x256xbf16> to vector<128x256xbf16>
    %cst_144 = arith.constant dense<0.000000e+00> : vector<2x256xf32>
    %287 = tpu.matmul %284, %286, %cst_144 {dimension_numbers = #tpu.dot_dimension_numbers<[1], [0], [0], [1], [0, 0, 1, 1], [], []>} : vector<2x128xbf16>, vector<128x256xbf16>, vector<2x256xf32> -> vector<2x256xf32>
    %288 = arith.addf %283, %287 : vector<2x256xf32>
    %289 = vector.extract_strided_slice %277 {offsets = [4, 0], sizes = [2, 128], strides = [1, 1]} : vector<72x128xbf16> to vector<2x128xbf16>
    %c2_145 = arith.constant 2 : index
    %c0_146 = arith.constant 0 : index
    %c0_147 = arith.constant 0 : index
    %290 = vector.load %arg11[%c2_145, %c0_146, %c0_147] : memref<36x128x256xbf16, #tpu.memory_space<vmem>>, vector<1x128x256xbf16>
    %291 = vector.shape_cast %290 : vector<1x128x256xbf16> to vector<128x256xbf16>
    %cst_148 = arith.constant dense<0.000000e+00> : vector<2x256xf32>
    %292 = tpu.matmul %289, %291, %cst_148 {dimension_numbers = #tpu.dot_dimension_numbers<[1], [0], [0], [1], [0, 0, 1, 1], [], []>} : vector<2x128xbf16>, vector<128x256xbf16>, vector<2x256xf32> -> vector<2x256xf32>
    %293 = arith.addf %288, %292 : vector<2x256xf32>
    %294 = vector.extract_strided_slice %277 {offsets = [6, 0], sizes = [2, 128], strides = [1, 1]} : vector<72x128xbf16> to vector<2x128xbf16>
    %c3_149 = arith.constant 3 : index
    %c0_150 = arith.constant 0 : index
    %c0_151 = arith.constant 0 : index
    %295 = vector.load %arg11[%c3_149, %c0_150, %c0_151] : memref<36x128x256xbf16, #tpu.memory_space<vmem>>, vector<1x128x256xbf16>
    %296 = vector.shape_cast %295 : vector<1x128x256xbf16> to vector<128x256xbf16>
    %cst_152 = arith.constant dense<0.000000e+00> : vector<2x256xf32>
    %297 = tpu.matmul %294, %296, %cst_152 {dimension_numbers = #tpu.dot_dimension_numbers<[1], [0], [0], [1], [0, 0, 1, 1], [], []>} : vector<2x128xbf16>, vector<128x256xbf16>, vector<2x256xf32> -> vector<2x256xf32>
    %298 = arith.addf %293, %297 : vector<2x256xf32>
    %299 = vector.extract_strided_slice %277 {offsets = [8, 0], sizes = [2, 128], strides = [1, 1]} : vector<72x128xbf16> to vector<2x128xbf16>
    %c4 = arith.constant 4 : index
    %c0_153 = arith.constant 0 : index
    %c0_154 = arith.constant 0 : index
    %300 = vector.load %arg11[%c4, %c0_153, %c0_154] : memref<36x128x256xbf16, #tpu.memory_space<vmem>>, vector<1x128x256xbf16>
    %301 = vector.shape_cast %300 : vector<1x128x256xbf16> to vector<128x256xbf16>
    %cst_155 = arith.constant dense<0.000000e+00> : vector<2x256xf32>
    %302 = tpu.matmul %299, %301, %cst_155 {dimension_numbers = #tpu.dot_dimension_numbers<[1], [0], [0], [1], [0, 0, 1, 1], [], []>} : vector<2x128xbf16>, vector<128x256xbf16>, vector<2x256xf32> -> vector<2x256xf32>
    %303 = arith.addf %298, %302 : vector<2x256xf32>
    %304 = vector.extract_strided_slice %277 {offsets = [10, 0], sizes = [2, 128], strides = [1, 1]} : vector<72x128xbf16> to vector<2x128xbf16>
    %c5_156 = arith.constant 5 : index
    %c0_157 = arith.constant 0 : index
    %c0_158 = arith.constant 0 : index
    %305 = vector.load %arg11[%c5_156, %c0_157, %c0_158] : memref<36x128x256xbf16, #tpu.memory_space<vmem>>, vector<1x128x256xbf16>
    %306 = vector.shape_cast %305 : vector<1x128x256xbf16> to vector<128x256xbf16>
    %cst_159 = arith.constant dense<0.000000e+00> : vector<2x256xf32>
    %307 = tpu.matmul %304, %306, %cst_159 {dimension_numbers = #tpu.dot_dimension_numbers<[1], [0], [0], [1], [0, 0, 1, 1], [], []>} : vector<2x128xbf16>, vector<128x256xbf16>, vector<2x256xf32> -> vector<2x256xf32>
    %308 = arith.addf %303, %307 : vector<2x256xf32>
    %309 = vector.extract_strided_slice %277 {offsets = [12, 0], sizes = [2, 128], strides = [1, 1]} : vector<72x128xbf16> to vector<2x128xbf16>
    %c6_160 = arith.constant 6 : index
    %c0_161 = arith.constant 0 : index
    %c0_162 = arith.constant 0 : index
    %310 = vector.load %arg11[%c6_160, %c0_161, %c0_162] : memref<36x128x256xbf16, #tpu.memory_space<vmem>>, vector<1x128x256xbf16>
    %311 = vector.shape_cast %310 : vector<1x128x256xbf16> to vector<128x256xbf16>
    %cst_163 = arith.constant dense<0.000000e+00> : vector<2x256xf32>
    %312 = tpu.matmul %309, %311, %cst_163 {dimension_numbers = #tpu.dot_dimension_numbers<[1], [0], [0], [1], [0, 0, 1, 1], [], []>} : vector<2x128xbf16>, vector<128x256xbf16>, vector<2x256xf32> -> vector<2x256xf32>
    %313 = arith.addf %308, %312 : vector<2x256xf32>
    %314 = vector.extract_strided_slice %277 {offsets = [14, 0], sizes = [2, 128], strides = [1, 1]} : vector<72x128xbf16> to vector<2x128xbf16>
    %c7_164 = arith.constant 7 : index
    %c0_165 = arith.constant 0 : index
    %c0_166 = arith.constant 0 : index
    %315 = vector.load %arg11[%c7_164, %c0_165, %c0_166] : memref<36x128x256xbf16, #tpu.memory_space<vmem>>, vector<1x128x256xbf16>
    %316 = vector.shape_cast %315 : vector<1x128x256xbf16> to vector<128x256xbf16>
    %cst_167 = arith.constant dense<0.000000e+00> : vector<2x256xf32>
    %317 = tpu.matmul %314, %316, %cst_167 {dimension_numbers = #tpu.dot_dimension_numbers<[1], [0], [0], [1], [0, 0, 1, 1], [], []>} : vector<2x128xbf16>, vector<128x256xbf16>, vector<2x256xf32> -> vector<2x256xf32>
    %318 = arith.addf %313, %317 : vector<2x256xf32>
    %319 = vector.extract_strided_slice %277 {offsets = [16, 0], sizes = [2, 128], strides = [1, 1]} : vector<72x128xbf16> to vector<2x128xbf16>
    %c8_168 = arith.constant 8 : index
    %c0_169 = arith.constant 0 : index
    %c0_170 = arith.constant 0 : index
    %320 = vector.load %arg11[%c8_168, %c0_169, %c0_170] : memref<36x128x256xbf16, #tpu.memory_space<vmem>>, vector<1x128x256xbf16>
    %321 = vector.shape_cast %320 : vector<1x128x256xbf16> to vector<128x256xbf16>
    %cst_171 = arith.constant dense<0.000000e+00> : vector<2x256xf32>
    %322 = tpu.matmul %319, %321, %cst_171 {dimension_numbers = #tpu.dot_dimension_numbers<[1], [0], [0], [1], [0, 0, 1, 1], [], []>} : vector<2x128xbf16>, vector<128x256xbf16>, vector<2x256xf32> -> vector<2x256xf32>
    %323 = arith.addf %318, %322 : vector<2x256xf32>
    %324 = vector.extract_strided_slice %277 {offsets = [18, 0], sizes = [2, 128], strides = [1, 1]} : vector<72x128xbf16> to vector<2x128xbf16>
    %c9 = arith.constant 9 : index
    %c0_172 = arith.constant 0 : index
    %c0_173 = arith.constant 0 : index
    %325 = vector.load %arg11[%c9, %c0_172, %c0_173] : memref<36x128x256xbf16, #tpu.memory_space<vmem>>, vector<1x128x256xbf16>
    %326 = vector.shape_cast %325 : vector<1x128x256xbf16> to vector<128x256xbf16>
    %cst_174 = arith.constant dense<0.000000e+00> : vector<2x256xf32>
    %327 = tpu.matmul %324, %326, %cst_174 {dimension_numbers = #tpu.dot_dimension_numbers<[1], [0], [0], [1], [0, 0, 1, 1], [], []>} : vector<2x128xbf16>, vector<128x256xbf16>, vector<2x256xf32> -> vector<2x256xf32>
    %328 = arith.addf %323, %327 : vector<2x256xf32>
    %329 = vector.extract_strided_slice %277 {offsets = [20, 0], sizes = [2, 128], strides = [1, 1]} : vector<72x128xbf16> to vector<2x128xbf16>
    %c10 = arith.constant 10 : index
    %c0_175 = arith.constant 0 : index
    %c0_176 = arith.constant 0 : index
    %330 = vector.load %arg11[%c10, %c0_175, %c0_176] : memref<36x128x256xbf16, #tpu.memory_space<vmem>>, vector<1x128x256xbf16>
    %331 = vector.shape_cast %330 : vector<1x128x256xbf16> to vector<128x256xbf16>
    %cst_177 = arith.constant dense<0.000000e+00> : vector<2x256xf32>
    %332 = tpu.matmul %329, %331, %cst_177 {dimension_numbers = #tpu.dot_dimension_numbers<[1], [0], [0], [1], [0, 0, 1, 1], [], []>} : vector<2x128xbf16>, vector<128x256xbf16>, vector<2x256xf32> -> vector<2x256xf32>
    %333 = arith.addf %328, %332 : vector<2x256xf32>
    %334 = vector.extract_strided_slice %277 {offsets = [22, 0], sizes = [2, 128], strides = [1, 1]} : vector<72x128xbf16> to vector<2x128xbf16>
    %c11 = arith.constant 11 : index
    %c0_178 = arith.constant 0 : index
    %c0_179 = arith.constant 0 : index
    %335 = vector.load %arg11[%c11, %c0_178, %c0_179] : memref<36x128x256xbf16, #tpu.memory_space<vmem>>, vector<1x128x256xbf16>
    %336 = vector.shape_cast %335 : vector<1x128x256xbf16> to vector<128x256xbf16>
    %cst_180 = arith.constant dense<0.000000e+00> : vector<2x256xf32>
    %337 = tpu.matmul %334, %336, %cst_180 {dimension_numbers = #tpu.dot_dimension_numbers<[1], [0], [0], [1], [0, 0, 1, 1], [], []>} : vector<2x128xbf16>, vector<128x256xbf16>, vector<2x256xf32> -> vector<2x256xf32>
    %338 = arith.addf %333, %337 : vector<2x256xf32>
    %339 = vector.extract_strided_slice %277 {offsets = [24, 0], sizes = [2, 128], strides = [1, 1]} : vector<72x128xbf16> to vector<2x128xbf16>
    %c12 = arith.constant 12 : index
    %c0_181 = arith.constant 0 : index
    %c0_182 = arith.constant 0 : index
    %340 = vector.load %arg11[%c12, %c0_181, %c0_182] : memref<36x128x256xbf16, #tpu.memory_space<vmem>>, vector<1x128x256xbf16>
    %341 = vector.shape_cast %340 : vector<1x128x256xbf16> to vector<128x256xbf16>
    %cst_183 = arith.constant dense<0.000000e+00> : vector<2x256xf32>
    %342 = tpu.matmul %339, %341, %cst_183 {dimension_numbers = #tpu.dot_dimension_numbers<[1], [0], [0], [1], [0, 0, 1, 1], [], []>} : vector<2x128xbf16>, vector<128x256xbf16>, vector<2x256xf32> -> vector<2x256xf32>
    %343 = arith.addf %338, %342 : vector<2x256xf32>
    %344 = vector.extract_strided_slice %277 {offsets = [26, 0], sizes = [2, 128], strides = [1, 1]} : vector<72x128xbf16> to vector<2x128xbf16>
    %c13 = arith.constant 13 : index
    %c0_184 = arith.constant 0 : index
    %c0_185 = arith.constant 0 : index
    %345 = vector.load %arg11[%c13, %c0_184, %c0_185] : memref<36x128x256xbf16, #tpu.memory_space<vmem>>, vector<1x128x256xbf16>
    %346 = vector.shape_cast %345 : vector<1x128x256xbf16> to vector<128x256xbf16>
    %cst_186 = arith.constant dense<0.000000e+00> : vector<2x256xf32>
    %347 = tpu.matmul %344, %346, %cst_186 {dimension_numbers = #tpu.dot_dimension_numbers<[1], [0], [0], [1], [0, 0, 1, 1], [], []>} : vector<2x128xbf16>, vector<128x256xbf16>, vector<2x256xf32> -> vector<2x256xf32>
    %348 = arith.addf %343, %347 : vector<2x256xf32>
    %349 = vector.extract_strided_slice %277 {offsets = [28, 0], sizes = [2, 128], strides = [1, 1]} : vector<72x128xbf16> to vector<2x128xbf16>
    %c14 = arith.constant 14 : index
    %c0_187 = arith.constant 0 : index
    %c0_188 = arith.constant 0 : index
    %350 = vector.load %arg11[%c14, %c0_187, %c0_188] : memref<36x128x256xbf16, #tpu.memory_space<vmem>>, vector<1x128x256xbf16>
    %351 = vector.shape_cast %350 : vector<1x128x256xbf16> to vector<128x256xbf16>
    %cst_189 = arith.constant dense<0.000000e+00> : vector<2x256xf32>
    %352 = tpu.matmul %349, %351, %cst_189 {dimension_numbers = #tpu.dot_dimension_numbers<[1], [0], [0], [1], [0, 0, 1, 1], [], []>} : vector<2x128xbf16>, vector<128x256xbf16>, vector<2x256xf32> -> vector<2x256xf32>
    %353 = arith.addf %348, %352 : vector<2x256xf32>
    %354 = vector.extract_strided_slice %277 {offsets = [30, 0], sizes = [2, 128], strides = [1, 1]} : vector<72x128xbf16> to vector<2x128xbf16>
    %c15 = arith.constant 15 : index
    %c0_190 = arith.constant 0 : index
    %c0_191 = arith.constant 0 : index
    %355 = vector.load %arg11[%c15, %c0_190, %c0_191] : memref<36x128x256xbf16, #tpu.memory_space<vmem>>, vector<1x128x256xbf16>
    %356 = vector.shape_cast %355 : vector<1x128x256xbf16> to vector<128x256xbf16>
    %cst_192 = arith.constant dense<0.000000e+00> : vector<2x256xf32>
    %357 = tpu.matmul %354, %356, %cst_192 {dimension_numbers = #tpu.dot_dimension_numbers<[1], [0], [0], [1], [0, 0, 1, 1], [], []>} : vector<2x128xbf16>, vector<128x256xbf16>, vector<2x256xf32> -> vector<2x256xf32>
    %358 = arith.addf %353, %357 : vector<2x256xf32>
    %359 = vector.extract_strided_slice %277 {offsets = [32, 0], sizes = [2, 128], strides = [1, 1]} : vector<72x128xbf16> to vector<2x128xbf16>
    %c16 = arith.constant 16 : index
    %c0_193 = arith.constant 0 : index
    %c0_194 = arith.constant 0 : index
    %360 = vector.load %arg11[%c16, %c0_193, %c0_194] : memref<36x128x256xbf16, #tpu.memory_space<vmem>>, vector<1x128x256xbf16>
    %361 = vector.shape_cast %360 : vector<1x128x256xbf16> to vector<128x256xbf16>
    %cst_195 = arith.constant dense<0.000000e+00> : vector<2x256xf32>
    %362 = tpu.matmul %359, %361, %cst_195 {dimension_numbers = #tpu.dot_dimension_numbers<[1], [0], [0], [1], [0, 0, 1, 1], [], []>} : vector<2x128xbf16>, vector<128x256xbf16>, vector<2x256xf32> -> vector<2x256xf32>
    %363 = arith.addf %358, %362 : vector<2x256xf32>
    %364 = vector.extract_strided_slice %277 {offsets = [34, 0], sizes = [2, 128], strides = [1, 1]} : vector<72x128xbf16> to vector<2x128xbf16>
    %c17 = arith.constant 17 : index
    %c0_196 = arith.constant 0 : index
    %c0_197 = arith.constant 0 : index
    %365 = vector.load %arg11[%c17, %c0_196, %c0_197] : memref<36x128x256xbf16, #tpu.memory_space<vmem>>, vector<1x128x256xbf16>
    %366 = vector.shape_cast %365 : vector<1x128x256xbf16> to vector<128x256xbf16>
    %cst_198 = arith.constant dense<0.000000e+00> : vector<2x256xf32>
    %367 = tpu.matmul %364, %366, %cst_198 {dimension_numbers = #tpu.dot_dimension_numbers<[1], [0], [0], [1], [0, 0, 1, 1], [], []>} : vector<2x128xbf16>, vector<128x256xbf16>, vector<2x256xf32> -> vector<2x256xf32>
    %368 = arith.addf %363, %367 : vector<2x256xf32>
    %369 = vector.extract_strided_slice %277 {offsets = [36, 0], sizes = [2, 128], strides = [1, 1]} : vector<72x128xbf16> to vector<2x128xbf16>
    %c18 = arith.constant 18 : index
    %c0_199 = arith.constant 0 : index
    %c0_200 = arith.constant 0 : index
    %370 = vector.load %arg11[%c18, %c0_199, %c0_200] : memref<36x128x256xbf16, #tpu.memory_space<vmem>>, vector<1x128x256xbf16>
    %371 = vector.shape_cast %370 : vector<1x128x256xbf16> to vector<128x256xbf16>
    %cst_201 = arith.constant dense<0.000000e+00> : vector<2x256xf32>
    %372 = tpu.matmul %369, %371, %cst_201 {dimension_numbers = #tpu.dot_dimension_numbers<[1], [0], [0], [1], [0, 0, 1, 1], [], []>} : vector<2x128xbf16>, vector<128x256xbf16>, vector<2x256xf32> -> vector<2x256xf32>
    %373 = arith.addf %368, %372 : vector<2x256xf32>
    %374 = vector.extract_strided_slice %277 {offsets = [38, 0], sizes = [2, 128], strides = [1, 1]} : vector<72x128xbf16> to vector<2x128xbf16>
    %c19 = arith.constant 19 : index
    %c0_202 = arith.constant 0 : index
    %c0_203 = arith.constant 0 : index
    %375 = vector.load %arg11[%c19, %c0_202, %c0_203] : memref<36x128x256xbf16, #tpu.memory_space<vmem>>, vector<1x128x256xbf16>
    %376 = vector.shape_cast %375 : vector<1x128x256xbf16> to vector<128x256xbf16>
    %cst_204 = arith.constant dense<0.000000e+00> : vector<2x256xf32>
    %377 = tpu.matmul %374, %376, %cst_204 {dimension_numbers = #tpu.dot_dimension_numbers<[1], [0], [0], [1], [0, 0, 1, 1], [], []>} : vector<2x128xbf16>, vector<128x256xbf16>, vector<2x256xf32> -> vector<2x256xf32>
    %378 = arith.addf %373, %377 : vector<2x256xf32>
    %379 = vector.extract_strided_slice %277 {offsets = [40, 0], sizes = [2, 128], strides = [1, 1]} : vector<72x128xbf16> to vector<2x128xbf16>
    %c20 = arith.constant 20 : index
    %c0_205 = arith.constant 0 : index
    %c0_206 = arith.constant 0 : index
    %380 = vector.load %arg11[%c20, %c0_205, %c0_206] : memref<36x128x256xbf16, #tpu.memory_space<vmem>>, vector<1x128x256xbf16>
    %381 = vector.shape_cast %380 : vector<1x128x256xbf16> to vector<128x256xbf16>
    %cst_207 = arith.constant dense<0.000000e+00> : vector<2x256xf32>
    %382 = tpu.matmul %379, %381, %cst_207 {dimension_numbers = #tpu.dot_dimension_numbers<[1], [0], [0], [1], [0, 0, 1, 1], [], []>} : vector<2x128xbf16>, vector<128x256xbf16>, vector<2x256xf32> -> vector<2x256xf32>
    %383 = arith.addf %378, %382 : vector<2x256xf32>
    %384 = vector.extract_strided_slice %277 {offsets = [42, 0], sizes = [2, 128], strides = [1, 1]} : vector<72x128xbf16> to vector<2x128xbf16>
    %c21 = arith.constant 21 : index
    %c0_208 = arith.constant 0 : index
    %c0_209 = arith.constant 0 : index
    %385 = vector.load %arg11[%c21, %c0_208, %c0_209] : memref<36x128x256xbf16, #tpu.memory_space<vmem>>, vector<1x128x256xbf16>
    %386 = vector.shape_cast %385 : vector<1x128x256xbf16> to vector<128x256xbf16>
    %cst_210 = arith.constant dense<0.000000e+00> : vector<2x256xf32>
    %387 = tpu.matmul %384, %386, %cst_210 {dimension_numbers = #tpu.dot_dimension_numbers<[1], [0], [0], [1], [0, 0, 1, 1], [], []>} : vector<2x128xbf16>, vector<128x256xbf16>, vector<2x256xf32> -> vector<2x256xf32>
    %388 = arith.addf %383, %387 : vector<2x256xf32>
    %389 = vector.extract_strided_slice %277 {offsets = [44, 0], sizes = [2, 128], strides = [1, 1]} : vector<72x128xbf16> to vector<2x128xbf16>
    %c22 = arith.constant 22 : index
    %c0_211 = arith.constant 0 : index
    %c0_212 = arith.constant 0 : index
    %390 = vector.load %arg11[%c22, %c0_211, %c0_212] : memref<36x128x256xbf16, #tpu.memory_space<vmem>>, vector<1x128x256xbf16>
    %391 = vector.shape_cast %390 : vector<1x128x256xbf16> to vector<128x256xbf16>
    %cst_213 = arith.constant dense<0.000000e+00> : vector<2x256xf32>
    %392 = tpu.matmul %389, %391, %cst_213 {dimension_numbers = #tpu.dot_dimension_numbers<[1], [0], [0], [1], [0, 0, 1, 1], [], []>} : vector<2x128xbf16>, vector<128x256xbf16>, vector<2x256xf32> -> vector<2x256xf32>
    %393 = arith.addf %388, %392 : vector<2x256xf32>
    %394 = vector.extract_strided_slice %277 {offsets = [46, 0], sizes = [2, 128], strides = [1, 1]} : vector<72x128xbf16> to vector<2x128xbf16>
    %c23 = arith.constant 23 : index
    %c0_214 = arith.constant 0 : index
    %c0_215 = arith.constant 0 : index
    %395 = vector.load %arg11[%c23, %c0_214, %c0_215] : memref<36x128x256xbf16, #tpu.memory_space<vmem>>, vector<1x128x256xbf16>
    %396 = vector.shape_cast %395 : vector<1x128x256xbf16> to vector<128x256xbf16>
    %cst_216 = arith.constant dense<0.000000e+00> : vector<2x256xf32>
    %397 = tpu.matmul %394, %396, %cst_216 {dimension_numbers = #tpu.dot_dimension_numbers<[1], [0], [0], [1], [0, 0, 1, 1], [], []>} : vector<2x128xbf16>, vector<128x256xbf16>, vector<2x256xf32> -> vector<2x256xf32>
    %398 = arith.addf %393, %397 : vector<2x256xf32>
    %399 = vector.extract_strided_slice %277 {offsets = [48, 0], sizes = [2, 128], strides = [1, 1]} : vector<72x128xbf16> to vector<2x128xbf16>
    %c24 = arith.constant 24 : index
    %c0_217 = arith.constant 0 : index
    %c0_218 = arith.constant 0 : index
    %400 = vector.load %arg11[%c24, %c0_217, %c0_218] : memref<36x128x256xbf16, #tpu.memory_space<vmem>>, vector<1x128x256xbf16>
    %401 = vector.shape_cast %400 : vector<1x128x256xbf16> to vector<128x256xbf16>
    %cst_219 = arith.constant dense<0.000000e+00> : vector<2x256xf32>
    %402 = tpu.matmul %399, %401, %cst_219 {dimension_numbers = #tpu.dot_dimension_numbers<[1], [0], [0], [1], [0, 0, 1, 1], [], []>} : vector<2x128xbf16>, vector<128x256xbf16>, vector<2x256xf32> -> vector<2x256xf32>
    %403 = arith.addf %398, %402 : vector<2x256xf32>
    %404 = vector.extract_strided_slice %277 {offsets = [50, 0], sizes = [2, 128], strides = [1, 1]} : vector<72x128xbf16> to vector<2x128xbf16>
    %c25 = arith.constant 25 : index
    %c0_220 = arith.constant 0 : index
    %c0_221 = arith.constant 0 : index
    %405 = vector.load %arg11[%c25, %c0_220, %c0_221] : memref<36x128x256xbf16, #tpu.memory_space<vmem>>, vector<1x128x256xbf16>
    %406 = vector.shape_cast %405 : vector<1x128x256xbf16> to vector<128x256xbf16>
    %cst_222 = arith.constant dense<0.000000e+00> : vector<2x256xf32>
    %407 = tpu.matmul %404, %406, %cst_222 {dimension_numbers = #tpu.dot_dimension_numbers<[1], [0], [0], [1], [0, 0, 1, 1], [], []>} : vector<2x128xbf16>, vector<128x256xbf16>, vector<2x256xf32> -> vector<2x256xf32>
    %408 = arith.addf %403, %407 : vector<2x256xf32>
    %409 = vector.extract_strided_slice %277 {offsets = [52, 0], sizes = [2, 128], strides = [1, 1]} : vector<72x128xbf16> to vector<2x128xbf16>
    %c26 = arith.constant 26 : index
    %c0_223 = arith.constant 0 : index
    %c0_224 = arith.constant 0 : index
    %410 = vector.load %arg11[%c26, %c0_223, %c0_224] : memref<36x128x256xbf16, #tpu.memory_space<vmem>>, vector<1x128x256xbf16>
    %411 = vector.shape_cast %410 : vector<1x128x256xbf16> to vector<128x256xbf16>
    %cst_225 = arith.constant dense<0.000000e+00> : vector<2x256xf32>
    %412 = tpu.matmul %409, %411, %cst_225 {dimension_numbers = #tpu.dot_dimension_numbers<[1], [0], [0], [1], [0, 0, 1, 1], [], []>} : vector<2x128xbf16>, vector<128x256xbf16>, vector<2x256xf32> -> vector<2x256xf32>
    %413 = arith.addf %408, %412 : vector<2x256xf32>
    %414 = vector.extract_strided_slice %277 {offsets = [54, 0], sizes = [2, 128], strides = [1, 1]} : vector<72x128xbf16> to vector<2x128xbf16>
    %c27 = arith.constant 27 : index
    %c0_226 = arith.constant 0 : index
    %c0_227 = arith.constant 0 : index
    %415 = vector.load %arg11[%c27, %c0_226, %c0_227] : memref<36x128x256xbf16, #tpu.memory_space<vmem>>, vector<1x128x256xbf16>
    %416 = vector.shape_cast %415 : vector<1x128x256xbf16> to vector<128x256xbf16>
    %cst_228 = arith.constant dense<0.000000e+00> : vector<2x256xf32>
    %417 = tpu.matmul %414, %416, %cst_228 {dimension_numbers = #tpu.dot_dimension_numbers<[1], [0], [0], [1], [0, 0, 1, 1], [], []>} : vector<2x128xbf16>, vector<128x256xbf16>, vector<2x256xf32> -> vector<2x256xf32>
    %418 = arith.addf %413, %417 : vector<2x256xf32>
    %419 = vector.extract_strided_slice %277 {offsets = [56, 0], sizes = [2, 128], strides = [1, 1]} : vector<72x128xbf16> to vector<2x128xbf16>
    %c28 = arith.constant 28 : index
    %c0_229 = arith.constant 0 : index
    %c0_230 = arith.constant 0 : index
    %420 = vector.load %arg11[%c28, %c0_229, %c0_230] : memref<36x128x256xbf16, #tpu.memory_space<vmem>>, vector<1x128x256xbf16>
    %421 = vector.shape_cast %420 : vector<1x128x256xbf16> to vector<128x256xbf16>
    %cst_231 = arith.constant dense<0.000000e+00> : vector<2x256xf32>
    %422 = tpu.matmul %419, %421, %cst_231 {dimension_numbers = #tpu.dot_dimension_numbers<[1], [0], [0], [1], [0, 0, 1, 1], [], []>} : vector<2x128xbf16>, vector<128x256xbf16>, vector<2x256xf32> -> vector<2x256xf32>
    %423 = arith.addf %418, %422 : vector<2x256xf32>
    %424 = vector.extract_strided_slice %277 {offsets = [58, 0], sizes = [2, 128], strides = [1, 1]} : vector<72x128xbf16> to vector<2x128xbf16>
    %c29 = arith.constant 29 : index
    %c0_232 = arith.constant 0 : index
    %c0_233 = arith.constant 0 : index
    %425 = vector.load %arg11[%c29, %c0_232, %c0_233] : memref<36x128x256xbf16, #tpu.memory_space<vmem>>, vector<1x128x256xbf16>
    %426 = vector.shape_cast %425 : vector<1x128x256xbf16> to vector<128x256xbf16>
    %cst_234 = arith.constant dense<0.000000e+00> : vector<2x256xf32>
    %427 = tpu.matmul %424, %426, %cst_234 {dimension_numbers = #tpu.dot_dimension_numbers<[1], [0], [0], [1], [0, 0, 1, 1], [], []>} : vector<2x128xbf16>, vector<128x256xbf16>, vector<2x256xf32> -> vector<2x256xf32>
    %428 = arith.addf %423, %427 : vector<2x256xf32>
    %429 = vector.extract_strided_slice %277 {offsets = [60, 0], sizes = [2, 128], strides = [1, 1]} : vector<72x128xbf16> to vector<2x128xbf16>
    %c30 = arith.constant 30 : index
    %c0_235 = arith.constant 0 : index
    %c0_236 = arith.constant 0 : index
    %430 = vector.load %arg11[%c30, %c0_235, %c0_236] : memref<36x128x256xbf16, #tpu.memory_space<vmem>>, vector<1x128x256xbf16>
    %431 = vector.shape_cast %430 : vector<1x128x256xbf16> to vector<128x256xbf16>
    %cst_237 = arith.constant dense<0.000000e+00> : vector<2x256xf32>
    %432 = tpu.matmul %429, %431, %cst_237 {dimension_numbers = #tpu.dot_dimension_numbers<[1], [0], [0], [1], [0, 0, 1, 1], [], []>} : vector<2x128xbf16>, vector<128x256xbf16>, vector<2x256xf32> -> vector<2x256xf32>
    %433 = arith.addf %428, %432 : vector<2x256xf32>
    %434 = vector.extract_strided_slice %277 {offsets = [62, 0], sizes = [2, 128], strides = [1, 1]} : vector<72x128xbf16> to vector<2x128xbf16>
    %c31 = arith.constant 31 : index
    %c0_238 = arith.constant 0 : index
    %c0_239 = arith.constant 0 : index
    %435 = vector.load %arg11[%c31, %c0_238, %c0_239] : memref<36x128x256xbf16, #tpu.memory_space<vmem>>, vector<1x128x256xbf16>
    %436 = vector.shape_cast %435 : vector<1x128x256xbf16> to vector<128x256xbf16>
    %cst_240 = arith.constant dense<0.000000e+00> : vector<2x256xf32>
    %437 = tpu.matmul %434, %436, %cst_240 {dimension_numbers = #tpu.dot_dimension_numbers<[1], [0], [0], [1], [0, 0, 1, 1], [], []>} : vector<2x128xbf16>, vector<128x256xbf16>, vector<2x256xf32> -> vector<2x256xf32>
    %438 = arith.addf %433, %437 : vector<2x256xf32>
    %439 = vector.extract_strided_slice %277 {offsets = [64, 0], sizes = [2, 128], strides = [1, 1]} : vector<72x128xbf16> to vector<2x128xbf16>
    %c32 = arith.constant 32 : index
    %c0_241 = arith.constant 0 : index
    %c0_242 = arith.constant 0 : index
    %440 = vector.load %arg11[%c32, %c0_241, %c0_242] : memref<36x128x256xbf16, #tpu.memory_space<vmem>>, vector<1x128x256xbf16>
    %441 = vector.shape_cast %440 : vector<1x128x256xbf16> to vector<128x256xbf16>
    %cst_243 = arith.constant dense<0.000000e+00> : vector<2x256xf32>
    %442 = tpu.matmul %439, %441, %cst_243 {dimension_numbers = #tpu.dot_dimension_numbers<[1], [0], [0], [1], [0, 0, 1, 1], [], []>} : vector<2x128xbf16>, vector<128x256xbf16>, vector<2x256xf32> -> vector<2x256xf32>
    %443 = arith.addf %438, %442 : vector<2x256xf32>
    %444 = vector.extract_strided_slice %277 {offsets = [66, 0], sizes = [2, 128], strides = [1, 1]} : vector<72x128xbf16> to vector<2x128xbf16>
    %c33 = arith.constant 33 : index
    %c0_244 = arith.constant 0 : index
    %c0_245 = arith.constant 0 : index
    %445 = vector.load %arg11[%c33, %c0_244, %c0_245] : memref<36x128x256xbf16, #tpu.memory_space<vmem>>, vector<1x128x256xbf16>
    %446 = vector.shape_cast %445 : vector<1x128x256xbf16> to vector<128x256xbf16>
    %cst_246 = arith.constant dense<0.000000e+00> : vector<2x256xf32>
    %447 = tpu.matmul %444, %446, %cst_246 {dimension_numbers = #tpu.dot_dimension_numbers<[1], [0], [0], [1], [0, 0, 1, 1], [], []>} : vector<2x128xbf16>, vector<128x256xbf16>, vector<2x256xf32> -> vector<2x256xf32>
    %448 = arith.addf %443, %447 : vector<2x256xf32>
    %449 = vector.extract_strided_slice %277 {offsets = [68, 0], sizes = [2, 128], strides = [1, 1]} : vector<72x128xbf16> to vector<2x128xbf16>
    %c34 = arith.constant 34 : index
    %c0_247 = arith.constant 0 : index
    %c0_248 = arith.constant 0 : index
    %450 = vector.load %arg11[%c34, %c0_247, %c0_248] : memref<36x128x256xbf16, #tpu.memory_space<vmem>>, vector<1x128x256xbf16>
    %451 = vector.shape_cast %450 : vector<1x128x256xbf16> to vector<128x256xbf16>
    %cst_249 = arith.constant dense<0.000000e+00> : vector<2x256xf32>
    %452 = tpu.matmul %449, %451, %cst_249 {dimension_numbers = #tpu.dot_dimension_numbers<[1], [0], [0], [1], [0, 0, 1, 1], [], []>} : vector<2x128xbf16>, vector<128x256xbf16>, vector<2x256xf32> -> vector<2x256xf32>
    %453 = arith.addf %448, %452 : vector<2x256xf32>
    %454 = vector.extract_strided_slice %277 {offsets = [70, 0], sizes = [2, 128], strides = [1, 1]} : vector<72x128xbf16> to vector<2x128xbf16>
    %c35 = arith.constant 35 : index
    %c0_250 = arith.constant 0 : index
    %c0_251 = arith.constant 0 : index
    %455 = vector.load %arg11[%c35, %c0_250, %c0_251] : memref<36x128x256xbf16, #tpu.memory_space<vmem>>, vector<1x128x256xbf16>
    %456 = vector.shape_cast %455 : vector<1x128x256xbf16> to vector<128x256xbf16>
    %cst_252 = arith.constant dense<0.000000e+00> : vector<2x256xf32>
    %457 = tpu.matmul %454, %456, %cst_252 {dimension_numbers = #tpu.dot_dimension_numbers<[1], [0], [0], [1], [0, 0, 1, 1], [], []>} : vector<2x128xbf16>, vector<128x256xbf16>, vector<2x256xf32> -> vector<2x256xf32>
    %458 = arith.addf %453, %457 : vector<2x256xf32>
    %cst_253 = arith.constant 0.000000e+00 : f32
    %459 = vector.broadcast %cst_253 : f32 to vector<2x256xf32>
    %460 = arith.maximumf %458, %459 : vector<2x256xf32>
    %c0_254 = arith.constant 0 : index
    %c0_255 = arith.constant 0 : index
    %461 = vector.load %arg10[%c0_254, %c0_255] : memref<2x256xf32, #tpu.memory_space<vmem>>, vector<2x256xf32>
    tpu.vector_store %arg10[%c0_254, %c0_255], %460 {strides = array<i32>} : memref<2x256xf32, #tpu.memory_space<vmem>>, vector<2x256xf32>,
    return
  }
}

</mosaic_0001>

<bundles_post_ra>
// kernel: net_forward.1
= control target key start
LH: loop header
LB: loop body
LE: loop exit
PB: predicated region body
PF: predicated region fallthrough
CT: control target
= control target key end

     0   :  { %15 = vsyncpa [#allocation5], 0  ;;  %s11492_s0 = inlined_call_operand.vmem [shape: bf16[72,256], index: 0, kind: input, shape index: {}]   ;;  %s11493_s1 = inlined_call_operand.hbm [shape: bf16[256,128], index: 1, kind: input, shape index: {}]   ;;  %s11494_s2 = inlined_call_operand.hbm [shape: bf16[128,1152], index: 2, kind: input, shape index: {}]   ;;  %s11495_s3 = inlined_call_operand.hbm [shape: bf16[128,1152], index: 3, kind: input, shape index: {}]   ;;  %s11496_s4 = inlined_call_operand.hbm [shape: bf16[128,1152], index: 4, kind: input, shape index: {}]   ;;  %s11497_s5 = inlined_call_operand.hbm [shape: bf16[128,1152], index: 5, kind: input, shape index: {}]   ;;  %s11498_s6 = inlined_call_operand.hbm [shape: f32[9,72,1], index: 6, kind: input, shape index: {}]   ;;  %s11499_s7 = inlined_call_operand.hbm [shape: f32[8,128], index: 7, kind: input, shape index: {}]   ;;  %s11500_s8 = inlined_call_operand.vmem [shape: f32[2,256], index: 8, kind: input, shape index: {}]   ;;  %s11501_s9 = inlined_call_operand.hbm [shape: bf16[36,128,256], index: 9, kind: input, shape index: {}]   ;;  %s11502_s10 = inlined_call_operand.hbm [shape: f32[2,256], index: 10, kind: output, shape index: {}]  }
   0x1   :  { %16 = vsyncpa [#allocation8], 0 }
   0x2   :  { %17 = vsyncpa [#allocation11], 0 }
   0x3   :  { %18 = vsyncpa [#allocation14], 0 }
   0x4   :  { %19 = vsyncpa [#allocation6], 0  ;;  %s9258_s13 = smov [#allocation7]   ;;  %s9070_s17 = scalar_lea.hbm %s11494_s2, 9216 }
   0x5   :  { %s39_s14 = sshll.u32 %s9258_s13, 4  ;;  %p9071_p0 = scmp.ne.s32.totalorder %s11494_s2, %s9070_s17  ;;  %s40_s14 = int_to_ptr.vmem [resolvable:$true] %s39_s14 }
   0x6   :  { %p9074_p1 = scmp.lt.u32.totalorder %s9070_s17, %s11494_s2 }
   0x8   :  { %p9076_p2 = pnand %p9074_p1, %p9071_p0 }
   0xa   :  { %9079 = shalt.err (!%p9076_p2)
}
   0xb   :  { %s9080_s22 = scalar_lea.vmem %s40_s14, 9216  ;;  %p9085_p4 = scmp.lt.s32.totalorder %s40_s14, %s40_s14 }
   0xc   :  { %p9081_p3 = scmp.ne.s32.totalorder %s40_s14, %s9080_s22  ;;  %p9086_p5 = scmp.lt.s32.totalorder %s9080_s22, %s9080_s22 }
   0xe   :  { %p9087_p6 = por %p9086_p5, %p9085_p4 }
  0x10   :  { %p9088_p7 = pnand %p9087_p6, %p9081_p3 }
  0x12   :  { %9091 = shalt.err (!%p9088_p7)
}
  0x13   :  { %s9259_s23 = smov 576   ;;  %s9260_s24 = smov 36  }
  0x14   :  { %45 = dma.hbm_to_vmem [thread:$0]  %s11494_s2, 9216, %s40_s14, [#allocation8], %s9259_s23, %s9259_s23, %s9260_s24  }
  0x15   :  { %s9261_s27 = smov [#allocation10]   ;;  %s9262_s29 = smov [#allocation13]  }
  0x16   :  { %s63_s28 = sshll.u32 %s9261_s27, 4  ;;  %s87_s30 = sshll.u32 %s9262_s29, 4  ;;  %s64_s28 = int_to_ptr.vmem [resolvable:$true] %s63_s28  ;;  %s88_s30 = int_to_ptr.vmem [resolvable:$true] %s87_s30 }
  0x17   :  { %s9092_s13 = scalar_lea.hbm %s11496_s4, 9216 }
  0x18   :  { %p9093_p8 = scmp.ne.s32.totalorder %s11496_s4, %s9092_s13  ;;  %p9096_p9 = scmp.lt.u32.totalorder %s9092_s13, %s11496_s4 }
  0x1a   :  { %p9098_p10 = pnand %p9096_p9, %p9093_p8 }
  0x1c   :  { %9101 = shalt.err (!%p9098_p10)
}
  0x1d   :  { %s9102_s2 = scalar_lea.vmem %s64_s28, 9216  ;;  %p9107_p12 = scmp.lt.s32.totalorder %s64_s28, %s64_s28 }
  0x1e   :  { %p9103_p11 = scmp.ne.s32.totalorder %s64_s28, %s9102_s2  ;;  %p9108_p13 = scmp.lt.s32.totalorder %s9102_s2, %s9102_s2 }
  0x20   :  { %p9109_p0 = por %p9108_p13, %p9107_p12 }
  0x22   :  { %p9110_p1 = pnand %p9109_p0, %p9103_p11 }
  0x24   :  { %9113 = shalt.err (!%p9110_p1)
}
  0x25   :  { %69 = dma.hbm_to_vmem [thread:$0]  %s11496_s4, 9216, %s64_s28, [#allocation11], %s9259_s23, %s9259_s23, %s9260_s24  }
  0x26   :  { %s9114_s22 = scalar_lea.hbm %s11498_s6, 10368 }
  0x27   :  { %p9115_p2 = scmp.ne.s32.totalorder %s11498_s6, %s9114_s22  ;;  %p9118_p3 = scmp.lt.u32.totalorder %s9114_s22, %s11498_s6 }
  0x29   :  { %p9120_p4 = pnand %p9118_p3, %p9115_p2 }
  0x2b   :  { %9123 = shalt.err (!%p9120_p4)
}
  0x2c   :  { %s9124_s11 = scalar_lea.vmem %s88_s30, 10368  ;;  %p9129_p6 = scmp.lt.s32.totalorder %s88_s30, %s88_s30 }
  0x2d   :  { %p9125_p5 = scmp.ne.s32.totalorder %s88_s30, %s9124_s11  ;;  %p9130_p7 = scmp.lt.s32.totalorder %s9124_s11, %s9124_s11 }
  0x2f   :  { %p9131_p8 = por %p9130_p7, %p9129_p6 }
  0x31   :  { %p9132_p9 = pnand %p9131_p8, %p9125_p5 }
  0x33   :  { %9135 = shalt.err (!%p9132_p9)
}
  0x34   :  { %s9263_s4 = smov 128   ;;  %s9264_s28 = smov 8  }
  0x35   :  { %93 = dma.hbm_to_vmem [thread:$0]  %s11498_s6, 10368, %s88_s30, [#allocation14], %s9263_s4, %s9263_s4, %s9264_s28  }
  0x36   :  { %s9265_s15 = smov [#allocation4]   ;;  %s9136_s2 = scalar_lea.hbm %s11493_s1, 2048 }
  0x37   :  { %s27_s16 = sshll.u32 %s9265_s15, 4  ;;  %p9137_p10 = scmp.ne.s32.totalorder %s11493_s1, %s9136_s2  ;;  %s28_s16 = int_to_ptr.vmem [resolvable:$true] %s27_s16 }
  0x38   :  { %p9140_p11 = scmp.lt.u32.totalorder %s9136_s2, %s11493_s1 }
  0x3a   :  { %p9142_p12 = pnand %p9140_p11, %p9137_p10 }
  0x3c   :  { %9145 = shalt.err (!%p9142_p12)
}
  0x3d   :  { %s9146_s22 = scalar_lea.vmem %s28_s16, 2048  ;;  %p9151_p0 = scmp.lt.s32.totalorder %s28_s16, %s28_s16 }
  0x3e   :  { %p9147_p13 = scmp.ne.s32.totalorder %s28_s16, %s9146_s22  ;;  %p9152_p1 = scmp.lt.s32.totalorder %s9146_s22, %s9146_s22 }
  0x40   :  { %p9153_p2 = por %p9152_p1, %p9151_p0 }
  0x42   :  { %p9154_p3 = pnand %p9153_p2, %p9147_p13 }
  0x44   :  { %9157 = shalt.err (!%p9154_p3)
}
  0x45   :  { %s9266_s6 = smov 64   ;;  %s9267_s30 = smov 4  }
  0x46   :  { %33 = dma.hbm_to_vmem [thread:$0]  %s11493_s1, 2048, %s28_s16, [#allocation5], %s9266_s6, %s9266_s6, %s9267_s30  }
  0x47   :  { %s9268_s27 = smov [#allocation9]   ;;  %s9269_s11 = smov [#allocation12]  }
  0x48   :  { %s51_s29 = sshll.u32 %s9268_s27, 4  ;;  %s75_s28 = sshll.u32 %s9269_s11, 4  ;;  %s52_s29 = int_to_ptr.vmem [resolvable:$true] %s51_s29  ;;  %s9395_s28 = int_to_ptr.vmem [resolvable:$true] %s75_s28 }
  0x49   :  { %s9158_s15 = scalar_lea.hbm %s11495_s3, 9216 }
  0x4a   :  { %p9159_p4 = scmp.ne.s32.totalorder %s11495_s3, %s9158_s15  ;;  %p9162_p5 = scmp.lt.u32.totalorder %s9158_s15, %s11495_s3 }
  0x4c   :  { %p9164_p6 = pnand %p9162_p5, %p9159_p4 }
  0x4e   :  { %9167 = shalt.err (!%p9164_p6)
}
  0x4f   :  { %s9168_s1 = scalar_lea.vmem %s52_s29, 9216  ;;  %p9173_p8 = scmp.lt.s32.totalorder %s52_s29, %s52_s29 }
  0x50   :  { %p9169_p7 = scmp.ne.s32.totalorder %s52_s29, %s9168_s1  ;;  %p9174_p9 = scmp.lt.s32.totalorder %s9168_s1, %s9168_s1 }
  0x52   :  { %p9175_p10 = por %p9174_p9, %p9173_p8 }
  0x54   :  { %p9176_p11 = pnand %p9175_p10, %p9169_p7 }
  0x56   :  { %9179 = shalt.err (!%p9176_p11)
}
  0x57   :  { %57 = dma.hbm_to_vmem [thread:$0]  %s11495_s3, 9216, %s52_s29, [#allocation8], %s9259_s23, %s9259_s23, %s9260_s24  }
  0x58   :  { %s9180_s22 = scalar_lea.hbm %s11497_s5, 9216 }
  0x59   :  { %p9181_p12 = scmp.ne.s32.totalorder %s11497_s5, %s9180_s22  ;;  %p9184_p13 = scmp.lt.u32.totalorder %s9180_s22, %s11497_s5 }
  0x5b   :  { %p9186_p0 = pnand %p9184_p13, %p9181_p12 }
  0x5d   :  { %9189 = shalt.err (!%p9186_p0)
}
  0x5e   :  { %s9190_s12 = scalar_lea.vmem %s9395_s28, 9216  ;;  %p9195_p2 = scmp.lt.s32.totalorder %s9395_s28, %s9395_s28 }
  0x5f   :  { %p9191_p1 = scmp.ne.s32.totalorder %s9395_s28, %s9190_s12  ;;  %p9196_p3 = scmp.lt.s32.totalorder %s9190_s12, %s9190_s12 }
  0x61   :  { %p9197_p4 = por %p9196_p3, %p9195_p2 }
  0x63   :  { %p9198_p5 = pnand %p9197_p4, %p9191_p1 }
  0x65   :  { %9201 = shalt.err (!%p9198_p5)
}
  0x66   :  { %81 = dma.hbm_to_vmem [thread:$0]  %s11497_s5, 9216, %s9395_s28, [#allocation11], %s9259_s23, %s9259_s23, %s9260_s24  }
  0x67   :  { %s9270_s13 = smov [#allocation15]   ;;  %s9202_s2 = scalar_lea.hbm %s11499_s7, 128 }
  0x68   :  { %s100_s15 = sshll.u32 %s9270_s13, 4  ;;  %p9203_p6 = scmp.ne.s32.totalorder %s11499_s7, %s9202_s2  ;;  %s101_s15 = int_to_ptr.vmem [resolvable:$true] %s100_s15 }
  0x69   :  { %p9206_p7 = scmp.lt.u32.totalorder %s9202_s2, %s11499_s7 }
  0x6b   :  { %p9208_p8 = pnand %p9206_p7, %p9203_p6 }
  0x6d   :  { %9211 = shalt.err (!%p9208_p8)
}
  0x6e   :  { %s9212_s20 = scalar_lea.vmem %s101_s15, 128  ;;  %p9217_p10 = scmp.lt.s32.totalorder %s101_s15, %s101_s15 }
  0x6f   :  { %p9213_p9 = scmp.ne.s32.totalorder %s101_s15, %s9212_s20  ;;  %p9218_p11 = scmp.lt.s32.totalorder %s9212_s20, %s9212_s20 }
  0x71   :  { %p9219_p12 = por %p9218_p11, %p9217_p10 }
  0x73   :  { %p9220_p13 = pnand %p9219_p12, %p9213_p9 }
  0x75   :  { %9223 = shalt.err (!%p9220_p13)
}
  0x76   :  { %103 = dma.hbm_to_vmem [thread:$0]  %s11499_s7, 128, %s101_s15, [#allocation14]  }
  0x77   :  { %9246 = dma.done.wait [#allocation5], 2048  }
  0x78   :  { %9247 = vsyncadd [#allocation5], 4294965248 }
  0x79   :  { %9248 = dma.done.wait [#allocation8], 18432  }
  0x7a   :  { %9249 = vsyncadd [#allocation8], 4294948864 }
  0x7b   :  { %9250 = dma.done.wait [#allocation11], 18432  }
  0x7c   :  { %9251 = vsyncadd [#allocation11], 4294948864 }
  0x7d   :  { %9252 = dma.done.wait [#allocation14], 10496  }
  0x7e   :  { %9253 = vsyncadd [#allocation14], 4294956800  ;;  %s132_s24 = sld [smem:[#allocation0]]   ;;  %s9271_s28 = smov 256   ;;  %v11513_v0 = vmov 0   ;;  %vm9278_vm0 = vmmov 0  }
  0x7f   :  { %144 = sst [smem:[#allocation18]] %s9271_s28  ;;  %8618 = vset.pattern.permute.xlu0 %v11513_v0  ;;  %8619 = vset.pattern.permute.xlu1 %v11513_v0  ;;  %s9273_s7 = smov 2  }
  0x80   :  { %146 = sst [smem:[#allocation18 + $0x1]] %s9271_s28  ;;  %918 = vmatprep.mubr.bf16.mxu1 %v11513_v0  ;;  %s9274_s21 = smov [#allocation2]  }
  0x81   :  { %148 = sst [smem:[#allocation18 + $0x2]] %s9273_s7  ;;  %s140_s22 = sshll.u32 %s9274_s21, 4  ;;  %s141_s22 = int_to_ptr.vmem [resolvable:$true] %s140_s22 }
  0x82   :  { %150 = sst [smem:[#allocation18 + $0x3]] %s9266_s6  ;;  %s9275_s27 = smov [#allocation3]  }
  0x83   :  { %152 = sst [smem:[#allocation18 + $0x4]] %s9263_s4  ;;  %s9276_s11 = smov [#allocation17]  }
  0x84   :  { %154 = sst [smem:[#allocation18 + $0x5]] %s9273_s7  ;;  %s8036_s25 = sshll.u32 %s132_s24, 26 }
  0x85   :  { %156 = sst [smem:[#allocation18 + $0x6]] %s9263_s4  ;;  %s8037_s26 = sadd.s32 134217728, %s8036_s25 }
  0x86   :  { %158 = sst [smem:[#allocation18 + $0x7]] %s9266_s6 }
  0x87   :  { %160 = sst [smem:[#allocation18 + $0x8]] %s9267_s30 }
  0x88   :  { %162 = dma.general %s11501_s9, 73728, %s141_s22, %s9275_s27, %s9276_s11, [#allocation18], %s8037_s26, 0  }
  0x89   :  { %v8620_v1 = vld [vmem:[#allocation4 + $0x40] sm:$0xff]   ;;  %v8622_v3 = vld [vmem:[#allocation4 + $0x48] sm:$0xff]   ;;  %v8624_v5 = vld [vmem:[#allocation4 + $0x50] sm:$0xff]  }
  0x8a   :  { %v8621_v2 = vld [vmem:[#allocation4] sm:$0xff]   ;;  %8353 = vmatprep.subr.bf16.mxu0 %v8620_v1  ;;  %v8623_v4 = vld [vmem:[#allocation4 + $0x8] sm:$0xff]   ;;  %v8625_v6 = vld [vmem:[#allocation4 + $0x10] sm:$0xff]  }
  0x8b   :  { %8354 = vmatpush3.bf16.msra.mxu0 %v8621_v2  ;;  %v8626_v7 = vld [vmem:[#allocation4 + $0x58] sm:$0xff]   ;;  %v8628_v9 = vld [vmem:[#allocation4 + $0x60] sm:$0xff]   ;;  %v8630_v11 = vld [vmem:[#allocation4 + $0x68] sm:$0xff]  }
  0x8c   :  { %8355 = vmatprep.subr.bf16.mxu0 %v8622_v3  ;;  %v8627_v8 = vld [vmem:[#allocation4 + $0x18] sm:$0xff]   ;;  %v8629_v10 = vld [vmem:[#allocation4 + $0x20] sm:$0xff]   ;;  %v8631_v13 = vld [vmem:[#allocation4 + $0x28] sm:$0xff]  }
  0x8d   :  { %v8638_v12 = vld [vmem:[%s11492_s0 + $0x4] ss:$8 sps:$4 sm:$0xff]   ;;  %v8632_v14 = vld [vmem:[#allocation4 + $0x70] sm:$0xff]   ;;  %v8634_v19 = vld [vmem:[#allocation4 + $0x78] sm:$0xff]  }
  0x8e   :  { %384 = vmatprep.mubr.bf16.mxu0 %v8638_v12  ;;  %v1303_v15 = vld [vmem:[#allocation13] sm:$0xff]  ;;  %v1386_v16 = vld [vmem:[#allocation13 + $0x48] sm:$0xff]  ;;  %v8633_v17 = vld [vmem:[#allocation4 + $0x30] sm:$0xff]  }
  0x8f   :  { %8356 = vmatpush3.bf16.msra.mxu0 %v8623_v4  ;;  %1314 = vperm.xlu0 %8618, %v1303_v15   ;;  %v1304_v18 = vld [vmem:[#allocation13 + $0x8] sm:$0xff]  ;;  %v1387_v20 = vld [vmem:[#allocation13 + $0x50] sm:$0xff]  ;;  %v8635_v21 = vld [vmem:[#allocation4 + $0x38] sm:$0xff]  }
  0x90   :  { %8357 = vmatprep.subr.bf16.mxu0 %v8624_v5  ;;  %1397 = vperm.xlu1 %8619, %v1386_v16   ;;  %v1459_v22 = vld [vmem:[#allocation13 + $0x90] sm:$0xff]  ;;  %v1460_v23 = vld [vmem:[#allocation13 + $0x98] sm:$0xff]  ;;  %v8636_v24 = vld [vmem:[%s11492_s0] ss:$8 sps:$4 sm:$0xff]  }
  0x91   :  { %v8650_v25 = vld [vmem:[#allocation7 + $0x4] ss:$36 sps:$4 sm:$0xff]   ;;  %v8639_v27 = vld [vmem:[%s11492_s0 + $0x14] ss:$8 sps:$4 sm:$0xff]   ;;  %v8655_v31 = vld [vmem:[#allocation7 + $0xc] ss:$36 sps:$4 sm:$0xff]  }
  0x92   :  { %v8652_v26 = vld [vmem:[#allocation7] ss:$36 sps:$4 sm:$0xff]   ;;  %v1550_v28 = vld [vmem:[#allocation13 + $0xd8] sm:$0xff]  ;;  %886 = vmatprep.subr.bf16.mxu1 %v8650_v25  ;;  %v8653_v30 = vld [vmem:[#allocation7 + $0x8] ss:$36 sps:$4 sm:$0xff]  }
  0x93   :  { %8358 = vmatpush3.bf16.msra.mxu0 %v8625_v6  ;;  %1319 = vperm.xlu0 %8618, %v1304_v18   ;;  %v1551_v29 = vld [vmem:[#allocation13 + $0xe0] sm:$0xff]  ;;  %v8656_v32 = vld [vmem:[#allocation7 + $0x4c] ss:$36 sps:$4 sm:$0xff]   ;;  %v8661_v34 = vld [vmem:[#allocation7 + $0x54] ss:$36 sps:$4 sm:$0xff]  }
  0x94   :  { %8359 = vmatprep.subr.bf16.mxu0 %v8626_v7  ;;  %1402 = vperm.xlu1 %8619, %v1387_v20   ;;  %v8658_v33 = vld [vmem:[#allocation7 + $0x48] ss:$36 sps:$4 sm:$0xff]   ;;  %v1305_v35 = vld [vmem:[#allocation13 + $0x10] sm:$0xff]  ;;  %v1306_v36 = vld [vmem:[#allocation13 + $0x18] sm:$0xff] }
  0x95   :  { %887 = vmatpush1.bf16.msra.mxu1 %v8652_v26  ;;  %v8662_v37 = vld [vmem:[#allocation7 + $0x94] ss:$36 sps:$4 sm:$0xff]   ;;  %v8642_v41 = vld [vmem:[%s11492_s0 + $0x24] ss:$8 sps:$4 sm:$0xff]   ;;  %v8667_v42 = vld [vmem:[#allocation7 + $0x9c] ss:$36 sps:$4 sm:$0xff]  }
  0x96   :  { %888 = vmatprep.subr.bf16.mxu1 %v8656_v32  ;;  %v8641_v38 = vld [vmem:[%s11492_s0 + $0x10] ss:$8 sps:$4 sm:$0xff]   ;;  %v8668_v44 = vld [vmem:[#allocation7 + $0xdc] ss:$36 sps:$4 sm:$0xff]   ;;  %v8673_v48 = vld [vmem:[#allocation7 + $0xe4] ss:$36 sps:$4 sm:$0xff]  }
  0x97   :  { %8360 = vmatpush3.bf16.msra.mxu0 %v8627_v8  ;;  %1470 = vperm.xlu0 %8618, %v1459_v22   ;;  %v8659_v39 = vld [vmem:[#allocation7 + $0x50] ss:$36 sps:$4 sm:$0xff]   ;;  %v1388_v43 = vld [vmem:[#allocation13 + $0x58] sm:$0xff]  ;;  %v1389_v45 = vld [vmem:[#allocation13 + $0x60] sm:$0xff] }
  0x98   :  { %8361 = vmatprep.subr.bf16.mxu0 %v8628_v9  ;;  %1475 = vperm.xlu1 %8619, %v1460_v23   ;;  %v8664_v40 = vld [vmem:[#allocation7 + $0x90] ss:$36 sps:$4 sm:$0xff]   ;;  %v8665_v46 = vld [vmem:[#allocation7 + $0x98] ss:$36 sps:$4 sm:$0xff]   ;;  %v8674_v49 = vld [vmem:[#allocation7 + $0x124] ss:$36 sps:$4 sm:$0xff]  }
  0x99   :  { %889 = vmatpush1.bf16.msra.mxu1 %v8658_v33  ;;  %v8670_v47 = vld [vmem:[#allocation7 + $0xd8] ss:$36 sps:$4 sm:$0xff]   ;;  %v1651_v50 = vld [vmem:[#allocation13 + $0x168] sm:$0xff]  ;;  %v1652_v51 = vld [vmem:[#allocation13 + $0x170] sm:$0xff] }
  0x9a   :  { %890 = vmatprep.subr.bf16.mxu1 %v8662_v37  ;;  %v8671_v52 = vld [vmem:[#allocation7 + $0xe0] ss:$36 sps:$4 sm:$0xff]   ;;  %v8679_v55 = vld [vmem:[#allocation7 + $0x12c] ss:$36 sps:$4 sm:$0xff]   ;;  %v8645_v56 = vld [vmem:[%s11492_s0 + $0x34] ss:$8 sps:$4 sm:$0xff]  }
  0x9b   :  { %8362 = vmatpush3.bf16.msra.mxu0 %v8629_v10  ;;  %1561 = vperm.xlu0 %8618, %v1550_v28   ;;  %v8676_v53 = vld [vmem:[#allocation7 + $0x120] ss:$36 sps:$4 sm:$0xff]   ;;  %v8680_v58 = vld [vmem:[#allocation7 + $0x16c] ss:$36 sps:$4 sm:$0xff]   ;;  %v1725_v63 = vld [vmem:[#allocation13 + $0x1b8] sm:$0xff] }
  0x9c   :  { %8363 = vmatprep.subr.bf16.mxu0 %v8630_v11  ;;  %1566 = vperm.xlu1 %8619, %v1551_v29   ;;  %v8644_v54 = vld [vmem:[%s11492_s0 + $0x20] ss:$8 sps:$4 sm:$0xff]   ;;  %v1724_v61 = vld [vmem:[#allocation13 + $0x1b0] sm:$0xff]  ;;  %v1815_v5 = vld [vmem:[#allocation13 + $0x1f8] sm:$0xff] }
  0x9d   :  { %891 = vmatpush1.bf16.msra.mxu1 %v8664_v40  ;;  %v1461_v57 = vld [vmem:[#allocation13 + $0xa0] sm:$0xff]  ;;  %v1462_v59 = vld [vmem:[#allocation13 + $0xa8] sm:$0xff]  ;;  %v8647_v1 = vld [vmem:[%s11492_s0 + $0x30] ss:$8 sps:$4 sm:$0xff]  }
  0x9e   :  { %892 = vmatprep.subr.bf16.mxu1 %v8668_v44  ;;  %v8677_v60 = vld [vmem:[#allocation7 + $0x128] ss:$36 sps:$4 sm:$0xff]   ;;  %v172_v62 = vld [vmem:[%s11492_s0 + $0x40] sm:$0xff]  ;;  %v1553_v3 = vld [vmem:[#allocation13 + $0xf0] sm:$0xff] }
  0x9f   :  { %8364 = vmatpush3.bf16.msra.mxu0 %v8631_v13  ;;  %1324 = vperm.xlu0 %8618, %v1305_v35   ;;  %v1552_v2 = vld [vmem:[#allocation13 + $0xe8] sm:$0xff]  ;;  %v8047_v4 = vcombine.high %v172_v62, %v172_v62  ;;  %v1816_v6 = vld [vmem:[#allocation13 + $0x200] sm:$0xff]  ;;  %v8046_v8 = vcombine.low %v172_v62, %v172_v62  ;;  %v1391_v13 = vld [vmem:[#allocation13 + $0x70] sm:$0xff] }
  0xa0   :  { %8365 = vmatprep.subr.bf16.mxu0 %v8632_v14  ;;  %1329 = vperm.xlu1 %8619, %v1306_v36   ;;  %v1906_v7 = vld [vmem:[#allocation13 + $0x240] sm:$0xff]  ;;  %v1907_v9 = vld [vmem:[#allocation13 + $0x248] sm:$0xff]  ;;  %v8685_v14 = vld [vmem:[#allocation7 + $0x174] ss:$36 sps:$4 sm:$0xff]  }
  0xa1   :  { %893 = vmatpush1.bf16.msra.mxu1 %v8670_v47  ;;  %v1307_v10 = vld [vmem:[#allocation13 + $0x20] sm:$0xff]  ;;  %v1308_v11 = vld [vmem:[#allocation13 + $0x28] sm:$0xff]  ;;  %v8683_v16 = vld [vmem:[#allocation7 + $0x170] ss:$36 sps:$4 sm:$0xff]  }
  0xa2   :  { %894 = vmatprep.subr.bf16.mxu1 %v8674_v49  ;;  %v1390_v12 = vld [vmem:[#allocation13 + $0x68] sm:$0xff]  ;;  %v1654_v18 = vld [vmem:[#allocation13 + $0x180] sm:$0xff]  ;;  %v8689_v22 = vld [vmem:[#allocation7 + $0x1b8] ss:$36 sps:$4 sm:$0xff]  }
  0xa3   :  { %8366 = vmatpush3.bf16.msra.mxu0 %v8633_v17  ;;  %1407 = vperm.xlu0 %8618, %v1388_v43   ;;  %v8682_v15 = vld [vmem:[#allocation7 + $0x168] ss:$36 sps:$4 sm:$0xff]   ;;  %v1653_v17 = vld [vmem:[#allocation13 + $0x178] sm:$0xff]  ;;  %v1463_v23 = vld [vmem:[#allocation13 + $0xb0] sm:$0xff] }
  0xa4   :  { %8367 = vmatprep.subr.bf16.mxu0 %v8634_v19  ;;  %1412 = vperm.xlu1 %8619, %v1389_v45   ;;  %v8686_v19 = vld [vmem:[#allocation7 + $0x1b4] ss:$36 sps:$4 sm:$0xff]   ;;  %v8691_v20 = vld [vmem:[#allocation7 + $0x1bc] ss:$36 sps:$4 sm:$0xff]   ;;  %v8697_v28 = vld [vmem:[#allocation7 + $0x204] ss:$36 sps:$4 sm:$0xff]  }
  0xa5   :  { %895 = vmatpush1.bf16.msra.mxu1 %v8676_v53  ;;  %v8692_v25 = vld [vmem:[#allocation7 + $0x1fc] ss:$36 sps:$4 sm:$0xff]   ;;  %v1817_v33 = vld [vmem:[#allocation13 + $0x208] sm:$0xff]  ;;  %v1818_v35 = vld [vmem:[#allocation13 + $0x210] sm:$0xff] }
  0xa6   :  { %896 = vmatprep.subr.bf16.mxu1 %v8680_v58  ;;  %v8694_v26 = vld [vmem:[#allocation7 + $0x1f8] ss:$36 sps:$4 sm:$0xff]   ;;  %v1726_v29 = vld [vmem:[#allocation13 + $0x1c0] sm:$0xff]  ;;  %v1908_v37 = vld [vmem:[#allocation13 + $0x250] sm:$0xff] }
  0xa7   :  { %8368 = vmatpush3.bf16.msra.mxu0 %v8635_v21  ;;  %1662 = vperm.xlu0 %8618, %v1651_v50   ;;  %v8688_v21 = vld [vmem:[#allocation7 + $0x1b0] ss:$36 sps:$4 sm:$0xff]   ;;  %v1555_v32 = vld [vmem:[#allocation13 + $0x100] sm:$0xff]  ;;  %v1310_v40 = vld [vmem:[#allocation13 + $0x38] sm:$0xff] }
  0xa8   :  { %967 = vmatprep.subr.bf16.mxu0 %v8655_v31  ;;  %1667 = vperm.xlu1 %8619, %v1652_v51   ;;  %v1554_v31 = vld [vmem:[#allocation13 + $0xf8] sm:$0xff]  ;;  %v1655_v43 = vld [vmem:[#allocation13 + $0x188] sm:$0xff]  ;;  %v1656_v44 = vld [vmem:[#allocation13 + $0x190] sm:$0xff] }
  0xa9   :  { %897 = vmatpush1.bf16.msra.mxu1 %v8682_v15  ;;  %v8706_v36 = vld [vmem:[#allocation7 + $0x1c] ss:$36 sps:$4 sm:$0xff]   ;;  %v1728_v47 = vld [vmem:[#allocation13 + $0x1d0] sm:$0xff]  ;;  %v1556_v49 = vld [vmem:[#allocation13 + $0x108] sm:$0xff] }
  0xaa   :  { %385 = vmatmul.mubr.bf16.vlgmr.msra.gmra.mrb[0].mxu0 %v8636_v24  ;;  %898 = vmatprep.subr.bf16.mxu1 %v8686_v19  ;;  %v1464_v24 = vld [vmem:[#allocation13 + $0xb8] sm:$0xff]  ;;  %v1465_v45 = vld [vmem:[#allocation13 + $0xc0] sm:$0xff]  ;;  %v1557_v50 = vld [vmem:[#allocation13 + $0x110] sm:$0xff] }
  0xab   :  { %392 = vmatprep.mubr.bf16.mxu0 %v8639_v27  ;;  %968 = vmatpush1.bf16.msra.mxu0 %v8653_v30  ;;  %v8695_v27 = vld [vmem:[#allocation7 + $0x200] ss:$36 sps:$4 sm:$0xff]   ;;  %v1727_v30 = vld [vmem:[#allocation13 + $0x1c8] sm:$0xff]  ;;  %v1819_v51 = vld [vmem:[#allocation13 + $0x218] sm:$0xff] }
  0xac   :  { %969 = vmatprep.subr.bf16.mxu0 %v8661_v34  ;;  %1480 = vperm.xlu0 %8618, %v1461_v57   ;;  %v8700_v34 = vld [vmem:[#allocation7 + $0x14] ss:$36 sps:$4 sm:$0xff]   ;;  %v1910_v53 = vld [vmem:[#allocation13 + $0x260] sm:$0xff] }
  0xad   :  { %1485 = vperm.xlu1 %8619, %v1462_v59   ;;  %899 = vmatpush1.bf16.msra.mxu1 %v8688_v21  ;;  %v1657_v57 = vld [vmem:[#allocation13 + $0x198] sm:$0xff]  ;;  %v1658_v58 = vld [vmem:[#allocation13 + $0x1a0] sm:$0xff]  ;;  %v1467_v59 = vld [vmem:[#allocation13 + $0xd0] sm:$0xff] }
  0xae   :  { %900 = vmatprep.subr.bf16.mxu1 %v8692_v25  ;;  %v1558_v62 = vld [vmem:[#allocation13 + $0x118] sm:$0xff]  ;;  %v8698_v25 = vld [vmem:[#allocation7 + $0x10] ss:$36 sps:$4 sm:$0xff]  }
  0xaf   :  { %970 = vmatpush1.bf16.msra.mxu0 %v8659_v39  ;;  %v1309_v39 = vld [vmem:[#allocation13 + $0x30] sm:$0xff] }
  0xb0   :  { %971 = vmatprep.subr.bf16.mxu0 %v8667_v42  ;;  %1735 = vperm.xlu0 %8618, %v1724_v61   ;;  %v1393_v42 = vld [vmem:[#allocation13 + $0x80] sm:$0xff]  ;;  %v1731_v61 = vld [vmem:[#allocation13 + $0x1e8] sm:$0xff] }
  0xb1   :  { %1740 = vperm.xlu1 %8619, %v1725_v63   ;;  %901 = vmatpush1.bf16.msra.mxu1 %v8694_v26  ;;  %v1821_v63 = vld [vmem:[#allocation13 + $0x228] sm:$0xff] }
  0xb2   :  { %393 = vmatmul.mubr.bf16.gmra.mrb[4].mxu0 %v8641_v38  ;;  %1048 = vmatprep.subr.bf16.mxu1 %v8700_v34  ;;  %v1909_v38 = vld [vmem:[#allocation13 + $0x258] sm:$0xff]  ;;  %v8712_v34 = vld [vmem:[#allocation7 + $0x64] ss:$36 sps:$4 sm:$0xff]  }
  0xb3   :  { %400 = vmatprep.mubr.bf16.mxu0 %v8642_v41  ;;  %972 = vmatpush1.bf16.msra.mxu0 %v8665_v46  ;;  %v1392_v41 = vld [vmem:[#allocation13 + $0x78] sm:$0xff]  ;;  %v1466_v46 = vld [vmem:[#allocation13 + $0xc8] sm:$0xff] }
  0xb4   :  { %973 = vmatprep.subr.bf16.mxu0 %v8673_v48  ;;  %1571 = vperm.xlu0 %8618, %v1552_v2   ;;  %v1729_v48 = vld [vmem:[#allocation13 + $0x1d8] sm:$0xff]  ;;  %v1912_v2 = vld [vmem:[#allocation13 + $0x270] sm:$0xff] }
  0xb5   :  { %1576 = vperm.xlu1 %8619, %v1553_v3   ;;  %v1913_v3 = vld [vmem:[#allocation13 + $0x278] sm:$0xff] }
  0xb7   :  { %974 = vmatpush1.bf16.msra.mxu0 %v8671_v52  ;;  %v1820_v52 = vld [vmem:[#allocation13 + $0x220] sm:$0xff] }
  0xb8   :  { %975 = vmatprep.subr.bf16.mxu0 %v8679_v55  ;;  %1826 = vperm.xlu0 %8618, %v1815_v5   ;;  %v1311_v55 = vld [vmem:[#allocation13 + $0x40] sm:$0xff]  ;;  %v1732_v5 = vld [vmem:[#allocation13 + $0x1f0] sm:$0xff] }
  0xb9   :  { %1831 = vperm.xlu1 %8619, %v1816_v6   ;;  %v1823_v6 = vld [vmem:[#allocation13 + $0x238] sm:$0xff] }
  0xba   :  { %401 = vmatmul.mubr.bf16.gmra.mrb[8].mxu0 %v8644_v54  ;;  %v1911_v54 = vld [vmem:[#allocation13 + $0x268] sm:$0xff] }
  0xbb   :  { %408 = vmatprep.mubr.bf16.mxu0 %v8645_v56  ;;  %976 = vmatpush1.bf16.msra.mxu0 %v8677_v60  ;;  %v1394_v56 = vld [vmem:[#allocation13 + $0x88] sm:$0xff]  ;;  %v1730_v60 = vld [vmem:[#allocation13 + $0x1e0] sm:$0xff] }
  0xbc   :  { %1917 = vperm.xlu0 %8618, %v1906_v7   ;;  %977 = vmatprep.subr.bf16.mxu0 %v8685_v14  ;;  %v1914_v7 = vld [vmem:[#allocation13 + $0x280] sm:$0xff] }
  0xbd   :  { %1922 = vperm.xlu1 %8619, %v1907_v9  }
  0xbf   :  { %978 = vmatpush1.bf16.msra.mxu0 %v8683_v16 }
  0xc0   :  { %1334 = vperm.xlu0 %8618, %v1307_v10   ;;  %979 = vmatprep.subr.bf16.mxu0 %v8691_v20 }
  0xc1   :  { %1339 = vperm.xlu1 %8619, %v1308_v11   ;;  %v163_v11 = vld [vmem:[#allocation15] sm:$0xff] }
  0xc2   :  { %409 = vmatmul.mubr.bf16.gmra.mrb[12].mxu0 %v8647_v1  ;;  %v1822_v1 = vld [vmem:[#allocation13 + $0x230] sm:$0xff] }
  0xc3   :  { %416 = vmatprep.mubr.bf16.mxu0 %v8047_v4  ;;  %980 = vmatpush1.bf16.msra.mxu0 %v8689_v22  ;;  %v1659_v4 = vld [vmem:[#allocation13 + $0x1a8] sm:$0xff] }
  0xc4   :  { %1417 = vperm.xlu0 %8618, %v1390_v12   ;;  %981 = vmatprep.subr.bf16.mxu0 %v8697_v28 }
  0xc5   :  { %1422 = vperm.xlu1 %8619, %v1391_v13  }
  0xc7   :  { %982 = vmatpush1.bf16.msra.mxu0 %v8695_v27 }
  0xc8   :  { %1672 = vperm.xlu0 %8618, %v1653_v17   ;;  %1129 = vmatprep.subr.bf16.mxu0 %v8706_v36 }
  0xc9   :  { %1677 = vperm.xlu1 %8619, %v1654_v18  }
  0xca   :  { %417 = vmatmul.mubr.bf16.gmra.mrb[16].mxu0 %v8046_v8  ;;  %v205_v8 = vlaneseq }
  0xcb   :  { %999 = vmatprep.mubr.bf16.mxu0 %v11513_v0 }
  0xcc   :  { %1490 = vperm.xlu0 %8618, %v1463_v23   ;;  %v9483_v9 = vshrl.u32 %v205_v8, 7  ;;  %v8725_v8 = vld [vmem:[#allocation7 + $0x178] ss:$36 sps:$4 sm:$0xff]  }
  0xcd   :  { %1495 = vperm.xlu1 %8619, %v1464_v24  }
  0xce   :  { %v207_v10 = vsub.s32 0, %v9483_v9  ;;  %vm1293_vm1 = vcmp.lt.s32.totalorder %v9483_v9, 4  ;;  %vm1375_vm2 = vcmp.lt.s32.totalorder %v9483_v9, 2  ;;  %vm1640_vm3 = vcmp.lt.s32.totalorder %v9483_v9, 6 }
  0xd0   :  { %1745 = vperm.xlu0 %8618, %v1726_v29   ;;  %v9486_v13 = vrot.slane %v163_v11, %v207_v10  ;;  %v8703_v29 = vld [vmem:[#allocation7 + $0x5c] ss:$36 sps:$4 sm:$0xff]  }
  0xd1   :  { %1750 = vperm.xlu1 %8619, %v1727_v30   ;;  %v8728_v10 = vld [vmem:[#allocation7 + $0x138] ss:$36 sps:$4 sm:$0xff]  }
  0xd4   :  { %1581 = vperm.xlu0 %8618, %v1554_v31   ;;  %v8704_v31 = vld [vmem:[#allocation7 + $0x18] ss:$36 sps:$4 sm:$0xff]  }
  0xd5   :  { %1586 = vperm.xlu1 %8619, %v1555_v32  }
  0xd8   :  { %1836 = vperm.xlu0 %8618, %v1817_v33  }
  0xd9   :  { %1841 = vperm.xlu1 %8619, %v1818_v35   ;;  %v8701_v35 = vld [vmem:[#allocation7 + $0x58] ss:$36 sps:$4 sm:$0xff]  }
  0xdc   :  { %1927 = vperm.xlu0 %8618, %v1908_v37   ;;  %v8709_v37 = vld [vmem:[#allocation7 + $0xa4] ss:$36 sps:$4 sm:$0xff]  }
  0xdd   :  { %1932 = vperm.xlu1 %8619, %v1909_v38   ;;  %v8710_v38 = vld [vmem:[#allocation7 + $0x60] ss:$36 sps:$4 sm:$0xff]  }
  0xe0   :  { %1344 = vperm.xlu0 %8618, %v1309_v39  }
  0xe1   :  { %1349 = vperm.xlu1 %8619, %v1310_v40  }
  0xe4   :  { %1427 = vperm.xlu0 %8618, %v1392_v41  }
  0xe5   :  { %1432 = vperm.xlu1 %8619, %v1393_v42  }
  0xe8   :  { %1682 = vperm.xlu0 %8618, %v1655_v43   ;;  %v8707_v43 = vld [vmem:[#allocation7 + $0xa0] ss:$36 sps:$4 sm:$0xff]  }
  0xe9   :  { %1687 = vperm.xlu1 %8619, %v1656_v44  }
  0xec   :  { %1500 = vperm.xlu0 %8618, %v1465_v45  }
  0xed   :  { %1505 = vperm.xlu1 %8619, %v1466_v46  }
  0xf0   :  { %1755 = vperm.xlu0 %8618, %v1728_v47   ;;  %v8715_v47 = vld [vmem:[#allocation7 + $0xec] ss:$36 sps:$4 sm:$0xff]  }
  0xf1   :  { %1760 = vperm.xlu1 %8619, %v1729_v48  }
  0xf4   :  { %1591 = vperm.xlu0 %8618, %v1556_v49   ;;  %v8718_v49 = vld [vmem:[#allocation7 + $0xac] ss:$36 sps:$4 sm:$0xff]  }
  0xf5   :  { %1596 = vperm.xlu1 %8619, %v1557_v50  }
  0xf8   :  { %1846 = vperm.xlu0 %8618, %v1819_v51  }
  0xf9   :  { %1851 = vperm.xlu1 %8619, %v1820_v52   ;;  %v8716_v52 = vld [vmem:[#allocation7 + $0xa8] ss:$36 sps:$4 sm:$0xff]  }
  0xfc   :  { %1937 = vperm.xlu0 %8618, %v1910_v53   ;;  %v8713_v53 = vld [vmem:[#allocation7 + $0xe8] ss:$36 sps:$4 sm:$0xff]  }
  0xfd   :  { %1942 = vperm.xlu1 %8619, %v1911_v54   ;;  %v8724_v54 = vld [vmem:[#allocation7 + $0xf4] ss:$36 sps:$4 sm:$0xff]  }
 0x100   :  { %1354 = vperm.xlu0 %8618, %v1311_v55  }
 0x101   :  { %1437 = vperm.xlu1 %8619, %v1394_v56   ;;  %v8721_v56 = vld [vmem:[#allocation7 + $0x134] ss:$36 sps:$4 sm:$0xff]  }
 0x104   :  { %1692 = vperm.xlu0 %8618, %v1657_v57  }
 0x105   :  { %1697 = vperm.xlu1 %8619, %v1658_v58  }
 0x108   :  { %1510 = vperm.xlu0 %8618, %v1467_v59  }
 0x109   :  { %1765 = vperm.xlu1 %8619, %v1730_v60  }
 0x10c   :  { %1770 = vperm.xlu0 %8618, %v1731_v61   ;;  %v8719_v61 = vld [vmem:[#allocation7 + $0x130] ss:$36 sps:$4 sm:$0xff]  }
 0x10d   :  { %1601 = vperm.xlu1 %8619, %v1558_v62   ;;  %v8722_v62 = vld [vmem:[#allocation7 + $0xf0] ss:$36 sps:$4 sm:$0xff]  }
 0x110   :  { %1856 = vperm.xlu0 %8618, %v1821_v63  }
 0x111   :  { %1861 = vperm.xlu1 %8619, %v1822_v1  }
 0x114   :  { %1947 = vperm.xlu0 %8618, %v1912_v2  }
 0x115   :  { %1952 = vperm.xlu1 %8619, %v1913_v3  }
 0x118   :  { %1702 = vperm.xlu0 %8618, %v1659_v4   ;;  %v8727_v4 = vld [vmem:[#allocation7 + $0x17c] ss:$36 sps:$4 sm:$0xff]  }
 0x119   :  { %1775 = vperm.xlu1 %8619, %v1732_v5   ;;  %v8730_v5 = vld [vmem:[#allocation7 + $0x13c] ss:$36 sps:$4 sm:$0xff]  }
 0x11c   :  { %1866 = vperm.xlu0 %8618, %v1823_v6  }
 0x11d   :  { %1957 = vperm.xlu1 %8619, %v1914_v7  }
 0x17d   :  { %v8369_v12 = vpop.f32.mrb[0].mxu0 }
 0x17e   :  { %v8370_v14 = vpop.f32.mrb[1].mxu0 }
 0x17f   :  { %v8371_v15 = vadd.f32 %v8370_v14, %v8369_v12  ;;  %v8372_v16 = vpop.f32.mrb[2].mxu0  ;;  %v8733_v12 = vld [vmem:[#allocation7 + $0x184] ss:$36 sps:$4 sm:$0xff]  }
 0x180   :  { %v8373_v17 = vpop.f32.mrb[3].mxu0  ;;  %v8736_v14 = vld [vmem:[#allocation7 + $0x1c4] ss:$36 sps:$4 sm:$0xff]  }
 0x181   :  { %v9489_v18 = vadd.f32 %v8371_v15, %v9486_v13  ;;  %v8374_v19 = vadd.f32 %v8373_v17, %v8372_v16 }
 0x183   :  { %11647 = vst [vmem:[#allocation25_spill] sm:$0xff] %v9489_v18  ;;  %v9492_v20 = vadd.f32 %v8374_v19, %v9486_v13  ;;  %v11510_v21 = vmax.f32 %v9489_v18, 0.0 }
 0x185   :  { %11648 = vst [vmem:[#allocation26_spill] sm:$0xff] %v9492_v20  ;;  %v11509_v22 = vmax.f32 %v9492_v20, 0.0  ;;  %v8375_v23 = vpop.f32.mrb[4].mxu0 }
 0x186   :  { %v8376_v24 = vpop.f32.mrb[5].mxu0 }
 0x187   :  { %v9500_v26 = vpack.c.bf16 %v11509_v22, %v11510_v21  ;;  %v8377_v27 = vadd.f32 %v8376_v24, %v8375_v23  ;;  %v8378_v28 = vpop.f32.mrb[6].mxu0  ;;  %v8731_v23 = vld [vmem:[#allocation7 + $0x180] ss:$36 sps:$4 sm:$0xff]   ;;  %v8769_v22 = vld [vmem:[#allocation9 + $0xd8] ss:$36 sps:$4 sm:$0xff]  }
 0x188   :  { %v8379_v30 = vpop.f32.mrb[7].mxu0  ;;  %v8734_v24 = vld [vmem:[#allocation7 + $0x1c0] ss:$36 sps:$4 sm:$0xff]  }
 0x189   :  { %v9503_v32 = vadd.f32 %v8377_v27, %v9486_v13  ;;  %v8380_v33 = vadd.f32 %v8379_v30, %v8378_v28  ;;  %919 = vmatmul.mubr.bf16.vlgmr.msra.gmra.mrb[0].mxu1 %v9500_v26  ;;  %1000 = vmatmul.mubr.bf16.vlgmr.msra.gmra.mrb[20].mxu0 %v9500_v26  ;;  %v8739_v30 = vld [vmem:[#allocation7 + $0x1cc] ss:$36 sps:$4 sm:$0xff]   ;;  %v8778_v21 = vld [vmem:[#allocation9 + $0xe0] ss:$36 sps:$4 sm:$0xff]  }
 0x18a   :  { %1049 = vmatpush1.bf16.msra.mxu1 %v8698_v25  ;;  %928 = vmatprep.mubr.bf16.mxu1 %v11513_v0 }
 0x18b   :  { %11649 = vst [vmem:[#allocation27_spill] sm:$0xff] %v9503_v32  ;;  %v9509_v36 = vadd.f32 %v8380_v33, %v9486_v13  ;;  %1050 = vmatprep.subr.bf16.mxu1 %v8703_v29  ;;  %1009 = vmatprep.mubr.bf16.mxu0 %v11513_v0  ;;  %v11508_v39 = vmax.f32 %v9503_v32, 0.0 }
 0x18c   :  { %1130 = vmatpush1.bf16.msra.mxu0 %v8704_v31  ;;  %v8742_v31 = vld [vmem:[#allocation7 + $0x20c] ss:$36 sps:$4 sm:$0xff]  }
 0x18d   :  { %11650 = vst [vmem:[#allocation28_spill] sm:$0xff] %v9509_v36  ;;  %v11507_v40 = vmax.f32 %v9509_v36, 0.0  ;;  %v8381_v41 = vpop.f32.mrb[8].mxu0  ;;  %1131 = vmatprep.subr.bf16.mxu0 %v8712_v34  ;;  %v8737_v34 = vld [vmem:[#allocation7 + $0x1c8] ss:$36 sps:$4 sm:$0xff]  }
 0x18e   :  { %v8382_v42 = vpop.f32.mrb[9].mxu0  ;;  %1051 = vmatpush1.bf16.msra.mxu1 %v8701_v35  ;;  %v8740_v35 = vld [vmem:[#allocation7 + $0x208] ss:$36 sps:$4 sm:$0xff]  }
 0x18f   :  { %v9518_v44 = vpack.c.bf16 %v11507_v40, %v11508_v39  ;;  %v8383_v45 = vadd.f32 %v8382_v42, %v8381_v41  ;;  %v8384_v46 = vpop.f32.mrb[10].mxu0  ;;  %1052 = vmatprep.subr.bf16.mxu1 %v8709_v37  ;;  %v8743_v41 = vld [vmem:[#allocation7 + $0x210] ss:$36 sps:$4 sm:$0xff]   ;;  %v11511_v42 = vmov 0.0   ;;  %v8772_v39 = vld [vmem:[#allocation9 + $0x98] ss:$36 sps:$4 sm:$0xff]  }
 0x190   :  { %v8385_v48 = vpop.f32.mrb[11].mxu0  ;;  %1132 = vmatpush1.bf16.msra.mxu0 %v8710_v38  ;;  %v8745_v38 = vld [vmem:[#allocation7 + $0x214] ss:$36 sps:$4 sm:$0xff]  }
 0x191   :  { %v9521_v50 = vadd.f32 %v8383_v45, %v9486_v13  ;;  %v8386_v51 = vadd.f32 %v8385_v48, %v8384_v46  ;;  %929 = vmatmul.mubr.bf16.gmra.mrb[4].mxu1 %v9518_v44  ;;  %1010 = vmatmul.mubr.bf16.gmra.mrb[24].mxu0 %v9518_v44  ;;  %v8747_v45 = vld [vmem:[#allocation7 + $0x68] ss:$36 sps:$4 sm:$0xff]   ;;  %v8748_v46 = vld [vmem:[#allocation7 + $0xb0] ss:$36 sps:$4 sm:$0xff]   ;;  %v8750_v48 = vld [vmem:[#allocation7 + $0x140] ss:$36 sps:$4 sm:$0xff]  }
 0x192   :  { %1053 = vmatpush1.bf16.msra.mxu1 %v8707_v43  ;;  %938 = vmatprep.mubr.bf16.mxu1 %v11513_v0  ;;  %v8746_v43 = vld [vmem:[#allocation7 + $0x20] ss:$36 sps:$4 sm:$0xff]  }
 0x193   :  { %11651 = vst [vmem:[#allocation29_spill] sm:$0xff] %v9521_v50  ;;  %v9527_v55 = vadd.f32 %v8386_v51, %v9486_v13  ;;  %1054 = vmatprep.subr.bf16.mxu1 %v8715_v47  ;;  %1019 = vmatprep.mubr.bf16.mxu0 %v11513_v0  ;;  %v11506_v57 = vmax.f32 %v9521_v50, 0.0  ;;  %v8749_v47 = vld [vmem:[#allocation7 + $0xf8] ss:$36 sps:$4 sm:$0xff]   ;;  %v9586_v51 = vpop.permute.xlu1 %1397 }
 0x194   :  { %1133 = vmatprep.subr.bf16.mxu0 %v8718_v49  ;;  %v9584_v49 = vpop.permute.xlu0 %1314  ;;  %11657 = vst [vmem:[#allocation35_spill] sm:$0xff] %v9586_v51 }
 0x195   :  { %11652 = vst [vmem:[#allocation30_spill] sm:$0xff] %v9527_v55  ;;  %v11505_v58 = vmax.f32 %v9527_v55, 0.0  ;;  %v8387_v59 = vpop.f32.mrb[12].mxu0  ;;  %1134 = vmatpush1.bf16.msra.mxu0 %v8716_v52  ;;  %11656 = vst [vmem:[#allocation34_spill] sm:$0xff] %v9584_v49  ;;  %v8751_v52 = vld [vmem:[#allocation7 + $0x188] ss:$36 sps:$4 sm:$0xff]  }
 0x196   :  { %v8388_v60 = vpop.f32.mrb[13].mxu0  ;;  %1055 = vmatpush1.bf16.msra.mxu1 %v8713_v53  ;;  %1135 = vmatprep.subr.bf16.mxu0 %v8724_v54  ;;  %v8793_v55 = vld [vmem:[#allocation9 + $0x1b8] ss:$36 sps:$4 sm:$0xff]  }
 0x197   :  { %v9536_v63 = vpack.c.bf16 %v11505_v58, %v11506_v57  ;;  %v8389_v1 = vadd.f32 %v8388_v60, %v8387_v59  ;;  %v8390_v2 = vpop.f32.mrb[14].mxu0  ;;  %1056 = vmatprep.subr.bf16.mxu1 %v8721_v56  ;;  %v9595_v54 = vpop.permute.xlu1 %1402  ;;  %v8752_v56 = vld [vmem:[#allocation7 + $0x1d0] ss:$36 sps:$4 sm:$0xff]   ;;  %v8753_v59 = vld [vmem:[#allocation7 + $0x218] ss:$36 sps:$4 sm:$0xff]  }
 0x198   :  { %v8391_v3 = vpop.f32.mrb[15].mxu0  ;;  %v9593_v53 = vpop.permute.xlu0 %1319  ;;  %v8763_v58 = vld [vmem:[#allocation9 + $0x90] ss:$36 sps:$4 sm:$0xff]  }
 0x199   :  { %v9539_v6 = vadd.f32 %v8389_v1, %v9486_v13  ;;  %v8392_v7 = vadd.f32 %v8391_v3, %v8390_v2  ;;  %939 = vmatmul.mubr.bf16.gmra.mrb[8].mxu1 %v9536_v63  ;;  %1020 = vmatmul.mubr.bf16.gmra.mrb[28].mxu0 %v9536_v63  ;;  %v8766_v57 = vld [vmem:[#allocation9 + $0x50] ss:$36 sps:$4 sm:$0xff]  }
 0x19a   :  { %1057 = vmatpush1.bf16.msra.mxu1 %v8719_v61  ;;  %1136 = vmatpush1.bf16.msra.mxu0 %v8722_v62 }
 0x19b   :  { %11653 = vst [vmem:[#allocation31_spill] sm:$0xff] %v9539_v6  ;;  %v9544_v11 = vadd.f32 %v8392_v7, %v9486_v13  ;;  %948 = vmatprep.mubr.bf16.mxu1 %v11513_v0  ;;  %1029 = vmatprep.mubr.bf16.mxu0 %v11513_v0  ;;  %v11504_v15 = vmax.f32 %v9539_v6, 0.0  ;;  %v9603_v61 = vpop.permute.xlu1 %1475  ;;  %v8790_v6 = vld [vmem:[#allocation9 + $0x1b0] ss:$36 sps:$4 sm:$0xff]  }
 0x19c   :  { %1058 = vmatprep.subr.bf16.mxu1 %v8727_v4  ;;  %1137 = vmatprep.subr.bf16.mxu0 %v8730_v5  ;;  %v9601_v60 = vpop.permute.xlu0 %1470 }
 0x19d   :  { %11654 = vst [vmem:[#allocation32_spill] sm:$0xff] %v9544_v11  ;;  %v11503_v16 = vmax.f32 %v9544_v11, 0.0  ;;  %v8393_v17 = vpop.f32.mrb[16].mxu0  ;;  %v8787_v11 = vld [vmem:[#allocation9 + $0x170] ss:$36 sps:$4 sm:$0xff]  }
 0x19e   :  { %v8394_v19 = vpop.f32.mrb[17].mxu0  ;;  %1059 = vmatpush1.bf16.msra.mxu1 %v8725_v8  ;;  %1138 = vmatpush1.bf16.msra.mxu0 %v8728_v10 }
 0x19f   :  { %v9554_v25 = vpack.c.bf16 %v11503_v16, %v11504_v15  ;;  %v8395_v27 = vadd.f32 %v8394_v19, %v8393_v17  ;;  %v8396_v28 = vpop.f32.mrb[18].mxu0  ;;  %1139 = vmatprep.subr.bf16.mxu0 %v8733_v12  ;;  %1060 = vmatprep.subr.bf16.mxu1 %v8736_v14  ;;  %v9611_v1 = vpop.permute.xlu1 %1566  ;;  %v8765_v16 = vld [vmem:[#allocation9 + $0x94] ss:$36 sps:$4 sm:$0xff]  }
 0x1a0   :  { %v8397_v29 = vpop.f32.mrb[19].mxu0  ;;  %v9607_v62 = vpop.permute.xlu0 %1561  ;;  %11658 = vst [vmem:[#allocation36_spill] sm:$0xff] %v9611_v1  ;;  %v8768_v15 = vld [vmem:[#allocation9 + $0x54] ss:$36 sps:$4 sm:$0xff]  }
 0x1a1   :  { %v419_v33 = vadd.f32 %v8395_v27, %v9486_v13  ;;  %949 = vmatmul.mubr.bf16.gmra.mrb[12].mxu1 %v9554_v25  ;;  %1030 = vmatmul.mubr.bf16.gmra.mrb[32].mxu0 %v9554_v25 }
 0x1a2   :  { %1140 = vmatpush1.bf16.msra.mxu0 %v8731_v23  ;;  %1061 = vmatpush1.bf16.msra.mxu1 %v8734_v24 }
 0x1a3   :  { %v9559_v37 = vmax.f32 %v419_v33, 0.0  ;;  %958 = vmatprep.mubr.bf16.mxu1 %v11513_v0  ;;  %1039 = vmatprep.mubr.bf16.mxu0 %v11513_v0  ;;  %v9618_v3 = vpop.permute.xlu1 %1329 }
 0x1a4   :  { %1141 = vmatprep.subr.bf16.mxu0 %v8739_v30  ;;  %1062 = vmatprep.subr.bf16.mxu1 %v8742_v31  ;;  %v9616_v2 = vpop.permute.xlu0 %1324  ;;  %11659 = vst [vmem:[#allocation37_spill] sm:$0xff] %v9618_v3 }
 0x1a5   :  { %11655 = vst [vmem:[#allocation33_spill] sm:$0xff] %v9559_v37  ;;  %v9565_v13 = vpack.c.bf16 %v9559_v37, %v9559_v37  ;;  %v8781_v37 = vld [vmem:[#allocation9 + $0x168] ss:$36 sps:$4 sm:$0xff]  }
 0x1a6   :  { %1142 = vmatpush1.bf16.msra.mxu0 %v8737_v34  ;;  %1063 = vmatpush1.bf16.msra.mxu1 %v8740_v35 }
 0x1a7   :  { %1143 = vmatprep.subr.bf16.mxu0 %v8745_v38  ;;  %8451 = vmatprep.subr.bf16.mxu1 %v11511_v42  ;;  %v9625_v5 = vpop.permute.xlu1 %1412 }
 0x1a8   :  { %v9623_v4 = vpop.permute.xlu0 %1407  ;;  %11660 = vst [vmem:[#allocation38_spill] sm:$0xff] %v9625_v5 }
 0x1a9   :  { %959 = vmatmul.mubr.bf16.gmra.mrb[16].mxu1 %v9565_v13  ;;  %1040 = vmatmul.mubr.bf16.gmra.mrb[36].mxu0 %v9565_v13 }
 0x1aa   :  { %1144 = vmatpush1.bf16.msra.mxu0 %v8743_v41  ;;  %1080 = vmatprep.mubr.bf16.mxu1 %v11513_v0 }
 0x1ab   :  { %1161 = vmatprep.mubr.bf16.mxu0 %v11513_v0  ;;  %v9632_v8 = vpop.permute.xlu1 %1667 }
 0x1ac   :  { %v9630_v7 = vpop.permute.xlu0 %1662  ;;  %11662 = vst [vmem:[#allocation40_spill] sm:$0xff] %v9632_v8 }
 0x1ad   :  { %11661 = vst [vmem:[#allocation39_spill] sm:$0xff] %v9630_v7 }
 0x1af   :  { %v9636_v12 = vpop.permute.xlu1 %1485 }
 0x1b0   :  { %v9634_v10 = vpop.permute.xlu0 %1480  ;;  %11663 = vst [vmem:[#allocation41_spill] sm:$0xff] %v9636_v12 }
 0x1b1   :  { %1081 = vmatmul.mubr.bf16.vlgmr.msra.gmra.mrb[20].mxu1 %v9500_v26  ;;  %1162 = vmatmul.mubr.bf16.vlgmr.msra.gmra.mrb[40].mxu0 %v9500_v26 }
 0x1b2   :  { %8452 = vmatpush3.bf16.msra.mxu1 %v8746_v43  ;;  %1090 = vmatprep.mubr.bf16.mxu1 %v11513_v0  ;;  %v8754_v43 = vld [vmem:[#allocation9] ss:$36 sps:$4 sm:$0xff]  }
 0x1b3   :  { %8453 = vmatprep.subr.bf16.mxu1 %v11511_v42  ;;  %1171 = vmatprep.mubr.bf16.mxu0 %v11513_v0  ;;  %v9643_v14 = vpop.permute.xlu1 %1740 }
 0x1b4   :  { %11665 = vst [vmem:[#allocation43_spill] sm:$0xff] %v9643_v14 }
 0x1b6   :  { %8454 = vmatpush3.bf16.msra.mxu1 %v8747_v45  ;;  %v8756_v45 = vld [vmem:[#allocation9 + $0x4] ss:$36 sps:$4 sm:$0xff]  }
 0x1b7   :  { %8455 = vmatprep.subr.bf16.mxu1 %v11511_v42  ;;  %v9650_v17 = vpop.permute.xlu1 %1576  ;;  %2466 = vmatprep.subr.bf16.mxu0 %v8756_v45 }
 0x1b8   :  { %11667 = vst [vmem:[#allocation45_spill] sm:$0xff] %v9650_v17  ;;  %2467 = vmatpush1.bf16.msra.mxu0 %v8754_v43  ;;  %v8774_v43 = vld [vmem:[#allocation9 + $0x9c] ss:$36 sps:$4 sm:$0xff]  }
 0x1b9   :  { %1091 = vmatmul.mubr.bf16.gmra.mrb[24].mxu1 %v9518_v44  ;;  %1172 = vmatmul.mubr.bf16.gmra.mrb[44].mxu0 %v9518_v44 }
 0x1ba   :  { %8456 = vmatpush3.bf16.msra.mxu1 %v8748_v46  ;;  %1100 = vmatprep.mubr.bf16.mxu1 %v11513_v0 }
 0x1bb   :  { %8457 = vmatprep.subr.bf16.mxu1 %v11511_v42  ;;  %1181 = vmatprep.mubr.bf16.mxu0 %v11513_v0  ;;  %v9656_v19 = vpop.permute.xlu1 %1831 }
 0x1bc   :  { %11669 = vst [vmem:[#allocation47_spill] sm:$0xff] %v9656_v19 }
 0x1be   :  { %8458 = vmatpush3.bf16.msra.mxu1 %v8749_v47 }
 0x1bf   :  { %8459 = vmatprep.subr.bf16.mxu1 %v11511_v42  ;;  %v9660_v24 = vpop.permute.xlu1 %1922 }
 0x1c0   :  { %11671 = vst [vmem:[#allocation49_spill] sm:$0xff] %v9660_v24 }
 0x1c1   :  { %1101 = vmatmul.mubr.bf16.gmra.mrb[28].mxu1 %v9536_v63  ;;  %1182 = vmatmul.mubr.bf16.gmra.mrb[48].mxu0 %v9536_v63 }
 0x1c2   :  { %8460 = vmatpush3.bf16.msra.mxu1 %v8750_v48  ;;  %1110 = vmatprep.mubr.bf16.mxu1 %v11513_v0  ;;  %v8762_v48 = vld [vmem:[#allocation9 + $0xc] ss:$36 sps:$4 sm:$0xff]  }
 0x1c3   :  { %1191 = vmatprep.mubr.bf16.mxu0 %v11513_v0  ;;  %8461 = vmatprep.subr.bf16.mxu1 %v11511_v42  ;;  %v9664_v27 = vpop.permute.xlu1 %1339 }
 0x1c4   :  { %11673 = vst [vmem:[#allocation51_spill] sm:$0xff] %v9664_v27 }
 0x1c6   :  { %8462 = vmatpush3.bf16.msra.mxu1 %v8751_v52  ;;  %v8760_v52 = vld [vmem:[#allocation9 + $0x8] ss:$36 sps:$4 sm:$0xff]  }
 0x1c7   :  { %8463 = vmatprep.subr.bf16.mxu1 %v11511_v42  ;;  %v9668_v29 = vpop.permute.xlu1 %1422 }
 0x1c8   :  { %11675 = vst [vmem:[#allocation53_spill] sm:$0xff] %v9668_v29 }
 0x1c9   :  { %1111 = vmatmul.mubr.bf16.gmra.mrb[32].mxu1 %v9554_v25  ;;  %1192 = vmatmul.mubr.bf16.gmra.mrb[52].mxu0 %v9554_v25 }
 0x1ca   :  { %8464 = vmatpush3.bf16.msra.mxu1 %v8752_v56  ;;  %1120 = vmatprep.mubr.bf16.mxu1 %v11513_v0  ;;  %v8757_v56 = vld [vmem:[#allocation9 + $0x48] ss:$36 sps:$4 sm:$0xff]  }
 0x1cb   :  { %1201 = vmatprep.mubr.bf16.mxu0 %v11513_v0  ;;  %8465 = vmatprep.subr.bf16.mxu1 %v11511_v42  ;;  %v9672_v31 = vpop.permute.xlu1 %1677 }
 0x1cc   :  { %11677 = vst [vmem:[#allocation55_spill] sm:$0xff] %v9672_v31 }
 0x1ce   :  { %8466 = vmatpush3.bf16.msra.mxu1 %v8753_v59  ;;  %v8759_v59 = vld [vmem:[#allocation9 + $0x4c] ss:$36 sps:$4 sm:$0xff]  }
 0x1cf   :  { %v9676_v34 = vpop.permute.xlu1 %1495  ;;  %2547 = vmatprep.subr.bf16.mxu1 %v8762_v48  ;;  %2468 = vmatprep.subr.bf16.mxu0 %v8759_v59  ;;  %v8771_v59 = vld [vmem:[#allocation9 + $0xdc] ss:$36 sps:$4 sm:$0xff]  }
 0x1d0   :  { %11679 = vst [vmem:[#allocation57_spill] sm:$0xff] %v9676_v34  ;;  %2469 = vmatpush1.bf16.msra.mxu0 %v8757_v56  ;;  %v8780_v56 = vld [vmem:[#allocation9 + $0xe4] ss:$36 sps:$4 sm:$0xff]  }
 0x1d1   :  { %1121 = vmatmul.mubr.bf16.gmra.mrb[36].mxu1 %v9565_v13  ;;  %1202 = vmatmul.mubr.bf16.gmra.mrb[56].mxu0 %v9565_v13 }
 0x1d2   :  { %8467 = vmatprep.mubr.msk.bf16.mxu1 %vm9278_vm0, %v11511_v42  ;;  %2498 = vmatprep.mubr.bf16.mxu0 %v11513_v0 }
 0x1d3   :  { %v9680_v38 = vpop.permute.xlu1 %1750  ;;  %2470 = vmatprep.subr.bf16.mxu0 %v8765_v16  ;;  %v8777_v16 = vld [vmem:[#allocation9 + $0x124] ss:$36 sps:$4 sm:$0xff]  }
 0x1d4   :  { %11681 = vst [vmem:[#allocation59_spill] sm:$0xff] %v9680_v38  ;;  %2471 = vmatpush1.bf16.msra.mxu0 %v8763_v58 }
 0x1d5   :  { %2472 = vmatprep.subr.bf16.mxu0 %v8771_v59  ;;  %v8792_v59 = vld [vmem:[#allocation9 + $0x1b4] ss:$36 sps:$4 sm:$0xff]  }
 0x1d7   :  { %v9684_v41 = vpop.permute.xlu1 %1586 }
 0x1d8   :  { %11683 = vst [vmem:[#allocation61_spill] sm:$0xff] %v9684_v41  ;;  %2473 = vmatpush1.bf16.msra.mxu0 %v8769_v22 }
 0x1d9   :  { %8468 = vmatmul.mubr.bf16.vlgmr.msra.gmra.mrb[40].mxu1 %v9500_v26  ;;  %v9641_v26 = vpop.permute.xlu0 %1735  ;;  %2474 = vmatprep.subr.bf16.mxu0 %v8777_v16  ;;  %v8801_v16 = vld [vmem:[#allocation9 + $0x204] ss:$36 sps:$4 sm:$0xff]  }
 0x1da   :  { %8471 = vmatprep.mubr.msk.bf16.mxu1 %vm9278_vm0, %v11511_v42  ;;  %11664 = vst [vmem:[#allocation42_spill] sm:$0xff] %v9641_v26  ;;  %2548 = vmatpush1.bf16.msra.mxu1 %v8760_v52 }
 0x1db   :  { %v9688_v47 = vpop.permute.xlu1 %1841  ;;  %2549 = vmatprep.subr.bf16.mxu1 %v8768_v15  ;;  %v8786_v15 = vld [vmem:[#allocation9 + $0x12c] ss:$36 sps:$4 sm:$0xff]  }
 0x1dc   :  { %11685 = vst [vmem:[#allocation63_spill] sm:$0xff] %v9688_v47 }
 0x1de   :  { %2550 = vmatpush1.bf16.msra.mxu1 %v8766_v57  ;;  %v8775_v57 = vld [vmem:[#allocation9 + $0x120] ss:$36 sps:$4 sm:$0xff]  }
 0x1df   :  { %v9692_v45 = vpop.permute.xlu1 %1932  ;;  %2551 = vmatprep.subr.bf16.mxu1 %v8774_v43  ;;  %2475 = vmatpush1.bf16.msra.mxu0 %v8775_v57  ;;  %v8799_v57 = vld [vmem:[#allocation9 + $0x200] ss:$36 sps:$4 sm:$0xff]  }
 0x1e0   :  { %11687 = vst [vmem:[#allocation65_spill] sm:$0xff] %v9692_v45 }
 0x1e1   :  { %8472 = vmatmul.mubr.bf16.gmra.mrb[44].mxu1 %v9518_v44  ;;  %v9648_v44 = vpop.permute.xlu0 %1571 }
 0x1e2   :  { %8475 = vmatprep.mubr.msk.bf16.mxu1 %vm9278_vm0, %v11511_v42  ;;  %11666 = vst [vmem:[#allocation44_spill] sm:$0xff] %v9648_v44  ;;  %2552 = vmatpush1.bf16.msra.mxu1 %v8772_v39  ;;  %v8783_v39 = vld [vmem:[#allocation9 + $0x16c] ss:$36 sps:$4 sm:$0xff]  }
 0x1e3   :  { %v9696_v52 = vpop.permute.xlu1 %1349  ;;  %2553 = vmatprep.subr.bf16.mxu1 %v8780_v56  ;;  %2476 = vmatprep.subr.bf16.mxu0 %v8783_v39  ;;  %v8795_v56 = vld [vmem:[#allocation9 + $0x1bc] ss:$36 sps:$4 sm:$0xff]  }
 0x1e4   :  { %11689 = vst [vmem:[#allocation67_spill] sm:$0xff] %v9696_v52  ;;  %2477 = vmatpush1.bf16.msra.mxu0 %v8781_v37 }
 0x1e5   :  { %2478 = vmatprep.subr.bf16.mxu0 %v8792_v59  ;;  %v8804_v59 = vld [vmem:[#allocation9 + $0x14] ss:$36 sps:$4 sm:$0xff]  }
 0x1e6   :  { %2554 = vmatpush1.bf16.msra.mxu1 %v8778_v21 }
 0x1e7   :  { %v9700_v43 = vpop.permute.xlu1 %1432  ;;  %2555 = vmatprep.subr.bf16.mxu1 %v8786_v15  ;;  %v8796_v15 = vld [vmem:[#allocation9 + $0x1f8] ss:$36 sps:$4 sm:$0xff]  }
 0x1e8   :  { %11691 = vst [vmem:[#allocation69_spill] sm:$0xff] %v9700_v43  ;;  %2479 = vmatpush1.bf16.msra.mxu0 %v8790_v6 }
 0x1e9   :  { %8476 = vmatmul.mubr.bf16.gmra.mrb[48].mxu1 %v9536_v63  ;;  %v9654_v63 = vpop.permute.xlu0 %1826 }
 0x1ea   :  { %8479 = vmatprep.mubr.msk.bf16.mxu1 %vm9278_vm0, %v11511_v42  ;;  %11668 = vst [vmem:[#allocation46_spill] sm:$0xff] %v9654_v63 }
 0x1eb   :  { %v9704_v22 = vpop.permute.xlu1 %1687 }
 0x1ec   :  { %11693 = vst [vmem:[#allocation71_spill] sm:$0xff] %v9704_v22 }
 0x1ed   :  { %v9658_v23 = vpop.permute.xlu0 %1917 }
 0x1ee   :  { %11670 = vst [vmem:[#allocation48_spill] sm:$0xff] %v9658_v23 }
 0x1f1   :  { %8480 = vmatmul.mubr.bf16.gmra.mrb[52].mxu1 %v9554_v25  ;;  %v9662_v25 = vpop.permute.xlu0 %1334 }
 0x1f2   :  { %8483 = vmatprep.mubr.msk.bf16.mxu1 %vm9278_vm0, %v11511_v42  ;;  %11672 = vst [vmem:[#allocation50_spill] sm:$0xff] %v9662_v25  ;;  %v8784_v42 = vld [vmem:[#allocation9 + $0x128] ss:$36 sps:$4 sm:$0xff]  }
 0x1f3   :  { %2556 = vmatpush1.bf16.msra.mxu1 %v8784_v42  ;;  %v8798_v42 = vld [vmem:[#allocation9 + $0x1fc] ss:$36 sps:$4 sm:$0xff]  }
 0x1f4   :  { %2480 = vmatprep.subr.bf16.mxu0 %v8798_v42 }
 0x1f5   :  { %v9666_v28 = vpop.permute.xlu0 %1417  ;;  %2481 = vmatpush1.bf16.msra.mxu0 %v8796_v15 }
 0x1f6   :  { %11674 = vst [vmem:[#allocation52_spill] sm:$0xff] %v9666_v28  ;;  %2628 = vmatprep.subr.bf16.mxu0 %v8804_v59 }
 0x1f9   :  { %8484 = vmatmul.mubr.bf16.gmra.mrb[56].mxu1 %v9565_v13  ;;  %v9670_v30 = vpop.permute.xlu0 %1672 }
 0x1fa   :  { %2579 = vmatprep.mubr.bf16.mxu1 %v11513_v0  ;;  %11676 = vst [vmem:[#allocation54_spill] sm:$0xff] %v9670_v30  ;;  %v8789_v0 = vld [vmem:[#allocation9 + $0x174] ss:$36 sps:$4 sm:$0xff]  }
 0x1fb   :  { %2557 = vmatprep.subr.bf16.mxu1 %v8789_v0  ;;  %v9708_v0 = vpop.permute.xlu1 %1505 }
 0x1fc   :  { %2558 = vmatpush1.bf16.msra.mxu1 %v8787_v11  ;;  %11695 = vst [vmem:[#allocation73_spill] sm:$0xff] %v9708_v0 }
 0x1fd   :  { %v9674_v33 = vpop.permute.xlu0 %1490  ;;  %2559 = vmatprep.subr.bf16.mxu1 %v8795_v56  ;;  %v8810_v56 = vld [vmem:[#allocation9 + $0x1c] ss:$36 sps:$4 sm:$0xff]  }
 0x1fe   :  { %11678 = vst [vmem:[#allocation56_spill] sm:$0xff] %v9674_v33 }
 0x1ff   :  { %v9712_v37 = vpop.permute.xlu1 %1760 }
 0x200   :  { %2560 = vmatpush1.bf16.msra.mxu1 %v8793_v55  ;;  %11697 = vst [vmem:[#allocation75_spill] sm:$0xff] %v9712_v37 }
 0x201   :  { %v9678_v35 = vpop.permute.xlu0 %1745  ;;  %2561 = vmatprep.subr.bf16.mxu1 %v8801_v16 }
 0x202   :  { %11680 = vst [vmem:[#allocation58_spill] sm:$0xff] %v9678_v35 }
 0x203   :  { %v9716_v6 = vpop.permute.xlu1 %1596 }
 0x204   :  { %2562 = vmatpush1.bf16.msra.mxu1 %v8799_v57 }
 0x205   :  { %v9682_v13 = vpop.permute.xlu0 %1581  ;;  %2709 = vmatprep.subr.bf16.mxu1 %v8810_v56 }
 0x206   :  { %11682 = vst [vmem:[#allocation60_spill] sm:$0xff] %v9682_v13 }
 0x207   :  { %v9720_v36 = vpop.permute.xlu1 %1851 }
 0x208   :  { %11700 = vst [vmem:[#allocation78_spill] sm:$0xff] %v9720_v36 }
 0x209   :  { %v9686_v46 = vpop.permute.xlu0 %1836 }
 0x20a   :  { %11684 = vst [vmem:[#allocation62_spill] sm:$0xff] %v9686_v46 }
 0x20d   :  { %v9690_v40 = vpop.permute.xlu0 %1927 }
 0x20e   :  { %11686 = vst [vmem:[#allocation64_spill] sm:$0xff] %v9690_v40 }
 0x211   :  { %v9694_v48 = vpop.permute.xlu0 %1344 }
 0x212   :  { %11688 = vst [vmem:[#allocation66_spill] sm:$0xff] %v9694_v48 }
 0x215   :  { %v9698_v58 = vpop.permute.xlu0 %1427 }
 0x216   :  { %11690 = vst [vmem:[#allocation68_spill] sm:$0xff] %v9698_v58 }
 0x219   :  { %v9702_v21 = vpop.permute.xlu0 %1682 }
 0x21a   :  { %11692 = vst [vmem:[#allocation70_spill] sm:$0xff] %v9702_v21 }
 0x21d   :  { %v9706_v39 = vpop.permute.xlu0 %1500 }
 0x21e   :  { %11694 = vst [vmem:[#allocation72_spill] sm:$0xff] %v9706_v39 }
 0x221   :  { %v9710_v11 = vpop.permute.xlu0 %1755 }
 0x222   :  { %11696 = vst [vmem:[#allocation74_spill] sm:$0xff] %v9710_v11 }
 0x225   :  { %v9714_v55 = vpop.permute.xlu0 %1591 }
 0x226   :  { %11698 = vst [vmem:[#allocation76_spill] sm:$0xff] %v9714_v55 }
 0x229   :  { %v9718_v50 = vpop.permute.xlu0 %1846 }
 0x22a   :  { %11699 = vst [vmem:[#allocation77_spill] sm:$0xff] %v9718_v50 }
 0x25c   :  { %v9722_v42 = vpop.f32.mrb[0].mxu1  ;;  %v9724_v16 = vpop.f32.mrb[20].mxu0 }
 0x25d   :  { %v9726_v15 = vpop.f32.mrb[1].mxu1  ;;  %v9728_v57 = vpop.f32.mrb[21].mxu0  ;;  %v11533_v56 = vrot.slane %v9722_v42, 4 }
 0x25e   :  { %v924_v59 = vpop.f32.mrb[2].mxu1  ;;  %v1005_v32 = vpop.f32.mrb[22].mxu0  ;;  %v11539_v40 = vrot.slane %v9726_v15, 6  ;;  %v11544_v24 = vrot.slane %v9728_v57, 6 }
 0x25f   :  { %v1283_v20 = vrot.slane %v924_v59, 4  ;;  %v926_v18 = vpop.f32.mrb[3].mxu1  ;;  %v1007_v45 = vpop.f32.mrb[23].mxu0 }
 0x260   :  { %v1367_v23 = vrot.slane %v926_v18, 6  ;;  %v1532_v36 = vrot.slane %v1007_v45, 6  ;;  %v9750_v18 = vpop.permute.xlu0 %1937  ;;  %v9752_v45 = vpop.permute.xlu1 %1942 }
 0x261   :  { %v1301_v50 = vsel %vm1293_vm1, %v11533_v56, %v1283_v20  ;;  %11701 = vst [vmem:[#allocation79_spill] sm:$0xff] %v9750_v18  ;;  %11702 = vst [vmem:[#allocation80_spill] sm:$0xff] %v9752_v45 }
 0x262   :  { %v1360_v37 = vmul.f32 %v9618_v3, %v1301_v50  ;;  %v1383_v59 = vsel %vm1375_vm2, %v11539_v40, %v1367_v23  ;;  %v9748_v47 = vsel %vm1375_vm2, %v11544_v24, %v1532_v36  ;;  %v1516_v50 = vmul.f32 %v9636_v12, %v1005_v32 }
 0x263   :  { %v1443_v22 = vmul.f32 %v9625_v5, %v1383_v59 }
 0x264   :  { %v930_v56 = vpop.f32.mrb[4].mxu1  ;;  %v1011_v11 = vpop.f32.mrb[24].mxu0 }
 0x265   :  { %v1284_v3 = vrot.slane %v930_v56, 4  ;;  %v932_v46 = vpop.f32.mrb[5].mxu1  ;;  %v1013_v21 = vpop.f32.mrb[25].mxu0  ;;  %v1452_v40 = vadd.f32 %v1443_v22, %v1360_v37 }
 0x266   :  { %v1368_v38 = vrot.slane %v932_v46, 6  ;;  %v1533_v19 = vrot.slane %v1013_v21, 6  ;;  %v934_v31 = vpop.f32.mrb[6].mxu1  ;;  %v1015_v35 = vpop.f32.mrb[26].mxu0 }
 0x267   :  { %v1300_v24 = vsel %vm1293_vm1, %v1283_v20, %v1284_v3  ;;  %v1285_v18 = vrot.slane %v934_v31, 4  ;;  %v936_v63 = vpop.f32.mrb[7].mxu1  ;;  %v1017_v45 = vpop.f32.mrb[27].mxu0  ;;  %v1525_v30 = vadd.f32 %v1516_v50, %v1452_v40 }
 0x268   :  { %v1361_v59 = vmul.f32 %v9662_v25, %v1300_v24  ;;  %v1382_v32 = vsel %vm1375_vm2, %v1367_v23, %v1368_v38  ;;  %v9763_v56 = vsel %vm1375_vm2, %v1532_v36, %v1533_v19  ;;  %v1369_v46 = vrot.slane %v936_v63, 6  ;;  %v9771_v24 = vpop.permute.xlu0 %1354  ;;  %v9773_v37 = vpop.permute.xlu1 %1437 }
 0x269   :  { %v1444_v21 = vmul.f32 %v9666_v28, %v1382_v32  ;;  %v1299_v22 = vsel %vm1293_vm1, %v1284_v3, %v1285_v18  ;;  %v1534_v20 = vrot.slane %v1017_v45, 6  ;;  %11703 = vst [vmem:[#allocation81_spill] sm:$0xff] %v9771_v24  ;;  %11704 = vst [vmem:[#allocation82_spill] sm:$0xff] %v9773_v37  ;;  %v1517_v23 = vmul.f32 %v9674_v33, %v1011_v11 }
 0x26a   :  { %v1362_v31 = vmul.f32 %v9664_v27, %v1299_v22  ;;  %v1381_v40 = vsel %vm1375_vm2, %v1368_v38, %v1369_v46  ;;  %v1518_v22 = vmul.f32 %v9676_v34, %v1015_v35 }
 0x26b   :  { %v1445_v36 = vmul.f32 %v9668_v29, %v1381_v40  ;;  %v1545_v63 = vsel %vm1375_vm2, %v1533_v19, %v1534_v20  ;;  %v1453_v50 = vadd.f32 %v1444_v21, %v1361_v59 }
 0x26c   :  { %v940_v32 = vpop.f32.mrb[8].mxu1  ;;  %v1021_v3 = vpop.f32.mrb[28].mxu0  ;;  %v1607_v45 = vmul.f32 %v9650_v17, %v1545_v63 }
 0x26d   :  { %v1286_v27 = vrot.slane %v940_v32, 4  ;;  %v942_v38 = vpop.f32.mrb[9].mxu1  ;;  %v1023_v28 = vpop.f32.mrb[29].mxu0  ;;  %v1526_v25 = vadd.f32 %v1517_v23, %v1453_v50  ;;  %v1454_v12 = vadd.f32 %v1445_v36, %v1362_v31  ;;  %v1519_v50 = vmul.f32 %v9706_v39, %v1021_v3 }
 0x26e   :  { %v1370_v5 = vrot.slane %v942_v38, 6  ;;  %v1535_v14 = vrot.slane %v1023_v28, 6  ;;  %v944_v11 = vpop.f32.mrb[10].mxu1  ;;  %v1025_v33 = vpop.f32.mrb[30].mxu0  ;;  %v9781_v40 = vadd.f32 %v1607_v45, %v1525_v30 }
 0x26f   :  { %v1298_v19 = vsel %vm1293_vm1, %v1285_v18, %v1286_v27  ;;  %v1287_v59 = vrot.slane %v944_v11, 4  ;;  %v946_v21 = vpop.f32.mrb[11].mxu1  ;;  %v1027_v29 = vpop.f32.mrb[31].mxu0  ;;  %v1527_v63 = vadd.f32 %v1518_v22, %v1454_v12 }
 0x270   :  { %v1363_v35 = vmul.f32 %v9694_v48, %v1298_v19  ;;  %v1380_v32 = vsel %vm1375_vm2, %v1369_v46, %v1370_v5  ;;  %v1544_v31 = vsel %vm1375_vm2, %v1534_v20, %v1535_v14  ;;  %v1371_v28 = vrot.slane %v946_v21, 6  ;;  %v9798_v46 = vpop.permute.xlu0 %1692  ;;  %v9800_v22 = vpop.permute.xlu1 %1697 }
 0x271   :  { %v1446_v23 = vmul.f32 %v9698_v58, %v1380_v32  ;;  %v1297_v30 = vsel %vm1293_vm1, %v1286_v27, %v1287_v59  ;;  %v1536_v36 = vrot.slane %v1027_v29, 6  ;;  %v1608_v18 = vmul.f32 %v9682_v13, %v1544_v31  ;;  %11705 = vst [vmem:[#allocation83_spill] sm:$0xff] %v9798_v46 }
 0x272   :  { %v1364_v12 = vmul.f32 %v9696_v52, %v1297_v30  ;;  %v1379_v45 = vsel %vm1375_vm2, %v1370_v5, %v1371_v28  ;;  %v1520_v21 = vmul.f32 %v9708_v0, %v1025_v33 }
 0x273   :  { %v1447_v20 = vmul.f32 %v9700_v43, %v1379_v45  ;;  %v1543_v38 = vsel %vm1375_vm2, %v1535_v14, %v1536_v36  ;;  %v9805_v27 = vadd.f32 %v1608_v18, %v1526_v25  ;;  %v1455_v29 = vadd.f32 %v1446_v23, %v1363_v35 }
 0x274   :  { %v950_v11 = vpop.f32.mrb[12].mxu1  ;;  %v1031_v19 = vpop.f32.mrb[32].mxu0  ;;  %v1609_v3 = vmul.f32 %v9684_v41, %v1543_v38 }
 0x275   :  { %v1288_v32 = vrot.slane %v950_v11, 4  ;;  %v952_v5 = vpop.f32.mrb[13].mxu1  ;;  %v1033_v31 = vpop.f32.mrb[33].mxu0  ;;  %v1528_v30 = vadd.f32 %v1519_v50, %v1455_v29  ;;  %v1456_v52 = vadd.f32 %v1447_v20, %v1364_v12 }
 0x276   :  { %v1372_v39 = vrot.slane %v952_v5, 6  ;;  %v1537_v13 = vrot.slane %v1033_v31, 6  ;;  %v954_v45 = vpop.f32.mrb[14].mxu1  ;;  %v1035_v43 = vpop.f32.mrb[34].mxu0  ;;  %v9809_v58 = vadd.f32 %v1609_v3, %v1527_v63 }
 0x277   :  { %v1296_v14 = vsel %vm1293_vm1, %v1287_v59, %v1288_v32  ;;  %v1289_v25 = vrot.slane %v954_v45, 4  ;;  %v956_v35 = vpop.f32.mrb[15].mxu1  ;;  %v1037_v23 = vpop.f32.mrb[35].mxu0  ;;  %v1529_v18 = vadd.f32 %v1520_v21, %v1456_v52 }
 0x278   :  { %v1365_v33 = vmul.f32 %v9771_v24, %v1296_v14  ;;  %v1378_v38 = vsel %vm1375_vm2, %v1371_v28, %v1372_v39  ;;  %v1542_v50 = vsel %vm1375_vm2, %v1536_v36, %v1537_v13  ;;  %v1373_v12 = vrot.slane %v956_v35, 6  ;;  %v9818_v20 = vpop.permute.xlu0 %1510  ;;  %v9828_v21 = vpop.permute.xlu1 %1765 }
 0x279   :  { %11706 = vst [vmem:[#allocation84_spill] sm:$0xff] %v9818_v20  ;;  %v1448_v63 = vmul.f32 %v9773_v37, %v1378_v38  ;;  %v1295_v59 = vsel %vm1293_vm1, %v1288_v32, %v1289_v25  ;;  %v1538_v29 = vrot.slane %v1037_v23, 6  ;;  %v1610_v11 = vmul.f32 %v9714_v55, %v1542_v50 }
 0x27a   :  { %v1521_v52 = vmul.f32 %v9818_v20, %v1031_v19  ;;  %v1357_v3 = vmul.f32 %v9584_v49, %v1295_v59  ;;  %v1377_v28 = vsel %vm1375_vm2, %v1372_v39, %v1373_v12  ;;  %v1513_v19 = vmul.f32 %v9601_v60, %v1035_v43 }
 0x27b   :  { %v1440_v36 = vmul.f32 %v9586_v51, %v1377_v28  ;;  %v1541_v5 = vsel %vm1375_vm2, %v1537_v13, %v1538_v29  ;;  %v9833_v31 = vadd.f32 %v1610_v11, %v1528_v30  ;;  %v1457_v32 = vadd.f32 %v1448_v63, %v1365_v33 }
 0x27c   :  { %v960_v45 = vpop.f32.mrb[16].mxu1  ;;  %v1041_v14 = vpop.f32.mrb[36].mxu0  ;;  %v1611_v35 = vmul.f32 %v9716_v6, %v1541_v5  ;;  %v11707_v30 = vrot.slane %v9722_v42, 4 }
 0x27d   :  { %v1290_v23 = vrot.slane %v960_v45, 4  ;;  %v962_v38 = vpop.f32.mrb[17].mxu1  ;;  %v1043_v50 = vpop.f32.mrb[37].mxu0  ;;  %v1449_v39 = vadd.f32 %v1440_v36, %v1357_v3  ;;  %v1530_v59 = vadd.f32 %v1521_v52, %v1457_v32  ;;  %v11709_v45 = vrot.slane %v9728_v57, 6 }
 0x27e   :  { %v1374_v49 = vrot.slane %v962_v38, 6  ;;  %v1539_v20 = vrot.slane %v1043_v50, 6  ;;  %v964_v28 = vpop.f32.mrb[18].mxu1  ;;  %v1045_v51 = vpop.f32.mrb[38].mxu0  ;;  %v9837_v55 = vadd.f32 %v1611_v35, %v1529_v18  ;;  %v11708_v18 = vrot.slane %v9726_v15, 6 }
 0x27f   :  { %v1294_v13 = vsel %vm1293_vm1, %v1289_v25, %v1290_v23  ;;  %v1302_v33 = vsel %vm1293_vm1, %v1290_v23, %v11707_v30  ;;  %v965_v43 = vpop.f32.mrb[19].mxu1  ;;  %v1046_v63 = vpop.f32.mrb[39].mxu0  ;;  %v1522_v11 = vadd.f32 %v1513_v19, %v1449_v39  ;;  %v1514_v19 = vmul.f32 %v9603_v61, %v1041_v14 }
 0x280   :  { %v1358_v3 = vmul.f32 %v9593_v53, %v1294_v13  ;;  %v1359_v52 = vmul.f32 %v9616_v2, %v1302_v33  ;;  %v1376_v51 = vsel %vm1375_vm2, %v1373_v12, %v1374_v49  ;;  %v1384_v25 = vsel %vm1375_vm2, %v1374_v49, %v11708_v18  ;;  %v9853_v36 = vpop.permute.xlu1 %1601 }
 0x281   :  { %v1441_v42 = vmul.f32 %v9595_v54, %v1376_v51  ;;  %v1442_v5 = vmul.f32 %v9623_v4, %v1384_v25  ;;  %v1540_v32 = vsel %vm1375_vm2, %v1538_v29, %v1539_v20  ;;  %v1548_v35 = vsel %vm1375_vm2, %v1539_v20, %v11709_v45 }
 0x282   :  { %v1604_v12 = vmul.f32 %v9607_v62, %v1548_v35  ;;  %v1612_v15 = vmul.f32 %v9853_v36, %v1540_v32  ;;  %v1515_v49 = vmul.f32 %v9634_v10, %v9724_v16  ;;  %v1605_v30 = vmul.f32 %v9611_v1, %v9748_v47  ;;  %v9895_v32 = vpop.permute.xlu0 %1770 }
 0x283   :  { %v1450_v23 = vadd.f32 %v1441_v42, %v1358_v3  ;;  %v1451_v38 = vadd.f32 %v1442_v5, %v1359_v52  ;;  %v1606_v16 = vmul.f32 %v9648_v44, %v9763_v56 }
 0x284   :  { %v1082_v50 = vpop.f32.mrb[20].mxu1  ;;  %v1613_v39 = vadd.f32 %v1604_v12, %v1522_v11  ;;  %v9868_v28 = vpop.f32.mrb[40].mxu0  ;;  %v9870_v29 = vadd.f32 %v1612_v15, %v1530_v59 }
 0x285   :  { %v9872_v57 = vpop.f32.mrb[21].mxu1  ;;  %v9874_v20 = vpop.f32.mrb[41].mxu0  ;;  %v1523_v13 = vadd.f32 %v1514_v19, %v1450_v23  ;;  %v1524_v33 = vadd.f32 %v1515_v49, %v1451_v38 }
 0x286   :  { %v1622_v14 = vadd.f32 %v1613_v39, %v1082_v50  ;;  %v1086_v43 = vpop.f32.mrb[22].mxu1  ;;  %v9880_v63 = vpop.f32.mrb[42].mxu0  ;;  %v11583_v51 = vrot.slane %v9872_v57, 2  ;;  %v11582_v18 = vrot.slane %v9874_v20, 2 }
 0x287   :  { %v1614_v59 = vadd.f32 %v1605_v30, %v1523_v13  ;;  %v1088_v11 = vpop.f32.mrb[23].mxu1  ;;  %v1169_v3 = vpop.f32.mrb[43].mxu0  ;;  %v1615_v52 = vadd.f32 %v1606_v16, %v1524_v33 }
 0x288   :  { %v1632_v25 = vrot.slane %v1088_v11, 2  ;;  %v1797_v47 = vrot.slane %v1169_v3, 2 }
 0x289   :  { %v1623_v42 = vadd.f32 %v1614_v59, %v1086_v43 }
 0x28a   :  { %v1648_v56 = vsel %vm1640_vm3, %v11583_v51, %v1632_v25  ;;  %v9893_v5 = vsel %vm1640_vm3, %v11582_v18, %v1797_v47 }
 0x28b   :  { %v1705_v45 = vmul.f32 %v9630_v7, %v1648_v56 }
 0x28c   :  { %v1092_v35 = vpop.f32.mrb[24].mxu1  ;;  %v1173_v12 = vpop.f32.mrb[44].mxu0 }
 0x28d   :  { %v1624_v15 = vadd.f32 %v1615_v52, %v1092_v35  ;;  %v1714_v49 = vadd.f32 %v1705_v45, %v1622_v14  ;;  %v1778_v19 = vmul.f32 %v9641_v26, %v1173_v12  ;;  %v1094_v23 = vpop.f32.mrb[25].mxu1  ;;  %v1175_v38 = vpop.f32.mrb[45].mxu0 }
 0x28e   :  { %v1633_v50 = vrot.slane %v1094_v23, 2  ;;  %v1798_v39 = vrot.slane %v1175_v38, 2  ;;  %v1096_v13 = vpop.f32.mrb[26].mxu1  ;;  %v1177_v30 = vpop.f32.mrb[46].mxu0  ;;  %v11712_v38 = vld [vmem:[#allocation46_spill] sm:$0xff] }
 0x28f   :  { %v1787_v33 = vadd.f32 %v1778_v19, %v1714_v49  ;;  %v1625_v16 = vadd.f32 %v9781_v40, %v1096_v13  ;;  %v1098_v43 = vpop.f32.mrb[27].mxu1  ;;  %v1179_v59 = vpop.f32.mrb[47].mxu0  ;;  %v11710_v49 = vld [vmem:[#allocation43_spill] sm:$0xff] }
 0x290   :  { %v1647_v11 = vsel %vm1640_vm3, %v1632_v25, %v1633_v50  ;;  %v9904_v3 = vsel %vm1640_vm3, %v1797_v47, %v1798_v39  ;;  %v1634_v14 = vrot.slane %v1098_v43, 2  ;;  %v1799_v52 = vrot.slane %v1179_v59, 2  ;;  %v9911_v40 = vpop.permute.xlu0 %1856  ;;  %v11711_v25 = vld [vmem:[#allocation54_spill] sm:$0xff] }
 0x291   :  { %v1706_v56 = vmul.f32 %v9632_v8, %v1647_v11  ;;  %v1779_v19 = vmul.f32 %v11710_v49, %v1177_v30 }
 0x292   :  { %v1646_v45 = vsel %vm1640_vm3, %v1633_v50, %v1634_v14  ;;  %v1810_v35 = vsel %vm1640_vm3, %v1798_v39, %v1799_v52  ;;  %v11713_v39 = vld [vmem:[#allocation58_spill] sm:$0xff] }
 0x293   :  { %v1715_v12 = vadd.f32 %v1706_v56, %v1623_v42  ;;  %v1707_v23 = vmul.f32 %v11711_v25, %v1646_v45  ;;  %v1869_v47 = vmul.f32 %v11712_v38, %v1810_v35 }
 0x294   :  { %v1102_v13 = vpop.f32.mrb[28].mxu1  ;;  %v1183_v43 = vpop.f32.mrb[48].mxu0 }
 0x295   :  { %v1788_v59 = vadd.f32 %v1779_v19, %v1715_v12  ;;  %v9916_v18 = vadd.f32 %v1869_v47, %v1787_v33  ;;  %v1626_v11 = vadd.f32 %v9805_v27, %v1102_v13  ;;  %v1716_v50 = vadd.f32 %v1707_v23, %v1624_v15  ;;  %v1104_v51 = vpop.f32.mrb[29].mxu1  ;;  %v1185_v8 = vpop.f32.mrb[49].mxu0  ;;  %v11714_v12 = vld [vmem:[#allocation55_spill] sm:$0xff] }
 0x296   :  { %v1780_v26 = vmul.f32 %v11713_v39, %v1183_v43  ;;  %v1635_v7 = vrot.slane %v1104_v51, 2  ;;  %v1800_v42 = vrot.slane %v1185_v8, 2  ;;  %v1106_v56 = vpop.f32.mrb[30].mxu1  ;;  %v1187_v30 = vpop.f32.mrb[50].mxu0  ;;  %v11715_v23 = vld [vmem:[#allocation47_spill] sm:$0xff] }
 0x297   :  { %v1627_v45 = vadd.f32 %v9809_v58, %v1106_v56  ;;  %v1108_v25 = vpop.f32.mrb[31].mxu1  ;;  %v1189_v35 = vpop.f32.mrb[51].mxu0  ;;  %v11716_v8 = vld [vmem:[#allocation59_spill] sm:$0xff]  ;;  %v11718_v56 = vld [vmem:[#allocation70_spill] sm:$0xff] }
 0x298   :  { %v1789_v38 = vadd.f32 %v1780_v26, %v1716_v50  ;;  %v1645_v33 = vsel %vm1640_vm3, %v1634_v14, %v1635_v7  ;;  %v1809_v27 = vsel %vm1640_vm3, %v1799_v52, %v1800_v42  ;;  %v1636_v15 = vrot.slane %v1108_v25, 2  ;;  %v9930_v43 = vpop.permute.xlu1 %1861  ;;  %v9932_v26 = vpop.permute.xlu0 %1947 }
 0x299   :  { %v1708_v19 = vmul.f32 %v11714_v12, %v1645_v33  ;;  %v1870_v47 = vmul.f32 %v11715_v23, %v1809_v27  ;;  %v1801_v51 = vrot.slane %v1189_v35, 2  ;;  %v1781_v13 = vmul.f32 %v11716_v8, %v1187_v30  ;;  %11717 = vst [vmem:[#allocation85_spill] sm:$0xff] %v9932_v26  ;;  %v11719_v33 = vld [vmem:[#allocation62_spill] sm:$0xff] }
 0x29a   :  { %v1644_v58 = vsel %vm1640_vm3, %v1635_v7, %v1636_v15  ;;  %v11720_v12 = vld [vmem:[#allocation74_spill] sm:$0xff] }
 0x29b   :  { %v9934_v50 = vadd.f32 %v1870_v47, %v1788_v59  ;;  %v1717_v14 = vadd.f32 %v1708_v19, %v1625_v16  ;;  %v1709_v52 = vmul.f32 %v11718_v56, %v1644_v58  ;;  %v1808_v25 = vsel %vm1640_vm3, %v1800_v42, %v1801_v51 }
 0x29c   :  { %v1871_v27 = vmul.f32 %v11719_v33, %v1808_v25  ;;  %v1112_v35 = vpop.f32.mrb[32].mxu1  ;;  %v1193_v23 = vpop.f32.mrb[52].mxu0 }
 0x29d   :  { %v1790_v30 = vadd.f32 %v1781_v13, %v1717_v14  ;;  %v1628_v8 = vadd.f32 %v9833_v31, %v1112_v35  ;;  %v1718_v7 = vadd.f32 %v1709_v52, %v1626_v11  ;;  %v1782_v39 = vmul.f32 %v11720_v12, %v1193_v23  ;;  %v1114_v49 = vpop.f32.mrb[33].mxu1  ;;  %v1195_v44 = vpop.f32.mrb[53].mxu0  ;;  %v11721_v14 = vld [vmem:[#allocation71_spill] sm:$0xff] }
 0x29e   :  { %v9942_v59 = vadd.f32 %v1871_v27, %v1789_v38  ;;  %v1637_v16 = vrot.slane %v1114_v49, 2  ;;  %v1802_v19 = vrot.slane %v1195_v44, 2  ;;  %v1116_v47 = vpop.f32.mrb[34].mxu1  ;;  %v1197_v58 = vpop.f32.mrb[54].mxu0  ;;  %v11722_v52 = vld [vmem:[#allocation63_spill] sm:$0xff] }
 0x29f   :  { %v1791_v56 = vadd.f32 %v1782_v39, %v1718_v7  ;;  %v1629_v42 = vadd.f32 %v9837_v55, %v1116_v47  ;;  %v1118_v25 = vpop.f32.mrb[35].mxu1  ;;  %v1199_v33 = vpop.f32.mrb[55].mxu0  ;;  %v11723_v44 = vld [vmem:[#allocation75_spill] sm:$0xff]  ;;  %v11725_v47 = vld [vmem:[#allocation77_spill] sm:$0xff] }
 0x2a0   :  { %v1643_v13 = vsel %vm1640_vm3, %v1636_v15, %v1637_v16  ;;  %v1807_v31 = vsel %vm1640_vm3, %v1801_v51, %v1802_v19  ;;  %v1638_v11 = vrot.slane %v1118_v25, 2  ;;  %v1803_v23 = vrot.slane %v1199_v33, 2  ;;  %v9956_v35 = vpop.permute.xlu1 %1952  ;;  %v9958_v15 = vpop.permute.xlu0 %1702 }
 0x2a1   :  { %v1710_v38 = vmul.f32 %v11721_v14, %v1643_v13  ;;  %v1872_v49 = vmul.f32 %v11722_v52, %v1807_v31  ;;  %v1783_v27 = vmul.f32 %v11723_v44, %v1197_v58  ;;  %11724 = vst [vmem:[#allocation86_spill] sm:$0xff] %v9956_v35 }
 0x2a2   :  { %v1642_v39 = vsel %vm1640_vm3, %v1637_v16, %v1638_v11  ;;  %v1806_v55 = vsel %vm1640_vm3, %v1802_v19, %v1803_v23 }
 0x2a3   :  { %v9960_v7 = vadd.f32 %v1872_v49, %v1790_v30  ;;  %v1719_v51 = vadd.f32 %v1710_v38, %v1627_v45  ;;  %v1711_v33 = vmul.f32 %v9798_v46, %v1642_v39  ;;  %v1873_v25 = vmul.f32 %v11725_v47, %v1806_v55 }
 0x2a4   :  { %v1122_v13 = vpop.f32.mrb[36].mxu1  ;;  %v1203_v31 = vpop.f32.mrb[56].mxu0 }
 0x2a5   :  { %v1792_v58 = vadd.f32 %v1783_v27, %v1719_v51  ;;  %v9964_v44 = vadd.f32 %v1873_v25, %v1791_v56  ;;  %v1630_v16 = vadd.f32 %v9870_v29, %v1122_v13  ;;  %v1720_v52 = vadd.f32 %v1711_v33, %v1628_v8  ;;  %v1124_v19 = vpop.f32.mrb[37].mxu1  ;;  %v1205_v14 = vpop.f32.mrb[57].mxu0 }
 0x2a6   :  { %v1784_v12 = vmul.f32 %v9828_v21, %v1203_v31  ;;  %v1639_v1 = vrot.slane %v1124_v19, 2  ;;  %v1804_v30 = vrot.slane %v1205_v14, 2  ;;  %v1126_v49 = vpop.f32.mrb[38].mxu1  ;;  %v1207_v45 = vpop.f32.mrb[58].mxu0  ;;  %v11726_v56 = vrot.slane %v9872_v57, 2 }
 0x2a7   :  { %v1127_v38 = vpop.f32.mrb[39].mxu1  ;;  %v1208_v39 = vpop.f32.mrb[59].mxu0  ;;  %v11727_v51 = vrot.slane %v9874_v20, 2  ;;  %v1785_v57 = vmul.f32 %v9895_v32, %v9868_v28  ;;  %v1876_v49 = vmul.f32 %v9930_v43, %v9893_v5 }
 0x2a8   :  { %v1793_v46 = vadd.f32 %v1784_v12, %v1720_v52  ;;  %v1641_v55 = vsel %vm1640_vm3, %v1638_v11, %v1639_v1  ;;  %v1649_v29 = vsel %vm1640_vm3, %v1639_v1, %v11726_v56  ;;  %v1805_v8 = vsel %vm1640_vm3, %v1803_v23, %v1804_v30  ;;  %v11728_v52 = vld [vmem:[#allocation78_spill] sm:$0xff]  ;;  %v9983_v11 = vpop.permute.xlu1 %1775  ;;  %v9992_v20 = vpop.permute.xlu0 %1866 }
 0x2a9   :  { %v1712_v27 = vmul.f32 %v9800_v22, %v1641_v55  ;;  %v1713_v14 = vmul.f32 %v9958_v15, %v1649_v29  ;;  %v1813_v12 = vsel %vm1640_vm3, %v1804_v30, %v11727_v51  ;;  %v1874_v33 = vmul.f32 %v11728_v52, %v1805_v8 }
 0x2aa   :  { %v1875_v1 = vmul.f32 %v9911_v40, %v1813_v12  ;;  %v1786_v23 = vmul.f32 %v9983_v11, %v9880_v63  ;;  %v1877_v28 = vmul.f32 %v9992_v20, %v9904_v3 }
 0x2ab   :  { %v1721_v25 = vadd.f32 %v1712_v27, %v1629_v42  ;;  %v1722_v13 = vadd.f32 %v1713_v14, %v1630_v16  ;;  %v9990_v31 = vadd.f32 %v1874_v33, %v1792_v58 }
 0x2ac   :  { %v9994_v19 = vadd.f32 %v1875_v1, %v1793_v46  ;;  %v9996_v30 = vpop.f32.mrb[40].mxu1  ;;  %v10010_v51 = vpop.permute.xlu1 %1957 }
 0x2ad   :  { %v1794_v45 = vadd.f32 %v1785_v57, %v1721_v25  ;;  %v1795_v38 = vadd.f32 %v1786_v23, %v1722_v13  ;;  %v8469_v39 = vpop.f32.mrb[41].mxu1  ;;  %v11596_v42 = vrot.slane %v9996_v30, 4  ;;  %11729 = vst [vmem:[#allocation77_spill] sm:$0xff] %v10010_v51  ;;  %v1980_v25 = vsub.s32 1, %v9483_v9 }
 0x2ae   :  { %v1247_v63 = vpop.f32.mrb[42].mxu1 }
 0x2af   :  { %v1885_v58 = vadd.f32 %v1876_v49, %v1794_v45  ;;  %v1888_v16 = vrot.slane %v1247_v63, 4  ;;  %v8470_v55 = vpop.f32.mrb[43].mxu1  ;;  %v1886_v56 = vadd.f32 %v1877_v28, %v1795_v38  ;;  %v11730_v49 = vld [vmem:[#allocation48_spill] sm:$0xff] }
 0x2b0   :  { %v1993_v55 = vsub.s32 2, %v9483_v9 }
 0x2b1   :  { %v1903_v46 = vsel %vm1293_vm1, %v11596_v42, %v1888_v16 }
 0x2b2   :  { %v1967_v5 = vmul.f32 %v9956_v35, %v1903_v46 }
 0x2b4   :  { %v10008_v29 = vadd.f32 %v1967_v5, %v1885_v58  ;;  %v1252_v3 = vpop.f32.mrb[44].mxu1  ;;  %v9066_v58 = vld [vmem:[#allocation15] sm:$0xff] }
 0x2b5   :  { %v1889_v8 = vrot.slane %v1252_v3, 4  ;;  %v8473_v27 = vpop.f32.mrb[45].mxu1 }
 0x2b6   :  { %v1255_v14 = vpop.f32.mrb[46].mxu1  ;;  %v11731_v27 = vld [vmem:[#allocation49_spill] sm:$0xff] }
 0x2b7   :  { %v1902_v12 = vsel %vm1293_vm1, %v1888_v16, %v1889_v8  ;;  %v1890_v33 = vrot.slane %v1255_v14, 4  ;;  %v8474_v57 = vpop.f32.mrb[47].mxu1  ;;  %v10022_v16 = vrot.slane %v9066_v58, %v1980_v25 }
 0x2b8   :  { %v1968_v1 = vmul.f32 %v10010_v51, %v1902_v12  ;;  %v10031_v12 = vrot.slane %v9066_v58, %v1993_v55 }
 0x2b9   :  { %v1901_v23 = vsel %vm1293_vm1, %v1889_v8, %v1890_v33 }
 0x2ba   :  { %v10018_v13 = vadd.f32 %v1968_v1, %v1886_v56  ;;  %v1960_v28 = vmul.f32 %v11730_v49, %v1901_v23  ;;  %v11732_v1 = vld [vmem:[#allocation64_spill] sm:$0xff] }
 0x2bc   :  { %v1969_v45 = vadd.f32 %v1960_v28, %v9916_v18  ;;  %v1260_v38 = vpop.f32.mrb[48].mxu1 }
 0x2bd   :  { %v1891_v39 = vrot.slane %v1260_v38, 4  ;;  %v8477_v63 = vpop.f32.mrb[49].mxu1 }
 0x2be   :  { %v1263_v46 = vpop.f32.mrb[50].mxu1  ;;  %v1982_v56 = vmul.f32 %v10022_v16, %v1969_v45 }
 0x2bf   :  { %v1900_v5 = vsel %vm1293_vm1, %v1890_v33, %v1891_v39  ;;  %v1892_v3 = vrot.slane %v1263_v46, 4  ;;  %v8478_v8 = vpop.f32.mrb[51].mxu1 }
 0x2c0   :  { %v1961_v14 = vmul.f32 %v11731_v27, %v1900_v5  ;;  %v1995_v25 = vadd.f32 %v10031_v12, %v1982_v56  ;;  %v11733_v56 = vld [vmem:[#allocation65_spill] sm:$0xff] }
 0x2c1   :  { %v1899_v18 = vsel %vm1293_vm1, %v1891_v39, %v1892_v3 }
 0x2c2   :  { %v1970_v57 = vadd.f32 %v1961_v14, %v9934_v50  ;;  %v1962_v23 = vmul.f32 %v11732_v1, %v1899_v18  ;;  %v2004_v8 = vmax.f32 %v1995_v25, 0.0 }
 0x2c4   :  { %v1983_v28 = vmul.f32 %v10022_v16, %v1970_v57  ;;  %v1971_v33 = vadd.f32 %v1962_v23, %v9942_v59  ;;  %v1268_v38 = vpop.f32.mrb[52].mxu1  ;;  %v8802_v57 = vld [vmem:[#allocation9 + $0x10] ss:$36 sps:$4 sm:$0xff]  }
 0x2c5   :  { %v1893_v63 = vrot.slane %v1268_v38, 4  ;;  %v8481_v45 = vpop.f32.mrb[53].mxu1  ;;  %v11734_v38 = vld [vmem:[#allocation79_spill] sm:$0xff] }
 0x2c6   :  { %v1996_v46 = vadd.f32 %v10031_v12, %v1983_v28  ;;  %v1271_v5 = vpop.f32.mrb[54].mxu1  ;;  %v1984_v39 = vmul.f32 %v10022_v16, %v1971_v33  ;;  %v8807_v33 = vld [vmem:[#allocation9 + $0x5c] ss:$36 sps:$4 sm:$0xff]  }
 0x2c7   :  { %v1898_v58 = vsel %vm1293_vm1, %v1892_v3, %v1893_v63  ;;  %v1894_v50 = vrot.slane %v1271_v5, 4  ;;  %v8482_v55 = vpop.f32.mrb[55].mxu1  ;;  %v8808_v3 = vld [vmem:[#allocation9 + $0x18] ss:$36 sps:$4 sm:$0xff]  }
 0x2c8   :  { %v2005_v14 = vmax.f32 %v1996_v46, 0.0  ;;  %v1963_v18 = vmul.f32 %v11733_v56, %v1898_v58  ;;  %v1997_v42 = vadd.f32 %v10031_v12, %v1984_v39  ;;  %v8805_v55 = vld [vmem:[#allocation9 + $0x58] ss:$36 sps:$4 sm:$0xff]  }
 0x2c9   :  { %v1897_v59 = vsel %vm1293_vm1, %v1893_v63, %v1894_v50  ;;  %v8816_v63 = vld [vmem:[#allocation9 + $0x64] ss:$36 sps:$4 sm:$0xff]  }
 0x2ca   :  { %v1972_v23 = vadd.f32 %v1963_v18, %v9960_v7  ;;  %v1964_v28 = vmul.f32 %v11734_v38, %v1897_v59  ;;  %v10047_v45 = vpack.c.bf16 %v2005_v14, %v2004_v8  ;;  %v11735_v8 = vmov 0   ;;  %v8813_v18 = vld [vmem:[#allocation9 + $0xa4] ss:$36 sps:$4 sm:$0xff]  }
 0x2cb   :  { %v2006_v59 = vmax.f32 %v1997_v42, 0.0  ;;  %v8811_v42 = vld [vmem:[#allocation9 + $0xa0] ss:$36 sps:$4 sm:$0xff]  }
 0x2cc   :  { %v1985_v5 = vmul.f32 %v10022_v16, %v1972_v23  ;;  %v1973_v25 = vadd.f32 %v1964_v28, %v9964_v44  ;;  %v1276_v46 = vpop.f32.mrb[56].mxu1  ;;  %2499 = vmatmul.mubr.bf16.vlgmr.msra.gmra.mrb[60].mxu0 %v10047_v45  ;;  %2580 = vmatmul.mubr.bf16.vlgmr.msra.gmra.mrb[60].mxu1 %v10047_v45  ;;  %v1989_v44 = vmul.f32 %v10022_v16, %v10008_v29 }
 0x2cd   :  { %v1895_v58 = vrot.slane %v1276_v46, 4  ;;  %2629 = vmatpush1.bf16.msra.mxu0 %v8802_v57  ;;  %v8485_v7 = vpop.f32.mrb[57].mxu1  ;;  %2508 = vmatprep.mubr.bf16.mxu0 %v11735_v8  ;;  %v11736_v57 = vrot.slane %v9996_v30, 4 }
 0x2ce   :  { %v1998_v14 = vadd.f32 %v10031_v12, %v1985_v5  ;;  %v1279_v39 = vpop.f32.mrb[58].mxu1  ;;  %2630 = vmatprep.subr.bf16.mxu0 %v8807_v33  ;;  %2589 = vmatprep.mubr.bf16.mxu1 %v11735_v8  ;;  %v8814_v5 = vld [vmem:[#allocation9 + $0x60] ss:$36 sps:$4 sm:$0xff]   ;;  %v1986_v33 = vmul.f32 %v10022_v16, %v1973_v25 }
 0x2cf   :  { %v1896_v23 = vsel %vm1293_vm1, %v1894_v50, %v1895_v58  ;;  %v1904_v28 = vsel %vm1293_vm1, %v1895_v58, %v11736_v57  ;;  %v8486_v46 = vpop.f32.mrb[59].mxu1  ;;  %2710 = vmatpush1.bf16.msra.mxu1 %v8808_v3  ;;  %v11737_v39 = vld [vmem:[#allocation80_spill] sm:$0xff]  ;;  %v2002_v3 = vadd.f32 %v10031_v12, %v1989_v44 }
 0x2d0   :  { %v2007_v7 = vmax.f32 %v1998_v14, 0.0  ;;  %v1965_v38 = vmul.f32 %v11737_v39, %v1896_v23  ;;  %v1966_v56 = vmul.f32 %v9932_v26, %v1904_v28  ;;  %2711 = vmatprep.subr.bf16.mxu1 %v8816_v63  ;;  %v8819_v58 = vld [vmem:[#allocation9 + $0xec] ss:$36 sps:$4 sm:$0xff]   ;;  %v1999_v25 = vadd.f32 %v10031_v12, %v1986_v33 }
 0x2d1   :  { %2631 = vmatpush1.bf16.msra.mxu0 %v8805_v55  ;;  %v8822_v14 = vld [vmem:[#allocation9 + $0xac] ss:$36 sps:$4 sm:$0xff]   ;;  %v2011_v44 = vmax.f32 %v2002_v3, 0.0  ;;  %v1990_v3 = vmul.f32 %v10022_v16, %v10018_v13 }
 0x2d2   :  { %v1974_v29 = vadd.f32 %v1965_v38, %v9990_v31  ;;  %v1975_v30 = vadd.f32 %v1966_v56, %v9994_v19  ;;  %v10070_v50 = vpack.c.bf16 %v2007_v7, %v2006_v59  ;;  %2632 = vmatprep.subr.bf16.mxu0 %v8813_v18  ;;  %v8820_v31 = vld [vmem:[#allocation9 + $0xa8] ss:$36 sps:$4 sm:$0xff]   ;;  %v8828_v56 = vld [vmem:[#allocation9 + $0xf4] ss:$36 sps:$4 sm:$0xff]   ;;  %v2008_v59 = vmax.f32 %v1999_v25, 0.0 }
 0x2d3   :  { %2712 = vmatpush1.bf16.msra.mxu1 %v8814_v5  ;;  %v8817_v19 = vld [vmem:[#allocation9 + $0xe8] ss:$36 sps:$4 sm:$0xff]   ;;  %v8825_v18 = vld [vmem:[#allocation9 + $0x134] ss:$36 sps:$4 sm:$0xff]  }
 0x2d4   :  { %v1987_v23 = vmul.f32 %v10022_v16, %v1974_v29  ;;  %v1988_v63 = vmul.f32 %v10022_v16, %v1975_v30  ;;  %2509 = vmatmul.mubr.bf16.gmra.mrb[64].mxu0 %v10070_v50  ;;  %2590 = vmatmul.mubr.bf16.gmra.mrb[64].mxu1 %v10070_v50  ;;  %v8823_v46 = vld [vmem:[#allocation9 + $0x130] ss:$36 sps:$4 sm:$0xff]   ;;  %v8834_v29 = vld [vmem:[#allocation9 + $0x13c] ss:$36 sps:$4 sm:$0xff]   ;;  %v8840_v25 = vld [vmem:[#allocation9 + $0x1c4] ss:$36 sps:$4 sm:$0xff]  }
 0x2d5   :  { %2633 = vmatpush1.bf16.msra.mxu0 %v8811_v42  ;;  %2518 = vmatprep.mubr.bf16.mxu0 %v11735_v8  ;;  %v8826_v5 = vld [vmem:[#allocation9 + $0xf0] ss:$36 sps:$4 sm:$0xff]   ;;  %v8831_v42 = vld [vmem:[#allocation9 + $0x17c] ss:$36 sps:$4 sm:$0xff]   ;;  %v8841_v13 = vld [vmem:[#allocation9 + $0x1c8] ss:$36 sps:$4 sm:$0xff]  }
 0x2d6   :  { %v2000_v38 = vadd.f32 %v10031_v12, %v1987_v23  ;;  %v2001_v55 = vadd.f32 %v10031_v12, %v1988_v63  ;;  %2634 = vmatprep.subr.bf16.mxu0 %v8819_v58  ;;  %2599 = vmatprep.mubr.bf16.mxu1 %v11735_v8  ;;  %v8829_v30 = vld [vmem:[#allocation9 + $0x178] ss:$36 sps:$4 sm:$0xff]   ;;  %v8835_v23 = vld [vmem:[#allocation9 + $0x180] ss:$36 sps:$4 sm:$0xff]   ;;  %v8844_v16 = vld [vmem:[#allocation9 + $0x208] ss:$36 sps:$4 sm:$0xff]  }
 0x2d7   :  { %2713 = vmatprep.subr.bf16.mxu1 %v8822_v14  ;;  %v8832_v58 = vld [vmem:[#allocation9 + $0x138] ss:$36 sps:$4 sm:$0xff]   ;;  %v8837_v14 = vld [vmem:[#allocation9 + $0x184] ss:$36 sps:$4 sm:$0xff]  }
 0x2d8   :  { %v2009_v57 = vmax.f32 %v2000_v38, 0.0  ;;  %v2010_v28 = vmax.f32 %v2001_v55, 0.0  ;;  %2714 = vmatpush1.bf16.msra.mxu1 %v8820_v31  ;;  %v8838_v63 = vld [vmem:[#allocation9 + $0x1c0] ss:$36 sps:$4 sm:$0xff]   ;;  %v2003_v31 = vadd.f32 %v10031_v12, %v1990_v3  ;;  %v8849_v55 = vld [vmem:[#allocation9 + $0x214] ss:$36 sps:$4 sm:$0xff]  }
 0x2d9   :  { %2635 = vmatpush1.bf16.msra.mxu0 %v8817_v19  ;;  %2715 = vmatprep.subr.bf16.mxu1 %v8828_v56  ;;  %v8843_v19 = vld [vmem:[#allocation9 + $0x1cc] ss:$36 sps:$4 sm:$0xff]  }
 0x2da   :  { %v10082_v7 = vpack.c.bf16 %v2009_v57, %v2008_v59  ;;  %2636 = vmatprep.subr.bf16.mxu0 %v8825_v18  ;;  %v10084_v33 = vpack.c.bf16 %v2011_v44, %v2010_v28  ;;  %v8846_v56 = vld [vmem:[#allocation9 + $0x20c] ss:$36 sps:$4 sm:$0xff]   ;;  %v2012_v38 = vmax.f32 %v2003_v31, 0.0  ;;  %v11738_v44 = vmov 0.0   ;;  %v8850_v59 = vld [vmem:[#allocation9 + $0x20] ss:$36 sps:$4 sm:$0xff]  }
 0x2db   :  { %v8847_v12 = vld [vmem:[#allocation9 + $0x210] ss:$36 sps:$4 sm:$0xff]   ;;  %v8851_v57 = vld [vmem:[#allocation9 + $0x68] ss:$36 sps:$4 sm:$0xff]   ;;  %v8878_v31 = vld [vmem:[#allocation10 + $0x9c] ss:$36 sps:$4 sm:$0xff]  }
 0x2dc   :  { %2519 = vmatmul.mubr.bf16.gmra.mrb[68].mxu0 %v10082_v7  ;;  %2600 = vmatmul.mubr.bf16.gmra.mrb[68].mxu1 %v10082_v7  ;;  %v2017_v18 = vpack.c.bf16 %v2012_v38, %v2012_v38  ;;  %v8852_v28 = vld [vmem:[#allocation9 + $0xb0] ss:$36 sps:$4 sm:$0xff]   ;;  %v8864_v3 = vld [vmem:[#allocation10 + $0x8] ss:$36 sps:$4 sm:$0xff]   ;;  %v8882_v38 = vld [vmem:[#allocation10 + $0xe0] ss:$36 sps:$4 sm:$0xff]  }
 0x2dd   :  { %2637 = vmatpush1.bf16.msra.mxu0 %v8823_v46  ;;  %2716 = vmatpush1.bf16.msra.mxu1 %v8826_v5  ;;  %v8853_v46 = vld [vmem:[#allocation9 + $0xf8] ss:$36 sps:$4 sm:$0xff]   ;;  %v8854_v5 = vld [vmem:[#allocation9 + $0x140] ss:$36 sps:$4 sm:$0xff]  }
 0x2de   :  { %2528 = vmatprep.mubr.bf16.mxu0 %v11735_v8  ;;  %2609 = vmatprep.mubr.bf16.mxu1 %v11735_v8 }
 0x2df   :  { %2638 = vmatprep.subr.bf16.mxu0 %v8831_v42  ;;  %2717 = vmatprep.subr.bf16.mxu1 %v8834_v29  ;;  %v8855_v42 = vld [vmem:[#allocation9 + $0x188] ss:$36 sps:$4 sm:$0xff]   ;;  %v8856_v29 = vld [vmem:[#allocation9 + $0x1d0] ss:$36 sps:$4 sm:$0xff]  }
 0x2e1   :  { %2639 = vmatpush1.bf16.msra.mxu0 %v8829_v30  ;;  %2718 = vmatpush1.bf16.msra.mxu1 %v8832_v58  ;;  %v8857_v30 = vld [vmem:[#allocation9 + $0x218] ss:$36 sps:$4 sm:$0xff]   ;;  %v8860_v58 = vld [vmem:[#allocation10 + $0x4] ss:$36 sps:$4 sm:$0xff]  }
 0x2e2   :  { %2719 = vmatprep.subr.bf16.mxu1 %v8837_v14  ;;  %2640 = vmatprep.subr.bf16.mxu0 %v8840_v25  ;;  %v8861_v14 = vld [vmem:[#allocation10 + $0x48] ss:$36 sps:$4 sm:$0xff]  }
 0x2e3   :  { %v8863_v25 = vld [vmem:[#allocation10 + $0x4c] ss:$36 sps:$4 sm:$0xff]  }
 0x2e4   :  { %2529 = vmatmul.mubr.bf16.gmra.mrb[72].mxu0 %v10084_v33  ;;  %2610 = vmatmul.mubr.bf16.gmra.mrb[72].mxu1 %v10084_v33 }
 0x2e5   :  { %2720 = vmatpush1.bf16.msra.mxu1 %v8835_v23  ;;  %2641 = vmatpush1.bf16.msra.mxu0 %v8838_v63  ;;  %v8872_v23 = vld [vmem:[#allocation10 + $0x54] ss:$36 sps:$4 sm:$0xff]  }
 0x2e6   :  { %2538 = vmatprep.mubr.bf16.mxu0 %v11735_v8  ;;  %2619 = vmatprep.mubr.bf16.mxu1 %v11735_v8  ;;  %v8870_v63 = vld [vmem:[#allocation10 + $0x50] ss:$36 sps:$4 sm:$0xff]  }
 0x2e7   :  { %2721 = vmatprep.subr.bf16.mxu1 %v8843_v19  ;;  %2642 = vmatprep.subr.bf16.mxu0 %v8846_v56  ;;  %v8876_v19 = vld [vmem:[#allocation10 + $0x98] ss:$36 sps:$4 sm:$0xff]  }
 0x2e8   :  { %v8875_v56 = vld [vmem:[#allocation10 + $0xdc] ss:$36 sps:$4 sm:$0xff]  }
 0x2e9   :  { %2722 = vmatpush1.bf16.msra.mxu1 %v8841_v13  ;;  %2643 = vmatpush1.bf16.msra.mxu0 %v8844_v16  ;;  %v8884_v13 = vld [vmem:[#allocation10 + $0xe4] ss:$36 sps:$4 sm:$0xff]   ;;  %v8873_v16 = vld [vmem:[#allocation10 + $0xd8] ss:$36 sps:$4 sm:$0xff]  }
 0x2ea   :  { %2723 = vmatprep.subr.bf16.mxu1 %v8849_v55  ;;  %8487 = vmatprep.subr.bf16.mxu0 %v11738_v44  ;;  %v8881_v55 = vld [vmem:[#allocation10 + $0x124] ss:$36 sps:$4 sm:$0xff]  }
 0x2ec   :  { %2539 = vmatmul.mubr.bf16.gmra.mrb[76].mxu0 %v2017_v18  ;;  %2620 = vmatmul.mubr.bf16.gmra.mrb[76].mxu1 %v2017_v18 }
 0x2ed   :  { %2724 = vmatpush1.bf16.msra.mxu1 %v8847_v12  ;;  %2660 = vmatprep.mubr.bf16.mxu0 %v11735_v8  ;;  %v8890_v12 = vld [vmem:[#allocation10 + $0x12c] ss:$36 sps:$4 sm:$0xff]  }
 0x2ee   :  { %2741 = vmatprep.mubr.bf16.mxu1 %v11735_v8  ;;  %3598 = vmatprep.subr.bf16.mxu1 %v8860_v58  ;;  %v8902_v58 = vld [vmem:[#allocation10 + $0x1fc] ss:$36 sps:$4 sm:$0xff]  }
 0x2f4   :  { %2661 = vmatmul.mubr.bf16.vlgmr.msra.gmra.mrb[80].mxu0 %v10047_v45  ;;  %2742 = vmatmul.mubr.bf16.vlgmr.msra.gmra.mrb[80].mxu1 %v10047_v45 }
 0x2f5   :  { %8488 = vmatpush3.bf16.msra.mxu0 %v8850_v59  ;;  %2670 = vmatprep.mubr.bf16.mxu0 %v11735_v8  ;;  %v8888_v59 = vld [vmem:[#allocation10 + $0x128] ss:$36 sps:$4 sm:$0xff]  }
 0x2f6   :  { %8489 = vmatprep.subr.bf16.mxu0 %v11738_v44  ;;  %2751 = vmatprep.mubr.bf16.mxu1 %v11735_v8 }
 0x2f9   :  { %8490 = vmatpush3.bf16.msra.mxu0 %v8851_v57  ;;  %v8887_v57 = vld [vmem:[#allocation10 + $0x16c] ss:$36 sps:$4 sm:$0xff]  }
 0x2fa   :  { %8491 = vmatprep.subr.bf16.mxu0 %v11738_v44 }
 0x2fc   :  { %2671 = vmatmul.mubr.bf16.gmra.mrb[84].mxu0 %v10070_v50  ;;  %2752 = vmatmul.mubr.bf16.gmra.mrb[84].mxu1 %v10070_v50 }
 0x2fd   :  { %8492 = vmatpush3.bf16.msra.mxu0 %v8852_v28  ;;  %2680 = vmatprep.mubr.bf16.mxu0 %v11735_v8  ;;  %v8893_v28 = vld [vmem:[#allocation10 + $0x174] ss:$36 sps:$4 sm:$0xff]  }
 0x2fe   :  { %8493 = vmatprep.subr.bf16.mxu0 %v11738_v44  ;;  %2761 = vmatprep.mubr.bf16.mxu1 %v11735_v8 }
 0x301   :  { %8494 = vmatpush3.bf16.msra.mxu0 %v8853_v46  ;;  %v8885_v46 = vld [vmem:[#allocation10 + $0x168] ss:$36 sps:$4 sm:$0xff]  }
 0x302   :  { %8495 = vmatprep.subr.bf16.mxu0 %v11738_v44 }
 0x304   :  { %2681 = vmatmul.mubr.bf16.gmra.mrb[88].mxu0 %v10082_v7  ;;  %2762 = vmatmul.mubr.bf16.gmra.mrb[88].mxu1 %v10082_v7 }
 0x305   :  { %8496 = vmatpush3.bf16.msra.mxu0 %v8854_v5  ;;  %2690 = vmatprep.mubr.bf16.mxu0 %v11735_v8  ;;  %v8891_v5 = vld [vmem:[#allocation10 + $0x170] ss:$36 sps:$4 sm:$0xff]  }
 0x306   :  { %2771 = vmatprep.mubr.bf16.mxu1 %v11735_v8  ;;  %8497 = vmatprep.subr.bf16.mxu0 %v11738_v44 }
 0x309   :  { %8498 = vmatpush3.bf16.msra.mxu0 %v8855_v42  ;;  %v8896_v42 = vld [vmem:[#allocation10 + $0x1b4] ss:$36 sps:$4 sm:$0xff]  }
 0x30a   :  { %8499 = vmatprep.subr.bf16.mxu0 %v11738_v44 }
 0x30c   :  { %2691 = vmatmul.mubr.bf16.gmra.mrb[92].mxu0 %v10084_v33  ;;  %2772 = vmatmul.mubr.bf16.gmra.mrb[92].mxu1 %v10084_v33 }
 0x30d   :  { %8500 = vmatpush3.bf16.msra.mxu0 %v8856_v29  ;;  %2700 = vmatprep.mubr.bf16.mxu0 %v11735_v8  ;;  %v8899_v29 = vld [vmem:[#allocation10 + $0x1bc] ss:$36 sps:$4 sm:$0xff]  }
 0x30e   :  { %2781 = vmatprep.mubr.bf16.mxu1 %v11735_v8  ;;  %8501 = vmatprep.subr.bf16.mxu0 %v11738_v44 }
 0x311   :  { %8502 = vmatpush3.bf16.msra.mxu0 %v8857_v30  ;;  %v8894_v30 = vld [vmem:[#allocation10 + $0x1b0] ss:$36 sps:$4 sm:$0xff]  }
 0x314   :  { %2701 = vmatmul.mubr.bf16.gmra.mrb[96].mxu0 %v2017_v18  ;;  %2782 = vmatmul.mubr.bf16.gmra.mrb[96].mxu1 %v2017_v18 }
 0x315   :  { %8503 = vmatprep.mubr.msk.bf16.mxu0 %vm9278_vm0, %v11738_v44  ;;  %3630 = vmatprep.mubr.bf16.mxu1 %v11735_v8 }
 0x31c   :  { %8504 = vmatmul.mubr.bf16.vlgmr.msra.gmra.mrb[100].mxu0 %v10047_v45  ;;  %v8858_v45 = vld [vmem:[#allocation10] ss:$36 sps:$4 sm:$0xff]  }
 0x31d   :  { %8507 = vmatprep.mubr.msk.bf16.mxu0 %vm9278_vm0, %v11738_v44  ;;  %3599 = vmatpush1.bf16.msra.mxu1 %v8858_v45  ;;  %v8897_v45 = vld [vmem:[#allocation10 + $0x1b8] ss:$36 sps:$4 sm:$0xff]  }
 0x31e   :  { %3600 = vmatprep.subr.bf16.mxu1 %v8863_v25  ;;  %v8908_v25 = vld [vmem:[#allocation10 + $0x14] ss:$36 sps:$4 sm:$0xff]  }
 0x321   :  { %3601 = vmatpush1.bf16.msra.mxu1 %v8861_v14  ;;  %v8903_v14 = vld [vmem:[#allocation10 + $0x200] ss:$36 sps:$4 sm:$0xff]  }
 0x324   :  { %8508 = vmatmul.mubr.bf16.gmra.mrb[104].mxu0 %v10070_v50  ;;  %v8866_v50 = vld [vmem:[#allocation10 + $0xc] ss:$36 sps:$4 sm:$0xff]  }
 0x325   :  { %8511 = vmatprep.mubr.msk.bf16.mxu0 %vm9278_vm0, %v11738_v44  ;;  %3679 = vmatprep.subr.bf16.mxu0 %v8866_v50  ;;  %v8905_v50 = vld [vmem:[#allocation10 + $0x204] ss:$36 sps:$4 sm:$0xff]  }
 0x326   :  { %3680 = vmatpush1.bf16.msra.mxu0 %v8864_v3  ;;  %v8900_v3 = vld [vmem:[#allocation10 + $0x1f8] ss:$36 sps:$4 sm:$0xff]  }
 0x327   :  { %3681 = vmatprep.subr.bf16.mxu0 %v8872_v23 }
 0x32a   :  { %3682 = vmatpush1.bf16.msra.mxu0 %v8870_v63 }
 0x32b   :  { %3683 = vmatprep.subr.bf16.mxu0 %v8878_v31 }
 0x32c   :  { %8512 = vmatmul.mubr.bf16.gmra.mrb[108].mxu0 %v10082_v7  ;;  %v8869_v7 = vld [vmem:[#allocation10 + $0x94] ss:$36 sps:$4 sm:$0xff]  }
 0x32d   :  { %8515 = vmatprep.mubr.msk.bf16.mxu0 %vm9278_vm0, %v11738_v44  ;;  %3602 = vmatprep.subr.bf16.mxu1 %v8869_v7  ;;  %v8914_v7 = vld [vmem:[#allocation10 + $0x1c] ss:$36 sps:$4 sm:$0xff]  }
 0x32e   :  { %3684 = vmatpush1.bf16.msra.mxu0 %v8876_v19 }
 0x32f   :  { %3685 = vmatprep.subr.bf16.mxu0 %v8884_v13 }
 0x332   :  { %3686 = vmatpush1.bf16.msra.mxu0 %v8882_v38 }
 0x333   :  { %3687 = vmatprep.subr.bf16.mxu0 %v8890_v12 }
 0x334   :  { %8516 = vmatmul.mubr.bf16.gmra.mrb[112].mxu0 %v10084_v33  ;;  %v8867_v33 = vld [vmem:[#allocation10 + $0x90] ss:$36 sps:$4 sm:$0xff]  }
 0x335   :  { %8519 = vmatprep.mubr.msk.bf16.mxu0 %vm9278_vm0, %v11738_v44  ;;  %3603 = vmatpush1.bf16.msra.mxu1 %v8867_v33 }
 0x336   :  { %3604 = vmatprep.subr.bf16.mxu1 %v8875_v56  ;;  %3688 = vmatpush1.bf16.msra.mxu0 %v8888_v59 }
 0x337   :  { %3689 = vmatprep.subr.bf16.mxu0 %v8893_v28 }
 0x339   :  { %3605 = vmatpush1.bf16.msra.mxu1 %v8873_v16 }
 0x33a   :  { %3606 = vmatprep.subr.bf16.mxu1 %v8881_v55  ;;  %3690 = vmatpush1.bf16.msra.mxu0 %v8891_v5 }
 0x33b   :  { %3691 = vmatprep.subr.bf16.mxu0 %v8899_v29 }
 0x33c   :  { %8520 = vmatmul.mubr.bf16.gmra.mrb[116].mxu0 %v2017_v18  ;;  %v8879_v18 = vld [vmem:[#allocation10 + $0x120] ss:$36 sps:$4 sm:$0xff]  }
 0x33d   :  { %3711 = vmatprep.mubr.bf16.mxu0 %v11735_v8  ;;  %3607 = vmatpush1.bf16.msra.mxu1 %v8879_v18 }
 0x33e   :  { %3608 = vmatprep.subr.bf16.mxu1 %v8887_v57  ;;  %3692 = vmatpush1.bf16.msra.mxu0 %v8897_v45 }
 0x33f   :  { %3693 = vmatprep.subr.bf16.mxu0 %v8905_v50 }
 0x341   :  { %3609 = vmatpush1.bf16.msra.mxu1 %v8885_v46  ;;  %v11739_v46 = vld [vmem:[#allocation37_spill] sm:$0xff] }
 0x342   :  { %3610 = vmatprep.subr.bf16.mxu1 %v8896_v42  ;;  %3694 = vmatpush1.bf16.msra.mxu0 %v8903_v14 }
 0x343   :  { %3841 = vmatprep.subr.bf16.mxu0 %v8914_v7 }
 0x345   :  { %3611 = vmatpush1.bf16.msra.mxu1 %v8894_v30  ;;  %v11740_v30 = vld [vmem:[#allocation38_spill] sm:$0xff] }
 0x346   :  { %3612 = vmatprep.subr.bf16.mxu1 %v8902_v58 }
 0x349   :  { %3613 = vmatpush1.bf16.msra.mxu1 %v8900_v3  ;;  %v11741_v3 = vld [vmem:[#allocation41_spill] sm:$0xff] }
 0x34a   :  { %3760 = vmatprep.subr.bf16.mxu1 %v8908_v25 }
 0x39f   :  { %v10139_v23 = vpop.f32.mrb[60].mxu0  ;;  %v10141_v33 = vpop.f32.mrb[60].mxu1 }
 0x3a0   :  { %v10143_v63 = vpop.f32.mrb[61].mxu0  ;;  %v10145_v31 = vpop.f32.mrb[61].mxu1  ;;  %v11597_v13 = vrot.slane %v10139_v23, 4 }
 0x3a1   :  { %v2504_v19 = vpop.f32.mrb[62].mxu0  ;;  %v2585_v56 = vpop.f32.mrb[62].mxu1  ;;  %v11598_v12 = vrot.slane %v10143_v63, 6  ;;  %v11600_v18 = vrot.slane %v10145_v31, 6 }
 0x3a2   :  { %v2863_v16 = vrot.slane %v2504_v19, 4  ;;  %v2506_v38 = vpop.f32.mrb[63].mxu0  ;;  %v2587_v55 = vpop.f32.mrb[63].mxu1  ;;  %v2928_v14 = vmul.f32 %v2585_v56, %v11741_v3 }
 0x3a3   :  { %v2890_v59 = vrot.slane %v2506_v38, 6  ;;  %v2944_v57 = vrot.slane %v2587_v55, 6 }
 0x3a4   :  { %v2878_v28 = vsel %vm1293_vm1, %v11597_v13, %v2863_v16 }
 0x3a5   :  { %v2883_v5 = vmul.f32 %v2878_v28, %v11739_v46  ;;  %v2905_v42 = vsel %vm1375_vm2, %v11598_v12, %v2890_v59  ;;  %v10163_v29 = vsel %vm1375_vm2, %v11600_v18, %v2944_v57 }
 0x3a6   :  { %v2910_v45 = vmul.f32 %v2905_v42, %v11740_v30  ;;  %v11742_v42 = vld [vmem:[#allocation50_spill] sm:$0xff] }
 0x3a7   :  { %v2510_v58 = vpop.f32.mrb[64].mxu0  ;;  %v2591_v50 = vpop.f32.mrb[64].mxu1 }
 0x3a8   :  { %v2864_v25 = vrot.slane %v2510_v58, 4  ;;  %v2512_v7 = vpop.f32.mrb[65].mxu0  ;;  %v2593_v19 = vpop.f32.mrb[65].mxu1  ;;  %v2919_v38 = vadd.f32 %v2910_v45, %v2883_v5  ;;  %v11743_v45 = vld [vmem:[#allocation52_spill] sm:$0xff] }
 0x3a9   :  { %v2891_v55 = vrot.slane %v2512_v7, 6  ;;  %v2945_v28 = vrot.slane %v2593_v19, 6  ;;  %v2514_v13 = vpop.f32.mrb[66].mxu0  ;;  %v2595_v12 = vpop.f32.mrb[66].mxu1 }
 0x3aa   :  { %v2877_v46 = vsel %vm1293_vm1, %v2863_v16, %v2864_v25  ;;  %v2865_v44 = vrot.slane %v2514_v13, 4  ;;  %v2516_v18 = vpop.f32.mrb[67].mxu0  ;;  %v2597_v26 = vpop.f32.mrb[67].mxu1  ;;  %v2937_v39 = vadd.f32 %v2928_v14, %v2919_v38  ;;  %v11744_v13 = vld [vmem:[#allocation51_spill] sm:$0xff] }
 0x3ab   :  { %v2884_v30 = vmul.f32 %v2877_v46, %v11742_v42  ;;  %v2904_v56 = vsel %vm1375_vm2, %v2890_v59, %v2891_v55  ;;  %v10174_v58 = vsel %vm1375_vm2, %v2944_v57, %v2945_v28  ;;  %v2892_v5 = vrot.slane %v2516_v18, 6  ;;  %v11745_v46 = vld [vmem:[#allocation56_spill] sm:$0xff]  ;;  %v11746_v42 = vld [vmem:[#allocation53_spill] sm:$0xff] }
 0x3ac   :  { %v2911_v7 = vmul.f32 %v2904_v56, %v11743_v45  ;;  %v2876_v19 = vsel %vm1293_vm1, %v2864_v25, %v2865_v44  ;;  %v2946_v16 = vrot.slane %v2597_v26, 6  ;;  %v2929_v38 = vmul.f32 %v2591_v50, %v11745_v46 }
 0x3ad   :  { %v2885_v3 = vmul.f32 %v2876_v19, %v11744_v13  ;;  %v2903_v14 = vsel %vm1375_vm2, %v2891_v55, %v2892_v5  ;;  %v2930_v25 = vmul.f32 %v2595_v12, %v9676_v34 }
 0x3ae   :  { %v2912_v59 = vmul.f32 %v2903_v14, %v11746_v42  ;;  %v2957_v57 = vsel %vm1375_vm2, %v2945_v28, %v2946_v16  ;;  %v2920_v8 = vadd.f32 %v2911_v7, %v2884_v30 }
 0x3af   :  { %v2520_v18 = vpop.f32.mrb[68].mxu0  ;;  %v2601_v1 = vpop.f32.mrb[68].mxu1  ;;  %v2964_v56 = vmul.f32 %v2957_v57, %v9650_v17 }
 0x3b0   :  { %v2866_v26 = vrot.slane %v2520_v18, 4  ;;  %v2522_v45 = vpop.f32.mrb[69].mxu0  ;;  %v2603_v19 = vpop.f32.mrb[69].mxu1  ;;  %v2938_v13 = vadd.f32 %v2929_v38, %v2920_v8  ;;  %v2921_v27 = vadd.f32 %v2912_v59, %v2885_v3 }
 0x3b1   :  { %v2893_v55 = vrot.slane %v2522_v45, 6  ;;  %v2947_v49 = vrot.slane %v2603_v19, 6  ;;  %v2524_v50 = vpop.f32.mrb[70].mxu0  ;;  %v2605_v46 = vpop.f32.mrb[70].mxu1  ;;  %v10188_v14 = vadd.f32 %v2964_v56, %v2937_v39  ;;  %v11747_v45 = vld [vmem:[#allocation68_spill] sm:$0xff] }
 0x3b2   :  { %v2875_v30 = vsel %vm1293_vm1, %v2865_v44, %v2866_v26  ;;  %v2867_v28 = vrot.slane %v2524_v50, 4  ;;  %v2526_v7 = vpop.f32.mrb[71].mxu0  ;;  %v2607_v42 = vpop.f32.mrb[71].mxu1  ;;  %v2939_v57 = vadd.f32 %v2930_v25, %v2921_v27  ;;  %v11748_v44 = vld [vmem:[#allocation60_spill] sm:$0xff]  ;;  %v11750_v27 = vld [vmem:[#allocation67_spill] sm:$0xff] }
 0x3b3   :  { %v2886_v12 = vmul.f32 %v2875_v30, %v9694_v48  ;;  %v2902_v18 = vsel %vm1375_vm2, %v2892_v5, %v2893_v55  ;;  %v2956_v8 = vsel %vm1375_vm2, %v2946_v16, %v2947_v49  ;;  %v2894_v3 = vrot.slane %v2526_v7, 6  ;;  %v11749_v19 = vld [vmem:[#allocation72_spill] sm:$0xff]  ;;  %v11751_v5 = vld [vmem:[#allocation69_spill] sm:$0xff] }
 0x3b4   :  { %v2913_v38 = vmul.f32 %v2902_v18, %v11747_v45  ;;  %v2874_v39 = vsel %vm1293_vm1, %v2866_v26, %v2867_v28  ;;  %v2948_v59 = vrot.slane %v2607_v42, 6  ;;  %v2965_v56 = vmul.f32 %v2956_v8, %v11748_v44 }
 0x3b5   :  { %v2931_v50 = vmul.f32 %v2601_v1, %v11749_v19  ;;  %v2887_v25 = vmul.f32 %v2874_v39, %v11750_v27  ;;  %v2901_v30 = vsel %vm1375_vm2, %v2893_v55, %v2894_v3  ;;  %v2932_v8 = vmul.f32 %v2605_v46, %v9708_v0 }
 0x3b6   :  { %v2914_v48 = vmul.f32 %v2901_v30, %v11751_v5  ;;  %v2955_v16 = vsel %vm1375_vm2, %v2947_v49, %v2948_v59  ;;  %v10208_v7 = vadd.f32 %v2965_v56, %v2938_v13  ;;  %v2922_v18 = vadd.f32 %v2913_v38, %v2886_v12 }
 0x3b7   :  { %v2530_v45 = vpop.f32.mrb[72].mxu0  ;;  %v2611_v26 = vpop.f32.mrb[72].mxu1  ;;  %v2966_v42 = vmul.f32 %v2955_v16, %v9684_v41 }
 0x3b8   :  { %v2868_v1 = vrot.slane %v2530_v45, 4  ;;  %v2532_v19 = vpop.f32.mrb[73].mxu0  ;;  %v2613_v39 = vpop.f32.mrb[73].mxu1  ;;  %v2940_v27 = vadd.f32 %v2931_v50, %v2922_v18  ;;  %v2923_v44 = vadd.f32 %v2914_v48, %v2887_v25  ;;  %v11753_v18 = vld [vmem:[#allocation84_spill] sm:$0xff] }
 0x3b9   :  { %v2895_v55 = vrot.slane %v2532_v19, 6  ;;  %v2949_v34 = vrot.slane %v2613_v39, 6  ;;  %v2534_v30 = vpop.f32.mrb[74].mxu0  ;;  %v2615_v5 = vpop.f32.mrb[74].mxu1  ;;  %v10212_v17 = vadd.f32 %v2966_v42, %v2939_v57  ;;  %v2933_v42 = vmul.f32 %v2611_v26, %v11753_v18 }
 0x3ba   :  { %v2873_v49 = vsel %vm1293_vm1, %v2867_v28, %v2868_v1  ;;  %v2869_v13 = vrot.slane %v2534_v30, 4  ;;  %v2536_v12 = vpop.f32.mrb[75].mxu0  ;;  %v2617_v38 = vpop.f32.mrb[75].mxu1  ;;  %v2941_v56 = vadd.f32 %v2932_v8, %v2923_v44  ;;  %v11752_v28 = vld [vmem:[#allocation76_spill] sm:$0xff]  ;;  %v11754_v44 = vld [vmem:[#allocation34_spill] sm:$0xff] }
 0x3bb   :  { %v2888_v46 = vmul.f32 %v2873_v49, %v9771_v24  ;;  %v2900_v45 = vsel %vm1375_vm2, %v2894_v3, %v2895_v55  ;;  %v2954_v48 = vsel %vm1375_vm2, %v2948_v59, %v2949_v34  ;;  %v2896_v19 = vrot.slane %v2536_v12, 6  ;;  %v11755_v3 = vld [vmem:[#allocation35_spill] sm:$0xff] }
 0x3bc   :  { %v2915_v50 = vmul.f32 %v2900_v45, %v9773_v37  ;;  %v2872_v57 = vsel %vm1293_vm1, %v2868_v1, %v2869_v13  ;;  %v2950_v25 = vrot.slane %v2617_v38, 6  ;;  %v2967_v16 = vmul.f32 %v2954_v48, %v11752_v28 }
 0x3bd   :  { %v2880_v8 = vmul.f32 %v2872_v57, %v11754_v44  ;;  %v2899_v39 = vsel %vm1375_vm2, %v2895_v55, %v2896_v19  ;;  %v2925_v48 = vmul.f32 %v2615_v5, %v9601_v60 }
 0x3be   :  { %v2907_v30 = vmul.f32 %v2899_v39, %v11755_v3  ;;  %v2953_v59 = vsel %vm1375_vm2, %v2949_v34, %v2950_v25  ;;  %v10232_v49 = vadd.f32 %v2967_v16, %v2940_v27  ;;  %v2924_v12 = vadd.f32 %v2915_v50, %v2888_v46 }
 0x3bf   :  { %v2540_v45 = vpop.f32.mrb[76].mxu0  ;;  %v2621_v1 = vpop.f32.mrb[76].mxu1  ;;  %v2968_v38 = vmul.f32 %v2953_v59, %v9716_v6  ;;  %v11756_v27 = vrot.slane %v10139_v23, 4 }
 0x3c0   :  { %v2870_v26 = vrot.slane %v2540_v45, 4  ;;  %v2542_v18 = vpop.f32.mrb[77].mxu0  ;;  %v2623_v57 = vpop.f32.mrb[77].mxu1  ;;  %v2916_v44 = vadd.f32 %v2907_v30, %v2880_v8  ;;  %v2942_v28 = vadd.f32 %v2933_v42, %v2924_v12  ;;  %v2926_v45 = vmul.f32 %v2621_v1, %v9603_v61 }
 0x3c1   :  { %v2897_v55 = vrot.slane %v2542_v18, 6  ;;  %v2951_v37 = vrot.slane %v2623_v57, 6  ;;  %v2544_v39 = vpop.f32.mrb[78].mxu0  ;;  %v2625_v3 = vpop.f32.mrb[78].mxu1  ;;  %v10236_v24 = vadd.f32 %v2968_v38, %v2941_v56  ;;  %v11757_v56 = vrot.slane %v10143_v63, 6 }
 0x3c2   :  { %v2871_v34 = vsel %vm1293_vm1, %v2869_v13, %v2870_v26  ;;  %v2879_v46 = vsel %vm1293_vm1, %v2870_v26, %v11756_v27  ;;  %v2545_v5 = vpop.f32.mrb[79].mxu0  ;;  %v2626_v50 = vpop.f32.mrb[79].mxu1  ;;  %v2934_v16 = vadd.f32 %v2925_v48, %v2916_v44  ;;  %v11758_v44 = vrot.slane %v10145_v31, 6 }
 0x3c3   :  { %v2881_v8 = vmul.f32 %v2871_v34, %v9593_v53  ;;  %v2882_v18 = vmul.f32 %v2879_v46, %v9616_v2  ;;  %v2898_v42 = vsel %vm1375_vm2, %v2896_v19, %v2897_v55  ;;  %v2906_v13 = vsel %vm1375_vm2, %v2897_v55, %v11757_v56  ;;  %v11759_v34 = vld [vmem:[#allocation36_spill] sm:$0xff] }
 0x3c4   :  { %v2908_v23 = vmul.f32 %v2898_v42, %v9595_v54  ;;  %v2909_v3 = vmul.f32 %v2906_v13, %v9623_v4  ;;  %v2952_v30 = vsel %vm1375_vm2, %v2950_v25, %v2951_v37  ;;  %v2960_v59 = vsel %vm1375_vm2, %v2951_v37, %v11758_v44  ;;  %v11761_v44 = vld [vmem:[#allocation39_spill] sm:$0xff] }
 0x3c5   :  { %v2961_v12 = vmul.f32 %v2960_v59, %v9607_v62  ;;  %v2969_v19 = vmul.f32 %v2952_v30, %v9853_v36  ;;  %v2927_v63 = vmul.f32 %v10141_v33, %v9634_v10  ;;  %v2962_v27 = vmul.f32 %v10163_v29, %v11759_v34  ;;  %v11760_v33 = vld [vmem:[#allocation44_spill] sm:$0xff] }
 0x3c6   :  { %v2917_v38 = vadd.f32 %v2908_v23, %v2881_v8  ;;  %v2918_v48 = vadd.f32 %v2909_v3, %v2882_v18  ;;  %v2963_v1 = vmul.f32 %v10174_v58, %v11760_v33  ;;  %v11767_v33 = vld [vmem:[#allocation58_spill] sm:$0xff] }
 0x3c7   :  { %v2662_v26 = vpop.f32.mrb[80].mxu0  ;;  %v2970_v57 = vadd.f32 %v2961_v12, %v2934_v16  ;;  %v10265_v55 = vpop.f32.mrb[80].mxu1  ;;  %v10267_v25 = vadd.f32 %v2969_v19, %v2942_v28 }
 0x3c8   :  { %v10269_v31 = vpop.f32.mrb[81].mxu0  ;;  %v10271_v37 = vpop.f32.mrb[81].mxu1  ;;  %v2935_v39 = vadd.f32 %v2926_v45, %v2917_v38  ;;  %v2936_v46 = vadd.f32 %v2927_v63, %v2918_v48  ;;  %v11762_v38 = vld [vmem:[#allocation42_spill] sm:$0xff] }
 0x3c9   :  { %v2979_v5 = vadd.f32 %v2970_v57, %v2662_v26  ;;  %v2666_v50 = vpop.f32.mrb[82].mxu0  ;;  %v10277_v8 = vpop.f32.mrb[82].mxu1  ;;  %v11615_v56 = vrot.slane %v10269_v31, 2  ;;  %v11614_v13 = vrot.slane %v10271_v37, 2 }
 0x3ca   :  { %v2971_v16 = vadd.f32 %v2962_v27, %v2935_v39  ;;  %v2668_v18 = vpop.f32.mrb[83].mxu0  ;;  %v2749_v28 = vpop.f32.mrb[83].mxu1  ;;  %v2972_v42 = vadd.f32 %v2963_v1, %v2936_v46 }
 0x3cb   :  { %v2989_v23 = vrot.slane %v2668_v18, 2  ;;  %v3043_v3 = vrot.slane %v2749_v28, 2 }
 0x3cc   :  { %v2980_v30 = vadd.f32 %v2971_v16, %v2666_v50 }
 0x3cd   :  { %v3004_v29 = vsel %vm1640_vm3, %v11615_v56, %v2989_v23  ;;  %v10289_v58 = vsel %vm1640_vm3, %v11614_v13, %v3043_v3 }
 0x3ce   :  { %v3006_v59 = vmul.f32 %v3004_v29, %v11761_v44 }
 0x3cf   :  { %v2672_v12 = vpop.f32.mrb[84].mxu0  ;;  %v2753_v19 = vpop.f32.mrb[84].mxu1 }
 0x3d0   :  { %v2981_v63 = vadd.f32 %v2972_v42, %v2672_v12  ;;  %v3015_v45 = vadd.f32 %v3006_v59, %v2979_v5  ;;  %v3024_v48 = vmul.f32 %v2753_v19, %v11762_v38  ;;  %v2674_v26 = vpop.f32.mrb[85].mxu0  ;;  %v2755_v57 = vpop.f32.mrb[85].mxu1  ;;  %v11763_v12 = vld [vmem:[#allocation40_spill] sm:$0xff] }
 0x3d1   :  { %v2990_v39 = vrot.slane %v2674_v26, 2  ;;  %v3044_v27 = vrot.slane %v2755_v57, 2  ;;  %v2676_v46 = vpop.f32.mrb[86].mxu0  ;;  %v2757_v1 = vpop.f32.mrb[86].mxu1 }
 0x3d2   :  { %v3033_v50 = vadd.f32 %v3024_v48, %v3015_v45  ;;  %v2982_v16 = vadd.f32 %v10188_v14, %v2676_v46  ;;  %v2678_v18 = vpop.f32.mrb[87].mxu0  ;;  %v2759_v28 = vpop.f32.mrb[87].mxu1  ;;  %v11764_v48 = vld [vmem:[#allocation43_spill] sm:$0xff]  ;;  %v11765_v46 = vld [vmem:[#allocation54_spill] sm:$0xff] }
 0x3d3   :  { %v3003_v29 = vsel %vm1640_vm3, %v2989_v23, %v2990_v39  ;;  %v10298_v42 = vsel %vm1640_vm3, %v3043_v3, %v3044_v27  ;;  %v2991_v5 = vrot.slane %v2678_v18, 2  ;;  %v3045_v59 = vrot.slane %v2759_v28, 2  ;;  %v11766_v23 = vld [vmem:[#allocation46_spill] sm:$0xff] }
 0x3d4   :  { %v3007_v19 = vmul.f32 %v3003_v29, %v11763_v12  ;;  %v3025_v57 = vmul.f32 %v2757_v1, %v11764_v48 }
 0x3d5   :  { %v3002_v26 = vsel %vm1640_vm3, %v2990_v39, %v2991_v5  ;;  %v3056_v45 = vsel %vm1640_vm3, %v3044_v27, %v3045_v59 }
 0x3d6   :  { %v3016_v14 = vadd.f32 %v3007_v19, %v2980_v30  ;;  %v3008_v13 = vmul.f32 %v3002_v26, %v11765_v46  ;;  %v3060_v56 = vmul.f32 %v3056_v45, %v11766_v23 }
 0x3d7   :  { %v2682_v38 = vpop.f32.mrb[88].mxu0  ;;  %v2763_v3 = vpop.f32.mrb[88].mxu1 }
 0x3d8   :  { %v3034_v44 = vadd.f32 %v3025_v57, %v3016_v14  ;;  %v10308_v18 = vadd.f32 %v3060_v56, %v3033_v50  ;;  %v2983_v28 = vadd.f32 %v10208_v7, %v2682_v38  ;;  %v3017_v29 = vadd.f32 %v3008_v13, %v2981_v63  ;;  %v2684_v12 = vpop.f32.mrb[89].mxu0  ;;  %v2765_v39 = vpop.f32.mrb[89].mxu1  ;;  %v11768_v63 = vld [vmem:[#allocation55_spill] sm:$0xff] }
 0x3d9   :  { %v3026_v34 = vmul.f32 %v2763_v3, %v11767_v33  ;;  %v2992_v27 = vrot.slane %v2684_v12, 2  ;;  %v3046_v30 = vrot.slane %v2765_v39, 2  ;;  %v2686_v19 = vpop.f32.mrb[90].mxu0  ;;  %v2767_v1 = vpop.f32.mrb[90].mxu1  ;;  %v11769_v50 = vld [vmem:[#allocation47_spill] sm:$0xff] }
 0x3da   :  { %v2984_v26 = vadd.f32 %v10212_v17, %v2686_v19  ;;  %v2688_v46 = vpop.f32.mrb[91].mxu0  ;;  %v2769_v45 = vpop.f32.mrb[91].mxu1  ;;  %v11770_v57 = vld [vmem:[#allocation59_spill] sm:$0xff] }
 0x3db   :  { %v3035_v23 = vadd.f32 %v3026_v34, %v3017_v29  ;;  %v3001_v56 = vsel %vm1640_vm3, %v2991_v5, %v2992_v27  ;;  %v3055_v7 = vsel %vm1640_vm3, %v3045_v59, %v3046_v30  ;;  %v2993_v13 = vrot.slane %v2688_v46, 2  ;;  %v11771_v29 = vld [vmem:[#allocation70_spill] sm:$0xff] }
 0x3dc   :  { %v3009_v38 = vmul.f32 %v3001_v56, %v11768_v63  ;;  %v3061_v14 = vmul.f32 %v3055_v7, %v11769_v50  ;;  %v3047_v12 = vrot.slane %v2769_v45, 2  ;;  %v3027_v3 = vmul.f32 %v2767_v1, %v11770_v57  ;;  %v11772_v59 = vld [vmem:[#allocation62_spill] sm:$0xff] }
 0x3dd   :  { %v3000_v17 = vsel %vm1640_vm3, %v2992_v27, %v2993_v13  ;;  %v11773_v1 = vld [vmem:[#allocation74_spill] sm:$0xff] }
 0x3de   :  { %v10322_v39 = vadd.f32 %v3061_v14, %v3034_v44  ;;  %v3018_v34 = vadd.f32 %v3009_v38, %v2982_v16  ;;  %v3010_v19 = vmul.f32 %v3000_v17, %v11771_v29  ;;  %v3054_v5 = vsel %vm1640_vm3, %v3046_v30, %v3047_v12 }
 0x3df   :  { %v3062_v46 = vmul.f32 %v3054_v5, %v11772_v59  ;;  %v2692_v33 = vpop.f32.mrb[92].mxu0  ;;  %v2773_v56 = vpop.f32.mrb[92].mxu1 }
 0x3e0   :  { %v3036_v63 = vadd.f32 %v3027_v3, %v3018_v34  ;;  %v2985_v45 = vadd.f32 %v10232_v49, %v2692_v33  ;;  %v3019_v7 = vadd.f32 %v3010_v19, %v2983_v28  ;;  %v3028_v57 = vmul.f32 %v2773_v56, %v11773_v1  ;;  %v2694_v50 = vpop.f32.mrb[93].mxu0  ;;  %v2775_v27 = vpop.f32.mrb[93].mxu1  ;;  %v11774_v34 = vld [vmem:[#allocation71_spill] sm:$0xff] }
 0x3e1   :  { %v10330_v44 = vadd.f32 %v3062_v46, %v3035_v23  ;;  %v2994_v16 = vrot.slane %v2694_v50, 2  ;;  %v3048_v38 = vrot.slane %v2775_v27, 2  ;;  %v2696_v14 = vpop.f32.mrb[94].mxu0  ;;  %v2777_v17 = vpop.f32.mrb[94].mxu1  ;;  %v11775_v19 = vld [vmem:[#allocation63_spill] sm:$0xff] }
 0x3e2   :  { %v3037_v29 = vadd.f32 %v3028_v57, %v3019_v7  ;;  %v2986_v30 = vadd.f32 %v10236_v24, %v2696_v14  ;;  %v2698_v5 = vpop.f32.mrb[95].mxu0  ;;  %v2779_v59 = vpop.f32.mrb[95].mxu1  ;;  %v11776_v46 = vld [vmem:[#allocation75_spill] sm:$0xff] }
 0x3e3   :  { %v2999_v3 = vsel %vm1640_vm3, %v2993_v13, %v2994_v16  ;;  %v3053_v49 = vsel %vm1640_vm3, %v3047_v12, %v3048_v38  ;;  %v2995_v33 = vrot.slane %v2698_v5, 2  ;;  %v3049_v28 = vrot.slane %v2779_v59, 2  ;;  %v11777_v27 = vld [vmem:[#allocation83_spill] sm:$0xff] }
 0x3e4   :  { %v3011_v23 = vmul.f32 %v2999_v3, %v11774_v34  ;;  %v3063_v50 = vmul.f32 %v3053_v49, %v11775_v19  ;;  %v3029_v56 = vmul.f32 %v2777_v17, %v11776_v46 }
 0x3e5   :  { %v2998_v57 = vsel %vm1640_vm3, %v2994_v16, %v2995_v33  ;;  %v3052_v24 = vsel %vm1640_vm3, %v3048_v38, %v3049_v28 }
 0x3e6   :  { %v10344_v7 = vadd.f32 %v3063_v50, %v3036_v63  ;;  %v3020_v13 = vadd.f32 %v3011_v23, %v2984_v26  ;;  %v3012_v14 = vmul.f32 %v2998_v57, %v11777_v27  ;;  %v3064_v12 = vmul.f32 %v3052_v24, %v11725_v47 }
 0x3e7   :  { %v2702_v59 = vpop.f32.mrb[96].mxu0  ;;  %v2783_v5 = vpop.f32.mrb[96].mxu1 }
 0x3e8   :  { %v3038_v3 = vadd.f32 %v3029_v56, %v3020_v13  ;;  %v10348_v34 = vadd.f32 %v3064_v12, %v3037_v29  ;;  %v2987_v17 = vadd.f32 %v10267_v25, %v2702_v59  ;;  %v3021_v49 = vadd.f32 %v3012_v14, %v2985_v45  ;;  %v2704_v46 = vpop.f32.mrb[97].mxu0  ;;  %v2785_v16 = vpop.f32.mrb[97].mxu1 }
 0x3e9   :  { %v3030_v19 = vmul.f32 %v2783_v5, %v9828_v21  ;;  %v2996_v38 = vrot.slane %v2704_v46, 2  ;;  %v3050_v63 = vrot.slane %v2785_v16, 2  ;;  %v2706_v50 = vpop.f32.mrb[98].mxu0  ;;  %v2787_v26 = vpop.f32.mrb[98].mxu1  ;;  %v11778_v29 = vrot.slane %v10269_v31, 2 }
 0x3ea   :  { %v2707_v23 = vpop.f32.mrb[99].mxu0  ;;  %v2788_v57 = vpop.f32.mrb[99].mxu1  ;;  %v11779_v13 = vrot.slane %v10271_v37, 2  ;;  %v3031_v31 = vmul.f32 %v10265_v55, %v9895_v32  ;;  %v3032_v12 = vmul.f32 %v10277_v8, %v9983_v11  ;;  %v3067_v16 = vmul.f32 %v10289_v58, %v9930_v43 }
 0x3eb   :  { %v3039_v27 = vadd.f32 %v3030_v19, %v3021_v49  ;;  %v2997_v24 = vsel %vm1640_vm3, %v2995_v33, %v2996_v38  ;;  %v3005_v25 = vsel %vm1640_vm3, %v2996_v38, %v11778_v29  ;;  %v3051_v45 = vsel %vm1640_vm3, %v3049_v28, %v3050_v63 }
 0x3ec   :  { %v3013_v56 = vmul.f32 %v2997_v24, %v9800_v22  ;;  %v3014_v46 = vmul.f32 %v3005_v25, %v9958_v15  ;;  %v3059_v19 = vsel %vm1640_vm3, %v3050_v63, %v11779_v13  ;;  %v3065_v14 = vmul.f32 %v3051_v45, %v11728_v52 }
 0x3ed   :  { %v3066_v33 = vmul.f32 %v3059_v19, %v9911_v40  ;;  %v3068_v38 = vmul.f32 %v10298_v42, %v9992_v20 }
 0x3ee   :  { %v3022_v28 = vadd.f32 %v3013_v56, %v2986_v30  ;;  %v3023_v59 = vadd.f32 %v3014_v46, %v2987_v17  ;;  %v10372_v5 = vadd.f32 %v3065_v14, %v3038_v3 }
 0x3ef   :  { %v10374_v49 = vadd.f32 %v3066_v33, %v3039_v27  ;;  %v10376_v37 = vpop.f32.mrb[100].mxu0 }
 0x3f0   :  { %v3040_v55 = vadd.f32 %v3031_v31, %v3022_v28  ;;  %v3041_v63 = vadd.f32 %v3032_v12, %v3023_v59  ;;  %v8505_v50 = vpop.f32.mrb[101].mxu0  ;;  %v3078_v8 = vrot.slane %v10376_v37, 4  ;;  %v11780_v31 = vld [vmem:[#allocation48_spill] sm:$0xff] }
 0x3f1   :  { %v2827_v26 = vpop.f32.mrb[102].mxu0 }
 0x3f2   :  { %v3076_v30 = vadd.f32 %v3067_v16, %v3040_v55  ;;  %v3079_v17 = vrot.slane %v2827_v26, 4  ;;  %v8506_v3 = vpop.f32.mrb[103].mxu0  ;;  %v3077_v23 = vadd.f32 %v3068_v38, %v3041_v63  ;;  %v3125_v38 = vsub.s32 3, %v9483_v9 }
 0x3f4   :  { %v3094_v27 = vsel %vm1293_vm1, %v3078_v8, %v3079_v17 }
 0x3f5   :  { %v3103_v58 = vmul.f32 %v3094_v27, %v9956_v35 }
 0x3f7   :  { %v10388_v57 = vadd.f32 %v3103_v58, %v3076_v30  ;;  %v2832_v42 = vpop.f32.mrb[104].mxu0  ;;  %v11781_v30 = vld [vmem:[#allocation25_spill] sm:$0xff] }
 0x3f8   :  { %v3080_v24 = vrot.slane %v2832_v42, 4  ;;  %v8509_v29 = vpop.f32.mrb[105].mxu0 }
 0x3f9   :  { %v2835_v25 = vpop.f32.mrb[106].mxu0  ;;  %v11784_v29 = vld [vmem:[#allocation64_spill] sm:$0xff] }
 0x3fa   :  { %v3093_v45 = vsel %vm1293_vm1, %v3079_v17, %v3080_v24  ;;  %v3081_v56 = vrot.slane %v2835_v25, 4  ;;  %v8510_v46 = vpop.f32.mrb[107].mxu0  ;;  %v11782_v17 = vmax.f32 %v11781_v30, 0.0 }
 0x3fb   :  { %v3104_v13 = vmul.f32 %v3093_v45, %v10010_v51 }
 0x3fc   :  { %v3092_v19 = vsel %vm1293_vm1, %v3080_v24, %v3081_v56 }
 0x3fd   :  { %v10395_v14 = vadd.f32 %v3104_v13, %v3077_v23  ;;  %v3096_v33 = vmul.f32 %v3092_v19, %v11780_v31  ;;  %v11783_v23 = vld [vmem:[#allocation49_spill] sm:$0xff] }
 0x3ff   :  { %v3105_v12 = vadd.f32 %v3096_v33, %v10308_v18  ;;  %v2840_v28 = vpop.f32.mrb[108].mxu0  ;;  %v9067_v18 = vld [vmem:[#allocation15] sm:$0xff] }
 0x400   :  { %v3082_v59 = vrot.slane %v2840_v28, 4  ;;  %v8513_v16 = vpop.f32.mrb[109].mxu0  ;;  %v10407_v42 = vrot.slane %v9067_v18, %v3125_v38  ;;  %v11789_v38 = vld [vmem:[#allocation27_spill] sm:$0xff]  ;;  %v8906_v18 = vld [vmem:[#allocation10 + $0x10] ss:$36 sps:$4 sm:$0xff]  }
 0x401   :  { %v2843_v55 = vpop.f32.mrb[110].mxu0  ;;  %v3114_v3 = vadd.f32 %v3105_v12, %v11782_v17 }
 0x402   :  { %v3091_v63 = vsel %vm1293_vm1, %v3081_v56, %v3082_v59  ;;  %v3083_v50 = vrot.slane %v2843_v55, 4  ;;  %v8514_v26 = vpop.f32.mrb[111].mxu0  ;;  %v11786_v56 = vld [vmem:[#allocation26_spill] sm:$0xff]  ;;  %v11790_v55 = vmax.f32 %v11789_v38, 0.0 }
 0x403   :  { %v3097_v27 = vmul.f32 %v3091_v63, %v11783_v23  ;;  %v10412_v45 = vadd.f32 %v10407_v42, %v3114_v3  ;;  %v11787_v46 = vmax.f32 %v11786_v56, 0.0 }
 0x404   :  { %v3090_v58 = vsel %vm1293_vm1, %v3082_v59, %v3083_v50 }
 0x405   :  { %v3106_v24 = vadd.f32 %v3097_v27, %v10322_v39  ;;  %v3098_v25 = vmul.f32 %v3090_v58, %v11784_v29  ;;  %11785 = vst [vmem:[#allocation78_spill] sm:$0xff] %v10412_v45  ;;  %v11617_v17 = vmax.f32 %v10412_v45, 0.0 }
 0x407   :  { %v3115_v13 = vadd.f32 %v3106_v24, %v11787_v46  ;;  %v3107_v19 = vadd.f32 %v3098_v25, %v10330_v44  ;;  %v2848_v33 = vpop.f32.mrb[112].mxu0  ;;  %v11791_v44 = vld [vmem:[#allocation65_spill] sm:$0xff]  ;;  %v11792_v25 = vld [vmem:[#allocation79_spill] sm:$0xff]  ;;  %v8911_v46 = vld [vmem:[#allocation10 + $0x5c] ss:$36 sps:$4 sm:$0xff]  }
 0x408   :  { %v3084_v12 = vrot.slane %v2848_v33, 4  ;;  %v8517_v28 = vpop.f32.mrb[113].mxu0  ;;  %v11794_v33 = vld [vmem:[#allocation28_spill] sm:$0xff] }
 0x409   :  { %v10418_v59 = vadd.f32 %v10407_v42, %v3115_v13  ;;  %v2851_v16 = vpop.f32.mrb[114].mxu0  ;;  %v3116_v39 = vadd.f32 %v3107_v19, %v11790_v55  ;;  %v8912_v19 = vld [vmem:[#allocation10 + $0x18] ss:$36 sps:$4 sm:$0xff]   ;;  %v11795_v28 = vmax.f32 %v11794_v33, 0.0 }
 0x40a   :  { %v3089_v63 = vsel %vm1293_vm1, %v3083_v50, %v3084_v12  ;;  %v3085_v26 = vrot.slane %v2851_v16, 4  ;;  %v8518_v30 = vpop.f32.mrb[115].mxu0 }
 0x40b   :  { %11788 = vst [vmem:[#allocation43_spill] sm:$0xff] %v10418_v59  ;;  %v11616_v3 = vmax.f32 %v10418_v59, 0.0  ;;  %v3099_v27 = vmul.f32 %v3089_v63, %v11791_v44  ;;  %v10438_v13 = vadd.f32 %v10407_v42, %v3116_v39  ;;  %v8909_v30 = vld [vmem:[#allocation10 + $0x58] ss:$36 sps:$4 sm:$0xff]  }
 0x40c   :  { %v3088_v58 = vsel %vm1293_vm1, %v3084_v12, %v3085_v26 }
 0x40d   :  { %v3108_v24 = vadd.f32 %v3099_v27, %v10344_v7  ;;  %v3100_v56 = vmul.f32 %v3088_v58, %v11792_v25  ;;  %v10435_v50 = vpack.c.bf16 %v11616_v3, %v11617_v17  ;;  %11793 = vst [vmem:[#allocation74_spill] sm:$0xff] %v10438_v13  ;;  %v8920_v7 = vld [vmem:[#allocation10 + $0x64] ss:$36 sps:$4 sm:$0xff]   ;;  %v11796_v27 = vmov 0   ;;  %v11801_v17 = vld [vmem:[#allocation85_spill] sm:$0xff] }
 0x40e   :  { %v11825_v25 = vld [vmem:[#allocation57_spill] sm:$0xff] }
 0x40f   :  { %v3117_v16 = vadd.f32 %v3108_v24, %v11795_v28  ;;  %v3109_v12 = vadd.f32 %v3100_v56, %v10348_v34  ;;  %v2856_v38 = vpop.f32.mrb[116].mxu0  ;;  %3631 = vmatmul.mubr.bf16.vlgmr.msra.gmra.mrb[100].mxu1 %v10435_v50  ;;  %3712 = vmatmul.mubr.bf16.vlgmr.msra.gmra.mrb[120].mxu0 %v10435_v50  ;;  %v8917_v34 = vld [vmem:[#allocation10 + $0xa4] ss:$36 sps:$4 sm:$0xff]  }
 0x410   :  { %v3086_v55 = vrot.slane %v2856_v38, 4  ;;  %3761 = vmatpush1.bf16.msra.mxu1 %v8906_v18  ;;  %v8521_v63 = vpop.f32.mrb[117].mxu0  ;;  %3640 = vmatprep.mubr.bf16.mxu1 %v11796_v27  ;;  %v8918_v28 = vld [vmem:[#allocation10 + $0x60] ss:$36 sps:$4 sm:$0xff]   ;;  %v11798_v38 = vld [vmem:[#allocation29_spill] sm:$0xff] }
 0x411   :  { %v10447_v39 = vadd.f32 %v10407_v42, %v3117_v16  ;;  %v2859_v58 = vpop.f32.mrb[118].mxu0  ;;  %3762 = vmatprep.subr.bf16.mxu1 %v8911_v46  ;;  %3721 = vmatprep.mubr.bf16.mxu0 %v11796_v27  ;;  %v11799_v46 = vmax.f32 %v11798_v38, 0.0  ;;  %v8929_v38 = vld [vmem:[#allocation10 + $0x134] ss:$36 sps:$4 sm:$0xff]  }
 0x412   :  { %v3087_v56 = vsel %vm1293_vm1, %v3085_v26, %v3086_v55  ;;  %v3095_v18 = vsel %vm1293_vm1, %v3086_v55, %v3078_v8  ;;  %v8522_v33 = vpop.f32.mrb[119].mxu0  ;;  %3842 = vmatpush1.bf16.msra.mxu0 %v8912_v19  ;;  %v11800_v58 = vld [vmem:[#allocation80_spill] sm:$0xff]  ;;  %v8915_v26 = vld [vmem:[#allocation10 + $0xa0] ss:$36 sps:$4 sm:$0xff]   ;;  %v11802_v8 = vmax.f32 %v10438_v13, 0.0 }
 0x413   :  { %11797 = vst [vmem:[#allocation25_spill] sm:$0xff] %v10447_v39  ;;  %v11623_v16 = vmax.f32 %v10447_v39, 0.0  ;;  %v3118_v63 = vadd.f32 %v3109_v12, %v11799_v46  ;;  %v3101_v3 = vmul.f32 %v3087_v56, %v11800_v58  ;;  %v3102_v24 = vmul.f32 %v3095_v18, %v11801_v17  ;;  %3843 = vmatprep.subr.bf16.mxu0 %v8920_v7  ;;  %v8923_v55 = vld [vmem:[#allocation10 + $0xec] ss:$36 sps:$4 sm:$0xff]   ;;  %v11804_v7 = vld [vmem:[#allocation30_spill] sm:$0xff] }
 0x414   :  { %3763 = vmatpush1.bf16.msra.mxu1 %v8909_v30  ;;  %v8926_v12 = vld [vmem:[#allocation10 + $0xac] ss:$36 sps:$4 sm:$0xff]   ;;  %v11805_v30 = vmax.f32 %v11804_v7, 0.0 }
 0x415   :  { %v3110_v37 = vadd.f32 %v3101_v3, %v10372_v5  ;;  %v3111_v59 = vadd.f32 %v3102_v24, %v10374_v49  ;;  %v10468_v19 = vpack.c.bf16 %v11623_v16, %v11802_v8  ;;  %3764 = vmatprep.subr.bf16.mxu1 %v8917_v34  ;;  %v10471_v56 = vadd.f32 %v10407_v42, %v3118_v63  ;;  %v8924_v5 = vld [vmem:[#allocation10 + $0xa8] ss:$36 sps:$4 sm:$0xff]   ;;  %v8932_v3 = vld [vmem:[#allocation10 + $0xf4] ss:$36 sps:$4 sm:$0xff]  }
 0x416   :  { %3844 = vmatpush1.bf16.msra.mxu0 %v8918_v28  ;;  %v8921_v49 = vld [vmem:[#allocation10 + $0xe8] ss:$36 sps:$4 sm:$0xff]   ;;  %v8927_v7 = vld [vmem:[#allocation10 + $0x130] ss:$36 sps:$4 sm:$0xff]  }
 0x417   :  { %11803 = vst [vmem:[#allocation26_spill] sm:$0xff] %v10471_v56  ;;  %v3119_v18 = vadd.f32 %v3110_v37, %v11805_v30  ;;  %3641 = vmatmul.mubr.bf16.gmra.mrb[104].mxu1 %v10468_v19  ;;  %3722 = vmatmul.mubr.bf16.gmra.mrb[124].mxu0 %v10468_v19  ;;  %v11806_v34 = vld [vmem:[#allocation31_spill] sm:$0xff]  ;;  %v11809_v46 = vld [vmem:[#allocation32_spill] sm:$0xff] }
 0x418   :  { %3765 = vmatpush1.bf16.msra.mxu1 %v8915_v26  ;;  %3650 = vmatprep.mubr.bf16.mxu1 %v11796_v27  ;;  %v11807_v24 = vmax.f32 %v11806_v34, 0.0  ;;  %v11810_v63 = vmax.f32 %v11809_v46, 0.0  ;;  %v11621_v26 = vmax.f32 %v10471_v56, 0.0 }
 0x419   :  { %v10481_v28 = vadd.f32 %v10407_v42, %v3119_v18  ;;  %3766 = vmatprep.subr.bf16.mxu1 %v8923_v55  ;;  %3731 = vmatprep.mubr.bf16.mxu0 %v11796_v27 }
 0x41a   :  { %v3120_v33 = vadd.f32 %v3111_v59, %v11807_v24  ;;  %3845 = vmatprep.subr.bf16.mxu0 %v8926_v12  ;;  %v3121_v37 = vadd.f32 %v10388_v57, %v11810_v63  ;;  %v8930_v59 = vld [vmem:[#allocation10 + $0xf0] ss:$36 sps:$4 sm:$0xff]   ;;  %v8935_v57 = vld [vmem:[#allocation10 + $0x17c] ss:$36 sps:$4 sm:$0xff]  }
 0x41b   :  { %11808 = vst [vmem:[#allocation27_spill] sm:$0xff] %v10481_v28  ;;  %v11620_v8 = vmax.f32 %v10481_v28, 0.0  ;;  %3846 = vmatpush1.bf16.msra.mxu0 %v8924_v5  ;;  %v8938_v12 = vld [vmem:[#allocation10 + $0x13c] ss:$36 sps:$4 sm:$0xff]  }
 0x41c   :  { %3767 = vmatpush1.bf16.msra.mxu1 %v8921_v49  ;;  %3847 = vmatprep.subr.bf16.mxu0 %v8932_v3  ;;  %v10490_v30 = vadd.f32 %v10407_v42, %v3120_v33  ;;  %v10499_v18 = vadd.f32 %v10407_v42, %v3121_v37  ;;  %v8933_v5 = vld [vmem:[#allocation10 + $0x178] ss:$36 sps:$4 sm:$0xff]   ;;  %v8941_v33 = vld [vmem:[#allocation10 + $0x184] ss:$36 sps:$4 sm:$0xff]  }
 0x41d   :  { %v10496_v55 = vpack.c.bf16 %v11620_v8, %v11621_v26  ;;  %3768 = vmatprep.subr.bf16.mxu1 %v8929_v38  ;;  %v8936_v49 = vld [vmem:[#allocation10 + $0x138] ss:$36 sps:$4 sm:$0xff]   ;;  %v8944_v38 = vld [vmem:[#allocation10 + $0x1c4] ss:$36 sps:$4 sm:$0xff]  }
 0x41e   :  { %11811 = vst [vmem:[#allocation28_spill] sm:$0xff] %v10490_v30  ;;  %11812 = vst [vmem:[#allocation29_spill] sm:$0xff] %v10499_v18  ;;  %v11813_v3 = vld [vmem:[#allocation33_spill] sm:$0xff]  ;;  %v11619_v24 = vmax.f32 %v10490_v30, 0.0  ;;  %v11622_v46 = vmax.f32 %v10499_v18, 0.0 }
 0x41f   :  { %3651 = vmatmul.mubr.bf16.gmra.mrb[108].mxu1 %v10496_v55  ;;  %3732 = vmatmul.mubr.bf16.gmra.mrb[128].mxu0 %v10496_v55  ;;  %v3122_v34 = vadd.f32 %v10395_v14, %v11813_v3  ;;  %v8939_v63 = vld [vmem:[#allocation10 + $0x180] ss:$36 sps:$4 sm:$0xff]   ;;  %v8950_v3 = vld [vmem:[#allocation10 + $0x20c] ss:$36 sps:$4 sm:$0xff]   ;;  %v11818_v30 = vld [vmem:[#allocation41_spill] sm:$0xff] }
 0x420   :  { %3769 = vmatpush1.bf16.msra.mxu1 %v8927_v7  ;;  %3848 = vmatpush1.bf16.msra.mxu0 %v8930_v59  ;;  %v8942_v37 = vld [vmem:[#allocation10 + $0x1c0] ss:$36 sps:$4 sm:$0xff]   ;;  %v10514_v14 = vpack.c.bf16 %v11622_v46, %v11619_v24  ;;  %v8947_v59 = vld [vmem:[#allocation10 + $0x1cc] ss:$36 sps:$4 sm:$0xff]   ;;  %v11816_v24 = vld [vmem:[#allocation37_spill] sm:$0xff] }
 0x421   :  { %3660 = vmatprep.mubr.bf16.mxu1 %v11796_v27  ;;  %3741 = vmatprep.mubr.bf16.mxu0 %v11796_v27  ;;  %v3135_v7 = vadd.f32 %v10407_v42, %v3122_v34  ;;  %v8953_v42 = vld [vmem:[#allocation10 + $0x214] ss:$36 sps:$4 sm:$0xff]  }
 0x422   :  { %3770 = vmatprep.subr.bf16.mxu1 %v8935_v57  ;;  %3849 = vmatprep.subr.bf16.mxu0 %v8938_v12  ;;  %v8945_v57 = vld [vmem:[#allocation10 + $0x1c8] ss:$36 sps:$4 sm:$0xff]  }
 0x423   :  { %v8948_v12 = vld [vmem:[#allocation10 + $0x208] ss:$36 sps:$4 sm:$0xff]  }
 0x424   :  { %3771 = vmatpush1.bf16.msra.mxu1 %v8933_v5  ;;  %3850 = vmatpush1.bf16.msra.mxu0 %v8936_v49  ;;  %v10518_v5 = vmax.f32 %v3135_v7, 0.0  ;;  %v8951_v49 = vld [vmem:[#allocation10 + $0x210] ss:$36 sps:$4 sm:$0xff]   ;;  %v8957_v7 = vld [vmem:[#allocation10 + $0xf8] ss:$36 sps:$4 sm:$0xff]  }
 0x425   :  { %3851 = vmatprep.subr.bf16.mxu0 %v8941_v33  ;;  %3772 = vmatprep.subr.bf16.mxu1 %v8944_v38  ;;  %v11815_v33 = vmov 0.0   ;;  %v8954_v38 = vld [vmem:[#allocation10 + $0x20] ss:$36 sps:$4 sm:$0xff]  }
 0x426   :  { %11814 = vst [vmem:[#allocation30_spill] sm:$0xff] %v10518_v5  ;;  %v3149_v34 = vpack.c.bf16 %v10518_v5, %v10518_v5 }
 0x427   :  { %3661 = vmatmul.mubr.bf16.gmra.mrb[112].mxu1 %v10514_v14  ;;  %3742 = vmatmul.mubr.bf16.gmra.mrb[132].mxu0 %v10514_v14 }
 0x428   :  { %3852 = vmatpush1.bf16.msra.mxu0 %v8939_v63  ;;  %3773 = vmatpush1.bf16.msra.mxu1 %v8942_v37  ;;  %v8955_v63 = vld [vmem:[#allocation10 + $0x68] ss:$36 sps:$4 sm:$0xff]   ;;  %v8956_v37 = vld [vmem:[#allocation10 + $0xb0] ss:$36 sps:$4 sm:$0xff]  }
 0x429   :  { %3670 = vmatprep.mubr.bf16.mxu1 %v11796_v27  ;;  %3751 = vmatprep.mubr.bf16.mxu0 %v11796_v27 }
 0x42a   :  { %3853 = vmatprep.subr.bf16.mxu0 %v8947_v59  ;;  %3774 = vmatprep.subr.bf16.mxu1 %v8950_v3  ;;  %v8958_v59 = vld [vmem:[#allocation10 + $0x140] ss:$36 sps:$4 sm:$0xff]   ;;  %v8959_v3 = vld [vmem:[#allocation10 + $0x188] ss:$36 sps:$4 sm:$0xff]  }
 0x42c   :  { %3854 = vmatpush1.bf16.msra.mxu0 %v8945_v57  ;;  %3775 = vmatpush1.bf16.msra.mxu1 %v8948_v12  ;;  %v8960_v57 = vld [vmem:[#allocation10 + $0x1d0] ss:$36 sps:$4 sm:$0xff]   ;;  %v8961_v12 = vld [vmem:[#allocation10 + $0x218] ss:$36 sps:$4 sm:$0xff]  }
 0x42d   :  { %3855 = vmatprep.subr.bf16.mxu0 %v8953_v42  ;;  %8523 = vmatprep.subr.bf16.mxu1 %v11815_v33  ;;  %v8964_v42 = vld [vmem:[#allocation12 + $0x4] ss:$36 sps:$4 sm:$0xff]  }
 0x42f   :  { %3671 = vmatmul.mubr.bf16.gmra.mrb[116].mxu1 %v3149_v34  ;;  %3752 = vmatmul.mubr.bf16.gmra.mrb[136].mxu0 %v3149_v34 }
 0x430   :  { %3856 = vmatpush1.bf16.msra.mxu0 %v8951_v49  ;;  %3792 = vmatprep.mubr.bf16.mxu1 %v11796_v27  ;;  %v8968_v49 = vld [vmem:[#allocation12 + $0x8] ss:$36 sps:$4 sm:$0xff]  }
 0x431   :  { %3873 = vmatprep.mubr.bf16.mxu0 %v11796_v27  ;;  %4734 = vmatprep.subr.bf16.mxu0 %v8964_v42  ;;  %v8985_v42 = vld [vmem:[#allocation12 + $0x124] ss:$36 sps:$4 sm:$0xff]  }
 0x437   :  { %3793 = vmatmul.mubr.bf16.vlgmr.msra.gmra.mrb[120].mxu1 %v10435_v50  ;;  %3874 = vmatmul.mubr.bf16.vlgmr.msra.gmra.mrb[140].mxu0 %v10435_v50 }
 0x438   :  { %8524 = vmatpush3.bf16.msra.mxu1 %v8954_v38  ;;  %3802 = vmatprep.mubr.bf16.mxu1 %v11796_v27  ;;  %v8965_v38 = vld [vmem:[#allocation12 + $0x48] ss:$36 sps:$4 sm:$0xff]  }
 0x439   :  { %8525 = vmatprep.subr.bf16.mxu1 %v11815_v33  ;;  %3883 = vmatprep.mubr.bf16.mxu0 %v11796_v27 }
 0x43c   :  { %8526 = vmatpush3.bf16.msra.mxu1 %v8955_v63  ;;  %v8967_v63 = vld [vmem:[#allocation12 + $0x4c] ss:$36 sps:$4 sm:$0xff]  }
 0x43d   :  { %8527 = vmatprep.subr.bf16.mxu1 %v11815_v33 }
 0x43f   :  { %3803 = vmatmul.mubr.bf16.gmra.mrb[124].mxu1 %v10468_v19  ;;  %3884 = vmatmul.mubr.bf16.gmra.mrb[144].mxu0 %v10468_v19 }
 0x440   :  { %8528 = vmatpush3.bf16.msra.mxu1 %v8956_v37  ;;  %3812 = vmatprep.mubr.bf16.mxu1 %v11796_v27  ;;  %v8976_v37 = vld [vmem:[#allocation12 + $0x54] ss:$36 sps:$4 sm:$0xff]  }
 0x441   :  { %8529 = vmatprep.subr.bf16.mxu1 %v11815_v33  ;;  %3893 = vmatprep.mubr.bf16.mxu0 %v11796_v27 }
 0x444   :  { %8530 = vmatpush3.bf16.msra.mxu1 %v8957_v7  ;;  %v8974_v7 = vld [vmem:[#allocation12 + $0x50] ss:$36 sps:$4 sm:$0xff]  }
 0x445   :  { %8531 = vmatprep.subr.bf16.mxu1 %v11815_v33 }
 0x447   :  { %3813 = vmatmul.mubr.bf16.gmra.mrb[128].mxu1 %v10496_v55  ;;  %3894 = vmatmul.mubr.bf16.gmra.mrb[148].mxu0 %v10496_v55 }
 0x448   :  { %8532 = vmatpush3.bf16.msra.mxu1 %v8958_v59  ;;  %3822 = vmatprep.mubr.bf16.mxu1 %v11796_v27  ;;  %v8980_v59 = vld [vmem:[#allocation12 + $0x98] ss:$36 sps:$4 sm:$0xff]  }
 0x449   :  { %3903 = vmatprep.mubr.bf16.mxu0 %v11796_v27  ;;  %8533 = vmatprep.subr.bf16.mxu1 %v11815_v33 }
 0x44c   :  { %8534 = vmatpush3.bf16.msra.mxu1 %v8959_v3  ;;  %v8979_v3 = vld [vmem:[#allocation12 + $0xdc] ss:$36 sps:$4 sm:$0xff]  }
 0x44d   :  { %8535 = vmatprep.subr.bf16.mxu1 %v11815_v33 }
 0x44f   :  { %3823 = vmatmul.mubr.bf16.gmra.mrb[132].mxu1 %v10514_v14  ;;  %3904 = vmatmul.mubr.bf16.gmra.mrb[152].mxu0 %v10514_v14 }
 0x450   :  { %8536 = vmatpush3.bf16.msra.mxu1 %v8960_v57  ;;  %3832 = vmatprep.mubr.bf16.mxu1 %v11796_v27  ;;  %v8988_v57 = vld [vmem:[#allocation12 + $0xe4] ss:$36 sps:$4 sm:$0xff]  }
 0x451   :  { %3913 = vmatprep.mubr.bf16.mxu0 %v11796_v27  ;;  %8537 = vmatprep.subr.bf16.mxu1 %v11815_v33 }
 0x454   :  { %8538 = vmatpush3.bf16.msra.mxu1 %v8961_v12  ;;  %v8977_v12 = vld [vmem:[#allocation12 + $0xd8] ss:$36 sps:$4 sm:$0xff]  }
 0x457   :  { %3833 = vmatmul.mubr.bf16.gmra.mrb[136].mxu1 %v3149_v34  ;;  %3914 = vmatmul.mubr.bf16.gmra.mrb[156].mxu0 %v3149_v34 }
 0x458   :  { %8539 = vmatprep.mubr.msk.bf16.mxu1 %vm9278_vm0, %v11815_v33  ;;  %4766 = vmatprep.mubr.bf16.mxu0 %v11796_v27 }
 0x45f   :  { %8540 = vmatmul.mubr.bf16.vlgmr.msra.gmra.mrb[140].mxu1 %v10435_v50  ;;  %v8962_v50 = vld [vmem:[#allocation12] ss:$36 sps:$4 sm:$0xff]  }
 0x460   :  { %8543 = vmatprep.mubr.msk.bf16.mxu1 %vm9278_vm0, %v11815_v33  ;;  %4735 = vmatpush1.bf16.msra.mxu0 %v8962_v50  ;;  %v8986_v50 = vld [vmem:[#allocation12 + $0xe0] ss:$36 sps:$4 sm:$0xff]  }
 0x461   :  { %4736 = vmatprep.subr.bf16.mxu0 %v8967_v63  ;;  %v8991_v63 = vld [vmem:[#allocation12 + $0x16c] ss:$36 sps:$4 sm:$0xff]  }
 0x464   :  { %4737 = vmatpush1.bf16.msra.mxu0 %v8965_v38  ;;  %v8992_v38 = vld [vmem:[#allocation12 + $0x128] ss:$36 sps:$4 sm:$0xff]  }
 0x467   :  { %8544 = vmatmul.mubr.bf16.gmra.mrb[144].mxu1 %v10468_v19  ;;  %v8970_v19 = vld [vmem:[#allocation12 + $0xc] ss:$36 sps:$4 sm:$0xff]  }
 0x468   :  { %8547 = vmatprep.mubr.msk.bf16.mxu1 %vm9278_vm0, %v11815_v33  ;;  %4815 = vmatprep.subr.bf16.mxu1 %v8970_v19  ;;  %v8994_v19 = vld [vmem:[#allocation12 + $0x12c] ss:$36 sps:$4 sm:$0xff]  }
 0x469   :  { %4816 = vmatpush1.bf16.msra.mxu1 %v8968_v49  ;;  %v8983_v49 = vld [vmem:[#allocation12 + $0x120] ss:$36 sps:$4 sm:$0xff]  }
 0x46a   :  { %4817 = vmatprep.subr.bf16.mxu1 %v8976_v37  ;;  %v8989_v37 = vld [vmem:[#allocation12 + $0x168] ss:$36 sps:$4 sm:$0xff]  }
 0x46d   :  { %4818 = vmatpush1.bf16.msra.mxu1 %v8974_v7  ;;  %v9000_v7 = vld [vmem:[#allocation12 + $0x1b4] ss:$36 sps:$4 sm:$0xff]  }
 0x46f   :  { %8548 = vmatmul.mubr.bf16.gmra.mrb[148].mxu1 %v10496_v55  ;;  %v8973_v55 = vld [vmem:[#allocation12 + $0x94] ss:$36 sps:$4 sm:$0xff]  }
 0x470   :  { %8551 = vmatprep.mubr.msk.bf16.mxu1 %vm9278_vm0, %v11815_v33  ;;  %4738 = vmatprep.subr.bf16.mxu0 %v8973_v55  ;;  %v8997_v55 = vld [vmem:[#allocation12 + $0x174] ss:$36 sps:$4 sm:$0xff]  }
 0x477   :  { %8552 = vmatmul.mubr.bf16.gmra.mrb[152].mxu1 %v10514_v14  ;;  %v8971_v14 = vld [vmem:[#allocation12 + $0x90] ss:$36 sps:$4 sm:$0xff]  }
 0x478   :  { %8555 = vmatprep.mubr.msk.bf16.mxu1 %vm9278_vm0, %v11815_v33  ;;  %4739 = vmatpush1.bf16.msra.mxu0 %v8971_v14  ;;  %v8995_v14 = vld [vmem:[#allocation12 + $0x170] ss:$36 sps:$4 sm:$0xff]  }
 0x479   :  { %4740 = vmatprep.subr.bf16.mxu0 %v8979_v3  ;;  %v9001_v3 = vld [vmem:[#allocation12 + $0x1b8] ss:$36 sps:$4 sm:$0xff]  }
 0x47c   :  { %4741 = vmatpush1.bf16.msra.mxu0 %v8977_v12  ;;  %v9009_v12 = vld [vmem:[#allocation12 + $0x204] ss:$36 sps:$4 sm:$0xff]  }
 0x47d   :  { %4742 = vmatprep.subr.bf16.mxu0 %v8985_v42  ;;  %v9007_v42 = vld [vmem:[#allocation12 + $0x200] ss:$36 sps:$4 sm:$0xff]  }
 0x47f   :  { %8556 = vmatmul.mubr.bf16.gmra.mrb[156].mxu1 %v3149_v34  ;;  %v8982_v34 = vld [vmem:[#allocation12 + $0x9c] ss:$36 sps:$4 sm:$0xff]  }
 0x480   :  { %4847 = vmatprep.mubr.bf16.mxu1 %v11796_v27  ;;  %4819 = vmatprep.subr.bf16.mxu1 %v8982_v34  ;;  %v9003_v34 = vld [vmem:[#allocation12 + $0x1bc] ss:$36 sps:$4 sm:$0xff]  }
 0x481   :  { %4820 = vmatpush1.bf16.msra.mxu1 %v8980_v59  ;;  %4743 = vmatpush1.bf16.msra.mxu0 %v8983_v49  ;;  %v8998_v59 = vld [vmem:[#allocation12 + $0x1b0] ss:$36 sps:$4 sm:$0xff]   ;;  %v9018_v49 = vld [vmem:[#allocation12 + $0x1c] ss:$36 sps:$4 sm:$0xff]  }
 0x482   :  { %4821 = vmatprep.subr.bf16.mxu1 %v8988_v57  ;;  %4744 = vmatprep.subr.bf16.mxu0 %v8991_v63  ;;  %v9006_v57 = vld [vmem:[#allocation12 + $0x1fc] ss:$36 sps:$4 sm:$0xff]  }
 0x485   :  { %4822 = vmatpush1.bf16.msra.mxu1 %v8986_v50  ;;  %4745 = vmatpush1.bf16.msra.mxu0 %v8989_v37  ;;  %v9004_v50 = vld [vmem:[#allocation12 + $0x1f8] ss:$36 sps:$4 sm:$0xff]  }
 0x486   :  { %4823 = vmatprep.subr.bf16.mxu1 %v8994_v19  ;;  %4746 = vmatprep.subr.bf16.mxu0 %v9000_v7  ;;  %v9012_v19 = vld [vmem:[#allocation12 + $0x14] ss:$36 sps:$4 sm:$0xff]  }
 0x489   :  { %4824 = vmatpush1.bf16.msra.mxu1 %v8992_v38  ;;  %4747 = vmatpush1.bf16.msra.mxu0 %v8998_v59 }
 0x48a   :  { %4825 = vmatprep.subr.bf16.mxu1 %v8997_v55  ;;  %4748 = vmatprep.subr.bf16.mxu0 %v9006_v57 }
 0x48d   :  { %4826 = vmatpush1.bf16.msra.mxu1 %v8995_v14  ;;  %4749 = vmatpush1.bf16.msra.mxu0 %v9004_v50 }
 0x48e   :  { %4827 = vmatprep.subr.bf16.mxu1 %v9003_v34  ;;  %4896 = vmatprep.subr.bf16.mxu0 %v9012_v19 }
 0x491   :  { %4828 = vmatpush1.bf16.msra.mxu1 %v9001_v3 }
 0x492   :  { %4829 = vmatprep.subr.bf16.mxu1 %v9009_v12 }
 0x495   :  { %4830 = vmatpush1.bf16.msra.mxu1 %v9007_v42 }
 0x496   :  { %4977 = vmatprep.subr.bf16.mxu1 %v9018_v49 }
 0x4e2   :  { %v10566_v38 = vpop.f32.mrb[100].mxu1  ;;  %v10568_v63 = vpop.f32.mrb[120].mxu0 }
 0x4e3   :  { %v10570_v55 = vpop.f32.mrb[101].mxu1  ;;  %v10572_v37 = vpop.f32.mrb[121].mxu0  ;;  %v11626_v34 = vrot.slane %v10566_v38, 4 }
 0x4e4   :  { %v3636_v14 = vpop.f32.mrb[102].mxu1  ;;  %v3717_v7 = vpop.f32.mrb[122].mxu0  ;;  %v11632_v12 = vrot.slane %v10570_v55, 6  ;;  %v11634_v50 = vrot.slane %v10572_v37, 6 }
 0x4e5   :  { %v3995_v59 = vrot.slane %v3636_v14, 4  ;;  %v3638_v3 = vpop.f32.mrb[103].mxu1  ;;  %v3719_v57 = vpop.f32.mrb[123].mxu0  ;;  %v4060_v28 = vmul.f32 %v3717_v7, %v11818_v30 }
 0x4e6   :  { %v4022_v42 = vrot.slane %v3638_v3, 6  ;;  %v4076_v19 = vrot.slane %v3719_v57, 6  ;;  %v11817_v3 = vld [vmem:[#allocation38_spill] sm:$0xff] }
 0x4e7   :  { %v4010_v49 = vsel %vm1293_vm1, %v11626_v34, %v3995_v59 }
 0x4e8   :  { %v4015_v8 = vmul.f32 %v4010_v49, %v11816_v24  ;;  %v4037_v14 = vsel %vm1375_vm2, %v11632_v12, %v4022_v42  ;;  %v10590_v26 = vsel %vm1375_vm2, %v11634_v50, %v4076_v19 }
 0x4e9   :  { %v4042_v57 = vmul.f32 %v4037_v14, %v11817_v3  ;;  %v11819_v14 = vld [vmem:[#allocation50_spill] sm:$0xff] }
 0x4ea   :  { %v3642_v46 = vpop.f32.mrb[104].mxu1  ;;  %v3723_v16 = vpop.f32.mrb[124].mxu0 }
 0x4eb   :  { %v3996_v34 = vrot.slane %v3642_v46, 4  ;;  %v3644_v56 = vpop.f32.mrb[105].mxu1  ;;  %v3725_v49 = vpop.f32.mrb[125].mxu0  ;;  %v4051_v18 = vadd.f32 %v4042_v57, %v4015_v8  ;;  %v11820_v8 = vld [vmem:[#allocation52_spill] sm:$0xff] }
 0x4ec   :  { %v4023_v39 = vrot.slane %v3644_v56, 6  ;;  %v4077_v13 = vrot.slane %v3725_v49, 6  ;;  %v3646_v45 = vpop.f32.mrb[106].mxu1  ;;  %v3727_v12 = vpop.f32.mrb[126].mxu0 }
 0x4ed   :  { %v4009_v5 = vsel %vm1293_vm1, %v3995_v59, %v3996_v34  ;;  %v3997_v24 = vrot.slane %v3646_v45, 4  ;;  %v3648_v50 = vpop.f32.mrb[107].mxu1  ;;  %v3729_v33 = vpop.f32.mrb[127].mxu0  ;;  %v4069_v17 = vadd.f32 %v4060_v28, %v4051_v18  ;;  %v11821_v45 = vld [vmem:[#allocation51_spill] sm:$0xff]  ;;  %v11822_v18 = vld [vmem:[#allocation56_spill] sm:$0xff] }
 0x4ee   :  { %v4016_v3 = vmul.f32 %v4009_v5, %v11819_v14  ;;  %v4036_v7 = vsel %vm1375_vm2, %v4022_v42, %v4023_v39  ;;  %v10601_v46 = vsel %vm1375_vm2, %v4076_v19, %v4077_v13  ;;  %v4024_v56 = vrot.slane %v3648_v50, 6  ;;  %v11823_v14 = vld [vmem:[#allocation53_spill] sm:$0xff] }
 0x4ef   :  { %v4043_v57 = vmul.f32 %v4036_v7, %v11820_v8  ;;  %v4008_v49 = vsel %vm1293_vm1, %v3996_v34, %v3997_v24  ;;  %v4078_v59 = vrot.slane %v3729_v33, 6  ;;  %v4061_v5 = vmul.f32 %v3723_v16, %v11822_v18  ;;  %v11824_v7 = vld [vmem:[#allocation45_spill] sm:$0xff] }
 0x4f0   :  { %v4017_v30 = vmul.f32 %v4008_v49, %v11821_v45  ;;  %v4035_v28 = vsel %vm1375_vm2, %v4023_v39, %v4024_v56  ;;  %v4062_v34 = vmul.f32 %v3727_v12, %v11825_v25 }
 0x4f1   :  { %v4044_v42 = vmul.f32 %v4035_v28, %v11823_v14  ;;  %v4089_v19 = vsel %vm1375_vm2, %v4077_v13, %v4078_v59  ;;  %v4052_v58 = vadd.f32 %v4043_v57, %v4016_v3 }
 0x4f2   :  { %v3652_v50 = vpop.f32.mrb[108].mxu1  ;;  %v3733_v27 = vpop.f32.mrb[128].mxu0  ;;  %v4096_v8 = vmul.f32 %v4089_v19, %v11824_v7  ;;  %v11826_v7 = vld [vmem:[#allocation66_spill] sm:$0xff] }
 0x4f3   :  { %v3998_v33 = vrot.slane %v3652_v50, 4  ;;  %v3654_v44 = vpop.f32.mrb[109].mxu1  ;;  %v3735_v49 = vpop.f32.mrb[129].mxu0  ;;  %v4070_v45 = vadd.f32 %v4061_v5, %v4052_v58  ;;  %v4053_v29 = vadd.f32 %v4044_v42, %v4017_v30  ;;  %v11827_v30 = vld [vmem:[#allocation68_spill] sm:$0xff] }
 0x4f4   :  { %v4025_v39 = vrot.slane %v3654_v44, 6  ;;  %v4079_v23 = vrot.slane %v3735_v49, 6  ;;  %v3656_v16 = vpop.f32.mrb[110].mxu1  ;;  %v3737_v18 = vpop.f32.mrb[130].mxu0  ;;  %v10615_v28 = vadd.f32 %v4096_v8, %v4069_v17  ;;  %v11829_v49 = vld [vmem:[#allocation72_spill] sm:$0xff] }
 0x4f5   :  { %v4007_v13 = vsel %vm1293_vm1, %v3997_v24, %v3998_v33  ;;  %v3999_v3 = vrot.slane %v3656_v16, 4  ;;  %v3658_v57 = vpop.f32.mrb[111].mxu1  ;;  %v3739_v14 = vpop.f32.mrb[131].mxu0  ;;  %v4071_v19 = vadd.f32 %v4062_v34, %v4053_v29  ;;  %v11828_v24 = vld [vmem:[#allocation60_spill] sm:$0xff]  ;;  %v4063_v16 = vmul.f32 %v3733_v27, %v11829_v49  ;;  %v11830_v29 = vld [vmem:[#allocation67_spill] sm:$0xff] }
 0x4f6   :  { %v4018_v12 = vmul.f32 %v4007_v13, %v11826_v7  ;;  %v4034_v50 = vsel %vm1375_vm2, %v4024_v56, %v4025_v39  ;;  %v4088_v44 = vsel %vm1375_vm2, %v4078_v59, %v4079_v23  ;;  %v4026_v58 = vrot.slane %v3658_v57, 6  ;;  %v11831_v56 = vld [vmem:[#allocation69_spill] sm:$0xff] }
 0x4f7   :  { %v4045_v5 = vmul.f32 %v4034_v50, %v11827_v30  ;;  %v4006_v17 = vsel %vm1293_vm1, %v3998_v33, %v3999_v3  ;;  %v4080_v8 = vrot.slane %v3739_v14, 6  ;;  %v4097_v42 = vmul.f32 %v4088_v44, %v11828_v24 }
 0x4f8   :  { %v4019_v34 = vmul.f32 %v4006_v17, %v11830_v29  ;;  %v4033_v13 = vsel %vm1375_vm2, %v4025_v39, %v4026_v58  ;;  %v4064_v44 = vmul.f32 %v3737_v18, %v9708_v0 }
 0x4f9   :  { %v4046_v7 = vmul.f32 %v4033_v13, %v11831_v56  ;;  %v4087_v59 = vsel %vm1375_vm2, %v4079_v23, %v4080_v8  ;;  %v10635_v57 = vadd.f32 %v4097_v42, %v4070_v45  ;;  %v4054_v50 = vadd.f32 %v4045_v5, %v4018_v12 }
 0x4fa   :  { %v3662_v30 = vpop.f32.mrb[112].mxu1  ;;  %v3743_v33 = vpop.f32.mrb[132].mxu0  ;;  %v4098_v14 = vmul.f32 %v4087_v59, %v9684_v41  ;;  %v11832_v59 = vld [vmem:[#allocation81_spill] sm:$0xff] }
 0x4fb   :  { %v4000_v27 = vrot.slane %v3662_v30, 4  ;;  %v3664_v49 = vpop.f32.mrb[113].mxu1  ;;  %v3745_v17 = vpop.f32.mrb[133].mxu0  ;;  %v4072_v29 = vadd.f32 %v4063_v16, %v4054_v50  ;;  %v4055_v24 = vadd.f32 %v4046_v7, %v4019_v34  ;;  %v11833_v16 = vld [vmem:[#allocation82_spill] sm:$0xff] }
 0x4fc   :  { %v4027_v39 = vrot.slane %v3664_v49, 6  ;;  %v4081_v25 = vrot.slane %v3745_v17, 6  ;;  %v3666_v13 = vpop.f32.mrb[114].mxu1  ;;  %v3747_v56 = vpop.f32.mrb[134].mxu0  ;;  %v10639_v31 = vadd.f32 %v4098_v14, %v4071_v19  ;;  %v11835_v17 = vld [vmem:[#allocation84_spill] sm:$0xff] }
 0x4fd   :  { %v4005_v23 = vsel %vm1293_vm1, %v3999_v3, %v4000_v27  ;;  %v4001_v45 = vrot.slane %v3666_v13, 4  ;;  %v3668_v12 = vpop.f32.mrb[115].mxu1  ;;  %v3749_v5 = vpop.f32.mrb[135].mxu0  ;;  %v4073_v42 = vadd.f32 %v4064_v44, %v4055_v24  ;;  %v11834_v3 = vld [vmem:[#allocation76_spill] sm:$0xff]  ;;  %v4065_v13 = vmul.f32 %v3743_v33, %v11835_v17  ;;  %v11836_v24 = vld [vmem:[#allocation34_spill] sm:$0xff] }
 0x4fe   :  { %v4020_v18 = vmul.f32 %v4005_v23, %v11832_v59  ;;  %v4032_v30 = vsel %vm1375_vm2, %v4026_v58, %v4027_v39  ;;  %v4086_v7 = vsel %vm1375_vm2, %v4080_v8, %v4081_v25  ;;  %v4028_v49 = vrot.slane %v3668_v12, 6  ;;  %v11837_v58 = vld [vmem:[#allocation35_spill] sm:$0xff] }
 0x4ff   :  { %v4047_v34 = vmul.f32 %v4032_v30, %v11833_v16  ;;  %v4004_v19 = vsel %vm1293_vm1, %v4000_v27, %v4001_v45  ;;  %v4082_v50 = vrot.slane %v3749_v5, 6  ;;  %v4099_v14 = vmul.f32 %v4086_v7, %v11834_v3 }
 0x500   :  { %v4012_v44 = vmul.f32 %v4004_v19, %v11836_v24  ;;  %v4031_v23 = vsel %vm1375_vm2, %v4027_v39, %v4028_v49  ;;  %v4057_v7 = vmul.f32 %v3747_v56, %v9601_v60 }
 0x501   :  { %v4039_v59 = vmul.f32 %v4031_v23, %v11837_v58  ;;  %v4085_v8 = vsel %vm1375_vm2, %v4081_v25, %v4082_v50  ;;  %v10659_v12 = vadd.f32 %v4099_v14, %v4072_v29  ;;  %v4056_v30 = vadd.f32 %v4047_v34, %v4020_v18 }
 0x502   :  { %v3672_v16 = vpop.f32.mrb[116].mxu1  ;;  %v3753_v27 = vpop.f32.mrb[136].mxu0  ;;  %v4100_v5 = vmul.f32 %v4085_v8, %v9716_v6  ;;  %v11838_v29 = vrot.slane %v10566_v38, 4 }
 0x503   :  { %v4002_v33 = vrot.slane %v3672_v16, 4  ;;  %v3674_v17 = vpop.f32.mrb[117].mxu1  ;;  %v3755_v19 = vpop.f32.mrb[137].mxu0  ;;  %v4048_v24 = vadd.f32 %v4039_v59, %v4012_v44  ;;  %v4074_v3 = vadd.f32 %v4065_v13, %v4056_v30  ;;  %v4058_v30 = vmul.f32 %v3753_v27, %v9603_v61 }
 0x504   :  { %v4029_v39 = vrot.slane %v3674_v17, 6  ;;  %v4083_v0 = vrot.slane %v3755_v19, 6  ;;  %v3676_v23 = vpop.f32.mrb[118].mxu1  ;;  %v3757_v58 = vpop.f32.mrb[138].mxu0  ;;  %v10663_v41 = vadd.f32 %v4100_v5, %v4073_v42  ;;  %v11839_v42 = vrot.slane %v10570_v55, 6 }
 0x505   :  { %v4003_v25 = vsel %vm1293_vm1, %v4001_v45, %v4002_v33  ;;  %v4011_v18 = vsel %vm1293_vm1, %v4002_v33, %v11838_v29  ;;  %v3677_v56 = vpop.f32.mrb[119].mxu1  ;;  %v3758_v16 = vpop.f32.mrb[139].mxu0  ;;  %v4066_v34 = vadd.f32 %v4057_v7, %v4048_v24  ;;  %v11840_v24 = vrot.slane %v10572_v37, 6 }
 0x506   :  { %v4013_v59 = vmul.f32 %v4003_v25, %v9593_v53  ;;  %v4014_v14 = vmul.f32 %v4011_v18, %v9616_v2  ;;  %v4030_v17 = vsel %vm1375_vm2, %v4028_v49, %v4029_v39  ;;  %v4038_v45 = vsel %vm1375_vm2, %v4029_v39, %v11839_v42  ;;  %v11841_v25 = vld [vmem:[#allocation36_spill] sm:$0xff] }
 0x507   :  { %v4040_v38 = vmul.f32 %v4030_v17, %v9595_v54  ;;  %v4041_v13 = vmul.f32 %v4038_v45, %v9623_v4  ;;  %v4084_v44 = vsel %vm1375_vm2, %v4082_v50, %v4083_v0  ;;  %v4092_v58 = vsel %vm1375_vm2, %v4083_v0, %v11840_v24  ;;  %v11843_v24 = vld [vmem:[#allocation39_spill] sm:$0xff] }
 0x508   :  { %v4093_v8 = vmul.f32 %v4092_v58, %v9607_v62  ;;  %v4101_v49 = vmul.f32 %v4084_v44, %v9853_v36  ;;  %v4059_v55 = vmul.f32 %v10568_v63, %v9634_v10  ;;  %v4094_v29 = vmul.f32 %v10590_v26, %v11841_v25  ;;  %v11842_v63 = vld [vmem:[#allocation44_spill] sm:$0xff] }
 0x509   :  { %v4049_v5 = vadd.f32 %v4040_v38, %v4013_v59  ;;  %v4050_v7 = vadd.f32 %v4041_v13, %v4014_v14  ;;  %v4095_v27 = vmul.f32 %v10601_v46, %v11842_v63 }
 0x50a   :  { %v3794_v33 = vpop.f32.mrb[120].mxu1  ;;  %v4102_v19 = vadd.f32 %v4093_v8, %v4066_v34  ;;  %v10692_v39 = vpop.f32.mrb[140].mxu0  ;;  %v10694_v50 = vadd.f32 %v4101_v49, %v4074_v3 }
 0x50b   :  { %v10696_v37 = vpop.f32.mrb[121].mxu1  ;;  %v10698_v0 = vpop.f32.mrb[141].mxu0  ;;  %v4067_v23 = vadd.f32 %v4058_v30, %v4049_v5  ;;  %v4068_v18 = vadd.f32 %v4059_v55, %v4050_v7  ;;  %v11844_v5 = vld [vmem:[#allocation42_spill] sm:$0xff] }
 0x50c   :  { %v4111_v56 = vadd.f32 %v4102_v19, %v3794_v33  ;;  %v3798_v16 = vpop.f32.mrb[122].mxu1  ;;  %v10704_v59 = vpop.f32.mrb[142].mxu0  ;;  %v11640_v42 = vrot.slane %v10696_v37, 2  ;;  %v11639_v45 = vrot.slane %v10698_v0, 2 }
 0x50d   :  { %v4103_v34 = vadd.f32 %v4094_v29, %v4067_v23  ;;  %v3800_v14 = vpop.f32.mrb[123].mxu1  ;;  %v3881_v3 = vpop.f32.mrb[143].mxu0  ;;  %v4104_v17 = vadd.f32 %v4095_v27, %v4068_v18 }
 0x50e   :  { %v4121_v38 = vrot.slane %v3800_v14, 2  ;;  %v4175_v13 = vrot.slane %v3881_v3, 2 }
 0x50f   :  { %v4112_v44 = vadd.f32 %v4103_v34, %v3798_v16 }
 0x510   :  { %v4136_v26 = vsel %vm1640_vm3, %v11640_v42, %v4121_v38  ;;  %v10716_v46 = vsel %vm1640_vm3, %v11639_v45, %v4175_v13 }
 0x511   :  { %v4138_v58 = vmul.f32 %v4136_v26, %v11843_v24  ;;  %v11848_v24 = vld [vmem:[#allocation58_spill] sm:$0xff] }
 0x512   :  { %v3804_v8 = vpop.f32.mrb[124].mxu1  ;;  %v3885_v49 = vpop.f32.mrb[144].mxu0 }
 0x513   :  { %v4113_v55 = vadd.f32 %v4104_v17, %v3804_v8  ;;  %v4147_v30 = vadd.f32 %v4138_v58, %v4111_v56  ;;  %v4156_v7 = vmul.f32 %v3885_v49, %v11844_v5  ;;  %v3806_v33 = vpop.f32.mrb[125].mxu1  ;;  %v3887_v19 = vpop.f32.mrb[145].mxu0  ;;  %v11845_v8 = vld [vmem:[#allocation40_spill] sm:$0xff] }
 0x514   :  { %v4122_v23 = vrot.slane %v3806_v33, 2  ;;  %v4176_v29 = vrot.slane %v3887_v19, 2  ;;  %v3808_v18 = vpop.f32.mrb[126].mxu1  ;;  %v3889_v27 = vpop.f32.mrb[146].mxu0  ;;  %v11846_v19 = vld [vmem:[#allocation54_spill] sm:$0xff] }
 0x515   :  { %v4165_v16 = vadd.f32 %v4156_v7, %v4147_v30  ;;  %v4114_v34 = vadd.f32 %v10615_v28, %v3808_v18  ;;  %v3810_v14 = vpop.f32.mrb[127].mxu1  ;;  %v3891_v3 = vpop.f32.mrb[147].mxu0  ;;  %v4157_v7 = vmul.f32 %v3889_v27, %v11764_v48 }
 0x516   :  { %v4135_v26 = vsel %vm1640_vm3, %v4121_v38, %v4122_v23  ;;  %v10725_v17 = vsel %vm1640_vm3, %v4175_v13, %v4176_v29  ;;  %v4123_v56 = vrot.slane %v3810_v14, 2  ;;  %v4177_v58 = vrot.slane %v3891_v3, 2  ;;  %v11847_v38 = vld [vmem:[#allocation46_spill] sm:$0xff] }
 0x517   :  { %v4139_v49 = vmul.f32 %v4135_v26, %v11845_v8 }
 0x518   :  { %v4134_v33 = vsel %vm1640_vm3, %v4122_v23, %v4123_v56  ;;  %v4188_v30 = vsel %vm1640_vm3, %v4176_v29, %v4177_v58 }
 0x519   :  { %v4148_v28 = vadd.f32 %v4139_v49, %v4112_v44  ;;  %v4140_v18 = vmul.f32 %v4134_v33, %v11846_v19  ;;  %v4192_v45 = vmul.f32 %v4188_v30, %v11847_v38 }
 0x51a   :  { %v3814_v42 = vpop.f32.mrb[128].mxu1  ;;  %v3895_v13 = vpop.f32.mrb[148].mxu0 }
 0x51b   :  { %v4166_v5 = vadd.f32 %v4157_v7, %v4148_v28  ;;  %v10735_v14 = vadd.f32 %v4192_v45, %v4165_v16  ;;  %v4115_v3 = vadd.f32 %v10635_v57, %v3814_v42  ;;  %v4149_v26 = vadd.f32 %v4140_v18, %v4113_v55  ;;  %v3816_v8 = vpop.f32.mrb[129].mxu1  ;;  %v3897_v23 = vpop.f32.mrb[149].mxu0  ;;  %v11849_v55 = vld [vmem:[#allocation55_spill] sm:$0xff] }
 0x51c   :  { %v4158_v63 = vmul.f32 %v3895_v13, %v11848_v24  ;;  %v4124_v29 = vrot.slane %v3816_v8, 2  ;;  %v4178_v44 = vrot.slane %v3897_v23, 2  ;;  %v3818_v49 = vpop.f32.mrb[130].mxu1  ;;  %v3899_v27 = vpop.f32.mrb[150].mxu0  ;;  %v11850_v28 = vld [vmem:[#allocation47_spill] sm:$0xff] }
 0x51d   :  { %v4116_v33 = vadd.f32 %v10639_v31, %v3818_v49  ;;  %v3820_v19 = vpop.f32.mrb[131].mxu1  ;;  %v3901_v30 = vpop.f32.mrb[151].mxu0  ;;  %v11851_v18 = vld [vmem:[#allocation59_spill] sm:$0xff] }
 0x51e   :  { %v4167_v38 = vadd.f32 %v4158_v63, %v4149_v26  ;;  %v4133_v45 = vsel %vm1640_vm3, %v4123_v56, %v4124_v29  ;;  %v4187_v57 = vsel %vm1640_vm3, %v4177_v58, %v4178_v44  ;;  %v4125_v42 = vrot.slane %v3820_v19, 2  ;;  %v11852_v26 = vld [vmem:[#allocation70_spill] sm:$0xff] }
 0x51f   :  { %v4141_v16 = vmul.f32 %v4133_v45, %v11849_v55  ;;  %v4193_v7 = vmul.f32 %v4187_v57, %v11850_v28  ;;  %v4179_v8 = vrot.slane %v3901_v30, 2  ;;  %v4159_v13 = vmul.f32 %v3899_v27, %v11851_v18  ;;  %v11853_v58 = vld [vmem:[#allocation62_spill] sm:$0xff] }
 0x520   :  { %v4132_v31 = vsel %vm1640_vm3, %v4124_v29, %v4125_v42 }
 0x521   :  { %v10749_v23 = vadd.f32 %v4193_v7, %v4166_v5  ;;  %v4150_v63 = vadd.f32 %v4141_v16, %v4114_v34  ;;  %v4142_v49 = vmul.f32 %v4132_v31, %v11852_v26  ;;  %v4186_v56 = vsel %vm1640_vm3, %v4178_v44, %v4179_v8 }
 0x522   :  { %v4194_v19 = vmul.f32 %v4186_v56, %v11853_v58  ;;  %v3824_v24 = vpop.f32.mrb[132].mxu1  ;;  %v3905_v45 = vpop.f32.mrb[152].mxu0 }
 0x523   :  { %v4168_v55 = vadd.f32 %v4159_v13, %v4150_v63  ;;  %v4117_v30 = vadd.f32 %v10659_v12, %v3824_v24  ;;  %v4151_v57 = vadd.f32 %v4142_v49, %v4115_v3  ;;  %v4160_v27 = vmul.f32 %v3905_v45, %v11773_v1  ;;  %v3826_v18 = vpop.f32.mrb[133].mxu1  ;;  %v3907_v29 = vpop.f32.mrb[153].mxu0  ;;  %v11854_v63 = vld [vmem:[#allocation71_spill] sm:$0xff] }
 0x524   :  { %v10757_v5 = vadd.f32 %v4194_v19, %v4167_v38  ;;  %v4126_v34 = vrot.slane %v3826_v18, 2  ;;  %v4180_v16 = vrot.slane %v3907_v29, 2  ;;  %v3828_v7 = vpop.f32.mrb[134].mxu1  ;;  %v3909_v31 = vpop.f32.mrb[154].mxu0  ;;  %v11855_v49 = vld [vmem:[#allocation63_spill] sm:$0xff] }
 0x525   :  { %v4169_v26 = vadd.f32 %v4160_v27, %v4151_v57  ;;  %v4118_v44 = vadd.f32 %v10663_v41, %v3828_v7  ;;  %v3830_v56 = vpop.f32.mrb[135].mxu1  ;;  %v3911_v58 = vpop.f32.mrb[155].mxu0  ;;  %v11856_v19 = vld [vmem:[#allocation75_spill] sm:$0xff] }
 0x526   :  { %v4131_v13 = vsel %vm1640_vm3, %v4125_v42, %v4126_v34  ;;  %v4185_v12 = vsel %vm1640_vm3, %v4179_v8, %v4180_v16  ;;  %v4127_v24 = vrot.slane %v3830_v56, 2  ;;  %v4181_v3 = vrot.slane %v3911_v58, 2  ;;  %v11857_v29 = vld [vmem:[#allocation83_spill] sm:$0xff] }
 0x527   :  { %v4143_v38 = vmul.f32 %v4131_v13, %v11854_v63  ;;  %v4195_v18 = vmul.f32 %v4185_v12, %v11855_v49  ;;  %v4161_v45 = vmul.f32 %v3909_v31, %v11856_v19 }
 0x528   :  { %v4130_v57 = vsel %vm1640_vm3, %v4126_v34, %v4127_v24  ;;  %v4184_v41 = vsel %vm1640_vm3, %v4180_v16, %v4181_v3 }
 0x529   :  { %v10771_v27 = vadd.f32 %v4195_v18, %v4168_v55  ;;  %v4152_v42 = vadd.f32 %v4143_v38, %v4116_v33  ;;  %v4144_v7 = vmul.f32 %v4130_v57, %v11857_v29  ;;  %v4196_v8 = vmul.f32 %v4184_v41, %v11725_v47 }
 0x52a   :  { %v3834_v58 = vpop.f32.mrb[136].mxu1  ;;  %v3915_v56 = vpop.f32.mrb[156].mxu0 }
 0x52b   :  { %v4170_v13 = vadd.f32 %v4161_v45, %v4152_v42  ;;  %v10775_v63 = vadd.f32 %v4196_v8, %v4169_v26  ;;  %v4119_v31 = vadd.f32 %v10694_v50, %v3834_v58  ;;  %v4153_v12 = vadd.f32 %v4144_v7, %v4117_v30  ;;  %v3836_v19 = vpop.f32.mrb[137].mxu1  ;;  %v3917_v34 = vpop.f32.mrb[157].mxu0 }
 0x52c   :  { %v4162_v49 = vmul.f32 %v3915_v56, %v9828_v21  ;;  %v4128_v16 = vrot.slane %v3836_v19, 2  ;;  %v4182_v55 = vrot.slane %v3917_v34, 2  ;;  %v3838_v18 = vpop.f32.mrb[138].mxu1  ;;  %v3919_v33 = vpop.f32.mrb[158].mxu0  ;;  %v11858_v26 = vrot.slane %v10696_v37, 2 }
 0x52d   :  { %v3839_v38 = vpop.f32.mrb[139].mxu1  ;;  %v3920_v57 = vpop.f32.mrb[159].mxu0  ;;  %v11859_v42 = vrot.slane %v10698_v0, 2  ;;  %v4163_v37 = vmul.f32 %v10692_v39, %v9895_v32  ;;  %v4164_v8 = vmul.f32 %v10704_v59, %v9983_v11  ;;  %v4199_v34 = vmul.f32 %v10716_v46, %v9930_v43 }
 0x52e   :  { %v4171_v29 = vadd.f32 %v4162_v49, %v4153_v12  ;;  %v4129_v41 = vsel %vm1640_vm3, %v4127_v24, %v4128_v16  ;;  %v4137_v50 = vsel %vm1640_vm3, %v4128_v16, %v11858_v26  ;;  %v4183_v30 = vsel %vm1640_vm3, %v4181_v3, %v4182_v55 }
 0x52f   :  { %v4145_v45 = vmul.f32 %v4129_v41, %v9800_v22  ;;  %v4146_v19 = vmul.f32 %v4137_v50, %v9958_v15  ;;  %v4191_v49 = vsel %vm1640_vm3, %v4182_v55, %v11859_v42  ;;  %v4197_v7 = vmul.f32 %v4183_v30, %v11728_v52 }
 0x530   :  { %v4198_v24 = vmul.f32 %v4191_v49, %v9911_v40  ;;  %v4200_v16 = vmul.f32 %v10725_v17, %v9992_v20 }
 0x531   :  { %v4154_v3 = vadd.f32 %v4145_v45, %v4118_v44  ;;  %v4155_v58 = vadd.f32 %v4146_v19, %v4119_v31  ;;  %v10799_v56 = vadd.f32 %v4197_v7, %v4170_v13  ;;  %v4248_v7 = vsub.s32 4, %v9483_v9 }
 0x532   :  { %v10801_v12 = vadd.f32 %v4198_v24, %v4171_v29  ;;  %v10803_v0 = vpop.f32.mrb[140].mxu1  ;;  %v11860_v24 = vld [vmem:[#allocation48_spill] sm:$0xff] }
 0x533   :  { %v4172_v39 = vadd.f32 %v4163_v37, %v4154_v3  ;;  %v4173_v55 = vadd.f32 %v4164_v8, %v4155_v58  ;;  %v8541_v18 = vpop.f32.mrb[141].mxu1  ;;  %v4210_v59 = vrot.slane %v10803_v0, 4 }
 0x534   :  { %v3959_v33 = vpop.f32.mrb[142].mxu1  ;;  %v4261_v18 = vsub.s32 5, %v9483_v9 }
 0x535   :  { %v4208_v44 = vadd.f32 %v4199_v34, %v4172_v39  ;;  %v4211_v31 = vrot.slane %v3959_v33, 4  ;;  %v8542_v13 = vpop.f32.mrb[143].mxu1  ;;  %v4209_v38 = vadd.f32 %v4200_v16, %v4173_v55  ;;  %v9068_v39 = vld [vmem:[#allocation15] sm:$0xff] }
 0x536   :  { %v10827_v55 = vrot.slane %v9068_v39, %v4248_v7 }
 0x537   :  { %v4226_v29 = vsel %vm1293_vm1, %v4210_v59, %v4211_v31 }
 0x538   :  { %v4235_v46 = vmul.f32 %v4226_v29, %v9956_v35  ;;  %v11861_v29 = vld [vmem:[#allocation49_spill] sm:$0xff] }
 0x53a   :  { %v10815_v57 = vadd.f32 %v4235_v46, %v4208_v44  ;;  %v3964_v17 = vpop.f32.mrb[144].mxu1 }
 0x53b   :  { %v4212_v41 = vrot.slane %v3964_v17, 4  ;;  %v8545_v26 = vpop.f32.mrb[145].mxu1  ;;  %v10836_v17 = vrot.slane %v9068_v39, %v4261_v18 }
 0x53c   :  { %v3967_v50 = vpop.f32.mrb[146].mxu1  ;;  %v11862_v26 = vld [vmem:[#allocation64_spill] sm:$0xff] }
 0x53d   :  { %v4225_v30 = vsel %vm1293_vm1, %v4211_v31, %v4212_v41  ;;  %v4213_v45 = vrot.slane %v3967_v50, 4  ;;  %v8546_v19 = vpop.f32.mrb[147].mxu1 }
 0x53e   :  { %v4236_v42 = vmul.f32 %v4225_v30, %v10010_v51 }
 0x53f   :  { %v4224_v49 = vsel %vm1293_vm1, %v4212_v41, %v4213_v45 }
 0x540   :  { %v10823_v37 = vadd.f32 %v4236_v42, %v4209_v38  ;;  %v4228_v8 = vmul.f32 %v4224_v49, %v11860_v24 }
 0x542   :  { %v4237_v3 = vadd.f32 %v4228_v8, %v10735_v14  ;;  %v3972_v58 = vpop.f32.mrb[148].mxu1 }
 0x543   :  { %v4214_v34 = vrot.slane %v3972_v58, 4  ;;  %v8549_v16 = vpop.f32.mrb[149].mxu1 }
 0x544   :  { %v3975_v33 = vpop.f32.mrb[150].mxu1  ;;  %v4250_v38 = vmul.f32 %v10827_v55, %v4237_v3 }
 0x545   :  { %v4223_v44 = vsel %vm1293_vm1, %v4213_v45, %v4214_v34  ;;  %v4215_v31 = vrot.slane %v3975_v33, 4  ;;  %v8550_v13 = vpop.f32.mrb[151].mxu1  ;;  %v11863_v33 = vld [vmem:[#allocation65_spill] sm:$0xff] }
 0x546   :  { %v4229_v46 = vmul.f32 %v4223_v44, %v11861_v29  ;;  %v4263_v30 = vadd.f32 %v10836_v17, %v4250_v38  ;;  %v9010_v13 = vld [vmem:[#allocation12 + $0x10] ss:$36 sps:$4 sm:$0xff]  }
 0x547   :  { %v4222_v14 = vsel %vm1293_vm1, %v4214_v34, %v4215_v31 }
 0x548   :  { %v4238_v41 = vadd.f32 %v4229_v46, %v10749_v23  ;;  %v4230_v50 = vmul.f32 %v4222_v14, %v11862_v26  ;;  %v4272_v39 = vmax.f32 %v4263_v30, 0.0  ;;  %v11864_v46 = vld [vmem:[#allocation79_spill] sm:$0xff] }
 0x54a   :  { %v4251_v19 = vmul.f32 %v10827_v55, %v4238_v41  ;;  %v4239_v45 = vadd.f32 %v4230_v50, %v10757_v5  ;;  %v3980_v42 = vpop.f32.mrb[152].mxu1  ;;  %v9015_v50 = vld [vmem:[#allocation12 + $0x5c] ss:$36 sps:$4 sm:$0xff]  }
 0x54b   :  { %v4216_v49 = vrot.slane %v3980_v42, 4  ;;  %v8553_v7 = vpop.f32.mrb[153].mxu1 }
 0x54c   :  { %v4264_v8 = vadd.f32 %v10836_v17, %v4251_v19  ;;  %v3983_v3 = vpop.f32.mrb[154].mxu1  ;;  %v4252_v58 = vmul.f32 %v10827_v55, %v4239_v45 }
 0x54d   :  { %v4221_v34 = vsel %vm1293_vm1, %v4215_v31, %v4216_v49  ;;  %v4217_v23 = vrot.slane %v3983_v3, 4  ;;  %v8554_v16 = vpop.f32.mrb[155].mxu1  ;;  %v9016_v31 = vld [vmem:[#allocation12 + $0x18] ss:$36 sps:$4 sm:$0xff]   ;;  %v11865_v3 = vmov 0  }
 0x54e   :  { %v4273_v18 = vmax.f32 %v4264_v8, 0.0  ;;  %v4231_v44 = vmul.f32 %v4221_v34, %v11863_v33  ;;  %v4265_v19 = vadd.f32 %v10836_v17, %v4252_v58  ;;  %v9013_v8 = vld [vmem:[#allocation12 + $0x58] ss:$36 sps:$4 sm:$0xff]   ;;  %v9021_v16 = vld [vmem:[#allocation12 + $0xa4] ss:$36 sps:$4 sm:$0xff]  }
 0x54f   :  { %v4220_v5 = vsel %vm1293_vm1, %v4216_v49, %v4217_v23  ;;  %v9024_v49 = vld [vmem:[#allocation12 + $0x64] ss:$36 sps:$4 sm:$0xff]  }
 0x550   :  { %v4240_v38 = vadd.f32 %v4231_v44, %v10771_v27  ;;  %v4232_v14 = vmul.f32 %v4220_v5, %v11864_v46  ;;  %v10852_v41 = vpack.c.bf16 %v4273_v18, %v4272_v39  ;;  %v4274_v39 = vmax.f32 %v4265_v19, 0.0  ;;  %v11878_v46 = vld [vmem:[#allocation57_spill] sm:$0xff] }
 0x552   :  { %v4253_v45 = vmul.f32 %v10827_v55, %v4240_v38  ;;  %v4241_v30 = vadd.f32 %v4232_v14, %v10775_v63  ;;  %v3988_v42 = vpop.f32.mrb[156].mxu1  ;;  %4767 = vmatmul.mubr.bf16.vlgmr.msra.gmra.mrb[160].mxu0 %v10852_v41  ;;  %4848 = vmatmul.mubr.bf16.vlgmr.msra.gmra.mrb[160].mxu1 %v10852_v41  ;;  %v4257_v63 = vmul.f32 %v10827_v55, %v10815_v57  ;;  %v9019_v57 = vld [vmem:[#allocation12 + $0xa0] ss:$36 sps:$4 sm:$0xff]  }
 0x553   :  { %v4218_v7 = vrot.slane %v3988_v42, 4  ;;  %4897 = vmatpush1.bf16.msra.mxu0 %v9010_v13  ;;  %v8557_v27 = vpop.f32.mrb[157].mxu1  ;;  %4776 = vmatprep.mubr.bf16.mxu0 %v11865_v3  ;;  %v9022_v13 = vld [vmem:[#allocation12 + $0x60] ss:$36 sps:$4 sm:$0xff]   ;;  %v11867_v42 = vld [vmem:[#allocation85_spill] sm:$0xff] }
 0x554   :  { %v4266_v34 = vadd.f32 %v10836_v17, %v4253_v45  ;;  %v3991_v58 = vpop.f32.mrb[158].mxu1  ;;  %4898 = vmatprep.subr.bf16.mxu0 %v9015_v50  ;;  %4857 = vmatprep.mubr.bf16.mxu1 %v11865_v3  ;;  %v4254_v14 = vmul.f32 %v10827_v55, %v4241_v30  ;;  %v11866_v50 = vld [vmem:[#allocation80_spill] sm:$0xff] }
 0x555   :  { %v4219_v18 = vsel %vm1293_vm1, %v4217_v23, %v4218_v7  ;;  %v4227_v44 = vsel %vm1293_vm1, %v4218_v7, %v4210_v59  ;;  %v8558_v5 = vpop.f32.mrb[159].mxu1  ;;  %4978 = vmatpush1.bf16.msra.mxu1 %v9016_v31  ;;  %v9027_v59 = vld [vmem:[#allocation12 + $0xec] ss:$36 sps:$4 sm:$0xff]   ;;  %v4270_v31 = vadd.f32 %v10836_v17, %v4257_v63  ;;  %v9033_v63 = vld [vmem:[#allocation12 + $0x134] ss:$36 sps:$4 sm:$0xff]  }
 0x556   :  { %v4275_v38 = vmax.f32 %v4266_v34, 0.0  ;;  %v4233_v45 = vmul.f32 %v4219_v18, %v11866_v50  ;;  %v4234_v27 = vmul.f32 %v4227_v44, %v11867_v42  ;;  %4979 = vmatprep.subr.bf16.mxu1 %v9024_v49  ;;  %v9030_v7 = vld [vmem:[#allocation12 + $0xac] ss:$36 sps:$4 sm:$0xff]   ;;  %v4267_v30 = vadd.f32 %v10836_v17, %v4254_v14 }
 0x557   :  { %4899 = vmatpush1.bf16.msra.mxu0 %v9013_v8  ;;  %v9036_v8 = vld [vmem:[#allocation12 + $0xf4] ss:$36 sps:$4 sm:$0xff]  }
 0x558   :  { %v4242_v23 = vadd.f32 %v4233_v45, %v10799_v56  ;;  %v4243_v0 = vadd.f32 %v4234_v27, %v10801_v12  ;;  %v10875_v19 = vpack.c.bf16 %v4275_v38, %v4274_v39  ;;  %4900 = vmatprep.subr.bf16.mxu0 %v9021_v16  ;;  %v9028_v56 = vld [vmem:[#allocation12 + $0xa8] ss:$36 sps:$4 sm:$0xff]   ;;  %v4279_v39 = vmax.f32 %v4270_v31, 0.0  ;;  %v9034_v38 = vld [vmem:[#allocation12 + $0xf0] ss:$36 sps:$4 sm:$0xff]  }
 0x559   :  { %4980 = vmatpush1.bf16.msra.mxu1 %v9022_v13  ;;  %v9025_v12 = vld [vmem:[#allocation12 + $0xe8] ss:$36 sps:$4 sm:$0xff]   ;;  %v4276_v18 = vmax.f32 %v4267_v30, 0.0  ;;  %v9031_v13 = vld [vmem:[#allocation12 + $0x130] ss:$36 sps:$4 sm:$0xff]  }
 0x55a   :  { %v4255_v34 = vmul.f32 %v10827_v55, %v4242_v23  ;;  %v4256_v49 = vmul.f32 %v10827_v55, %v4243_v0  ;;  %4777 = vmatmul.mubr.bf16.gmra.mrb[164].mxu0 %v10875_v19  ;;  %4858 = vmatmul.mubr.bf16.gmra.mrb[164].mxu1 %v10875_v19  ;;  %v9039_v27 = vld [vmem:[#allocation12 + $0x17c] ss:$36 sps:$4 sm:$0xff]   ;;  %v9045_v31 = vld [vmem:[#allocation12 + $0x184] ss:$36 sps:$4 sm:$0xff]  }
 0x55b   :  { %4901 = vmatpush1.bf16.msra.mxu0 %v9019_v57  ;;  %4786 = vmatprep.mubr.bf16.mxu0 %v11865_v3  ;;  %v9042_v57 = vld [vmem:[#allocation12 + $0x13c] ss:$36 sps:$4 sm:$0xff]  }
 0x55c   :  { %v4268_v58 = vadd.f32 %v10836_v17, %v4255_v34  ;;  %v4269_v16 = vadd.f32 %v10836_v17, %v4256_v49  ;;  %4902 = vmatprep.subr.bf16.mxu0 %v9027_v59  ;;  %4867 = vmatprep.mubr.bf16.mxu1 %v11865_v3  ;;  %v9037_v23 = vld [vmem:[#allocation12 + $0x178] ss:$36 sps:$4 sm:$0xff]   ;;  %v4258_v59 = vmul.f32 %v10827_v55, %v10823_v37  ;;  %v9043_v30 = vld [vmem:[#allocation12 + $0x180] ss:$36 sps:$4 sm:$0xff]   ;;  %v9049_v37 = vld [vmem:[#allocation12 + $0x1c8] ss:$36 sps:$4 sm:$0xff]  }
 0x55d   :  { %4981 = vmatprep.subr.bf16.mxu1 %v9030_v7  ;;  %v9040_v0 = vld [vmem:[#allocation12 + $0x138] ss:$36 sps:$4 sm:$0xff]   ;;  %v9048_v7 = vld [vmem:[#allocation12 + $0x1c4] ss:$36 sps:$4 sm:$0xff]  }
 0x55e   :  { %v4277_v44 = vmax.f32 %v4268_v58, 0.0  ;;  %v4278_v5 = vmax.f32 %v4269_v16, 0.0  ;;  %4982 = vmatpush1.bf16.msra.mxu1 %v9028_v56  ;;  %v9046_v34 = vld [vmem:[#allocation12 + $0x1c0] ss:$36 sps:$4 sm:$0xff]   ;;  %v4271_v49 = vadd.f32 %v10836_v17, %v4258_v59  ;;  %v9051_v56 = vld [vmem:[#allocation12 + $0x1cc] ss:$36 sps:$4 sm:$0xff]  }
 0x55f   :  { %4903 = vmatpush1.bf16.msra.mxu0 %v9025_v12  ;;  %4983 = vmatprep.subr.bf16.mxu1 %v9036_v8  ;;  %v9054_v12 = vld [vmem:[#allocation12 + $0x20c] ss:$36 sps:$4 sm:$0xff]   ;;  %v9057_v58 = vld [vmem:[#allocation12 + $0x214] ss:$36 sps:$4 sm:$0xff]  }
 0x560   :  { %v10887_v14 = vpack.c.bf16 %v4277_v44, %v4276_v18  ;;  %4904 = vmatprep.subr.bf16.mxu0 %v9033_v63  ;;  %v10889_v45 = vpack.c.bf16 %v4279_v39, %v4278_v5  ;;  %v9052_v55 = vld [vmem:[#allocation12 + $0x208] ss:$36 sps:$4 sm:$0xff]   ;;  %v4280_v8 = vmax.f32 %v4271_v49, 0.0  ;;  %v9055_v17 = vld [vmem:[#allocation12 + $0x210] ss:$36 sps:$4 sm:$0xff]   ;;  %v11868_v63 = vmov 0.0  }
 0x561   :  { %v9058_v39 = vld [vmem:[#allocation12 + $0x20] ss:$36 sps:$4 sm:$0xff]   ;;  %v9059_v18 = vld [vmem:[#allocation12 + $0x68] ss:$36 sps:$4 sm:$0xff]   ;;  %v9060_v44 = vld [vmem:[#allocation12 + $0xb0] ss:$36 sps:$4 sm:$0xff]  }
 0x562   :  { %4787 = vmatmul.mubr.bf16.gmra.mrb[168].mxu0 %v10887_v14  ;;  %4868 = vmatmul.mubr.bf16.gmra.mrb[168].mxu1 %v10887_v14  ;;  %v4285_v16 = vpack.c.bf16 %v4280_v8, %v4280_v8  ;;  %v9061_v5 = vld [vmem:[#allocation12 + $0xf8] ss:$36 sps:$4 sm:$0xff]  }
 0x563   :  { %4905 = vmatpush1.bf16.msra.mxu0 %v9031_v13  ;;  %4984 = vmatpush1.bf16.msra.mxu1 %v9034_v38  ;;  %v9062_v13 = vld [vmem:[#allocation12 + $0x140] ss:$36 sps:$4 sm:$0xff]   ;;  %v9063_v38 = vld [vmem:[#allocation12 + $0x188] ss:$36 sps:$4 sm:$0xff]  }
 0x564   :  { %4796 = vmatprep.mubr.bf16.mxu0 %v11865_v3  ;;  %4877 = vmatprep.mubr.bf16.mxu1 %v11865_v3 }
 0x565   :  { %4906 = vmatprep.subr.bf16.mxu0 %v9039_v27  ;;  %4985 = vmatprep.subr.bf16.mxu1 %v9042_v57  ;;  %v9064_v27 = vld [vmem:[#allocation12 + $0x1d0] ss:$36 sps:$4 sm:$0xff]   ;;  %v9065_v57 = vld [vmem:[#allocation12 + $0x218] ss:$36 sps:$4 sm:$0xff]  }
 0x567   :  { %4907 = vmatpush1.bf16.msra.mxu0 %v9037_v23  ;;  %4986 = vmatpush1.bf16.msra.mxu1 %v9040_v0 }
 0x568   :  { %4987 = vmatprep.subr.bf16.mxu1 %v9045_v31  ;;  %4908 = vmatprep.subr.bf16.mxu0 %v9048_v7 }
 0x56a   :  { %4797 = vmatmul.mubr.bf16.gmra.mrb[172].mxu0 %v10889_v45  ;;  %4878 = vmatmul.mubr.bf16.gmra.mrb[172].mxu1 %v10889_v45 }
 0x56b   :  { %4988 = vmatpush1.bf16.msra.mxu1 %v9043_v30  ;;  %4909 = vmatpush1.bf16.msra.mxu0 %v9046_v34 }
 0x56c   :  { %4806 = vmatprep.mubr.bf16.mxu0 %v11865_v3  ;;  %4887 = vmatprep.mubr.bf16.mxu1 %v11865_v3 }
 0x56d   :  { %4989 = vmatprep.subr.bf16.mxu1 %v9051_v56  ;;  %4910 = vmatprep.subr.bf16.mxu0 %v9054_v12 }
 0x56f   :  { %4990 = vmatpush1.bf16.msra.mxu1 %v9049_v37  ;;  %4911 = vmatpush1.bf16.msra.mxu0 %v9052_v55  ;;  %v11869_v55 = vld [vmem:[#allocation37_spill] sm:$0xff] }
 0x570   :  { %4991 = vmatprep.subr.bf16.mxu1 %v9057_v58  ;;  %8559 = vmatprep.subr.bf16.mxu0 %v11868_v63 }
 0x572   :  { %4807 = vmatmul.mubr.bf16.gmra.mrb[176].mxu0 %v4285_v16  ;;  %4888 = vmatmul.mubr.bf16.gmra.mrb[176].mxu1 %v4285_v16 }
 0x573   :  { %4992 = vmatpush1.bf16.msra.mxu1 %v9055_v17  ;;  %4928 = vmatprep.mubr.bf16.mxu0 %v11865_v3 }
 0x574   :  { %5009 = vmatprep.mubr.bf16.mxu1 %v11865_v3 }
 0x57a   :  { %4929 = vmatmul.mubr.bf16.vlgmr.msra.gmra.mrb[180].mxu0 %v10852_v41  ;;  %5010 = vmatmul.mubr.bf16.vlgmr.msra.gmra.mrb[180].mxu1 %v10852_v41 }
 0x57b   :  { %8560 = vmatpush3.bf16.msra.mxu0 %v9058_v39  ;;  %4938 = vmatprep.mubr.bf16.mxu0 %v11865_v3 }
 0x57c   :  { %8561 = vmatprep.subr.bf16.mxu0 %v11868_v63  ;;  %5019 = vmatprep.mubr.bf16.mxu1 %v11865_v3 }
 0x57f   :  { %8562 = vmatpush3.bf16.msra.mxu0 %v9059_v18 }
 0x580   :  { %8563 = vmatprep.subr.bf16.mxu0 %v11868_v63 }
 0x582   :  { %4939 = vmatmul.mubr.bf16.gmra.mrb[184].mxu0 %v10875_v19  ;;  %5020 = vmatmul.mubr.bf16.gmra.mrb[184].mxu1 %v10875_v19 }
 0x583   :  { %8564 = vmatpush3.bf16.msra.mxu0 %v9060_v44  ;;  %4948 = vmatprep.mubr.bf16.mxu0 %v11865_v3  ;;  %v11871_v44 = vld [vmem:[#allocation41_spill] sm:$0xff] }
 0x584   :  { %8565 = vmatprep.subr.bf16.mxu0 %v11868_v63  ;;  %5029 = vmatprep.mubr.bf16.mxu1 %v11865_v3 }
 0x587   :  { %8566 = vmatpush3.bf16.msra.mxu0 %v9061_v5 }
 0x588   :  { %8567 = vmatprep.subr.bf16.mxu0 %v11868_v63 }
 0x58a   :  { %4949 = vmatmul.mubr.bf16.gmra.mrb[188].mxu0 %v10887_v14  ;;  %5030 = vmatmul.mubr.bf16.gmra.mrb[188].mxu1 %v10887_v14 }
 0x58b   :  { %8568 = vmatpush3.bf16.msra.mxu0 %v9062_v13  ;;  %4958 = vmatprep.mubr.bf16.mxu0 %v11865_v3 }
 0x58c   :  { %5039 = vmatprep.mubr.bf16.mxu1 %v11865_v3  ;;  %8569 = vmatprep.subr.bf16.mxu0 %v11868_v63 }
 0x58f   :  { %8570 = vmatpush3.bf16.msra.mxu0 %v9063_v38 }
 0x590   :  { %8571 = vmatprep.subr.bf16.mxu0 %v11868_v63 }
 0x592   :  { %4959 = vmatmul.mubr.bf16.gmra.mrb[192].mxu0 %v10889_v45  ;;  %5040 = vmatmul.mubr.bf16.gmra.mrb[192].mxu1 %v10889_v45 }
 0x593   :  { %8572 = vmatpush3.bf16.msra.mxu0 %v9064_v27  ;;  %4968 = vmatprep.mubr.bf16.mxu0 %v11865_v3 }
 0x594   :  { %5049 = vmatprep.mubr.bf16.mxu1 %v11865_v3  ;;  %8573 = vmatprep.subr.bf16.mxu0 %v11868_v63 }
 0x597   :  { %8574 = vmatpush3.bf16.msra.mxu0 %v9065_v57 }
 0x59a   :  { %4969 = vmatmul.mubr.bf16.gmra.mrb[196].mxu0 %v4285_v16  ;;  %5050 = vmatmul.mubr.bf16.gmra.mrb[196].mxu1 %v4285_v16 }
 0x59b   :  { %8575 = vmatprep.mubr.msk.bf16.mxu0 %vm9278_vm0, %v11868_v63 }
 0x5a2   :  { %8576 = vmatmul.mubr.bf16.vlgmr.msra.gmra.mrb[200].mxu0 %v10852_v41 }
 0x5a3   :  { %8579 = vmatprep.mubr.msk.bf16.mxu0 %vm9278_vm0, %v11868_v63 }
 0x5aa   :  { %8580 = vmatmul.mubr.bf16.gmra.mrb[204].mxu0 %v10875_v19 }
 0x5ab   :  { %8583 = vmatprep.mubr.msk.bf16.mxu0 %vm9278_vm0, %v11868_v63 }
 0x5b2   :  { %8584 = vmatmul.mubr.bf16.gmra.mrb[208].mxu0 %v10887_v14 }
 0x5b3   :  { %8587 = vmatprep.mubr.msk.bf16.mxu0 %vm9278_vm0, %v11868_v63 }
 0x5ba   :  { %8588 = vmatmul.mubr.bf16.gmra.mrb[212].mxu0 %v10889_v45 }
 0x5bb   :  { %8591 = vmatprep.mubr.msk.bf16.mxu0 %vm9278_vm0, %v11868_v63 }
 0x5c2   :  { %8592 = vmatmul.mubr.bf16.gmra.mrb[216].mxu0 %v4285_v16  ;;  %v11870_v16 = vld [vmem:[#allocation38_spill] sm:$0xff] }
 0x625   :  { %v10942_v41 = vpop.f32.mrb[160].mxu0  ;;  %v10944_v23 = vpop.f32.mrb[160].mxu1 }
 0x626   :  { %v10946_v0 = vpop.f32.mrb[161].mxu0  ;;  %v10948_v19 = vpop.f32.mrb[161].mxu1  ;;  %v11643_v14 = vrot.slane %v10942_v41, 4 }
 0x627   :  { %v4772_v59 = vpop.f32.mrb[162].mxu0  ;;  %v4853_v31 = vpop.f32.mrb[162].mxu1  ;;  %v11641_v45 = vrot.slane %v10946_v0, 6  ;;  %v11642_v49 = vrot.slane %v10948_v19, 6 }
 0x628   :  { %v5131_v7 = vrot.slane %v4772_v59, 4  ;;  %v4774_v30 = vpop.f32.mrb[163].mxu0  ;;  %v4855_v34 = vpop.f32.mrb[163].mxu1  ;;  %v5196_v5 = vmul.f32 %v4853_v31, %v11871_v44 }
 0x629   :  { %v5158_v56 = vrot.slane %v4774_v30, 6  ;;  %v5212_v12 = vrot.slane %v4855_v34, 6 }
 0x62a   :  { %v5146_v37 = vsel %vm1293_vm1, %v11643_v14, %v5131_v7 }
 0x62b   :  { %v5151_v8 = vmul.f32 %v5146_v37, %v11869_v55  ;;  %v5173_v58 = vsel %vm1375_vm2, %v11641_v45, %v5158_v56  ;;  %v10966_v17 = vsel %vm1375_vm2, %v11642_v49, %v5212_v12 }
 0x62c   :  { %v5178_v63 = vmul.f32 %v5173_v58, %v11870_v16  ;;  %v11872_v58 = vld [vmem:[#allocation50_spill] sm:$0xff] }
 0x62d   :  { %v4778_v39 = vpop.f32.mrb[164].mxu0  ;;  %v4859_v18 = vpop.f32.mrb[164].mxu1 }
 0x62e   :  { %v5132_v13 = vrot.slane %v4778_v39, 4  ;;  %v4780_v38 = vpop.f32.mrb[165].mxu0  ;;  %v4861_v27 = vpop.f32.mrb[165].mxu1  ;;  %v5187_v57 = vadd.f32 %v5178_v63, %v5151_v8  ;;  %v11873_v63 = vld [vmem:[#allocation52_spill] sm:$0xff] }
 0x62f   :  { %v5159_v59 = vrot.slane %v4780_v38, 6  ;;  %v5213_v30 = vrot.slane %v4861_v27, 6  ;;  %v4782_v34 = vpop.f32.mrb[166].mxu0  ;;  %v4863_v37 = vpop.f32.mrb[166].mxu1  ;;  %v11874_v27 = vld [vmem:[#allocation51_spill] sm:$0xff] }
 0x630   :  { %v5145_v55 = vsel %vm1293_vm1, %v5131_v7, %v5132_v13  ;;  %v5133_v45 = vrot.slane %v4782_v34, 4  ;;  %v4784_v49 = vpop.f32.mrb[167].mxu0  ;;  %v4865_v14 = vpop.f32.mrb[167].mxu1  ;;  %v5205_v3 = vadd.f32 %v5196_v5, %v5187_v57  ;;  %v11875_v57 = vld [vmem:[#allocation56_spill] sm:$0xff] }
 0x631   :  { %v5152_v16 = vmul.f32 %v5145_v55, %v11872_v58  ;;  %v5172_v31 = vsel %vm1375_vm2, %v5158_v56, %v5159_v59  ;;  %v10977_v39 = vsel %vm1375_vm2, %v5212_v12, %v5213_v30  ;;  %v5160_v8 = vrot.slane %v4784_v49, 6  ;;  %v11876_v58 = vld [vmem:[#allocation53_spill] sm:$0xff] }
 0x632   :  { %v5179_v44 = vmul.f32 %v5172_v31, %v11873_v63  ;;  %v5144_v38 = vsel %vm1293_vm1, %v5132_v13, %v5133_v45  ;;  %v5214_v7 = vrot.slane %v4865_v14, 6  ;;  %v5197_v55 = vmul.f32 %v4859_v18, %v11875_v57  ;;  %v11877_v31 = vld [vmem:[#allocation45_spill] sm:$0xff] }
 0x633   :  { %v5153_v34 = vmul.f32 %v5144_v38, %v11874_v27  ;;  %v5171_v5 = vsel %vm1375_vm2, %v5159_v59, %v5160_v8  ;;  %v5198_v13 = vmul.f32 %v4863_v37, %v11878_v46 }
 0x634   :  { %v5180_v56 = vmul.f32 %v5171_v5, %v11876_v58  ;;  %v5225_v12 = vsel %vm1375_vm2, %v5213_v30, %v5214_v7  ;;  %v5188_v42 = vadd.f32 %v5179_v44, %v5152_v16 }
 0x635   :  { %v4788_v49 = vpop.f32.mrb[168].mxu0  ;;  %v4869_v50 = vpop.f32.mrb[168].mxu1  ;;  %v5232_v63 = vmul.f32 %v5225_v12, %v11877_v31  ;;  %v11879_v31 = vld [vmem:[#allocation66_spill] sm:$0xff] }
 0x636   :  { %v5134_v14 = vrot.slane %v4788_v49, 4  ;;  %v4790_v33 = vpop.f32.mrb[169].mxu0  ;;  %v4871_v38 = vpop.f32.mrb[169].mxu1  ;;  %v5206_v27 = vadd.f32 %v5197_v55, %v5188_v42  ;;  %v5189_v26 = vadd.f32 %v5180_v56, %v5153_v34  ;;  %v11880_v34 = vld [vmem:[#allocation68_spill] sm:$0xff] }
 0x637   :  { %v5161_v59 = vrot.slane %v4790_v33, 6  ;;  %v5215_v29 = vrot.slane %v4871_v38, 6  ;;  %v4792_v18 = vpop.f32.mrb[170].mxu0  ;;  %v4873_v57 = vpop.f32.mrb[170].mxu1  ;;  %v10991_v5 = vadd.f32 %v5232_v63, %v5205_v3  ;;  %v11882_v63 = vld [vmem:[#allocation72_spill] sm:$0xff] }
 0x638   :  { %v5143_v30 = vsel %vm1293_vm1, %v5133_v45, %v5134_v14  ;;  %v5135_v16 = vrot.slane %v4792_v18, 4  ;;  %v4794_v44 = vpop.f32.mrb[171].mxu0  ;;  %v4875_v58 = vpop.f32.mrb[171].mxu1  ;;  %v5207_v12 = vadd.f32 %v5198_v13, %v5189_v26  ;;  %v11881_v45 = vld [vmem:[#allocation60_spill] sm:$0xff]  ;;  %v5199_v38 = vmul.f32 %v4869_v50, %v11882_v63  ;;  %v11883_v26 = vld [vmem:[#allocation67_spill] sm:$0xff] }
 0x639   :  { %v5154_v46 = vmul.f32 %v5143_v30, %v11879_v31  ;;  %v5170_v37 = vsel %vm1375_vm2, %v5160_v8, %v5161_v59  ;;  %v5224_v33 = vsel %vm1375_vm2, %v5214_v7, %v5215_v29  ;;  %v5162_v42 = vrot.slane %v4794_v44, 6  ;;  %v11884_v8 = vld [vmem:[#allocation69_spill] sm:$0xff] }
 0x63a   :  { %v5181_v55 = vmul.f32 %v5170_v37, %v11880_v34  ;;  %v5142_v3 = vsel %vm1293_vm1, %v5134_v14, %v5135_v16  ;;  %v5216_v56 = vrot.slane %v4875_v58, 6  ;;  %v5233_v49 = vmul.f32 %v5224_v33, %v11881_v45  ;;  %v11885_v58 = vld [vmem:[#allocation61_spill] sm:$0xff] }
 0x63b   :  { %v5155_v13 = vmul.f32 %v5142_v3, %v11883_v26  ;;  %v5169_v18 = vsel %vm1375_vm2, %v5161_v59, %v5162_v42  ;;  %v11886_v33 = vld [vmem:[#allocation73_spill] sm:$0xff] }
 0x63c   :  { %v5182_v30 = vmul.f32 %v5169_v18, %v11884_v8  ;;  %v5223_v7 = vsel %vm1375_vm2, %v5215_v29, %v5216_v56  ;;  %v11011_v44 = vadd.f32 %v5233_v49, %v5206_v27  ;;  %v5190_v31 = vadd.f32 %v5181_v55, %v5154_v46 }
 0x63d   :  { %v4798_v37 = vpop.f32.mrb[172].mxu0  ;;  %v4879_v14 = vpop.f32.mrb[172].mxu1  ;;  %v5234_v34 = vmul.f32 %v5223_v7, %v11885_v58  ;;  %v5200_v45 = vmul.f32 %v4873_v57, %v11886_v33  ;;  %v11887_v7 = vld [vmem:[#allocation81_spill] sm:$0xff]  ;;  %v11890_v33 = vld [vmem:[#allocation84_spill] sm:$0xff] }
 0x63e   :  { %v5136_v50 = vrot.slane %v4798_v37, 4  ;;  %v4800_v63 = vpop.f32.mrb[173].mxu0  ;;  %v4881_v3 = vpop.f32.mrb[173].mxu1  ;;  %v5208_v26 = vadd.f32 %v5199_v38, %v5190_v31  ;;  %v5191_v24 = vadd.f32 %v5182_v30, %v5155_v13  ;;  %v11888_v30 = vld [vmem:[#allocation82_spill] sm:$0xff] }
 0x63f   :  { %v5163_v59 = vrot.slane %v4800_v63, 6  ;;  %v5217_v51 = vrot.slane %v4881_v3, 6  ;;  %v4802_v18 = vpop.f32.mrb[174].mxu0  ;;  %v4883_v8 = vpop.f32.mrb[174].mxu1  ;;  %v11015_v35 = vadd.f32 %v5234_v34, %v5207_v12  ;;  %v5201_v63 = vmul.f32 %v4879_v14, %v11890_v33 }
 0x640   :  { %v5141_v29 = vsel %vm1293_vm1, %v5135_v16, %v5136_v50  ;;  %v5137_v27 = vrot.slane %v4802_v18, 4  ;;  %v4804_v46 = vpop.f32.mrb[175].mxu0  ;;  %v4885_v55 = vpop.f32.mrb[175].mxu1  ;;  %v5209_v49 = vadd.f32 %v5200_v45, %v5191_v24  ;;  %v11889_v16 = vld [vmem:[#allocation76_spill] sm:$0xff]  ;;  %v11891_v24 = vld [vmem:[#allocation34_spill] sm:$0xff] }
 0x641   :  { %v5156_v57 = vmul.f32 %v5141_v29, %v11887_v7  ;;  %v5168_v37 = vsel %vm1375_vm2, %v5162_v42, %v5163_v59  ;;  %v5222_v38 = vsel %vm1375_vm2, %v5216_v56, %v5217_v51  ;;  %v5164_v13 = vrot.slane %v4804_v46, 6  ;;  %v11892_v42 = vld [vmem:[#allocation35_spill] sm:$0xff] }
 0x642   :  { %v5183_v31 = vmul.f32 %v5168_v37, %v11888_v30  ;;  %v5140_v12 = vsel %vm1293_vm1, %v5136_v50, %v5137_v27  ;;  %v5218_v58 = vrot.slane %v4885_v55, 6  ;;  %v5235_v34 = vmul.f32 %v5222_v38, %v11889_v16 }
 0x643   :  { %v5148_v45 = vmul.f32 %v5140_v12, %v11891_v24  ;;  %v5167_v3 = vsel %vm1375_vm2, %v5163_v59, %v5164_v13  ;;  %v5193_v37 = vmul.f32 %v4883_v8, %v9601_v60 }
 0x644   :  { %v5175_v18 = vmul.f32 %v5167_v3, %v11892_v42  ;;  %v5221_v56 = vsel %vm1375_vm2, %v5217_v51, %v5218_v58  ;;  %v11035_v29 = vadd.f32 %v5235_v34, %v5208_v26  ;;  %v5192_v46 = vadd.f32 %v5183_v31, %v5156_v57 }
 0x645   :  { %v4808_v7 = vpop.f32.mrb[176].mxu0  ;;  %v4889_v50 = vpop.f32.mrb[176].mxu1  ;;  %v5236_v55 = vmul.f32 %v5221_v56, %v9716_v6  ;;  %v11893_v26 = vrot.slane %v10942_v41, 4  ;;  %v11895_v56 = vrot.slane %v10948_v19, 6 }
 0x646   :  { %v5138_v14 = vrot.slane %v4808_v7, 4  ;;  %v4810_v38 = vpop.f32.mrb[177].mxu0  ;;  %v4891_v30 = vpop.f32.mrb[177].mxu1  ;;  %v5184_v12 = vadd.f32 %v5175_v18, %v5148_v45  ;;  %v5210_v16 = vadd.f32 %v5201_v63, %v5192_v46  ;;  %v5194_v46 = vmul.f32 %v4889_v50, %v9603_v61 }
 0x647   :  { %v5165_v59 = vrot.slane %v4810_v38, 6  ;;  %v5219_v33 = vrot.slane %v4891_v30, 6  ;;  %v4812_v24 = vpop.f32.mrb[178].mxu0  ;;  %v4893_v3 = vpop.f32.mrb[178].mxu1  ;;  %v11039_v42 = vadd.f32 %v5236_v55, %v5209_v49  ;;  %v11894_v49 = vrot.slane %v10946_v0, 6 }
 0x648   :  { %v5139_v51 = vsel %vm1293_vm1, %v5137_v27, %v5138_v14  ;;  %v5147_v6 = vsel %vm1293_vm1, %v5138_v14, %v11893_v26  ;;  %v4813_v60 = vpop.f32.mrb[179].mxu0  ;;  %v4894_v8 = vpop.f32.mrb[179].mxu1  ;;  %v5202_v57 = vadd.f32 %v5193_v37, %v5184_v12  ;;  %v5195_v0 = vmul.f32 %v10944_v23, %v9634_v10  ;;  %v11896_v10 = vld [vmem:[#allocation44_spill] sm:$0xff] }
 0x649   :  { %v5149_v31 = vmul.f32 %v5139_v51, %v9593_v53  ;;  %v5150_v34 = vmul.f32 %v5147_v6, %v9616_v2  ;;  %v5166_v63 = vsel %vm1375_vm2, %v5164_v13, %v5165_v59  ;;  %v5174_v27 = vsel %vm1375_vm2, %v5165_v59, %v11894_v49 }
 0x64a   :  { %v5176_v41 = vmul.f32 %v5166_v63, %v9595_v54  ;;  %v5177_v45 = vmul.f32 %v5174_v27, %v9623_v4  ;;  %v5220_v18 = vsel %vm1375_vm2, %v5218_v58, %v5219_v33  ;;  %v5228_v53 = vsel %vm1375_vm2, %v5219_v33, %v11895_v56  ;;  %v11898_v63 = vld [vmem:[#allocation42_spill] sm:$0xff] }
 0x64b   :  { %v5229_v2 = vmul.f32 %v5228_v53, %v9607_v62  ;;  %v5237_v13 = vmul.f32 %v5220_v18, %v9853_v36  ;;  %v5230_v36 = vmul.f32 %v10966_v17, %v11841_v25  ;;  %v5231_v61 = vmul.f32 %v10977_v39, %v11896_v10  ;;  %v11897_v39 = vld [vmem:[#allocation39_spill] sm:$0xff] }
 0x64c   :  { %v5185_v54 = vadd.f32 %v5176_v41, %v5149_v31  ;;  %v5186_v7 = vadd.f32 %v5177_v45, %v5150_v34 }
 0x64d   :  { %v4930_v4 = vpop.f32.mrb[180].mxu0  ;;  %v5238_v55 = vadd.f32 %v5229_v2, %v5202_v57  ;;  %v11068_v37 = vpop.f32.mrb[180].mxu1  ;;  %v11070_v58 = vadd.f32 %v5237_v13, %v5210_v16 }
 0x64e   :  { %v11072_v19 = vpop.f32.mrb[181].mxu0  ;;  %v11074_v14 = vpop.f32.mrb[181].mxu1  ;;  %v5203_v62 = vadd.f32 %v5194_v46, %v5185_v54  ;;  %v5204_v38 = vadd.f32 %v5195_v0, %v5186_v7 }
 0x64f   :  { %v5247_v23 = vadd.f32 %v5238_v55, %v4930_v4  ;;  %v4934_v50 = vpop.f32.mrb[182].mxu0  ;;  %v11080_v30 = vpop.f32.mrb[182].mxu1  ;;  %v5256_v24 = vrot.slane %v11072_v19, 2  ;;  %v5310_v3 = vrot.slane %v11074_v14, 2  ;;  %v5299_v19 = vmul.f32 %v11068_v37, %v9895_v32 }
 0x650   :  { %v5239_v12 = vadd.f32 %v5230_v36, %v5203_v62  ;;  %v4936_v59 = vpop.f32.mrb[183].mxu0  ;;  %v5017_v16 = vpop.f32.mrb[183].mxu1  ;;  %v5240_v33 = vadd.f32 %v5231_v61, %v5204_v38  ;;  %v11899_v62 = vld [vmem:[#allocation40_spill] sm:$0xff] }
 0x651   :  { %v5257_v51 = vrot.slane %v4936_v59, 2  ;;  %v5311_v26 = vrot.slane %v5017_v16, 2 }
 0x652   :  { %v5248_v6 = vadd.f32 %v5239_v12, %v4934_v50  ;;  %v11901_v12 = vld [vmem:[#allocation46_spill] sm:$0xff] }
 0x653   :  { %v5272_v25 = vsel %vm1640_vm3, %v5256_v24, %v5257_v51  ;;  %v11092_v17 = vsel %vm1640_vm3, %v5310_v3, %v5311_v26 }
 0x654   :  { %v5274_v60 = vmul.f32 %v5272_v25, %v11897_v39 }
 0x655   :  { %v4940_v8 = vpop.f32.mrb[184].mxu0  ;;  %v5021_v57 = vpop.f32.mrb[184].mxu1 }
 0x656   :  { %v5249_v31 = vadd.f32 %v5240_v33, %v4940_v8  ;;  %v5283_v34 = vadd.f32 %v5274_v60, %v5247_v23  ;;  %v5292_v49 = vmul.f32 %v5021_v57, %v11898_v63  ;;  %v4942_v27 = vpop.f32.mrb[185].mxu0  ;;  %v5023_v41 = vpop.f32.mrb[185].mxu1  ;;  %v11900_v23 = vld [vmem:[#allocation54_spill] sm:$0xff] }
 0x657   :  { %v5258_v45 = vrot.slane %v4942_v27, 2  ;;  %v5312_v18 = vrot.slane %v5023_v41, 2  ;;  %v4944_v56 = vpop.f32.mrb[186].mxu0  ;;  %v5025_v53 = vpop.f32.mrb[186].mxu1  ;;  %v11902_v57 = vld [vmem:[#allocation58_spill] sm:$0xff] }
 0x658   :  { %v5301_v2 = vadd.f32 %v5292_v49, %v5283_v34  ;;  %v5250_v13 = vadd.f32 %v10991_v5, %v4944_v56  ;;  %v4946_v0 = vpop.f32.mrb[187].mxu0  ;;  %v5027_v46 = vpop.f32.mrb[187].mxu1  ;;  %v5293_v61 = vmul.f32 %v5025_v53, %v11764_v48  ;;  %v11903_v53 = vld [vmem:[#allocation55_spill] sm:$0xff] }
 0x659   :  { %v5271_v54 = vsel %vm1640_vm3, %v5257_v51, %v5258_v45  ;;  %v11101_v7 = vsel %vm1640_vm3, %v5311_v26, %v5312_v18  ;;  %v5259_v4 = vrot.slane %v4946_v0, 2  ;;  %v5313_v55 = vrot.slane %v5027_v46, 2 }
 0x65a   :  { %v5275_v36 = vmul.f32 %v5271_v54, %v11899_v62  ;;  %v11904_v54 = vld [vmem:[#allocation59_spill] sm:$0xff] }
 0x65b   :  { %v5270_v38 = vsel %vm1640_vm3, %v5258_v45, %v5259_v4  ;;  %v5324_v10 = vsel %vm1640_vm3, %v5312_v18, %v5313_v55 }
 0x65c   :  { %v5284_v5 = vadd.f32 %v5275_v36, %v5248_v6  ;;  %v5276_v50 = vmul.f32 %v5270_v38, %v11900_v23  ;;  %v5328_v59 = vmul.f32 %v5324_v10, %v11901_v12  ;;  %v11905_v10 = vld [vmem:[#allocation70_spill] sm:$0xff] }
 0x65d   :  { %v4950_v16 = vpop.f32.mrb[188].mxu0  ;;  %v5031_v33 = vpop.f32.mrb[188].mxu1 }
 0x65e   :  { %v5302_v51 = vadd.f32 %v5293_v61, %v5284_v5  ;;  %v11111_v26 = vadd.f32 %v5328_v59, %v5301_v2  ;;  %v5251_v25 = vadd.f32 %v11011_v44, %v4950_v16  ;;  %v5285_v39 = vadd.f32 %v5276_v50, %v5249_v31  ;;  %v4952_v60 = vpop.f32.mrb[189].mxu0  ;;  %v5033_v8 = vpop.f32.mrb[189].mxu1 }
 0x65f   :  { %v5294_v34 = vmul.f32 %v5031_v33, %v11902_v57  ;;  %v5260_v63 = vrot.slane %v4952_v60, 2  ;;  %v5314_v6 = vrot.slane %v5033_v8, 2  ;;  %v4954_v49 = vpop.f32.mrb[190].mxu0  ;;  %v5035_v48 = vpop.f32.mrb[190].mxu1 }
 0x660   :  { %v5252_v27 = vadd.f32 %v11015_v35, %v4954_v49  ;;  %v4956_v41 = vpop.f32.mrb[191].mxu0  ;;  %v5037_v45 = vpop.f32.mrb[191].mxu1  ;;  %v5295_v62 = vmul.f32 %v5035_v48, %v11904_v54  ;;  %v11910_v54 = vld [vmem:[#allocation83_spill] sm:$0xff] }
 0x661   :  { %v5303_v18 = vadd.f32 %v5294_v34, %v5285_v39  ;;  %v5269_v56 = vsel %vm1640_vm3, %v5259_v4, %v5260_v63  ;;  %v5323_v44 = vsel %vm1640_vm3, %v5313_v55, %v5314_v6  ;;  %v5261_v31 = vrot.slane %v4956_v41, 2  ;;  %v11906_v55 = vld [vmem:[#allocation62_spill] sm:$0xff]  ;;  %v11907_v41 = vld [vmem:[#allocation71_spill] sm:$0xff] }
 0x662   :  { %v5277_v2 = vmul.f32 %v5269_v56, %v11903_v53  ;;  %v5329_v0 = vmul.f32 %v5323_v44, %v11850_v28  ;;  %v5315_v46 = vrot.slane %v5037_v45, 2  ;;  %v11909_v44 = vld [vmem:[#allocation75_spill] sm:$0xff] }
 0x663   :  { %v5268_v35 = vsel %vm1640_vm3, %v5260_v63, %v5261_v31 }
 0x664   :  { %v11125_v36 = vadd.f32 %v5329_v0, %v5302_v51  ;;  %v5286_v38 = vadd.f32 %v5277_v2, %v5250_v13  ;;  %v5278_v5 = vmul.f32 %v5268_v35, %v11905_v10  ;;  %v5322_v4 = vsel %vm1640_vm3, %v5314_v6, %v5315_v46 }
 0x665   :  { %v5330_v61 = vmul.f32 %v5322_v4, %v11906_v55  ;;  %v4960_v23 = vpop.f32.mrb[192].mxu0  ;;  %v5041_v50 = vpop.f32.mrb[192].mxu1 }
 0x666   :  { %v5304_v12 = vadd.f32 %v5295_v62, %v5286_v38  ;;  %v5253_v28 = vadd.f32 %v11035_v29, %v4960_v23  ;;  %v5287_v59 = vadd.f32 %v5278_v5, %v5251_v25  ;;  %v5296_v16 = vmul.f32 %v5041_v50, %v11773_v1  ;;  %v4962_v33 = vpop.f32.mrb[193].mxu0  ;;  %v5043_v39 = vpop.f32.mrb[193].mxu1 }
 0x667   :  { %v11133_v51 = vadd.f32 %v5330_v61, %v5303_v18  ;;  %v5262_v13 = vrot.slane %v4962_v33, 2  ;;  %v5316_v60 = vrot.slane %v5043_v39, 2  ;;  %v4964_v8 = vpop.f32.mrb[194].mxu0  ;;  %v5045_v57 = vpop.f32.mrb[194].mxu1  ;;  %v11908_v18 = vld [vmem:[#allocation63_spill] sm:$0xff] }
 0x668   :  { %v5305_v34 = vadd.f32 %v5296_v16, %v5287_v59  ;;  %v5254_v63 = vadd.f32 %v11039_v42, %v4964_v8  ;;  %v4966_v6 = vpop.f32.mrb[195].mxu0  ;;  %v5047_v49 = vpop.f32.mrb[195].mxu1  ;;  %v5297_v53 = vmul.f32 %v5045_v57, %v11909_v44 }
 0x669   :  { %v5267_v48 = vsel %vm1640_vm3, %v5261_v31, %v5262_v13  ;;  %v5321_v29 = vsel %vm1640_vm3, %v5315_v46, %v5316_v60  ;;  %v5263_v1 = vrot.slane %v4966_v6, 2  ;;  %v5317_v25 = vrot.slane %v5047_v49, 2 }
 0x66a   :  { %v5279_v45 = vmul.f32 %v5267_v48, %v11907_v41  ;;  %v5331_v56 = vmul.f32 %v5321_v29, %v11908_v18  ;;  %v11911_v41 = vld [vmem:[#allocation86_spill] sm:$0xff] }
 0x66b   :  { %v5266_v2 = vsel %vm1640_vm3, %v5262_v13, %v5263_v1  ;;  %v5320_v42 = vsel %vm1640_vm3, %v5316_v60, %v5317_v25 }
 0x66c   :  { %v11147_v0 = vadd.f32 %v5331_v56, %v5304_v12  ;;  %v5288_v31 = vadd.f32 %v5279_v45, %v5252_v27  ;;  %v5280_v62 = vmul.f32 %v5266_v2, %v11910_v54  ;;  %v5332_v46 = vmul.f32 %v5320_v42, %v11725_v47  ;;  %v11912_v42 = vld [vmem:[#allocation77_spill] sm:$0xff] }
 0x66d   :  { %v4970_v35 = vpop.f32.mrb[196].mxu0  ;;  %v5051_v38 = vpop.f32.mrb[196].mxu1  ;;  %v5393_v2 = vsub.s32 6, %v9483_v9 }
 0x66e   :  { %v5306_v10 = vadd.f32 %v5297_v53, %v5288_v31  ;;  %v11151_v5 = vadd.f32 %v5332_v46, %v5305_v34  ;;  %v5255_v4 = vadd.f32 %v11070_v58, %v4970_v35  ;;  %v5289_v55 = vadd.f32 %v5280_v62, %v5253_v28  ;;  %v4972_v61 = vpop.f32.mrb[197].mxu0  ;;  %v5053_v23 = vpop.f32.mrb[197].mxu1  ;;  %v11913_v46 = vld [vmem:[#allocation48_spill] sm:$0xff] }
 0x66f   :  { %v5298_v50 = vmul.f32 %v5051_v38, %v9828_v21  ;;  %v5264_v59 = vrot.slane %v4972_v61, 2  ;;  %v5318_v12 = vrot.slane %v5053_v23, 2  ;;  %v4974_v16 = vpop.f32.mrb[198].mxu0  ;;  %v5055_v27 = vpop.f32.mrb[198].mxu1  ;;  %v9069_v38 = vld [vmem:[#allocation15] sm:$0xff] }
 0x670   :  { %v4975_v33 = vpop.f32.mrb[199].mxu0  ;;  %v5056_v39 = vpop.f32.mrb[199].mxu1 }
 0x671   :  { %v5307_v13 = vadd.f32 %v5298_v50, %v5289_v55  ;;  %v5265_v47 = vsel %vm1640_vm3, %v5263_v1, %v5264_v59  ;;  %v5273_v58 = vsel %vm1640_vm3, %v5264_v59, %v5256_v24  ;;  %v5319_v28 = vsel %vm1640_vm3, %v5317_v25, %v5318_v12 }
 0x672   :  { %v5281_v21 = vmul.f32 %v5265_v47, %v9800_v22  ;;  %v5282_v60 = vmul.f32 %v5273_v58, %v9958_v15  ;;  %v5327_v8 = vsel %vm1640_vm3, %v5318_v12, %v5310_v3  ;;  %v5333_v57 = vmul.f32 %v5319_v28, %v11728_v52  ;;  %v11915_v47 = vld [vmem:[#allocation78_spill] sm:$0xff] }
 0x673   :  { %v5334_v34 = vmul.f32 %v5327_v8, %v9911_v40  ;;  %v5300_v24 = vmul.f32 %v11080_v30, %v9983_v11  ;;  %v5335_v3 = vmul.f32 %v11092_v17, %v9930_v43  ;;  %v5336_v52 = vmul.f32 %v11101_v7, %v9992_v20 }
 0x674   :  { %v5290_v6 = vadd.f32 %v5281_v21, %v5254_v63  ;;  %v5291_v49 = vadd.f32 %v5282_v60, %v5255_v4  ;;  %v11175_v22 = vadd.f32 %v5333_v57, %v5306_v10  ;;  %v5394_v10 = vrot.slane %v9069_v38, %v5393_v2  ;;  %v11914_v4 = vld [vmem:[#allocation30_spill] sm:$0xff]  ;;  %v11917_v21 = vld [vmem:[#allocation49_spill] sm:$0xff] }
 0x675   :  { %v11177_v15 = vadd.f32 %v5334_v34, %v5307_v13  ;;  %v11179_v14 = vpop.f32.mrb[200].mxu0  ;;  %v11916_v58 = vmax.f32 %v11915_v47, 0.0 }
 0x676   :  { %v5308_v32 = vadd.f32 %v5299_v19, %v5290_v6  ;;  %v5309_v37 = vadd.f32 %v5300_v24, %v5291_v49  ;;  %v8577_v40 = vpop.f32.mrb[201].mxu0  ;;  %v5346_v11 = vrot.slane %v11179_v14, 4  ;;  %v11918_v19 = vld [vmem:[#allocation64_spill] sm:$0xff]  ;;  %v11919_v6 = vld [vmem:[#allocation43_spill] sm:$0xff] }
 0x677   :  { %v5095_v48 = vpop.f32.mrb[202].mxu0  ;;  %v11920_v49 = vmax.f32 %v11919_v6, 0.0 }
 0x678   :  { %v5344_v30 = vadd.f32 %v5335_v3, %v5308_v32  ;;  %v5347_v63 = vrot.slane %v5095_v48, 4  ;;  %v8578_v29 = vpop.f32.mrb[203].mxu0  ;;  %v5345_v1 = vadd.f32 %v5336_v52, %v5309_v37 }
 0x67a   :  { %v5362_v25 = vsel %vm1293_vm1, %v5346_v11, %v5347_v63 }
 0x67b   :  { %v5371_v43 = vmul.f32 %v5362_v25, %v11911_v41 }
 0x67d   :  { %v5380_v17 = vadd.f32 %v5371_v43, %v5344_v30  ;;  %v5100_v45 = vpop.f32.mrb[204].mxu0 }
 0x67e   :  { %v5348_v20 = vrot.slane %v5100_v45, 4  ;;  %v8581_v7 = vpop.f32.mrb[205].mxu0 }
 0x67f   :  { %v5103_v18 = vpop.f32.mrb[206].mxu0 }
 0x680   :  { %v5361_v56 = vsel %vm1293_vm1, %v5347_v63, %v5348_v20  ;;  %v5349_v44 = vrot.slane %v5103_v18, 4  ;;  %v8582_v53 = vpop.f32.mrb[207].mxu0  ;;  %v11921_v63 = vld [vmem:[#allocation74_spill] sm:$0xff] }
 0x681   :  { %v5372_v31 = vmul.f32 %v5361_v56, %v11912_v42  ;;  %v11922_v29 = vmax.f32 %v11921_v63, 0.0  ;;  %v11925_v42 = vld [vmem:[#allocation25_spill] sm:$0xff] }
 0x682   :  { %v5360_v54 = vsel %vm1293_vm1, %v5348_v20, %v5349_v44  ;;  %v11923_v20 = vld [vmem:[#allocation65_spill] sm:$0xff] }
 0x683   :  { %v5381_v62 = vadd.f32 %v5372_v31, %v5345_v1  ;;  %v5364_v35 = vmul.f32 %v5360_v54, %v11913_v46  ;;  %v11926_v31 = vmax.f32 %v11925_v42, 0.0 }
 0x685   :  { %v5390_v55 = vadd.f32 %v5381_v62, %v11914_v4  ;;  %v5373_v61 = vadd.f32 %v5364_v35, %v11111_v26  ;;  %v5108_v23 = vpop.f32.mrb[208].mxu0 }
 0x686   :  { %v5350_v50 = vrot.slane %v5108_v23, 4  ;;  %v8585_v59 = vpop.f32.mrb[209].mxu0 }
 0x687   :  { %v5403_v12 = vadd.f32 %v5394_v10, %v5390_v55  ;;  %v5111_v16 = vpop.f32.mrb[210].mxu0  ;;  %v5382_v28 = vadd.f32 %v5373_v61, %v11916_v58  ;;  %v11927_v61 = vld [vmem:[#allocation29_spill] sm:$0xff] }
 0x688   :  { %v5359_v27 = vsel %vm1293_vm1, %v5349_v44, %v5350_v50  ;;  %v5351_v33 = vrot.slane %v5111_v16, 4  ;;  %v8586_v39 = vpop.f32.mrb[211].mxu0  ;;  %v11924_v44 = vld [vmem:[#allocation79_spill] sm:$0xff]  ;;  %v11928_v23 = vmax.f32 %v11927_v61, 0.0  ;;  %v11932_v58 = vld [vmem:[#allocation85_spill] sm:$0xff] }
 0x689   :  { %v5412_v13 = vmax.f32 %v5403_v12, 0.0  ;;  %v5365_v60 = vmul.f32 %v5359_v27, %v11917_v21  ;;  %v5395_v24 = vadd.f32 %v5394_v10, %v5382_v28 }
 0x68a   :  { %v5358_v8 = vsel %vm1293_vm1, %v5350_v50, %v5351_v33  ;;  %v5389_v50 = vadd.f32 %v5380_v17, %v11928_v23 }
 0x68b   :  { %v11207_v26 = vpack.c.bf16 %v5412_v13, %v5412_v13  ;;  %v5374_v57 = vadd.f32 %v5365_v60, %v11125_v36  ;;  %v5366_v34 = vmul.f32 %v5358_v8, %v11918_v19  ;;  %v5404_v43 = vmax.f32 %v5395_v24, 0.0  ;;  %v11931_v13 = vld [vmem:[#allocation80_spill] sm:$0xff] }
 0x68c   :  { %v5402_v8 = vadd.f32 %v5394_v10, %v5389_v50 }
 0x68d   :  { %v5383_v3 = vadd.f32 %v5374_v57, %v11920_v49  ;;  %v5375_v52 = vadd.f32 %v5366_v34, %v11133_v51  ;;  %v5116_v32 = vpop.f32.mrb[212].mxu0  ;;  %v11933_v57 = vld [vmem:[#allocation27_spill] sm:$0xff]  ;;  %v11935_v34 = vld [vmem:[#allocation28_spill] sm:$0xff] }
 0x68e   :  { %v5352_v37 = vrot.slane %v5116_v32, 4  ;;  %v8589_v40 = vpop.f32.mrb[213].mxu0  ;;  %v11934_v19 = vmax.f32 %v11933_v57, 0.0  ;;  %v11936_v24 = vmax.f32 %v11935_v34, 0.0 }
 0x68f   :  { %v5396_v48 = vadd.f32 %v5394_v10, %v5383_v3  ;;  %v5119_v30 = vpop.f32.mrb[214].mxu0  ;;  %v5384_v1 = vadd.f32 %v5375_v52, %v11922_v29  ;;  %v5411_v52 = vmax.f32 %v5402_v8, 0.0 }
 0x690   :  { %v5357_v25 = vsel %vm1293_vm1, %v5351_v33, %v5352_v37  ;;  %v5353_v36 = vrot.slane %v5119_v30, 4  ;;  %v8590_v41 = vpop.f32.mrb[215].mxu0 }
 0x691   :  { %v5405_v45 = vmax.f32 %v5396_v48, 0.0  ;;  %v5367_v7 = vmul.f32 %v5357_v25, %v11923_v20  ;;  %v5397_v2 = vadd.f32 %v5394_v10, %v5384_v1 }
 0x692   :  { %v5356_v51 = vsel %vm1293_vm1, %v5352_v37, %v5353_v36 }
 0x693   :  { %v11221_v18 = vpack.c.bf16 %v5405_v45, %v5404_v43  ;;  %v5376_v56 = vadd.f32 %v5367_v7, %v11147_v0  ;;  %v5368_v53 = vmul.f32 %v5356_v51, %v11924_v44  ;;  %v5406_v59 = vmax.f32 %v5397_v2, 0.0 }
 0x695   :  { %v5385_v54 = vadd.f32 %v5376_v56, %v11926_v31  ;;  %v5377_v62 = vadd.f32 %v5368_v53, %v11151_v5  ;;  %v5124_v46 = vpop.f32.mrb[216].mxu0  ;;  %v11929_v5 = vld [vmem:[#allocation26_spill] sm:$0xff] }
 0x696   :  { %v5354_v35 = vrot.slane %v5124_v46, 4  ;;  %v8593_v38 = vpop.f32.mrb[217].mxu0  ;;  %v11930_v33 = vmax.f32 %v11929_v5, 0.0 }
 0x697   :  { %v5398_v4 = vadd.f32 %v5394_v10, %v5385_v54  ;;  %v5127_v55 = vpop.f32.mrb[218].mxu0 }
 0x698   :  { %v5355_v0 = vsel %vm1293_vm1, %v5353_v36, %v5354_v35  ;;  %v5363_v12 = vsel %vm1293_vm1, %v5354_v35, %v5346_v11  ;;  %v8594_v16 = vpop.f32.mrb[219].mxu0  ;;  %v5386_v39 = vadd.f32 %v5377_v62, %v11930_v33 }
 0x699   :  { %v5407_v27 = vmax.f32 %v5398_v4, 0.0  ;;  %v5369_v47 = vmul.f32 %v5355_v0, %v11931_v13  ;;  %v5370_v28 = vmul.f32 %v5363_v12, %v11932_v58 }
 0x69a   :  { %v5399_v14 = vadd.f32 %v5394_v10, %v5386_v39 }
 0x69b   :  { %v11240_v21 = vpack.c.bf16 %v5407_v27, %v5406_v59  ;;  %v5378_v17 = vadd.f32 %v5369_v47, %v11175_v22  ;;  %v5379_v60 = vadd.f32 %v5370_v28, %v11177_v15 }
 0x69c   :  { %v5408_v32 = vmax.f32 %v5399_v14, 0.0 }
 0x69d   :  { %v5387_v11 = vadd.f32 %v5378_v17, %v11934_v19  ;;  %v5388_v6 = vadd.f32 %v5379_v60, %v11936_v24 }
 0x69f   :  { %v5400_v49 = vadd.f32 %v5394_v10, %v5387_v11  ;;  %v5401_v3 = vadd.f32 %v5394_v10, %v5388_v6 }
 0x6a1   :  { %v5409_v37 = vmax.f32 %v5400_v49, 0.0  ;;  %v5410_v40 = vmax.f32 %v5401_v3, 0.0 }
 0x6a3   :  { %v11248_v48 = vpack.c.bf16 %v5409_v37, %v5408_v32  ;;  %v11250_v30 = vpack.c.bf16 %v5411_v52, %v5410_v40 }
 0x6a4   :  { %9254 = dma.done.wait [#allocation3], 73728 }
 0x6a5   :  { %9255 = vsyncadd [#allocation3], 4294893568  ;;  %v11937_v22 = vmov 0   ;;  %v5425_v15 = vld [vmem:[#allocation2 + $0x8] sm:$0xff]  ;;  %v5424_v63 = vld [vmem:[#allocation2] sm:$0xff]  ;;  %v5583_v13 = vrot.slane %v11221_v18, 2 }
 0x6a6   :  { %5472 = vmatprep.mubr.bf16.mxu1 %v11937_v22  ;;  %5617 = vmatprep.mubr.bf16.mxu0 %v11937_v22  ;;  %v5427_v29 = vld [vmem:[#allocation2 + $0x18] sm:$0xff]  ;;  %v5426_v10 = vld [vmem:[#allocation2 + $0x10] sm:$0xff]  ;;  %v5429_v1 = vld [vmem:[#allocation2 + $0x28] sm:$0xff] }
 0x6a7   :  { %5440 = vmatprep.subr.bf16.mxu1 %v5425_v15  ;;  %v5568_v25 = vld [vmem:[#allocation2 + $0x108] sm:$0xff]  ;;  %v5567_v36 = vld [vmem:[#allocation2 + $0x100] sm:$0xff]  ;;  %v5570_v43 = vld [vmem:[#allocation2 + $0x118] sm:$0xff] }
 0x6a8   :  { %5441 = vmatpush1.bf16.msra.mxu1 %v5424_v63  ;;  %v5428_v41 = vld [vmem:[#allocation2 + $0x20] sm:$0xff]  ;;  %5585 = vmatprep.subr.bf16.mxu0 %v5568_v25  ;;  %v5431_v45 = vld [vmem:[#allocation2 + $0x38] sm:$0xff]  ;;  %v5569_v20 = vld [vmem:[#allocation2 + $0x110] sm:$0xff] }
 0x6a9   :  { %5442 = vmatprep.subr.bf16.mxu1 %v5427_v29  ;;  %5586 = vmatpush1.bf16.msra.mxu0 %v5567_v36  ;;  %v5572_v7 = vld [vmem:[#allocation2 + $0x128] sm:$0xff]  ;;  %v5430_v51 = vld [vmem:[#allocation2 + $0x30] sm:$0xff]  ;;  %v5571_v44 = vld [vmem:[#allocation2 + $0x120] sm:$0xff]  ;;  %v5511_v36 = vrot.slane %v11221_v18, 1 }
 0x6aa   :  { %5587 = vmatprep.subr.bf16.mxu0 %v5570_v43  ;;  %v5433_v56 = vld [vmem:[#allocation2 + $0x48] sm:$0xff]  ;;  %v5574_v53 = vld [vmem:[#allocation2 + $0x138] sm:$0xff]  ;;  %v5432_v2 = vld [vmem:[#allocation2 + $0x40] sm:$0xff] }
 0x6ab   :  { %v5435_v42 = vld [vmem:[#allocation2 + $0x58] sm:$0xff]  ;;  %v5573_v31 = vld [vmem:[#allocation2 + $0x130] sm:$0xff]  ;;  %v5576_v54 = vld [vmem:[#allocation2 + $0x148] sm:$0xff] }
 0x6ac   :  { %5443 = vmatpush1.bf16.msra.mxu1 %v5426_v10  ;;  %v5434_v62 = vld [vmem:[#allocation2 + $0x50] sm:$0xff]  ;;  %v5437_v46 = vld [vmem:[#allocation2 + $0x68] sm:$0xff]  ;;  %v5575_v35 = vld [vmem:[#allocation2 + $0x140] sm:$0xff] }
 0x6ad   :  { %5444 = vmatprep.subr.bf16.mxu1 %v5429_v1  ;;  %5588 = vmatpush1.bf16.msra.mxu0 %v5569_v20  ;;  %v5578_v38 = vld [vmem:[#allocation2 + $0x158] sm:$0xff]  ;;  %v5436_v4 = vld [vmem:[#allocation2 + $0x60] sm:$0xff]  ;;  %v5577_v61 = vld [vmem:[#allocation2 + $0x150] sm:$0xff] }
 0x6ae   :  { %5589 = vmatprep.subr.bf16.mxu0 %v5572_v7  ;;  %v5439_v55 = vld [vmem:[#allocation2 + $0x78] sm:$0xff]  ;;  %v5580_v23 = vld [vmem:[#allocation2 + $0x168] sm:$0xff]  ;;  %v5438_v50 = vld [vmem:[#allocation2 + $0x70] sm:$0xff] }
 0x6af   :  { %v5495_v59 = vld [vmem:[#allocation2 + $0x88] sm:$0xff]  ;;  %v5579_v0 = vld [vmem:[#allocation2 + $0x160] sm:$0xff]  ;;  %v5582_v12 = vld [vmem:[#allocation2 + $0x178] sm:$0xff] }
 0x6b0   :  { %5445 = vmatpush1.bf16.msra.mxu1 %v5428_v41  ;;  %v5494_v16 = vld [vmem:[#allocation2 + $0x80] sm:$0xff]  ;;  %v5497_v27 = vld [vmem:[#allocation2 + $0x98] sm:$0xff]  ;;  %v5581_v5 = vld [vmem:[#allocation2 + $0x170] sm:$0xff] }
 0x6b1   :  { %5446 = vmatprep.subr.bf16.mxu1 %v5431_v45  ;;  %5590 = vmatpush1.bf16.msra.mxu0 %v5571_v44  ;;  %v5712_v33 = vld [vmem:[#allocation2 + $0x208] sm:$0xff]  ;;  %v5496_v39 = vld [vmem:[#allocation2 + $0x90] sm:$0xff]  ;;  %v5711_v58 = vld [vmem:[#allocation2 + $0x200] sm:$0xff]  ;;  %v5727_v44 = vrot.slane %v11221_v18, 4 }
 0x6b2   :  { %5591 = vmatprep.subr.bf16.mxu0 %v5574_v53  ;;  %v5499_v47 = vld [vmem:[#allocation2 + $0xa8] sm:$0xff]  ;;  %v5714_v28 = vld [vmem:[#allocation2 + $0x218] sm:$0xff]  ;;  %v5498_v17 = vld [vmem:[#allocation2 + $0xa0] sm:$0xff] }
 0x6b3   :  { %v5501_v60 = vld [vmem:[#allocation2 + $0xb8] sm:$0xff]  ;;  %v5713_v8 = vld [vmem:[#allocation2 + $0x210] sm:$0xff]  ;;  %v5716_v14 = vld [vmem:[#allocation2 + $0x228] sm:$0xff] }
 0x6b4   :  { %5447 = vmatpush1.bf16.msra.mxu1 %v5430_v51  ;;  %v5500_v57 = vld [vmem:[#allocation2 + $0xb0] sm:$0xff]  ;;  %v5503_v19 = vld [vmem:[#allocation2 + $0xc8] sm:$0xff]  ;;  %v5715_v11 = vld [vmem:[#allocation2 + $0x220] sm:$0xff] }
 0x6b5   :  { %5448 = vmatprep.subr.bf16.mxu1 %v5433_v56  ;;  %5592 = vmatpush1.bf16.msra.mxu0 %v5573_v31  ;;  %v5718_v34 = vld [vmem:[#allocation2 + $0x238] sm:$0xff]  ;;  %v5502_v24 = vld [vmem:[#allocation2 + $0xc0] sm:$0xff]  ;;  %v5717_v49 = vld [vmem:[#allocation2 + $0x230] sm:$0xff] }
 0x6b6   :  { %5593 = vmatprep.subr.bf16.mxu0 %v5576_v54  ;;  %v5505_v6 = vld [vmem:[#allocation2 + $0xd8] sm:$0xff]  ;;  %v5720_v3 = vld [vmem:[#allocation2 + $0x248] sm:$0xff]  ;;  %v5504_v52 = vld [vmem:[#allocation2 + $0xd0] sm:$0xff] }
 0x6b7   :  { %v5507_v32 = vld [vmem:[#allocation2 + $0xe8] sm:$0xff]  ;;  %v5719_v37 = vld [vmem:[#allocation2 + $0x240] sm:$0xff]  ;;  %v5722_v40 = vld [vmem:[#allocation2 + $0x258] sm:$0xff] }
 0x6b8   :  { %5449 = vmatpush1.bf16.msra.mxu1 %v5432_v2  ;;  %v5506_v15 = vld [vmem:[#allocation2 + $0xe0] sm:$0xff]  ;;  %v5509_v63 = vld [vmem:[#allocation2 + $0xf8] sm:$0xff]  ;;  %v5721_v29 = vld [vmem:[#allocation2 + $0x250] sm:$0xff] }
 0x6b9   :  { %5450 = vmatprep.subr.bf16.mxu1 %v5435_v42  ;;  %5594 = vmatpush1.bf16.msra.mxu0 %v5575_v35  ;;  %v5724_v10 = vld [vmem:[#allocation2 + $0x268] sm:$0xff]  ;;  %v5508_v1 = vld [vmem:[#allocation2 + $0xf0] sm:$0xff]  ;;  %v5723_v41 = vld [vmem:[#allocation2 + $0x260] sm:$0xff] }
 0x6ba   :  { %5595 = vmatprep.subr.bf16.mxu0 %v5578_v38  ;;  %v5640_v25 = vld [vmem:[#allocation2 + $0x188] sm:$0xff]  ;;  %v5726_v43 = vld [vmem:[#allocation2 + $0x278] sm:$0xff]  ;;  %v5639_v45 = vld [vmem:[#allocation2 + $0x180] sm:$0xff] }
 0x6bb   :  { %v5642_v20 = vld [vmem:[#allocation2 + $0x198] sm:$0xff]  ;;  %v5725_v7 = vld [vmem:[#allocation2 + $0x270] sm:$0xff]  ;;  %v5856_v51 = vld [vmem:[#allocation2 + $0x308] sm:$0xff] }
 0x6bc   :  { %5451 = vmatpush1.bf16.msra.mxu1 %v5434_v62  ;;  %v5641_v56 = vld [vmem:[#allocation2 + $0x190] sm:$0xff]  ;;  %v5644_v53 = vld [vmem:[#allocation2 + $0x1a8] sm:$0xff]  ;;  %v5855_v2 = vld [vmem:[#allocation2 + $0x300] sm:$0xff] }
 0x6bd   :  { %5452 = vmatprep.subr.bf16.mxu1 %v5437_v46  ;;  %5596 = vmatpush1.bf16.msra.mxu0 %v5577_v61  ;;  %v5858_v42 = vld [vmem:[#allocation2 + $0x318] sm:$0xff]  ;;  %v5643_v31 = vld [vmem:[#allocation2 + $0x1a0] sm:$0xff]  ;;  %v5857_v62 = vld [vmem:[#allocation2 + $0x310] sm:$0xff] }
 0x6be   :  { %5597 = vmatprep.subr.bf16.mxu0 %v5580_v23  ;;  %v5646_v54 = vld [vmem:[#allocation2 + $0x1b8] sm:$0xff]  ;;  %v5860_v46 = vld [vmem:[#allocation2 + $0x328] sm:$0xff]  ;;  %v5645_v35 = vld [vmem:[#allocation2 + $0x1b0] sm:$0xff] }
 0x6bf   :  { %v5648_v38 = vld [vmem:[#allocation2 + $0x1c8] sm:$0xff]  ;;  %v5647_v61 = vld [vmem:[#allocation2 + $0x1c0] sm:$0xff]  ;;  %v5650_v23 = vld [vmem:[#allocation2 + $0x1d8] sm:$0xff] }
 0x6c0   :  { %5453 = vmatpush1.bf16.msra.mxu1 %v5436_v4  ;;  %v5859_v4 = vld [vmem:[#allocation2 + $0x320] sm:$0xff] }
 0x6c1   :  { %5454 = vmatprep.subr.bf16.mxu1 %v5439_v55  ;;  %5598 = vmatpush1.bf16.msra.mxu0 %v5579_v0  ;;  %v5862_v55 = vld [vmem:[#allocation2 + $0x338] sm:$0xff]  ;;  %v5649_v0 = vld [vmem:[#allocation2 + $0x1d0] sm:$0xff] }
 0x6c2   :  { %5599 = vmatprep.subr.bf16.mxu0 %v5582_v12  ;;  %v5652_v12 = vld [vmem:[#allocation2 + $0x1e8] sm:$0xff] }
 0x6c4   :  { %5455 = vmatpush1.bf16.msra.mxu1 %v5438_v50  ;;  %v5861_v50 = vld [vmem:[#allocation2 + $0x330] sm:$0xff] }
 0x6c5   :  { %5513 = vmatprep.subr.bf16.mxu1 %v5495_v59  ;;  %5600 = vmatpush1.bf16.msra.mxu0 %v5581_v5  ;;  %v5864_v59 = vld [vmem:[#allocation2 + $0x348] sm:$0xff]  ;;  %v5651_v5 = vld [vmem:[#allocation2 + $0x1e0] sm:$0xff] }
 0x6c6   :  { %5729 = vmatprep.subr.bf16.mxu0 %v5712_v33  ;;  %v5654_v33 = vld [vmem:[#allocation2 + $0x1f8] sm:$0xff] }
 0x6c7   :  { %5473 = vmatmul.mubr.bf16.vlgmr.msra.gmra.mrb[200].mxu1 %v11221_v18 }
 0x6c8   :  { %5514 = vmatpush1.bf16.msra.mxu1 %v5494_v16  ;;  %5545 = vmatprep.mubr.bf16.mxu1 %v11937_v22  ;;  %v5863_v16 = vld [vmem:[#allocation2 + $0x340] sm:$0xff] }
 0x6c9   :  { %5515 = vmatprep.subr.bf16.mxu1 %v5497_v27  ;;  %5618 = vmatmul.mubr.bf16.vlgmr.msra.gmra.mrb[220].mxu0 %v5583_v13  ;;  %v5866_v27 = vld [vmem:[#allocation2 + $0x358] sm:$0xff]  ;;  %v5868_v13 = vld [vmem:[#allocation2 + $0x368] sm:$0xff] }
 0x6ca   :  { %5730 = vmatpush1.bf16.msra.mxu0 %v5711_v58  ;;  %5761 = vmatprep.mubr.bf16.mxu0 %v11937_v22  ;;  %v5784_v58 = vld [vmem:[#allocation2 + $0x288] sm:$0xff] }
 0x6cb   :  { %5731 = vmatprep.subr.bf16.mxu0 %v5714_v28  ;;  %v5655_v28 = vrot.slane %v11221_v18, 3 }
 0x6cc   :  { %5516 = vmatpush1.bf16.msra.mxu1 %v5496_v39  ;;  %v5865_v39 = vld [vmem:[#allocation2 + $0x350] sm:$0xff] }
 0x6cd   :  { %5517 = vmatprep.subr.bf16.mxu1 %v5499_v47  ;;  %v5653_v47 = vld [vmem:[#allocation2 + $0x1f0] sm:$0xff] }
 0x6ce   :  { %5732 = vmatpush1.bf16.msra.mxu0 %v5713_v8  ;;  %v5783_v8 = vld [vmem:[#allocation2 + $0x280] sm:$0xff] }
 0x6cf   :  { %5733 = vmatprep.subr.bf16.mxu0 %v5716_v14  ;;  %v5786_v14 = vld [vmem:[#allocation2 + $0x298] sm:$0xff] }
 0x6d0   :  { %5518 = vmatpush1.bf16.msra.mxu1 %v5498_v17  ;;  %v5867_v17 = vld [vmem:[#allocation2 + $0x360] sm:$0xff] }
 0x6d1   :  { %5519 = vmatprep.subr.bf16.mxu1 %v5501_v60  ;;  %v5870_v60 = vld [vmem:[#allocation2 + $0x378] sm:$0xff] }
 0x6d2   :  { %5734 = vmatpush1.bf16.msra.mxu0 %v5715_v11  ;;  %v5785_v11 = vld [vmem:[#allocation2 + $0x290] sm:$0xff] }
 0x6d3   :  { %5735 = vmatprep.subr.bf16.mxu0 %v5718_v34  ;;  %v5871_v34 = vrot.slane %v11221_v18, 6 }
 0x6d4   :  { %5520 = vmatpush1.bf16.msra.mxu1 %v5500_v57  ;;  %v5869_v57 = vld [vmem:[#allocation2 + $0x370] sm:$0xff] }
 0x6d5   :  { %5521 = vmatprep.subr.bf16.mxu1 %v5503_v19  ;;  %v6000_v19 = vld [vmem:[#allocation2 + $0x408] sm:$0xff] }
 0x6d6   :  { %5736 = vmatpush1.bf16.msra.mxu0 %v5717_v49  ;;  %v6002_v49 = vld [vmem:[#allocation2 + $0x418] sm:$0xff] }
 0x6d7   :  { %5737 = vmatprep.subr.bf16.mxu0 %v5720_v3  ;;  %v5787_v3 = vld [vmem:[#allocation2 + $0x2a0] sm:$0xff] }
 0x6d8   :  { %5522 = vmatpush1.bf16.msra.mxu1 %v5502_v24  ;;  %v5788_v24 = vld [vmem:[#allocation2 + $0x2a8] sm:$0xff] }
 0x6d9   :  { %5523 = vmatprep.subr.bf16.mxu1 %v5505_v6  ;;  %v5999_v6 = vld [vmem:[#allocation2 + $0x400] sm:$0xff] }
 0x6da   :  { %5738 = vmatpush1.bf16.msra.mxu0 %v5719_v37  ;;  %v6004_v37 = vld [vmem:[#allocation2 + $0x428] sm:$0xff] }
 0x6db   :  { %5739 = vmatprep.subr.bf16.mxu0 %v5722_v40  ;;  %v5789_v40 = vld [vmem:[#allocation2 + $0x2b0] sm:$0xff] }
 0x6dc   :  { %5524 = vmatpush1.bf16.msra.mxu1 %v5504_v52  ;;  %v5790_v52 = vld [vmem:[#allocation2 + $0x2b8] sm:$0xff] }
 0x6dd   :  { %5525 = vmatprep.subr.bf16.mxu1 %v5507_v32  ;;  %v6001_v32 = vld [vmem:[#allocation2 + $0x410] sm:$0xff] }
 0x6de   :  { %5740 = vmatpush1.bf16.msra.mxu0 %v5721_v29  ;;  %v6006_v29 = vld [vmem:[#allocation2 + $0x438] sm:$0xff] }
 0x6df   :  { %5741 = vmatprep.subr.bf16.mxu0 %v5724_v10  ;;  %v5791_v10 = vld [vmem:[#allocation2 + $0x2c0] sm:$0xff] }
 0x6e0   :  { %5526 = vmatpush1.bf16.msra.mxu1 %v5506_v15  ;;  %v5792_v15 = vld [vmem:[#allocation2 + $0x2c8] sm:$0xff] }
 0x6e1   :  { %5527 = vmatprep.subr.bf16.mxu1 %v5509_v63  ;;  %v6003_v63 = vld [vmem:[#allocation2 + $0x420] sm:$0xff] }
 0x6e2   :  { %5742 = vmatpush1.bf16.msra.mxu0 %v5723_v41  ;;  %v5793_v41 = vld [vmem:[#allocation2 + $0x2d0] sm:$0xff] }
 0x6e3   :  { %5743 = vmatprep.subr.bf16.mxu0 %v5726_v43  ;;  %v5796_v43 = vld [vmem:[#allocation2 + $0x2e8] sm:$0xff] }
 0x6e4   :  { %5528 = vmatpush1.bf16.msra.mxu1 %v5508_v1  ;;  %v5794_v1 = vld [vmem:[#allocation2 + $0x2d8] sm:$0xff] }
 0x6e5   :  { %5657 = vmatprep.subr.bf16.mxu1 %v5640_v25  ;;  %v6005_v25 = vld [vmem:[#allocation2 + $0x430] sm:$0xff] }
 0x6e6   :  { %5744 = vmatpush1.bf16.msra.mxu0 %v5725_v7  ;;  %v5795_v7 = vld [vmem:[#allocation2 + $0x2e0] sm:$0xff] }
 0x6e7   :  { %5546 = vmatmul.mubr.bf16.vlgmr.msra.gmra.mrb[204].mxu1 %v5511_v36  ;;  %5873 = vmatprep.subr.bf16.mxu0 %v5856_v51  ;;  %v6008_v36 = vld [vmem:[#allocation2 + $0x448] sm:$0xff]  ;;  %v5798_v51 = vld [vmem:[#allocation2 + $0x2f8] sm:$0xff] }
 0x6e8   :  { %5658 = vmatpush1.bf16.msra.mxu1 %v5639_v45  ;;  %5689 = vmatprep.mubr.bf16.mxu1 %v11937_v22  ;;  %v6007_v45 = vld [vmem:[#allocation2 + $0x440] sm:$0xff] }
 0x6e9   :  { %5659 = vmatprep.subr.bf16.mxu1 %v5642_v20  ;;  %5762 = vmatmul.mubr.bf16.vlgmr.msra.gmra.mrb[224].mxu0 %v5727_v44  ;;  %v6010_v20 = vld [vmem:[#allocation2 + $0x458] sm:$0xff]  ;;  %v6012_v44 = vld [vmem:[#allocation2 + $0x468] sm:$0xff] }
 0x6ea   :  { %5874 = vmatpush1.bf16.msra.mxu0 %v5855_v2  ;;  %5905 = vmatprep.mubr.bf16.mxu0 %v11937_v22  ;;  %v5928_v2 = vld [vmem:[#allocation2 + $0x388] sm:$0xff] }
 0x6eb   :  { %5875 = vmatprep.subr.bf16.mxu0 %v5858_v42  ;;  %v5799_v42 = vrot.slane %v11221_v18, 5 }
 0x6ec   :  { %5660 = vmatpush1.bf16.msra.mxu1 %v5641_v56  ;;  %v6009_v56 = vld [vmem:[#allocation2 + $0x450] sm:$0xff] }
 0x6ed   :  { %5661 = vmatprep.subr.bf16.mxu1 %v5644_v53  ;;  %v5797_v53 = vld [vmem:[#allocation2 + $0x2f0] sm:$0xff] }
 0x6ee   :  { %5876 = vmatpush1.bf16.msra.mxu0 %v5857_v62  ;;  %v5927_v62 = vld [vmem:[#allocation2 + $0x380] sm:$0xff] }
 0x6ef   :  { %5877 = vmatprep.subr.bf16.mxu0 %v5860_v46  ;;  %v5930_v46 = vld [vmem:[#allocation2 + $0x398] sm:$0xff] }
 0x6f0   :  { %5662 = vmatpush1.bf16.msra.mxu1 %v5643_v31  ;;  %v6011_v31 = vld [vmem:[#allocation2 + $0x460] sm:$0xff] }
 0x6f1   :  { %5663 = vmatprep.subr.bf16.mxu1 %v5646_v54  ;;  %v6014_v54 = vld [vmem:[#allocation2 + $0x478] sm:$0xff] }
 0x6f2   :  { %5878 = vmatpush1.bf16.msra.mxu0 %v5859_v4  ;;  %v5929_v4 = vld [vmem:[#allocation2 + $0x390] sm:$0xff] }
 0x6f3   :  { %5879 = vmatprep.subr.bf16.mxu0 %v5862_v55  ;;  %v5932_v55 = vld [vmem:[#allocation2 + $0x3a8] sm:$0xff] }
 0x6f4   :  { %5664 = vmatpush1.bf16.msra.mxu1 %v5645_v35  ;;  %v6013_v35 = vld [vmem:[#allocation2 + $0x470] sm:$0xff] }
 0x6f5   :  { %5665 = vmatprep.subr.bf16.mxu1 %v5648_v38  ;;  %v6143_v38 = vld [vmem:[#allocation2 + $0x508] sm:$0xff] }
 0x6f6   :  { %5880 = vmatpush1.bf16.msra.mxu0 %v5861_v50  ;;  %v5931_v50 = vld [vmem:[#allocation2 + $0x3a0] sm:$0xff] }
 0x6f7   :  { %5881 = vmatprep.subr.bf16.mxu0 %v5864_v59  ;;  %v5934_v59 = vld [vmem:[#allocation2 + $0x3b8] sm:$0xff] }
 0x6f8   :  { %5666 = vmatpush1.bf16.msra.mxu1 %v5647_v61  ;;  %v6142_v61 = vld [vmem:[#allocation2 + $0x500] sm:$0xff] }
 0x6f9   :  { %5667 = vmatprep.subr.bf16.mxu1 %v5650_v23  ;;  %v6145_v23 = vld [vmem:[#allocation2 + $0x518] sm:$0xff] }
 0x6fa   :  { %5882 = vmatpush1.bf16.msra.mxu0 %v5863_v16  ;;  %v5933_v16 = vld [vmem:[#allocation2 + $0x3b0] sm:$0xff] }
 0x6fb   :  { %5883 = vmatprep.subr.bf16.mxu0 %v5866_v27  ;;  %v5936_v27 = vld [vmem:[#allocation2 + $0x3c8] sm:$0xff] }
 0x6fc   :  { %5668 = vmatpush1.bf16.msra.mxu1 %v5649_v0  ;;  %v6144_v0 = vld [vmem:[#allocation2 + $0x510] sm:$0xff] }
 0x6fd   :  { %5669 = vmatprep.subr.bf16.mxu1 %v5652_v12  ;;  %v6147_v12 = vld [vmem:[#allocation2 + $0x528] sm:$0xff] }
 0x6fe   :  { %5884 = vmatpush1.bf16.msra.mxu0 %v5865_v39  ;;  %v5935_v39 = vld [vmem:[#allocation2 + $0x3c0] sm:$0xff] }
 0x6ff   :  { %5885 = vmatprep.subr.bf16.mxu0 %v5868_v13  ;;  %v5938_v13 = vld [vmem:[#allocation2 + $0x3d8] sm:$0xff] }
 0x700   :  { %5670 = vmatpush1.bf16.msra.mxu1 %v5651_v5  ;;  %v6146_v5 = vld [vmem:[#allocation2 + $0x520] sm:$0xff] }
 0x701   :  { %5671 = vmatprep.subr.bf16.mxu1 %v5654_v33  ;;  %v6149_v33 = vld [vmem:[#allocation2 + $0x538] sm:$0xff] }
 0x702   :  { %5886 = vmatpush1.bf16.msra.mxu0 %v5867_v17  ;;  %v5940_v17 = vld [vmem:[#allocation2 + $0x3e8] sm:$0xff] }
 0x703   :  { %5887 = vmatprep.subr.bf16.mxu0 %v5870_v60  ;;  %v6150_v60 = vld [vmem:[#allocation2 + $0x540] sm:$0xff] }
 0x704   :  { %5672 = vmatpush1.bf16.msra.mxu1 %v5653_v47  ;;  %v6148_v47 = vld [vmem:[#allocation2 + $0x530] sm:$0xff] }
 0x705   :  { %5801 = vmatprep.subr.bf16.mxu1 %v5784_v58  ;;  %v6151_v58 = vld [vmem:[#allocation2 + $0x548] sm:$0xff] }
 0x706   :  { %5888 = vmatpush1.bf16.msra.mxu0 %v5869_v57  ;;  %v5942_v57 = vld [vmem:[#allocation2 + $0x3f8] sm:$0xff] }
 0x707   :  { %5690 = vmatmul.mubr.bf16.vlgmr.msra.gmra.mrb[208].mxu1 %v5655_v28  ;;  %6015 = vmatprep.subr.bf16.mxu0 %v6000_v19  ;;  %v5937_v28 = vld [vmem:[#allocation2 + $0x3d0] sm:$0xff] }
 0x708   :  { %5802 = vmatpush1.bf16.msra.mxu1 %v5783_v8  ;;  %5833 = vmatprep.mubr.bf16.mxu1 %v11937_v22  ;;  %v6153_v8 = vld [vmem:[#allocation2 + $0x558] sm:$0xff]  ;;  %v6152_v19 = vld [vmem:[#allocation2 + $0x550] sm:$0xff] }
 0x709   :  { %5803 = vmatprep.subr.bf16.mxu1 %v5786_v14  ;;  %5906 = vmatmul.mubr.bf16.vlgmr.msra.gmra.mrb[228].mxu0 %v5871_v34  ;;  %v5939_v14 = vld [vmem:[#allocation2 + $0x3e0] sm:$0xff]  ;;  %v5941_v34 = vld [vmem:[#allocation2 + $0x3f0] sm:$0xff] }
 0x70a   :  { %6016 = vmatpush1.bf16.msra.mxu0 %v5999_v6  ;;  %6047 = vmatprep.mubr.bf16.mxu0 %v11937_v22  ;;  %v5943_v6 = vrot.slane %v11221_v18, 7  ;;  %v6074_v18 = vld [vmem:[#allocation2 + $0x4a8] sm:$0xff] }
 0x70b   :  { %6017 = vmatprep.subr.bf16.mxu0 %v6002_v49  ;;  %v6154_v49 = vld [vmem:[#allocation2 + $0x560] sm:$0xff] }
 0x70c   :  { %5804 = vmatpush1.bf16.msra.mxu1 %v5785_v11  ;;  %v6155_v11 = vld [vmem:[#allocation2 + $0x568] sm:$0xff] }
 0x70d   :  { %5805 = vmatprep.subr.bf16.mxu1 %v5788_v24  ;;  %v6070_v24 = vld [vmem:[#allocation2 + $0x488] sm:$0xff] }
 0x70e   :  { %6018 = vmatpush1.bf16.msra.mxu0 %v6001_v32  ;;  %v6072_v32 = vld [vmem:[#allocation2 + $0x498] sm:$0xff] }
 0x70f   :  { %6019 = vmatprep.subr.bf16.mxu0 %v6004_v37  ;;  %v6156_v37 = vld [vmem:[#allocation2 + $0x570] sm:$0xff] }
 0x710   :  { %5806 = vmatpush1.bf16.msra.mxu1 %v5787_v3  ;;  %v6157_v3 = vld [vmem:[#allocation2 + $0x578] sm:$0xff] }
 0x711   :  { %5807 = vmatprep.subr.bf16.mxu1 %v5790_v52  ;;  %v6069_v52 = vld [vmem:[#allocation2 + $0x480] sm:$0xff] }
 0x712   :  { %6020 = vmatpush1.bf16.msra.mxu0 %v6003_v63  ;;  %v6158_v63 = vrot.slane %v11240_v21, 2 }
 0x713   :  { %6021 = vmatprep.subr.bf16.mxu0 %v6006_v29  ;;  %v6286_v29 = vld [vmem:[#allocation2 + $0x600] sm:$0xff] }
 0x714   :  { %5808 = vmatpush1.bf16.msra.mxu1 %v5789_v40  ;;  %v6287_v40 = vld [vmem:[#allocation2 + $0x608] sm:$0xff] }
 0x715   :  { %5809 = vmatprep.subr.bf16.mxu1 %v5792_v15  ;;  %v6071_v15 = vld [vmem:[#allocation2 + $0x490] sm:$0xff] }
 0x716   :  { %6022 = vmatpush1.bf16.msra.mxu0 %v6005_v25  ;;  %v6076_v25 = vld [vmem:[#allocation2 + $0x4b8] sm:$0xff] }
 0x717   :  { %6023 = vmatprep.subr.bf16.mxu0 %v6008_v36  ;;  %v6288_v36 = vld [vmem:[#allocation2 + $0x610] sm:$0xff] }
 0x718   :  { %5810 = vmatpush1.bf16.msra.mxu1 %v5791_v10  ;;  %v6289_v10 = vld [vmem:[#allocation2 + $0x618] sm:$0xff] }
 0x719   :  { %5811 = vmatprep.subr.bf16.mxu1 %v5794_v1  ;;  %v6073_v1 = vld [vmem:[#allocation2 + $0x4a0] sm:$0xff] }
 0x71a   :  { %6024 = vmatpush1.bf16.msra.mxu0 %v6007_v45  ;;  %v6078_v45 = vld [vmem:[#allocation2 + $0x4c8] sm:$0xff] }
 0x71b   :  { %6025 = vmatprep.subr.bf16.mxu0 %v6010_v20  ;;  %v6290_v20 = vld [vmem:[#allocation2 + $0x620] sm:$0xff] }
 0x71c   :  { %5812 = vmatpush1.bf16.msra.mxu1 %v5793_v41  ;;  %v6291_v41 = vld [vmem:[#allocation2 + $0x628] sm:$0xff] }
 0x71d   :  { %5813 = vmatprep.subr.bf16.mxu1 %v5796_v43  ;;  %v6075_v43 = vld [vmem:[#allocation2 + $0x4b0] sm:$0xff] }
 0x71e   :  { %6026 = vmatpush1.bf16.msra.mxu0 %v6009_v56  ;;  %v6080_v56 = vld [vmem:[#allocation2 + $0x4d8] sm:$0xff] }
 0x71f   :  { %6027 = vmatprep.subr.bf16.mxu0 %v6012_v44  ;;  %v6292_v44 = vld [vmem:[#allocation2 + $0x630] sm:$0xff] }
 0x720   :  { %5814 = vmatpush1.bf16.msra.mxu1 %v5795_v7  ;;  %v6293_v7 = vld [vmem:[#allocation2 + $0x638] sm:$0xff] }
 0x721   :  { %5815 = vmatprep.subr.bf16.mxu1 %v5798_v51  ;;  %v6077_v51 = vld [vmem:[#allocation2 + $0x4c0] sm:$0xff] }
 0x722   :  { %6028 = vmatpush1.bf16.msra.mxu0 %v6011_v31  ;;  %v6294_v31 = vld [vmem:[#allocation2 + $0x640] sm:$0xff] }
 0x723   :  { %6029 = vmatprep.subr.bf16.mxu0 %v6014_v54  ;;  %v6297_v54 = vld [vmem:[#allocation2 + $0x658] sm:$0xff] }
 0x724   :  { %5816 = vmatpush1.bf16.msra.mxu1 %v5797_v53  ;;  %v6295_v53 = vld [vmem:[#allocation2 + $0x648] sm:$0xff] }
 0x725   :  { %5945 = vmatprep.subr.bf16.mxu1 %v5928_v2  ;;  %v6079_v2 = vld [vmem:[#allocation2 + $0x4d0] sm:$0xff] }
 0x726   :  { %6030 = vmatpush1.bf16.msra.mxu0 %v6013_v35  ;;  %v6296_v35 = vld [vmem:[#allocation2 + $0x650] sm:$0xff] }
 0x727   :  { %5834 = vmatmul.mubr.bf16.vlgmr.msra.gmra.mrb[212].mxu1 %v5799_v42  ;;  %6160 = vmatprep.subr.bf16.mxu0 %v6143_v38  ;;  %v6082_v42 = vld [vmem:[#allocation2 + $0x4e8] sm:$0xff] }
 0x728   :  { %5946 = vmatpush1.bf16.msra.mxu1 %v5927_v62  ;;  %5977 = vmatprep.mubr.bf16.mxu1 %v11937_v22  ;;  %v6081_v62 = vld [vmem:[#allocation2 + $0x4e0] sm:$0xff]  ;;  %v6299_v38 = vld [vmem:[#allocation2 + $0x668] sm:$0xff] }
 0x729   :  { %5947 = vmatprep.subr.bf16.mxu1 %v5930_v46  ;;  %6048 = vmatmul.mubr.bf16.vlgmr.msra.gmra.mrb[232].mxu0 %v11240_v21  ;;  %v6084_v46 = vld [vmem:[#allocation2 + $0x4f8] sm:$0xff] }
 0x72a   :  { %6161 = vmatpush1.bf16.msra.mxu0 %v6142_v61  ;;  %6192 = vmatprep.mubr.bf16.mxu0 %v11937_v22  ;;  %v6086_v61 = vrot.slane %v11240_v21, 1 }
 0x72b   :  { %6162 = vmatprep.subr.bf16.mxu0 %v6145_v23  ;;  %v6298_v23 = vld [vmem:[#allocation2 + $0x660] sm:$0xff] }
 0x72c   :  { %5948 = vmatpush1.bf16.msra.mxu1 %v5929_v4  ;;  %v6083_v4 = vld [vmem:[#allocation2 + $0x4f0] sm:$0xff] }
 0x72d   :  { %5949 = vmatprep.subr.bf16.mxu1 %v5932_v55  ;;  %v6215_v55 = vld [vmem:[#allocation2 + $0x588] sm:$0xff] }
 0x72e   :  { %6163 = vmatpush1.bf16.msra.mxu0 %v6144_v0  ;;  %v6217_v0 = vld [vmem:[#allocation2 + $0x598] sm:$0xff] }
 0x72f   :  { %6164 = vmatprep.subr.bf16.mxu0 %v6147_v12  ;;  %v6300_v12 = vld [vmem:[#allocation2 + $0x670] sm:$0xff] }
 0x730   :  { %5950 = vmatpush1.bf16.msra.mxu1 %v5931_v50  ;;  %v6301_v50 = vld [vmem:[#allocation2 + $0x678] sm:$0xff] }
 0x731   :  { %5951 = vmatprep.subr.bf16.mxu1 %v5934_v59  ;;  %v6214_v59 = vld [vmem:[#allocation2 + $0x580] sm:$0xff] }
 0x732   :  { %6165 = vmatpush1.bf16.msra.mxu0 %v6146_v5  ;;  %v6302_v5 = vrot.slane %v11240_v21, 4 }
 0x733   :  { %6166 = vmatprep.subr.bf16.mxu0 %v6149_v33  ;;  %v6219_v33 = vld [vmem:[#allocation2 + $0x5a8] sm:$0xff] }
 0x734   :  { %5952 = vmatpush1.bf16.msra.mxu1 %v5933_v16  ;;  %v6431_v16 = vld [vmem:[#allocation2 + $0x708] sm:$0xff] }
 0x735   :  { %5953 = vmatprep.subr.bf16.mxu1 %v5936_v27  ;;  %v6216_v27 = vld [vmem:[#allocation2 + $0x590] sm:$0xff] }
 0x736   :  { %6167 = vmatpush1.bf16.msra.mxu0 %v6148_v47  ;;  %v6218_v47 = vld [vmem:[#allocation2 + $0x5a0] sm:$0xff] }
 0x737   :  { %6168 = vmatprep.subr.bf16.mxu0 %v6151_v58  ;;  %v6221_v58 = vld [vmem:[#allocation2 + $0x5b8] sm:$0xff] }
 0x738   :  { %5954 = vmatpush1.bf16.msra.mxu1 %v5935_v39  ;;  %v6430_v39 = vld [vmem:[#allocation2 + $0x700] sm:$0xff] }
 0x739   :  { %5955 = vmatprep.subr.bf16.mxu1 %v5938_v13  ;;  %v6433_v13 = vld [vmem:[#allocation2 + $0x718] sm:$0xff] }
 0x73a   :  { %6169 = vmatpush1.bf16.msra.mxu0 %v6150_v60  ;;  %v6220_v60 = vld [vmem:[#allocation2 + $0x5b0] sm:$0xff] }
 0x73b   :  { %6170 = vmatprep.subr.bf16.mxu0 %v6153_v8  ;;  %v6223_v8 = vld [vmem:[#allocation2 + $0x5c8] sm:$0xff] }
 0x73c   :  { %5956 = vmatpush1.bf16.msra.mxu1 %v5937_v28  ;;  %v6432_v28 = vld [vmem:[#allocation2 + $0x710] sm:$0xff] }
 0x73d   :  { %5957 = vmatprep.subr.bf16.mxu1 %v5940_v17  ;;  %v6435_v17 = vld [vmem:[#allocation2 + $0x728] sm:$0xff] }
 0x73e   :  { %6171 = vmatpush1.bf16.msra.mxu0 %v6152_v19  ;;  %v6222_v19 = vld [vmem:[#allocation2 + $0x5c0] sm:$0xff] }
 0x73f   :  { %6172 = vmatprep.subr.bf16.mxu0 %v6155_v11  ;;  %v6225_v11 = vld [vmem:[#allocation2 + $0x5d8] sm:$0xff] }
 0x740   :  { %5958 = vmatpush1.bf16.msra.mxu1 %v5939_v14  ;;  %v6434_v14 = vld [vmem:[#allocation2 + $0x720] sm:$0xff] }
 0x741   :  { %5959 = vmatprep.subr.bf16.mxu1 %v5942_v57  ;;  %v6437_v57 = vld [vmem:[#allocation2 + $0x738] sm:$0xff] }
 0x742   :  { %6173 = vmatpush1.bf16.msra.mxu0 %v6154_v49  ;;  %v6227_v49 = vld [vmem:[#allocation2 + $0x5e8] sm:$0xff] }
 0x743   :  { %6174 = vmatprep.subr.bf16.mxu0 %v6157_v3  ;;  %v6438_v3 = vld [vmem:[#allocation2 + $0x740] sm:$0xff] }
 0x744   :  { %5960 = vmatpush1.bf16.msra.mxu1 %v5941_v34  ;;  %v6436_v34 = vld [vmem:[#allocation2 + $0x730] sm:$0xff] }
 0x745   :  { %6088 = vmatprep.subr.bf16.mxu1 %v6070_v24  ;;  %v6439_v24 = vld [vmem:[#allocation2 + $0x748] sm:$0xff] }
 0x746   :  { %6175 = vmatpush1.bf16.msra.mxu0 %v6156_v37  ;;  %v6229_v37 = vld [vmem:[#allocation2 + $0x5f8] sm:$0xff] }
 0x747   :  { %5978 = vmatmul.mubr.bf16.vlgmr.msra.gmra.mrb[216].mxu1 %v5943_v6  ;;  %6304 = vmatprep.subr.bf16.mxu0 %v6287_v40  ;;  %v6224_v6 = vld [vmem:[#allocation2 + $0x5d0] sm:$0xff] }
 0x748   :  { %6089 = vmatpush1.bf16.msra.mxu1 %v6069_v52  ;;  %6120 = vmatprep.mubr.bf16.mxu1 %v11937_v22  ;;  %v6441_v52 = vld [vmem:[#allocation2 + $0x758] sm:$0xff]  ;;  %v6440_v40 = vld [vmem:[#allocation2 + $0x750] sm:$0xff] }
 0x749   :  { %6090 = vmatprep.subr.bf16.mxu1 %v6072_v32  ;;  %6193 = vmatmul.mubr.bf16.vlgmr.msra.gmra.mrb[236].mxu0 %v6158_v63  ;;  %v6226_v32 = vld [vmem:[#allocation2 + $0x5e0] sm:$0xff]  ;;  %v6228_v63 = vld [vmem:[#allocation2 + $0x5f0] sm:$0xff] }
 0x74a   :  { %6305 = vmatpush1.bf16.msra.mxu0 %v6286_v29  ;;  %6336 = vmatprep.mubr.bf16.mxu0 %v11937_v22  ;;  %v6230_v29 = vrot.slane %v11240_v21, 3 }
 0x74b   :  { %6306 = vmatprep.subr.bf16.mxu0 %v6289_v10  ;;  %v6442_v10 = vld [vmem:[#allocation2 + $0x760] sm:$0xff] }
 0x74c   :  { %6091 = vmatpush1.bf16.msra.mxu1 %v6071_v15  ;;  %v6443_v15 = vld [vmem:[#allocation2 + $0x768] sm:$0xff] }
 0x74d   :  { %6092 = vmatprep.subr.bf16.mxu1 %v6074_v18  ;;  %v6359_v18 = vld [vmem:[#allocation2 + $0x688] sm:$0xff] }
 0x74e   :  { %6307 = vmatpush1.bf16.msra.mxu0 %v6288_v36  ;;  %v6361_v36 = vld [vmem:[#allocation2 + $0x698] sm:$0xff] }
 0x74f   :  { %6308 = vmatprep.subr.bf16.mxu0 %v6291_v41  ;;  %v6444_v41 = vld [vmem:[#allocation2 + $0x770] sm:$0xff] }
 0x750   :  { %6093 = vmatpush1.bf16.msra.mxu1 %v6073_v1  ;;  %v6445_v1 = vld [vmem:[#allocation2 + $0x778] sm:$0xff] }
 0x751   :  { %6094 = vmatprep.subr.bf16.mxu1 %v6076_v25  ;;  %v6358_v25 = vld [vmem:[#allocation2 + $0x680] sm:$0xff] }
 0x752   :  { %6309 = vmatpush1.bf16.msra.mxu0 %v6290_v20  ;;  %v6446_v20 = vrot.slane %v11240_v21, 6 }
 0x753   :  { %6310 = vmatprep.subr.bf16.mxu0 %v6293_v7  ;;  %v6363_v7 = vld [vmem:[#allocation2 + $0x6a8] sm:$0xff] }
 0x754   :  { %6095 = vmatpush1.bf16.msra.mxu1 %v6075_v43  ;;  %v6575_v43 = vld [vmem:[#allocation2 + $0x808] sm:$0xff] }
 0x755   :  { %6096 = vmatprep.subr.bf16.mxu1 %v6078_v45  ;;  %v6360_v45 = vld [vmem:[#allocation2 + $0x690] sm:$0xff] }
 0x756   :  { %6311 = vmatpush1.bf16.msra.mxu0 %v6292_v44  ;;  %v6362_v44 = vld [vmem:[#allocation2 + $0x6a0] sm:$0xff] }
 0x757   :  { %6312 = vmatprep.subr.bf16.mxu0 %v6295_v53  ;;  %v6365_v53 = vld [vmem:[#allocation2 + $0x6b8] sm:$0xff] }
 0x758   :  { %6097 = vmatpush1.bf16.msra.mxu1 %v6077_v51  ;;  %v6574_v51 = vld [vmem:[#allocation2 + $0x800] sm:$0xff] }
 0x759   :  { %6098 = vmatprep.subr.bf16.mxu1 %v6080_v56  ;;  %v6577_v56 = vld [vmem:[#allocation2 + $0x818] sm:$0xff] }
 0x75a   :  { %6313 = vmatpush1.bf16.msra.mxu0 %v6294_v31  ;;  %v6364_v31 = vld [vmem:[#allocation2 + $0x6b0] sm:$0xff] }
 0x75b   :  { %6314 = vmatprep.subr.bf16.mxu0 %v6297_v54  ;;  %v6367_v54 = vld [vmem:[#allocation2 + $0x6c8] sm:$0xff] }
 0x75c   :  { %6099 = vmatpush1.bf16.msra.mxu1 %v6079_v2  ;;  %v6576_v2 = vld [vmem:[#allocation2 + $0x810] sm:$0xff] }
 0x75d   :  { %6100 = vmatprep.subr.bf16.mxu1 %v6082_v42  ;;  %v6579_v42 = vld [vmem:[#allocation2 + $0x828] sm:$0xff] }
 0x75e   :  { %6315 = vmatpush1.bf16.msra.mxu0 %v6296_v35  ;;  %v6366_v35 = vld [vmem:[#allocation2 + $0x6c0] sm:$0xff] }
 0x75f   :  { %6316 = vmatprep.subr.bf16.mxu0 %v6299_v38  ;;  %v6369_v38 = vld [vmem:[#allocation2 + $0x6d8] sm:$0xff] }
 0x760   :  { %6101 = vmatpush1.bf16.msra.mxu1 %v6081_v62  ;;  %v6578_v62 = vld [vmem:[#allocation2 + $0x820] sm:$0xff] }
 0x761   :  { %6102 = vmatprep.subr.bf16.mxu1 %v6084_v46  ;;  %v6581_v46 = vld [vmem:[#allocation2 + $0x838] sm:$0xff] }
 0x762   :  { %6317 = vmatpush1.bf16.msra.mxu0 %v6298_v23 }
 0x763   :  { %6318 = vmatprep.subr.bf16.mxu0 %v6301_v50  ;;  %v6371_v50 = vld [vmem:[#allocation2 + $0x6e8] sm:$0xff] }
 0x764   :  { %6103 = vmatpush1.bf16.msra.mxu1 %v6083_v4  ;;  %v6580_v4 = vld [vmem:[#allocation2 + $0x830] sm:$0xff] }
 0x765   :  { %6232 = vmatprep.subr.bf16.mxu1 %v6215_v55  ;;  %v6583_v55 = vld [vmem:[#allocation2 + $0x848] sm:$0xff] }
 0x766   :  { %6319 = vmatpush1.bf16.msra.mxu0 %v6300_v12 }
 0x767   :  { %6121 = vmatmul.mubr.bf16.vlgmr.msra.gmra.mrb[220].mxu1 %v6086_v61  ;;  %6448 = vmatprep.subr.bf16.mxu0 %v6431_v16  ;;  %v6368_v61 = vld [vmem:[#allocation2 + $0x6d0] sm:$0xff] }
 0x768   :  { %6233 = vmatpush1.bf16.msra.mxu1 %v6214_v59  ;;  %6264 = vmatprep.mubr.bf16.mxu1 %v11937_v22 }
 0x769   :  { %6234 = vmatprep.subr.bf16.mxu1 %v6217_v0  ;;  %6337 = vmatmul.mubr.bf16.vlgmr.msra.gmra.mrb[240].mxu0 %v6302_v5  ;;  %v6582_v0 = vld [vmem:[#allocation2 + $0x840] sm:$0xff] }
 0x76a   :  { %6449 = vmatpush1.bf16.msra.mxu0 %v6430_v39  ;;  %6480 = vmatprep.mubr.bf16.mxu0 %v11937_v22  ;;  %v6373_v39 = vld [vmem:[#allocation2 + $0x6f8] sm:$0xff] }
 0x76b   :  { %6450 = vmatprep.subr.bf16.mxu0 %v6433_v13  ;;  %v6584_v13 = vld [vmem:[#allocation2 + $0x850] sm:$0xff] }
 0x76c   :  { %6235 = vmatpush1.bf16.msra.mxu1 %v6216_v27  ;;  %v6585_v27 = vld [vmem:[#allocation2 + $0x858] sm:$0xff] }
 0x76d   :  { %6236 = vmatprep.subr.bf16.mxu1 %v6219_v33  ;;  %v6370_v33 = vld [vmem:[#allocation2 + $0x6e0] sm:$0xff] }
 0x76e   :  { %6451 = vmatpush1.bf16.msra.mxu0 %v6432_v28  ;;  %v6372_v28 = vld [vmem:[#allocation2 + $0x6f0] sm:$0xff] }
 0x76f   :  { %6452 = vmatprep.subr.bf16.mxu0 %v6435_v17 }
 0x770   :  { %6237 = vmatpush1.bf16.msra.mxu1 %v6218_v47 }
 0x771   :  { %6238 = vmatprep.subr.bf16.mxu1 %v6221_v58  ;;  %v6587_v58 = vld [vmem:[#allocation2 + $0x868] sm:$0xff] }
 0x772   :  { %6453 = vmatpush1.bf16.msra.mxu0 %v6434_v14 }
 0x773   :  { %6454 = vmatprep.subr.bf16.mxu0 %v6437_v57  ;;  %v6374_v57 = vrot.slane %v11240_v21, 5 }
 0x774   :  { %6239 = vmatpush1.bf16.msra.mxu1 %v6220_v60  ;;  %v6503_v60 = vld [vmem:[#allocation2 + $0x788] sm:$0xff] }
 0x775   :  { %6240 = vmatprep.subr.bf16.mxu1 %v6223_v8 }
 0x776   :  { %6455 = vmatpush1.bf16.msra.mxu0 %v6436_v34  ;;  %v6589_v34 = vld [vmem:[#allocation2 + $0x878] sm:$0xff] }
 0x777   :  { %6456 = vmatprep.subr.bf16.mxu0 %v6439_v24  ;;  %v6502_v24 = vld [vmem:[#allocation2 + $0x780] sm:$0xff] }
 0x778   :  { %6241 = vmatpush1.bf16.msra.mxu1 %v6222_v19  ;;  %v6586_v19 = vld [vmem:[#allocation2 + $0x860] sm:$0xff] }
 0x779   :  { %6242 = vmatprep.subr.bf16.mxu1 %v6225_v11 }
 0x77a   :  { %6457 = vmatpush1.bf16.msra.mxu0 %v6438_v3  ;;  %v6718_v3 = vld [vmem:[#allocation2 + $0x908] sm:$0xff] }
 0x77b   :  { %6458 = vmatprep.subr.bf16.mxu0 %v6441_v52  ;;  %v6504_v52 = vld [vmem:[#allocation2 + $0x790] sm:$0xff] }
 0x77c   :  { %6243 = vmatpush1.bf16.msra.mxu1 %v6224_v6  ;;  %v6505_v6 = vld [vmem:[#allocation2 + $0x798] sm:$0xff] }
 0x77d   :  { %6244 = vmatprep.subr.bf16.mxu1 %v6227_v49  ;;  %v6588_v49 = vld [vmem:[#allocation2 + $0x870] sm:$0xff] }
 0x77e   :  { %6459 = vmatpush1.bf16.msra.mxu0 %v6440_v40  ;;  %v6720_v40 = vld [vmem:[#allocation2 + $0x918] sm:$0xff] }
 0x77f   :  { %6460 = vmatprep.subr.bf16.mxu0 %v6443_v15  ;;  %v6506_v15 = vld [vmem:[#allocation2 + $0x7a0] sm:$0xff] }
 0x780   :  { %6245 = vmatpush1.bf16.msra.mxu1 %v6226_v32  ;;  %v6507_v32 = vld [vmem:[#allocation2 + $0x7a8] sm:$0xff] }
 0x781   :  { %6246 = vmatprep.subr.bf16.mxu1 %v6229_v37  ;;  %v6717_v37 = vld [vmem:[#allocation2 + $0x900] sm:$0xff] }
 0x782   :  { %6461 = vmatpush1.bf16.msra.mxu0 %v6442_v10  ;;  %v6719_v10 = vld [vmem:[#allocation2 + $0x910] sm:$0xff] }
 0x783   :  { %6462 = vmatprep.subr.bf16.mxu0 %v6445_v1  ;;  %v6722_v1 = vld [vmem:[#allocation2 + $0x928] sm:$0xff] }
 0x784   :  { %6247 = vmatpush1.bf16.msra.mxu1 %v6228_v63  ;;  %v9279_v63 = vmov 1983009808  }
 0x785   :  { %6376 = vmatprep.subr.bf16.mxu1 %v6359_v18  ;;  %v5485_v18 = vunpack.c.l.s4 %v9279_v63  ;;  %v6865_v63 = vld [vmem:[#allocation2 + $0xa20] sm:$0xff] }
 0x786   :  { %6463 = vmatpush1.bf16.msra.mxu0 %v6444_v41  ;;  %v6511_v41 = vld [vmem:[#allocation2 + $0x7c8] sm:$0xff] }
 0x787   :  { %6265 = vmatmul.mubr.bf16.vlgmr.msra.gmra.mrb[224].mxu1 %v6230_v29  ;;  %6590 = vmatprep.subr.bf16.mxu0 %v6575_v43  ;;  %v6509_v29 = vld [vmem:[#allocation2 + $0x7b8] sm:$0xff]  ;;  %v6721_v43 = vld [vmem:[#allocation2 + $0x920] sm:$0xff] }
 0x788   :  { %6377 = vmatpush1.bf16.msra.mxu1 %v6358_v25  ;;  %6408 = vmatprep.mubr.bf16.mxu1 %v11937_v22  ;;  %v6508_v25 = vld [vmem:[#allocation2 + $0x7b0] sm:$0xff] }
 0x789   :  { %6378 = vmatprep.subr.bf16.mxu1 %v6361_v36  ;;  %6481 = vmatmul.mubr.bf16.vlgmr.msra.gmra.mrb[244].mxu0 %v6446_v20  ;;  %v5486_v36 = vunpack.c.0.s8 %v5485_v18  ;;  %v6510_v20 = vld [vmem:[#allocation2 + $0x7c0] sm:$0xff]  ;;  %v6868_v18 = vld [vmem:[#allocation2 + $0xa38] sm:$0xff] }
 0x78a   :  { %6591 = vmatpush1.bf16.msra.mxu0 %v6574_v51  ;;  %6622 = vmatprep.mubr.bf16.mxu0 %v11937_v22  ;;  %v6513_v51 = vld [vmem:[#allocation2 + $0x7d8] sm:$0xff] }
 0x78b   :  { %6592 = vmatprep.subr.bf16.mxu0 %v6577_v56  ;;  %v6723_v56 = vld [vmem:[#allocation2 + $0x930] sm:$0xff] }
 0x78c   :  { %6379 = vmatpush1.bf16.msra.mxu1 %v6360_v45  ;;  %v6724_v45 = vld [vmem:[#allocation2 + $0x938] sm:$0xff] }
 0x78d   :  { %6380 = vmatprep.subr.bf16.mxu1 %v6363_v7  ;;  %v11299_v7 = vsub.s32 %v5486_v36, %v9483_v9  ;;  %v5423_v9 = vld [vmem:[%s11500_s8] sm:$0xf]  ;;  %v6654_v36 = vld [vmem:[#allocation2 + $0x8d0] sm:$0xff]  ;;  %s9280_s8 = smov [#allocation16]  }
 0x78e   :  { %6593 = vmatpush1.bf16.msra.mxu0 %v6576_v2  ;;  %s8018_s7 = sshll.u32 %s9280_s8, 4  ;;  %s8019_s7 = int_to_ptr.vmem [resolvable:$true] %s8018_s7 }
 0x78f   :  { %6594 = vmatprep.subr.bf16.mxu0 %v6579_v42  ;;  %s9224_s21 = scalar_lea.vmem %s8019_s7, 64  ;;  %p9229_p1 = scmp.lt.s32.totalorder %s8019_s7, %s8019_s7 }
 0x790   :  { %6381 = vmatpush1.bf16.msra.mxu1 %v6362_v44  ;;  %v6726_v44 = vld [vmem:[#allocation2 + $0x948] sm:$0xff]  ;;  %p9225_p0 = scmp.ne.s32.totalorder %s8019_s7, %s9224_s21  ;;  %p9230_p2 = scmp.lt.s32.totalorder %s9224_s21, %s9224_s21 }
 0x791   :  { %6382 = vmatprep.subr.bf16.mxu1 %v6365_v53  ;;  %v6512_v53 = vld [vmem:[#allocation2 + $0x7d0] sm:$0xff] }
 0x792   :  { %6595 = vmatpush1.bf16.msra.mxu0 %v6578_v62  ;;  %v6725_v62 = vld [vmem:[#allocation2 + $0x940] sm:$0xff]  ;;  %p9231_p3 = por %p9230_p2, %p9229_p1 }
 0x793   :  { %6596 = vmatprep.subr.bf16.mxu0 %v6581_v46 }
 0x794   :  { %6383 = vmatpush1.bf16.msra.mxu1 %v6364_v31  ;;  %v6515_v31 = vld [vmem:[#allocation2 + $0x7e8] sm:$0xff]  ;;  %p9232_p4 = pnand %p9231_p3, %p9225_p0 }
 0x795   :  { %6384 = vmatprep.subr.bf16.mxu1 %v6367_v54 }
 0x796   :  { %6597 = vmatpush1.bf16.msra.mxu0 %v6580_v4 }
 0x797   :  { %6598 = vmatprep.subr.bf16.mxu0 %v6583_v55  ;;  %v6514_v55 = vld [vmem:[#allocation2 + $0x7e0] sm:$0xff] }
 0x798   :  { %6385 = vmatpush1.bf16.msra.mxu1 %v6366_v35 }
 0x799   :  { %6386 = vmatprep.subr.bf16.mxu1 %v6369_v38  ;;  %v6728_v38 = vld [vmem:[#allocation2 + $0x958] sm:$0xff] }
 0x79a   :  { %v11282_v23 = vpop.f32.mrb[200].mxu1  ;;  %6599 = vmatpush1.bf16.msra.mxu0 %v6582_v0  ;;  %v6727_v0 = vld [vmem:[#allocation2 + $0x950] sm:$0xff] }
 0x79b   :  { %v11284_v59 = vpop.f32.mrb[201].mxu1  ;;  %6600 = vmatprep.subr.bf16.mxu0 %v6585_v27  ;;  %v6730_v27 = vld [vmem:[#allocation2 + $0x968] sm:$0xff] }
 0x79c   :  { %v5483_v12 = vcombine.low %v11282_v23, %v11284_v59  ;;  %v5478_v16 = vpop.f32.mrb[202].mxu1  ;;  %6387 = vmatpush1.bf16.msra.mxu1 %v6368_v61  ;;  %v11288_v47 = vpop.f32.mrb[220].mxu0  ;;  %v6517_v59 = vld [vmem:[#allocation2 + $0x7f8] sm:$0xff] }
 0x79d   :  { %v5479_v5 = vpop.f32.mrb[203].mxu1  ;;  %6388 = vmatprep.subr.bf16.mxu1 %v6371_v50  ;;  %v11290_v17 = vpop.f32.mrb[221].mxu0 }
 0x79e   :  { %v5628_v8 = vcombine.low %v11288_v47, %v11290_v17  ;;  %6601 = vmatpush1.bf16.msra.mxu0 %v6584_v13  ;;  %v5623_v14 = vpop.f32.mrb[222].mxu0  ;;  %v5490_v2 = vrot.slane %v5483_v12, %v11299_v7  ;;  %v6516_v5 = vld [vmem:[#allocation2 + $0x7f0] sm:$0xff]  ;;  %v6645_v13 = vld [vmem:[#allocation2 + $0x888] sm:$0xff]  ;;  %v6729_v17 = vld [vmem:[#allocation2 + $0x960] sm:$0xff] }
 0x79f   :  { %6602 = vmatprep.subr.bf16.mxu0 %v6587_v58  ;;  %v5624_v11 = vpop.f32.mrb[223].mxu0  ;;  %v6644_v14 = vld [vmem:[#allocation2 + $0x880] sm:$0xff] }
 0x7a0   :  { %6389 = vmatpush1.bf16.msra.mxu1 %v6370_v33  ;;  %v5492_v61 = vadd.f32 %v5490_v2, %v5423_v9  ;;  %v5635_v50 = vrot.slane %v5628_v8, %v11299_v7  ;;  %v6732_v8 = vld [vmem:[#allocation2 + $0x978] sm:$0xff]  ;;  %v6862_v11 = vld [vmem:[#allocation2 + $0xa08] sm:$0xff]  ;;  %v6656_v2 = vld [vmem:[#allocation2 + $0x8e0] sm:$0xff] }
 0x7a1   :  { %6390 = vmatprep.subr.bf16.mxu1 %v6373_v39  ;;  %v6659_v9 = vld [vmem:[#allocation2 + $0x8f8] sm:$0xff] }
 0x7a2   :  { %6603 = vmatpush1.bf16.msra.mxu0 %v6586_v19  ;;  %v6731_v19 = vld [vmem:[#allocation2 + $0x970] sm:$0xff] }
 0x7a3   :  { %6604 = vmatprep.subr.bf16.mxu0 %v6589_v34  ;;  %v6646_v34 = vld [vmem:[#allocation2 + $0x890] sm:$0xff] }
 0x7a4   :  { %6391 = vmatpush1.bf16.msra.mxu1 %v6372_v28  ;;  %v6518_v28 = vrot.slane %v11240_v21, 7  ;;  %v6733_v21 = vrot.slane %v11248_v48, 2 }
 0x7a5   :  { %6520 = vmatprep.subr.bf16.mxu1 %v6503_v60 }
 0x7a6   :  { %6605 = vmatpush1.bf16.msra.mxu0 %v6588_v49  ;;  %v6864_v49 = vld [vmem:[#allocation2 + $0xa18] sm:$0xff] }
 0x7a7   :  { %6409 = vmatmul.mubr.bf16.vlgmr.msra.gmra.mrb[228].mxu1 %v6374_v57  ;;  %6735 = vmatprep.subr.bf16.mxu0 %v6718_v3  ;;  %v6647_v57 = vld [vmem:[#allocation2 + $0x898] sm:$0xff]  ;;  %v6648_v3 = vld [vmem:[#allocation2 + $0x8a0] sm:$0xff] }
 0x7a8   :  { %6521 = vmatpush1.bf16.msra.mxu1 %v6502_v24  ;;  %6552 = vmatprep.mubr.bf16.mxu1 %v11937_v22  ;;  %v6649_v24 = vld [vmem:[#allocation2 + $0x8a8] sm:$0xff] }
 0x7a9   :  { %6522 = vmatprep.subr.bf16.mxu1 %v6505_v6  ;;  %6623 = vmatmul.mubr.bf16.vlgmr.msra.gmra.mrb[248].mxu0 %v11248_v48  ;;  %v6861_v6 = vld [vmem:[#allocation2 + $0xa00] sm:$0xff] }
 0x7aa   :  { %6736 = vmatpush1.bf16.msra.mxu0 %v6717_v37  ;;  %6767 = vmatprep.mubr.bf16.mxu0 %v11937_v22  ;;  %v6866_v37 = vld [vmem:[#allocation2 + $0xa28] sm:$0xff] }
 0x7ab   :  { %6737 = vmatprep.subr.bf16.mxu0 %v6720_v40  ;;  %v6650_v40 = vld [vmem:[#allocation2 + $0x8b0] sm:$0xff] }
 0x7ac   :  { %6523 = vmatpush1.bf16.msra.mxu1 %v6504_v52  ;;  %v6651_v52 = vld [vmem:[#allocation2 + $0x8b8] sm:$0xff] }
 0x7ad   :  { %6524 = vmatprep.subr.bf16.mxu1 %v6507_v32  ;;  %v6863_v32 = vld [vmem:[#allocation2 + $0xa10] sm:$0xff] }
 0x7ae   :  { %6738 = vmatpush1.bf16.msra.mxu0 %v6719_v10  ;;  %v6655_v10 = vld [vmem:[#allocation2 + $0x8d8] sm:$0xff] }
 0x7af   :  { %6739 = vmatprep.subr.bf16.mxu0 %v6722_v1  ;;  %v6867_v1 = vld [vmem:[#allocation2 + $0xa30] sm:$0xff] }
 0x7b0   :  { %6525 = vmatpush1.bf16.msra.mxu1 %v6506_v15  ;;  %v6653_v15 = vld [vmem:[#allocation2 + $0x8c8] sm:$0xff] }
 0x7b1   :  { %6526 = vmatprep.subr.bf16.mxu1 %v6509_v29  ;;  %v6652_v29 = vld [vmem:[#allocation2 + $0x8c0] sm:$0xff] }
 0x7b2   :  { %6740 = vmatpush1.bf16.msra.mxu0 %v6721_v43  ;;  %v6657_v43 = vld [vmem:[#allocation2 + $0x8e8] sm:$0xff] }
 0x7b3   :  { %6741 = vmatprep.subr.bf16.mxu0 %v6724_v45 }
 0x7b4   :  { %6527 = vmatpush1.bf16.msra.mxu1 %v6508_v25  ;;  %v6870_v25 = vld [vmem:[#allocation2 + $0xa48] sm:$0xff] }
 0x7b5   :  { %6528 = vmatprep.subr.bf16.mxu1 %v6511_v41 }
 0x7b6   :  { %6742 = vmatpush1.bf16.msra.mxu0 %v6723_v56 }
 0x7b7   :  { %6743 = vmatprep.subr.bf16.mxu0 %v6726_v44  ;;  %v6872_v44 = vld [vmem:[#allocation2 + $0xa58] sm:$0xff] }
 0x7b8   :  { %6529 = vmatpush1.bf16.msra.mxu1 %v6510_v20  ;;  %v6869_v20 = vld [vmem:[#allocation2 + $0xa40] sm:$0xff] }
 0x7b9   :  { %6530 = vmatprep.subr.bf16.mxu1 %v6513_v51 }
 0x7ba   :  { %v5547_v42 = vpop.f32.mrb[204].mxu1  ;;  %6744 = vmatpush1.bf16.msra.mxu0 %v6725_v62 }
 0x7bb   :  { %v5549_v54 = vpop.f32.mrb[205].mxu1  ;;  %6745 = vmatprep.subr.bf16.mxu0 %v6728_v38  ;;  %v6658_v38 = vld [vmem:[#allocation2 + $0x8f0] sm:$0xff] }
 0x7bc   :  { %v5556_v46 = vcombine.low %v5547_v42, %v5549_v54  ;;  %v5551_v35 = vpop.f32.mrb[206].mxu1  ;;  %6531 = vmatpush1.bf16.msra.mxu1 %v6512_v53  ;;  %v11313_v16 = vpop.f32.mrb[224].mxu0  ;;  %v6871_v54 = vld [vmem:[#allocation2 + $0xa50] sm:$0xff] }
 0x7bd   :  { %v5552_v4 = vpop.f32.mrb[207].mxu1  ;;  %6532 = vmatprep.subr.bf16.mxu1 %v6515_v31  ;;  %v11315_v33 = vpop.f32.mrb[225].mxu0  ;;  %v6874_v35 = vld [vmem:[#allocation2 + $0xa68] sm:$0xff] }
 0x7be   :  { %v5563_v23 = vrot.slane %v5556_v46, %v11299_v7  ;;  %v5772_v47 = vcombine.low %v11313_v16, %v11315_v33  ;;  %6746 = vmatpush1.bf16.msra.mxu0 %v6727_v0  ;;  %v5767_v58 = vpop.f32.mrb[226].mxu0  ;;  %v6873_v0 = vld [vmem:[#allocation2 + $0xa60] sm:$0xff]  ;;  %v6876_v16 = vld [vmem:[#allocation2 + $0xa78] sm:$0xff]  ;;  %v6875_v33 = vld [vmem:[#allocation2 + $0xa70] sm:$0xff] }
 0x7bf   :  { %6747 = vmatprep.subr.bf16.mxu0 %v6730_v27  ;;  %v5768_v60 = vpop.f32.mrb[227].mxu0  ;;  %v6789_v27 = vld [vmem:[#allocation2 + $0x980] sm:$0xff]  ;;  %v6794_v58 = vld [vmem:[#allocation2 + $0x9a8] sm:$0xff] }
 0x7c0   :  { %v5565_v12 = vadd.f32 %v5563_v23, %v5492_v61  ;;  %6533 = vmatpush1.bf16.msra.mxu1 %v6514_v55  ;;  %v5779_v31 = vrot.slane %v5772_v47, %v11299_v7  ;;  %v6790_v61 = vld [vmem:[#allocation2 + $0x988] sm:$0xff]  ;;  %v6877_v47 = vrot.slane %v11248_v48, 4  ;;  %v6793_v60 = vld [vmem:[#allocation2 + $0x9a0] sm:$0xff] }
 0x7c1   :  { %6534 = vmatprep.subr.bf16.mxu1 %v6517_v59  ;;  %v6661_v59 = vrot.slane %v11248_v48, 1 }
 0x7c2   :  { %v11317_v39 = vadd.f32 %v5635_v50, %v5565_v12  ;;  %6748 = vmatpush1.bf16.msra.mxu0 %v6729_v17  ;;  %v7008_v17 = vld [vmem:[#allocation2 + $0xb18] sm:$0xff] }
 0x7c3   :  { %6749 = vmatprep.subr.bf16.mxu0 %v6732_v8  ;;  %v6796_v8 = vld [vmem:[#allocation2 + $0x9b8] sm:$0xff] }
 0x7c4   :  { %6535 = vmatpush1.bf16.msra.mxu1 %v6516_v5  ;;  %v6792_v5 = vld [vmem:[#allocation2 + $0x998] sm:$0xff] }
 0x7c5   :  { %6663 = vmatprep.subr.bf16.mxu1 %v6645_v13  ;;  %v6791_v13 = vld [vmem:[#allocation2 + $0x990] sm:$0xff] }
 0x7c6   :  { %6750 = vmatpush1.bf16.msra.mxu0 %v6731_v19  ;;  %v6795_v19 = vld [vmem:[#allocation2 + $0x9b0] sm:$0xff] }
 0x7c7   :  { %6553 = vmatmul.mubr.bf16.vlgmr.msra.gmra.mrb[232].mxu1 %v6518_v28  ;;  %6879 = vmatprep.subr.bf16.mxu0 %v6862_v11  ;;  %v7005_v28 = vld [vmem:[#allocation2 + $0xb00] sm:$0xff]  ;;  %v6798_v11 = vld [vmem:[#allocation2 + $0x9c8] sm:$0xff] }
 0x7c8   :  { %6664 = vmatpush1.bf16.msra.mxu1 %v6644_v14  ;;  %6695 = vmatprep.mubr.bf16.mxu1 %v11937_v22  ;;  %v7007_v14 = vld [vmem:[#allocation2 + $0xb10] sm:$0xff] }
 0x7c9   :  { %6665 = vmatprep.subr.bf16.mxu1 %v6647_v57  ;;  %6768 = vmatmul.mubr.bf16.vlgmr.msra.gmra.mrb[252].mxu0 %v6733_v21  ;;  %v7010_v57 = vld [vmem:[#allocation2 + $0xb28] sm:$0xff]  ;;  %v7012_v21 = vld [vmem:[#allocation2 + $0xb38] sm:$0xff] }
 0x7ca   :  { %6880 = vmatpush1.bf16.msra.mxu0 %v6861_v6  ;;  %6911 = vmatprep.mubr.bf16.mxu0 %v11937_v22  ;;  %v6800_v6 = vld [vmem:[#allocation2 + $0x9d8] sm:$0xff] }
 0x7cb   :  { %6881 = vmatprep.subr.bf16.mxu0 %v6864_v49  ;;  %v7011_v49 = vld [vmem:[#allocation2 + $0xb30] sm:$0xff] }
 0x7cc   :  { %6666 = vmatpush1.bf16.msra.mxu1 %v6646_v34  ;;  %v7009_v34 = vld [vmem:[#allocation2 + $0xb20] sm:$0xff] }
 0x7cd   :  { %6667 = vmatprep.subr.bf16.mxu1 %v6649_v24  ;;  %v6797_v24 = vld [vmem:[#allocation2 + $0x9c0] sm:$0xff] }
 0x7ce   :  { %6882 = vmatpush1.bf16.msra.mxu0 %v6863_v32 }
 0x7cf   :  { %6883 = vmatprep.subr.bf16.mxu0 %v6866_v37  ;;  %v6802_v37 = vld [vmem:[#allocation2 + $0x9e8] sm:$0xff] }
 0x7d0   :  { %6668 = vmatpush1.bf16.msra.mxu1 %v6648_v3  ;;  %v7014_v3 = vld [vmem:[#allocation2 + $0xb48] sm:$0xff] }
 0x7d1   :  { %6669 = vmatprep.subr.bf16.mxu1 %v6651_v52  ;;  %v6799_v52 = vld [vmem:[#allocation2 + $0x9d0] sm:$0xff] }
 0x7d2   :  { %6884 = vmatpush1.bf16.msra.mxu0 %v6865_v63 }
 0x7d3   :  { %6885 = vmatprep.subr.bf16.mxu0 %v6868_v18 }
 0x7d4   :  { %6670 = vmatpush1.bf16.msra.mxu1 %v6650_v40 }
 0x7d5   :  { %6671 = vmatprep.subr.bf16.mxu1 %v6653_v15  ;;  %v7013_v15 = vld [vmem:[#allocation2 + $0xb40] sm:$0xff] }
 0x7d6   :  { %6886 = vmatpush1.bf16.msra.mxu0 %v6867_v1  ;;  %v6801_v1 = vld [vmem:[#allocation2 + $0x9e0] sm:$0xff] }
 0x7d7   :  { %6887 = vmatprep.subr.bf16.mxu0 %v6870_v25 }
 0x7d8   :  { %6672 = vmatpush1.bf16.msra.mxu1 %v6652_v29  ;;  %v7016_v29 = vld [vmem:[#allocation2 + $0xb58] sm:$0xff] }
 0x7d9   :  { %6673 = vmatprep.subr.bf16.mxu1 %v6655_v10 }
 0x7da   :  { %v5691_v41 = vpop.f32.mrb[208].mxu1  ;;  %6888 = vmatpush1.bf16.msra.mxu0 %v6869_v20 }
 0x7db   :  { %v5693_v45 = vpop.f32.mrb[209].mxu1  ;;  %6889 = vmatprep.subr.bf16.mxu0 %v6872_v44 }
 0x7dc   :  { %v5700_v51 = vcombine.low %v5691_v41, %v5693_v45  ;;  %v5695_v56 = vpop.f32.mrb[210].mxu1  ;;  %6674 = vmatpush1.bf16.msra.mxu1 %v6654_v36  ;;  %v11331_v46 = vpop.f32.mrb[228].mxu0  ;;  %v6804_v41 = vld [vmem:[#allocation2 + $0x9f8] sm:$0xff] }
 0x7dd   :  { %v5696_v53 = vpop.f32.mrb[211].mxu1  ;;  %6675 = vmatprep.subr.bf16.mxu1 %v6657_v43  ;;  %v11333_v4 = vpop.f32.mrb[229].mxu0  ;;  %v7015_v43 = vld [vmem:[#allocation2 + $0xb50] sm:$0xff] }
 0x7de   :  { %v5707_v42 = vrot.slane %v5700_v51, %v11299_v7  ;;  %v5916_v23 = vcombine.low %v11331_v46, %v11333_v4  ;;  %6890 = vmatpush1.bf16.msra.mxu0 %v6871_v54  ;;  %v5911_v50 = vpop.f32.mrb[230].mxu0  ;;  %v7018_v51 = vld [vmem:[#allocation2 + $0xb68] sm:$0xff]  ;;  %v6803_v56 = vld [vmem:[#allocation2 + $0x9f0] sm:$0xff]  ;;  %v7017_v54 = vld [vmem:[#allocation2 + $0xb60] sm:$0xff] }
 0x7df   :  { %6891 = vmatprep.subr.bf16.mxu0 %v6874_v35  ;;  %v5912_v12 = vpop.f32.mrb[231].mxu0  ;;  %v7020_v46 = vld [vmem:[#allocation2 + $0xb78] sm:$0xff]  ;;  %v6933_v35 = vld [vmem:[#allocation2 + $0xa80] sm:$0xff]  ;;  %v7019_v4 = vld [vmem:[#allocation2 + $0xb70] sm:$0xff] }
 0x7e0   :  { %v5709_v62 = vadd.f32 %v5707_v42, %v11317_v39  ;;  %6676 = vmatpush1.bf16.msra.mxu1 %v6656_v2  ;;  %v7006_v39 = vld [vmem:[#allocation2 + $0xb08] sm:$0xff]  ;;  %v5923_v36 = vrot.slane %v5916_v23, %v11299_v7  ;;  %v7021_v23 = vrot.slane %v11248_v48, 6  ;;  %v6937_v12 = vld [vmem:[#allocation2 + $0xaa0] sm:$0xff] }
 0x7e1   :  { %6677 = vmatprep.subr.bf16.mxu1 %v6659_v9  ;;  %v6934_v2 = vld [vmem:[#allocation2 + $0xa88] sm:$0xff]  ;;  %v6805_v9 = vrot.slane %v11248_v48, 3 }
 0x7e2   :  { %v11335_v55 = vadd.f32 %v5779_v31, %v5709_v62  ;;  %6892 = vmatpush1.bf16.msra.mxu0 %v6873_v0  ;;  %v6938_v50 = vld [vmem:[#allocation2 + $0xaa8] sm:$0xff]  ;;  %v7152_v0 = vld [vmem:[#allocation2 + $0xc18] sm:$0xff] }
 0x7e3   :  { %6893 = vmatprep.subr.bf16.mxu0 %v6876_v16  ;;  %v6940_v16 = vld [vmem:[#allocation2 + $0xab8] sm:$0xff] }
 0x7e4   :  { %6678 = vmatpush1.bf16.msra.mxu1 %v6658_v38  ;;  %v6936_v38 = vld [vmem:[#allocation2 + $0xa98] sm:$0xff] }
 0x7e5   :  { %6807 = vmatprep.subr.bf16.mxu1 %v6790_v61  ;;  %v6935_v61 = vld [vmem:[#allocation2 + $0xa90] sm:$0xff] }
 0x7e6   :  { %6894 = vmatpush1.bf16.msra.mxu0 %v6875_v33  ;;  %v6939_v33 = vld [vmem:[#allocation2 + $0xab0] sm:$0xff] }
 0x7e7   :  { %6696 = vmatmul.mubr.bf16.vlgmr.msra.gmra.mrb[236].mxu1 %v6661_v59  ;;  %7023 = vmatprep.subr.bf16.mxu0 %v7006_v39  ;;  %v7149_v59 = vld [vmem:[#allocation2 + $0xc00] sm:$0xff]  ;;  %v6942_v39 = vld [vmem:[#allocation2 + $0xac8] sm:$0xff] }
 0x7e8   :  { %6808 = vmatpush1.bf16.msra.mxu1 %v6789_v27  ;;  %6839 = vmatprep.mubr.bf16.mxu1 %v11937_v22  ;;  %v7151_v27 = vld [vmem:[#allocation2 + $0xc10] sm:$0xff] }
 0x7e9   :  { %6809 = vmatprep.subr.bf16.mxu1 %v6792_v5  ;;  %6912 = vmatmul.mubr.bf16.vlgmr.msra.gmra.mrb[0].mxu0 %v6877_v47  ;;  %v7154_v5 = vld [vmem:[#allocation2 + $0xc28] sm:$0xff]  ;;  %v7156_v47 = vld [vmem:[#allocation2 + $0xc38] sm:$0xff] }
 0x7ea   :  { %7024 = vmatpush1.bf16.msra.mxu0 %v7005_v28  ;;  %7055 = vmatprep.mubr.bf16.mxu0 %v11937_v22  ;;  %v6944_v28 = vld [vmem:[#allocation2 + $0xad8] sm:$0xff] }
 0x7eb   :  { %7025 = vmatprep.subr.bf16.mxu0 %v7008_v17  ;;  %v7155_v17 = vld [vmem:[#allocation2 + $0xc30] sm:$0xff] }
 0x7ec   :  { %6810 = vmatpush1.bf16.msra.mxu1 %v6791_v13  ;;  %v7153_v13 = vld [vmem:[#allocation2 + $0xc20] sm:$0xff] }
 0x7ed   :  { %6811 = vmatprep.subr.bf16.mxu1 %v6794_v58  ;;  %v6941_v58 = vld [vmem:[#allocation2 + $0xac0] sm:$0xff] }
 0x7ee   :  { %7026 = vmatpush1.bf16.msra.mxu0 %v7007_v14 }
 0x7ef   :  { %7027 = vmatprep.subr.bf16.mxu0 %v7010_v57  ;;  %v6946_v57 = vld [vmem:[#allocation2 + $0xae8] sm:$0xff] }
 0x7f0   :  { %6812 = vmatpush1.bf16.msra.mxu1 %v6793_v60  ;;  %v7158_v60 = vld [vmem:[#allocation2 + $0xc48] sm:$0xff] }
 0x7f1   :  { %6813 = vmatprep.subr.bf16.mxu1 %v6796_v8  ;;  %v6943_v8 = vld [vmem:[#allocation2 + $0xad0] sm:$0xff] }
 0x7f2   :  { %7028 = vmatpush1.bf16.msra.mxu0 %v7009_v34 }
 0x7f3   :  { %7029 = vmatprep.subr.bf16.mxu0 %v7012_v21 }
 0x7f4   :  { %6814 = vmatpush1.bf16.msra.mxu1 %v6795_v19 }
 0x7f5   :  { %6815 = vmatprep.subr.bf16.mxu1 %v6798_v11  ;;  %v7157_v11 = vld [vmem:[#allocation2 + $0xc40] sm:$0xff] }
 0x7f6   :  { %7030 = vmatpush1.bf16.msra.mxu0 %v7011_v49  ;;  %v6945_v49 = vld [vmem:[#allocation2 + $0xae0] sm:$0xff] }
 0x7f7   :  { %7031 = vmatprep.subr.bf16.mxu0 %v7014_v3 }
 0x7f8   :  { %6816 = vmatpush1.bf16.msra.mxu1 %v6797_v24  ;;  %v7160_v24 = vld [vmem:[#allocation2 + $0xc58] sm:$0xff] }
 0x7f9   :  { %6817 = vmatprep.subr.bf16.mxu1 %v6800_v6 }
 0x7fa   :  { %v5835_v32 = vpop.f32.mrb[212].mxu1  ;;  %7032 = vmatpush1.bf16.msra.mxu0 %v7013_v15 }
 0x7fb   :  { %v5837_v40 = vpop.f32.mrb[213].mxu1  ;;  %7033 = vmatprep.subr.bf16.mxu0 %v7016_v29 }
 0x7fc   :  { %v5844_v63 = vcombine.low %v5835_v32, %v5837_v40  ;;  %v5839_v18 = vpop.f32.mrb[214].mxu1  ;;  %6818 = vmatpush1.bf16.msra.mxu1 %v6799_v52  ;;  %v11349_v20 = vpop.f32.mrb[232].mxu0  ;;  %v6948_v32 = vld [vmem:[#allocation2 + $0xaf8] sm:$0xff] }
 0x7fd   :  { %v5840_v10 = vpop.f32.mrb[215].mxu1  ;;  %6819 = vmatprep.subr.bf16.mxu1 %v6802_v37  ;;  %v11351_v44 = vpop.f32.mrb[233].mxu0  ;;  %v7159_v37 = vld [vmem:[#allocation2 + $0xc50] sm:$0xff] }
 0x7fe   :  { %v5851_v25 = vrot.slane %v5844_v63, %v11299_v7  ;;  %v6058_v42 = vcombine.low %v11349_v20, %v11351_v44  ;;  %7034 = vmatpush1.bf16.msra.mxu0 %v7015_v43  ;;  %v6053_v31 = vpop.f32.mrb[234].mxu0  ;;  %v7162_v63 = vld [vmem:[#allocation2 + $0xc68] sm:$0xff]  ;;  %v6947_v18 = vld [vmem:[#allocation2 + $0xaf0] sm:$0xff]  ;;  %v7161_v43 = vld [vmem:[#allocation2 + $0xc60] sm:$0xff] }
 0x7ff   :  { %7035 = vmatprep.subr.bf16.mxu0 %v7018_v51  ;;  %v6054_v62 = vpop.f32.mrb[235].mxu0  ;;  %v7164_v20 = vld [vmem:[#allocation2 + $0xc78] sm:$0xff]  ;;  %v7077_v51 = vld [vmem:[#allocation2 + $0xb80] sm:$0xff]  ;;  %v7163_v44 = vld [vmem:[#allocation2 + $0xc70] sm:$0xff] }
 0x800   :  { %v5853_v45 = vadd.f32 %v5851_v25, %v11335_v55  ;;  %6820 = vmatpush1.bf16.msra.mxu1 %v6801_v1  ;;  %v7150_v55 = vld [vmem:[#allocation2 + $0xc08] sm:$0xff]  ;;  %v6065_v52 = vrot.slane %v6058_v42, %v11299_v7  ;;  %v7292_v31 = vld [vmem:[#allocation2 + $0xd00] sm:$0xff]  ;;  %v7084_v62 = vld [vmem:[#allocation2 + $0xbb8] sm:$0xff] }
 0x801   :  { %6821 = vmatprep.subr.bf16.mxu1 %v6804_v41  ;;  %v7078_v1 = vld [vmem:[#allocation2 + $0xb88] sm:$0xff]  ;;  %v6949_v41 = vrot.slane %v11248_v48, 5 }
 0x802   :  { %v11353_v53 = vadd.f32 %v5923_v36, %v5853_v45  ;;  %7036 = vmatpush1.bf16.msra.mxu0 %v7017_v54  ;;  %v7082_v42 = vld [vmem:[#allocation2 + $0xba8] sm:$0xff]  ;;  %v7081_v54 = vld [vmem:[#allocation2 + $0xba0] sm:$0xff] }
 0x803   :  { %7037 = vmatprep.subr.bf16.mxu0 %v7020_v46  ;;  %v7294_v46 = vld [vmem:[#allocation2 + $0xd10] sm:$0xff] }
 0x804   :  { %6822 = vmatpush1.bf16.msra.mxu1 %v6803_v56  ;;  %v7080_v56 = vld [vmem:[#allocation2 + $0xb98] sm:$0xff] }
 0x805   :  { %6951 = vmatprep.subr.bf16.mxu1 %v6934_v2  ;;  %v7079_v2 = vld [vmem:[#allocation2 + $0xb90] sm:$0xff] }
 0x806   :  { %7038 = vmatpush1.bf16.msra.mxu0 %v7019_v4  ;;  %v7086_v4 = vld [vmem:[#allocation2 + $0xbc8] sm:$0xff] }
 0x807   :  { %6840 = vmatmul.mubr.bf16.vlgmr.msra.gmra.mrb[240].mxu1 %v6805_v9  ;;  %7165 = vmatprep.subr.bf16.mxu0 %v7150_v55  ;;  %v7295_v9 = vld [vmem:[#allocation2 + $0xd18] sm:$0xff]  ;;  %v7296_v55 = vld [vmem:[#allocation2 + $0xd20] sm:$0xff] }
 0x808   :  { %6952 = vmatpush1.bf16.msra.mxu1 %v6933_v35  ;;  %6983 = vmatprep.mubr.bf16.mxu1 %v11937_v22  ;;  %v7297_v35 = vld [vmem:[#allocation2 + $0xd28] sm:$0xff] }
 0x809   :  { %6953 = vmatprep.subr.bf16.mxu1 %v6936_v38  ;;  %7056 = vmatmul.mubr.bf16.vlgmr.msra.gmra.mrb[4].mxu0 %v7021_v23  ;;  %v7083_v38 = vld [vmem:[#allocation2 + $0xbb0] sm:$0xff]  ;;  %v7085_v23 = vld [vmem:[#allocation2 + $0xbc0] sm:$0xff] }
 0x80a   :  { %7166 = vmatpush1.bf16.msra.mxu0 %v7149_v59  ;;  %7197 = vmatprep.mubr.bf16.mxu0 %v11937_v22  ;;  %v7298_v59 = vld [vmem:[#allocation2 + $0xd30] sm:$0xff] }
 0x80b   :  { %7167 = vmatprep.subr.bf16.mxu0 %v7152_v0  ;;  %v7301_v0 = vld [vmem:[#allocation2 + $0xd48] sm:$0xff] }
 0x80c   :  { %6954 = vmatpush1.bf16.msra.mxu1 %v6935_v61  ;;  %v7299_v61 = vld [vmem:[#allocation2 + $0xd38] sm:$0xff] }
 0x80d   :  { %6955 = vmatprep.subr.bf16.mxu1 %v6938_v50  ;;  %v7088_v50 = vld [vmem:[#allocation2 + $0xbd8] sm:$0xff] }
 0x80e   :  { %7168 = vmatpush1.bf16.msra.mxu0 %v7151_v27  ;;  %v7090_v27 = vld [vmem:[#allocation2 + $0xbe8] sm:$0xff] }
 0x80f   :  { %7169 = vmatprep.subr.bf16.mxu0 %v7154_v5 }
 0x810   :  { %6956 = vmatpush1.bf16.msra.mxu1 %v6937_v12  ;;  %v7087_v12 = vld [vmem:[#allocation2 + $0xbd0] sm:$0xff] }
 0x811   :  { %6957 = vmatprep.subr.bf16.mxu1 %v6940_v16 }
 0x812   :  { %7170 = vmatpush1.bf16.msra.mxu0 %v7153_v13 }
 0x813   :  { %7171 = vmatprep.subr.bf16.mxu0 %v7156_v47  ;;  %v7303_v47 = vld [vmem:[#allocation2 + $0xd58] sm:$0xff] }
 0x814   :  { %6958 = vmatpush1.bf16.msra.mxu1 %v6939_v33  ;;  %v7300_v33 = vld [vmem:[#allocation2 + $0xd40] sm:$0xff] }
 0x815   :  { %6959 = vmatprep.subr.bf16.mxu1 %v6942_v39 }
 0x816   :  { %7172 = vmatpush1.bf16.msra.mxu0 %v7155_v17 }
 0x817   :  { %7173 = vmatprep.subr.bf16.mxu0 %v7158_v60 }
 0x818   :  { %6960 = vmatpush1.bf16.msra.mxu1 %v6941_v58 }
 0x819   :  { %6961 = vmatprep.subr.bf16.mxu1 %v6944_v28  ;;  %v7089_v28 = vld [vmem:[#allocation2 + $0xbe0] sm:$0xff] }
 0x81a   :  { %v5979_v14 = vpop.f32.mrb[216].mxu1  ;;  %7174 = vmatpush1.bf16.msra.mxu0 %v7157_v11  ;;  %v7305_v11 = vld [vmem:[#allocation2 + $0xd68] sm:$0xff] }
 0x81b   :  { %v5981_v19 = vpop.f32.mrb[217].mxu1  ;;  %7175 = vmatprep.subr.bf16.mxu0 %v7160_v24 }
 0x81c   :  { %v5988_v34 = vcombine.low %v5979_v14, %v5981_v19  ;;  %v5983_v21 = vpop.f32.mrb[218].mxu1  ;;  %6962 = vmatpush1.bf16.msra.mxu1 %v6943_v8  ;;  %v11367_v15 = vpop.f32.mrb[236].mxu0  ;;  %v7092_v8 = vld [vmem:[#allocation2 + $0xbf8] sm:$0xff]  ;;  %v7302_v14 = vld [vmem:[#allocation2 + $0xd50] sm:$0xff] }
 0x81d   :  { %v5984_v6 = vpop.f32.mrb[219].mxu1  ;;  %6963 = vmatprep.subr.bf16.mxu1 %v6946_v57  ;;  %v11369_v29 = vpop.f32.mrb[237].mxu0 }
 0x81e   :  { %v5995_v3 = vrot.slane %v5988_v34, %v11299_v7  ;;  %v6203_v25 = vcombine.low %v11367_v15, %v11369_v29  ;;  %7176 = vmatpush1.bf16.msra.mxu0 %v7159_v37  ;;  %v6198_v36 = vpop.f32.mrb[238].mxu0  ;;  %v7091_v34 = vld [vmem:[#allocation2 + $0xbf0] sm:$0xff]  ;;  %v7220_v6 = vld [vmem:[#allocation2 + $0xc88] sm:$0xff]  ;;  %v7219_v15 = vld [vmem:[#allocation2 + $0xc80] sm:$0xff] }
 0x81f   :  { %7177 = vmatprep.subr.bf16.mxu0 %v7162_v63  ;;  %v6199_v45 = vpop.f32.mrb[239].mxu0  ;;  %v7222_v63 = vld [vmem:[#allocation2 + $0xc98] sm:$0xff]  ;;  %v7437_v29 = vld [vmem:[#allocation2 + $0xe08] sm:$0xff] }
 0x820   :  { %v5997_v40 = vadd.f32 %v5995_v3, %v11353_v53  ;;  %6964 = vmatpush1.bf16.msra.mxu1 %v6945_v49  ;;  %v7293_v53 = vld [vmem:[#allocation2 + $0xd08] sm:$0xff]  ;;  %v6210_v60 = vrot.slane %v6203_v25, %v11299_v7  ;;  %v7436_v25 = vld [vmem:[#allocation2 + $0xe00] sm:$0xff]  ;;  %v7439_v36 = vld [vmem:[#allocation2 + $0xe18] sm:$0xff] }
 0x821   :  { %6965 = vmatprep.subr.bf16.mxu1 %v6948_v32  ;;  %v7304_v32 = vld [vmem:[#allocation2 + $0xd60] sm:$0xff]  ;;  %v7438_v45 = vld [vmem:[#allocation2 + $0xe10] sm:$0xff] }
 0x822   :  { %v11371_v10 = vadd.f32 %v6065_v52, %v5997_v40  ;;  %7178 = vmatpush1.bf16.msra.mxu0 %v7161_v43  ;;  %v7093_v52 = vrot.slane %v11248_v48, 7  ;;  %v7307_v40 = vld [vmem:[#allocation2 + $0xd78] sm:$0xff]  ;;  %v7308_v48 = vrot.slane %v11250_v30, 2 }
 0x823   :  { %7179 = vmatprep.subr.bf16.mxu0 %v7164_v20  ;;  %v7226_v43 = vld [vmem:[#allocation2 + $0xcb8] sm:$0xff]  ;;  %v7441_v20 = vld [vmem:[#allocation2 + $0xe28] sm:$0xff] }
 0x824   :  { %6966 = vmatpush1.bf16.msra.mxu1 %v6947_v18  ;;  %v7306_v18 = vld [vmem:[#allocation2 + $0xd70] sm:$0xff] }
 0x825   :  { %7095 = vmatprep.subr.bf16.mxu1 %v7078_v1  ;;  %v7224_v1 = vld [vmem:[#allocation2 + $0xca8] sm:$0xff] }
 0x826   :  { %7180 = vmatpush1.bf16.msra.mxu0 %v7163_v44  ;;  %v7440_v44 = vld [vmem:[#allocation2 + $0xe20] sm:$0xff] }
 0x827   :  { %6984 = vmatmul.mubr.bf16.vlgmr.msra.gmra.mrb[244].mxu1 %v6949_v41  ;;  %7310 = vmatprep.subr.bf16.mxu0 %v7293_v53  ;;  %v7223_v41 = vld [vmem:[#allocation2 + $0xca0] sm:$0xff]  ;;  %v7443_v53 = vld [vmem:[#allocation2 + $0xe38] sm:$0xff] }
 0x828   :  { %7096 = vmatpush1.bf16.msra.mxu1 %v7077_v51  ;;  %7127 = vmatprep.mubr.bf16.mxu1 %v11937_v22  ;;  %v7225_v51 = vld [vmem:[#allocation2 + $0xcb0] sm:$0xff] }
 0x829   :  { %7097 = vmatprep.subr.bf16.mxu1 %v7080_v56  ;;  %7198 = vmatmul.mubr.bf16.vlgmr.msra.gmra.mrb[8].mxu0 %v11250_v30  ;;  %v7228_v56 = vld [vmem:[#allocation2 + $0xcc8] sm:$0xff] }
 0x82a   :  { %7311 = vmatpush1.bf16.msra.mxu0 %v7292_v31  ;;  %7342 = vmatprep.mubr.bf16.mxu0 %v11937_v22  ;;  %v7442_v31 = vld [vmem:[#allocation2 + $0xe30] sm:$0xff] }
 0x82b   :  { %7312 = vmatprep.subr.bf16.mxu0 %v7295_v9  ;;  %v7445_v9 = vld [vmem:[#allocation2 + $0xe48] sm:$0xff] }
 0x82c   :  { %7098 = vmatpush1.bf16.msra.mxu1 %v7079_v2  ;;  %v7227_v2 = vld [vmem:[#allocation2 + $0xcc0] sm:$0xff] }
 0x82d   :  { %7099 = vmatprep.subr.bf16.mxu1 %v7082_v42  ;;  %v7230_v42 = vld [vmem:[#allocation2 + $0xcd8] sm:$0xff] }
 0x82e   :  { %7313 = vmatpush1.bf16.msra.mxu0 %v7294_v46  ;;  %v7232_v46 = vld [vmem:[#allocation2 + $0xce8] sm:$0xff] }
 0x82f   :  { %7314 = vmatprep.subr.bf16.mxu0 %v7297_v35 }
 0x830   :  { %7100 = vmatpush1.bf16.msra.mxu1 %v7081_v54  ;;  %v7229_v54 = vld [vmem:[#allocation2 + $0xcd0] sm:$0xff] }
 0x831   :  { %7101 = vmatprep.subr.bf16.mxu1 %v7084_v62 }
 0x832   :  { %7315 = vmatpush1.bf16.msra.mxu0 %v7296_v55 }
 0x833   :  { %7316 = vmatprep.subr.bf16.mxu0 %v7299_v61  ;;  %v7447_v61 = vld [vmem:[#allocation2 + $0xe58] sm:$0xff] }
 0x834   :  { %7102 = vmatpush1.bf16.msra.mxu1 %v7083_v38  ;;  %v7444_v38 = vld [vmem:[#allocation2 + $0xe40] sm:$0xff] }
 0x835   :  { %7103 = vmatprep.subr.bf16.mxu1 %v7086_v4 }
 0x836   :  { %7317 = vmatpush1.bf16.msra.mxu0 %v7298_v59 }
 0x837   :  { %7318 = vmatprep.subr.bf16.mxu0 %v7301_v0 }
 0x838   :  { %7104 = vmatpush1.bf16.msra.mxu1 %v7085_v23 }
 0x839   :  { %7105 = vmatprep.subr.bf16.mxu1 %v7088_v50  ;;  %v7231_v50 = vld [vmem:[#allocation2 + $0xce0] sm:$0xff] }
 0x83a   :  { %v6122_v16 = vpop.f32.mrb[220].mxu1  ;;  %7319 = vmatpush1.bf16.msra.mxu0 %v7300_v33  ;;  %v7449_v33 = vld [vmem:[#allocation2 + $0xe68] sm:$0xff] }
 0x83b   :  { %v6124_v5 = vpop.f32.mrb[221].mxu1  ;;  %7320 = vmatprep.subr.bf16.mxu0 %v7303_v47 }
 0x83c   :  { %v6131_v39 = vcombine.low %v6122_v16, %v6124_v5  ;;  %v6126_v13 = vpop.f32.mrb[222].mxu1  ;;  %7106 = vmatpush1.bf16.msra.mxu1 %v7087_v12  ;;  %v11385_v19 = vpop.f32.mrb[240].mxu0  ;;  %v7234_v12 = vld [vmem:[#allocation2 + $0xcf8] sm:$0xff]  ;;  %v7446_v16 = vld [vmem:[#allocation2 + $0xe50] sm:$0xff] }
 0x83d   :  { %v6127_v58 = vpop.f32.mrb[223].mxu1  ;;  %7107 = vmatprep.subr.bf16.mxu1 %v7090_v27  ;;  %v11387_v21 = vpop.f32.mrb[241].mxu0 }
 0x83e   :  { %v6138_v17 = vrot.slane %v6131_v39, %v11299_v7  ;;  %v6347_v49 = vcombine.low %v11385_v19, %v11387_v21  ;;  %7321 = vmatpush1.bf16.msra.mxu0 %v7302_v14  ;;  %v6342_v3 = vpop.f32.mrb[242].mxu0  ;;  %v7233_v39 = vld [vmem:[#allocation2 + $0xcf0] sm:$0xff]  ;;  %v7365_v58 = vld [vmem:[#allocation2 + $0xd88] sm:$0xff]  ;;  %v7364_v19 = vld [vmem:[#allocation2 + $0xd80] sm:$0xff] }
 0x83f   :  { %7322 = vmatprep.subr.bf16.mxu0 %v7305_v11  ;;  %v6343_v37 = vpop.f32.mrb[243].mxu0  ;;  %v7367_v11 = vld [vmem:[#allocation2 + $0xd98] sm:$0xff]  ;;  %v7581_v21 = vld [vmem:[#allocation2 + $0xf08] sm:$0xff]  ;;  %v7580_v3 = vld [vmem:[#allocation2 + $0xf00] sm:$0xff] }
 0x840   :  { %v6140_v57 = vadd.f32 %v6138_v17, %v11371_v10  ;;  %7108 = vmatpush1.bf16.msra.mxu1 %v7089_v28  ;;  %v7221_v10 = vld [vmem:[#allocation2 + $0xc90] sm:$0xff]  ;;  %v6354_v0 = vrot.slane %v6347_v49, %v11299_v7  ;;  %v7369_v49 = vld [vmem:[#allocation2 + $0xda8] sm:$0xff]  ;;  %v7371_v37 = vld [vmem:[#allocation2 + $0xdb8] sm:$0xff] }
 0x841   :  { %7109 = vmatprep.subr.bf16.mxu1 %v7092_v8  ;;  %v7448_v8 = vld [vmem:[#allocation2 + $0xe60] sm:$0xff] }
 0x842   :  { %v11389_v24 = vadd.f32 %v6210_v60, %v6140_v57  ;;  %7323 = vmatpush1.bf16.msra.mxu0 %v7304_v32  ;;  %v7236_v60 = vrot.slane %v11250_v30, 1  ;;  %v7451_v57 = vld [vmem:[#allocation2 + $0xe78] sm:$0xff]  ;;  %v7368_v32 = vld [vmem:[#allocation2 + $0xda0] sm:$0xff] }
 0x843   :  { %7324 = vmatprep.subr.bf16.mxu0 %v7307_v40  ;;  %v7582_v40 = vld [vmem:[#allocation2 + $0xf10] sm:$0xff] }
 0x844   :  { %7110 = vmatpush1.bf16.msra.mxu1 %v7091_v34  ;;  %v7450_v34 = vld [vmem:[#allocation2 + $0xe70] sm:$0xff] }
 0x845   :  { %7238 = vmatprep.subr.bf16.mxu1 %v7220_v6  ;;  %v7452_v6 = vrot.slane %v11250_v30, 4 }
 0x846   :  { %7325 = vmatpush1.bf16.msra.mxu0 %v7306_v18  ;;  %v7373_v18 = vld [vmem:[#allocation2 + $0xdc8] sm:$0xff] }
 0x847   :  { %7128 = vmatmul.mubr.bf16.vlgmr.msra.gmra.mrb[248].mxu1 %v7093_v52  ;;  %7454 = vmatprep.subr.bf16.mxu0 %v7437_v29  ;;  %v7583_v52 = vld [vmem:[#allocation2 + $0xf18] sm:$0xff]  ;;  %v7584_v29 = vld [vmem:[#allocation2 + $0xf20] sm:$0xff] }
 0x848   :  { %7239 = vmatpush1.bf16.msra.mxu1 %v7219_v15  ;;  %7270 = vmatprep.mubr.bf16.mxu1 %v11937_v22  ;;  %v7585_v15 = vld [vmem:[#allocation2 + $0xf28] sm:$0xff] }
 0x849   :  { %7240 = vmatprep.subr.bf16.mxu1 %v7222_v63  ;;  %7343 = vmatmul.mubr.bf16.vlgmr.msra.gmra.mrb[12].mxu0 %v7308_v48  ;;  %v7370_v63 = vld [vmem:[#allocation2 + $0xdb0] sm:$0xff]  ;;  %v7372_v48 = vld [vmem:[#allocation2 + $0xdc0] sm:$0xff] }
 0x84a   :  { %7455 = vmatpush1.bf16.msra.mxu0 %v7436_v25  ;;  %7486 = vmatprep.mubr.bf16.mxu0 %v11937_v22  ;;  %v7586_v25 = vld [vmem:[#allocation2 + $0xf30] sm:$0xff] }
 0x84b   :  { %7456 = vmatprep.subr.bf16.mxu0 %v7439_v36  ;;  %v7589_v36 = vld [vmem:[#allocation2 + $0xf48] sm:$0xff] }
 0x84c   :  { %7241 = vmatpush1.bf16.msra.mxu1 %v7221_v10  ;;  %v7587_v10 = vld [vmem:[#allocation2 + $0xf38] sm:$0xff] }
 0x84d   :  { %7242 = vmatprep.subr.bf16.mxu1 %v7224_v1  ;;  %v7375_v1 = vld [vmem:[#allocation2 + $0xdd8] sm:$0xff] }
 0x84e   :  { %7457 = vmatpush1.bf16.msra.mxu0 %v7438_v45  ;;  %v7377_v45 = vld [vmem:[#allocation2 + $0xde8] sm:$0xff] }
 0x84f   :  { %7458 = vmatprep.subr.bf16.mxu0 %v7441_v20 }
 0x850   :  { %7243 = vmatpush1.bf16.msra.mxu1 %v7223_v41  ;;  %v7374_v41 = vld [vmem:[#allocation2 + $0xdd0] sm:$0xff] }
 0x851   :  { %7244 = vmatprep.subr.bf16.mxu1 %v7226_v43 }
 0x852   :  { %7459 = vmatpush1.bf16.msra.mxu0 %v7440_v44 }
 0x853   :  { %7460 = vmatprep.subr.bf16.mxu0 %v7443_v53  ;;  %v7591_v53 = vld [vmem:[#allocation2 + $0xf58] sm:$0xff] }
 0x854   :  { %7245 = vmatpush1.bf16.msra.mxu1 %v7225_v51  ;;  %v7588_v51 = vld [vmem:[#allocation2 + $0xf40] sm:$0xff] }
 0x855   :  { %7246 = vmatprep.subr.bf16.mxu1 %v7228_v56 }
 0x856   :  { %7461 = vmatpush1.bf16.msra.mxu0 %v7442_v31 }
 0x857   :  { %7462 = vmatprep.subr.bf16.mxu0 %v7445_v9 }
 0x858   :  { %7247 = vmatpush1.bf16.msra.mxu1 %v7227_v2 }
 0x859   :  { %7248 = vmatprep.subr.bf16.mxu1 %v7230_v42  ;;  %v7376_v42 = vld [vmem:[#allocation2 + $0xde0] sm:$0xff] }
 0x85a   :  { %v6266_v62 = vpop.f32.mrb[224].mxu1  ;;  %7463 = vmatpush1.bf16.msra.mxu0 %v7444_v38  ;;  %v7593_v38 = vld [vmem:[#allocation2 + $0xf68] sm:$0xff] }
 0x85b   :  { %v6268_v35 = vpop.f32.mrb[225].mxu1  ;;  %7464 = vmatprep.subr.bf16.mxu0 %v7447_v61 }
 0x85c   :  { %v6275_v4 = vcombine.low %v6266_v62, %v6268_v35  ;;  %v6270_v55 = vpop.f32.mrb[226].mxu1  ;;  %7249 = vmatpush1.bf16.msra.mxu1 %v7229_v54  ;;  %v11403_v5 = vpop.f32.mrb[244].mxu0  ;;  %v7379_v54 = vld [vmem:[#allocation2 + $0xdf8] sm:$0xff]  ;;  %v7590_v62 = vld [vmem:[#allocation2 + $0xf50] sm:$0xff] }
 0x85d   :  { %v6271_v23 = vpop.f32.mrb[227].mxu1  ;;  %7250 = vmatprep.subr.bf16.mxu1 %v7232_v46  ;;  %v11405_v13 = vpop.f32.mrb[245].mxu0 }
 0x85e   :  { %v6282_v59 = vrot.slane %v6275_v4, %v11299_v7  ;;  %v6491_v28 = vcombine.low %v11403_v5, %v11405_v13  ;;  %7465 = vmatpush1.bf16.msra.mxu0 %v7446_v16  ;;  %v6486_v17 = vpop.f32.mrb[246].mxu0  ;;  %v7378_v4 = vld [vmem:[#allocation2 + $0xdf0] sm:$0xff]  ;;  %v7509_v23 = vld [vmem:[#allocation2 + $0xe88] sm:$0xff]  ;;  %v7508_v5 = vld [vmem:[#allocation2 + $0xe80] sm:$0xff] }
 0x85f   :  { %7466 = vmatprep.subr.bf16.mxu0 %v7449_v33  ;;  %v6487_v14 = vpop.f32.mrb[247].mxu0  ;;  %v7511_v33 = vld [vmem:[#allocation2 + $0xe98] sm:$0xff]  ;;  %v7725_v13 = vld [vmem:[#allocation2 + $0x1008] sm:$0xff]  ;;  %v7724_v17 = vld [vmem:[#allocation2 + $0x1000] sm:$0xff] }
 0x860   :  { %v6284_v27 = vadd.f32 %v6282_v59, %v11389_v24  ;;  %7251 = vmatpush1.bf16.msra.mxu1 %v7231_v50  ;;  %v7366_v24 = vld [vmem:[#allocation2 + $0xd90] sm:$0xff]  ;;  %v6498_v9 = vrot.slane %v6491_v28, %v11299_v7  ;;  %v7513_v28 = vld [vmem:[#allocation2 + $0xea8] sm:$0xff]  ;;  %v7515_v14 = vld [vmem:[#allocation2 + $0xeb8] sm:$0xff] }
 0x861   :  { %7252 = vmatprep.subr.bf16.mxu1 %v7234_v12  ;;  %v7592_v12 = vld [vmem:[#allocation2 + $0xf60] sm:$0xff] }
 0x862   :  { %v11407_v47 = vadd.f32 %v6354_v0, %v6284_v27  ;;  %7467 = vmatpush1.bf16.msra.mxu0 %v7448_v8  ;;  %v7380_v0 = vrot.slane %v11250_v30, 3  ;;  %v7595_v27 = vld [vmem:[#allocation2 + $0xf78] sm:$0xff]  ;;  %v7512_v8 = vld [vmem:[#allocation2 + $0xea0] sm:$0xff] }
 0x863   :  { %7468 = vmatprep.subr.bf16.mxu0 %v7451_v57  ;;  %v7726_v57 = vld [vmem:[#allocation2 + $0x1010] sm:$0xff] }
 0x864   :  { %7253 = vmatpush1.bf16.msra.mxu1 %v7233_v39  ;;  %v7594_v39 = vld [vmem:[#allocation2 + $0xf70] sm:$0xff] }
 0x865   :  { %7382 = vmatprep.subr.bf16.mxu1 %v7365_v58  ;;  %v7596_v58 = vrot.slane %v11250_v30, 6 }
 0x866   :  { %7469 = vmatpush1.bf16.msra.mxu0 %v7450_v34  ;;  %v7517_v34 = vld [vmem:[#allocation2 + $0xec8] sm:$0xff] }
 0x867   :  { %7271 = vmatmul.mubr.bf16.vlgmr.msra.gmra.mrb[252].mxu1 %v7236_v60  ;;  %7598 = vmatprep.subr.bf16.mxu0 %v7581_v21  ;;  %v7727_v60 = vld [vmem:[#allocation2 + $0x1018] sm:$0xff]  ;;  %v7728_v21 = vld [vmem:[#allocation2 + $0x1020] sm:$0xff] }
 0x868   :  { %7383 = vmatpush1.bf16.msra.mxu1 %v7364_v19  ;;  %7414 = vmatprep.mubr.bf16.mxu1 %v11937_v22  ;;  %v7729_v19 = vld [vmem:[#allocation2 + $0x1028] sm:$0xff] }
 0x869   :  { %7384 = vmatprep.subr.bf16.mxu1 %v7367_v11  ;;  %7487 = vmatmul.mubr.bf16.vlgmr.msra.gmra.mrb[16].mxu0 %v7452_v6  ;;  %v7514_v11 = vld [vmem:[#allocation2 + $0xeb0] sm:$0xff]  ;;  %v7516_v6 = vld [vmem:[#allocation2 + $0xec0] sm:$0xff] }
 0x86a   :  { %7599 = vmatpush1.bf16.msra.mxu0 %v7580_v3  ;;  %7630 = vmatprep.mubr.bf16.mxu0 %v11937_v22  ;;  %v7730_v3 = vld [vmem:[#allocation2 + $0x1030] sm:$0xff] }
 0x86b   :  { %7600 = vmatprep.subr.bf16.mxu0 %v7583_v52  ;;  %v7733_v52 = vld [vmem:[#allocation2 + $0x1048] sm:$0xff] }
 0x86c   :  { %7385 = vmatpush1.bf16.msra.mxu1 %v7366_v24  ;;  %v7731_v24 = vld [vmem:[#allocation2 + $0x1038] sm:$0xff] }
 0x86d   :  { %7386 = vmatprep.subr.bf16.mxu1 %v7369_v49  ;;  %v7519_v49 = vld [vmem:[#allocation2 + $0xed8] sm:$0xff] }
 0x86e   :  { %7601 = vmatpush1.bf16.msra.mxu0 %v7582_v40  ;;  %v7521_v40 = vld [vmem:[#allocation2 + $0xee8] sm:$0xff] }
 0x86f   :  { %7602 = vmatprep.subr.bf16.mxu0 %v7585_v15 }
 0x870   :  { %7387 = vmatpush1.bf16.msra.mxu1 %v7368_v32  ;;  %v7518_v32 = vld [vmem:[#allocation2 + $0xed0] sm:$0xff] }
 0x871   :  { %7388 = vmatprep.subr.bf16.mxu1 %v7371_v37 }
 0x872   :  { %7603 = vmatpush1.bf16.msra.mxu0 %v7584_v29 }
 0x873   :  { %7604 = vmatprep.subr.bf16.mxu0 %v7587_v10  ;;  %v7735_v10 = vld [vmem:[#allocation2 + $0x1058] sm:$0xff] }
 0x874   :  { %7389 = vmatpush1.bf16.msra.mxu1 %v7370_v63  ;;  %v7732_v63 = vld [vmem:[#allocation2 + $0x1040] sm:$0xff] }
 0x875   :  { %7390 = vmatprep.subr.bf16.mxu1 %v7373_v18 }
 0x876   :  { %7605 = vmatpush1.bf16.msra.mxu0 %v7586_v25 }
 0x877   :  { %7606 = vmatprep.subr.bf16.mxu0 %v7589_v36 }
 0x878   :  { %7391 = vmatpush1.bf16.msra.mxu1 %v7372_v48 }
 0x879   :  { %7392 = vmatprep.subr.bf16.mxu1 %v7375_v1  ;;  %v7520_v1 = vld [vmem:[#allocation2 + $0xee0] sm:$0xff] }
 0x87a   :  { %v6410_v43 = vpop.f32.mrb[228].mxu1  ;;  %7607 = vmatpush1.bf16.msra.mxu0 %v7588_v51  ;;  %v7737_v51 = vld [vmem:[#allocation2 + $0x1068] sm:$0xff] }
 0x87b   :  { %v6412_v20 = vpop.f32.mrb[229].mxu1  ;;  %7608 = vmatprep.subr.bf16.mxu0 %v7591_v53 }
 0x87c   :  { %v6419_v56 = vcombine.low %v6410_v43, %v6412_v20  ;;  %v6414_v44 = vpop.f32.mrb[230].mxu1  ;;  %7393 = vmatpush1.bf16.msra.mxu1 %v7374_v41  ;;  %v11421_v35 = vpop.f32.mrb[248].mxu0  ;;  %v7523_v41 = vld [vmem:[#allocation2 + $0xef8] sm:$0xff]  ;;  %v7734_v43 = vld [vmem:[#allocation2 + $0x1050] sm:$0xff] }
 0x87d   :  { %v6415_v2 = vpop.f32.mrb[231].mxu1  ;;  %7394 = vmatprep.subr.bf16.mxu1 %v7377_v45  ;;  %v11423_v55 = vpop.f32.mrb[249].mxu0 }
 0x87e   :  { %v6426_v31 = vrot.slane %v6419_v56, %v11299_v7  ;;  %v6633_v50 = vcombine.low %v11421_v35, %v11423_v55  ;;  %7609 = vmatpush1.bf16.msra.mxu0 %v7590_v62  ;;  %v6628_v59 = vpop.f32.mrb[250].mxu0  ;;  %v7522_v56 = vld [vmem:[#allocation2 + $0xef0] sm:$0xff]  ;;  %v7653_v2 = vld [vmem:[#allocation2 + $0xf88] sm:$0xff]  ;;  %v7652_v35 = vld [vmem:[#allocation2 + $0xf80] sm:$0xff] }
 0x87f   :  { %7610 = vmatprep.subr.bf16.mxu0 %v7593_v38  ;;  %v6629_v16 = vpop.f32.mrb[251].mxu0  ;;  %v7655_v38 = vld [vmem:[#allocation2 + $0xf98] sm:$0xff]  ;;  %v7868_v55 = vld [vmem:[#allocation2 + $0x1108] sm:$0xff] }
 0x880   :  { %v6428_v46 = vadd.f32 %v6426_v31, %v11407_v47  ;;  %7395 = vmatpush1.bf16.msra.mxu1 %v7376_v42  ;;  %v7510_v47 = vld [vmem:[#allocation2 + $0xe90] sm:$0xff]  ;;  %v6640_v36 = vrot.slane %v6633_v50, %v11299_v7  ;;  %v7867_v50 = vld [vmem:[#allocation2 + $0x1100] sm:$0xff]  ;;  %v7870_v59 = vld [vmem:[#allocation2 + $0x1118] sm:$0xff] }
 0x881   :  { %7396 = vmatprep.subr.bf16.mxu1 %v7379_v54  ;;  %v7736_v54 = vld [vmem:[#allocation2 + $0x1060] sm:$0xff]  ;;  %v7869_v16 = vld [vmem:[#allocation2 + $0x1110] sm:$0xff] }
 0x882   :  { %v11425_v61 = vadd.f32 %v6498_v9, %v6428_v46  ;;  %7611 = vmatpush1.bf16.msra.mxu0 %v7592_v12  ;;  %v7524_v9 = vrot.slane %v11250_v30, 5  ;;  %v7739_v46 = vld [vmem:[#allocation2 + $0x1078] sm:$0xff] }
 0x883   :  { %7612 = vmatprep.subr.bf16.mxu0 %v7595_v27  ;;  %v7659_v12 = vld [vmem:[#allocation2 + $0xfb8] sm:$0xff]  ;;  %v7872_v27 = vld [vmem:[#allocation2 + $0x1128] sm:$0xff] }
 0x884   :  { %7397 = vmatpush1.bf16.msra.mxu1 %v7378_v4  ;;  %v7738_v4 = vld [vmem:[#allocation2 + $0x1070] sm:$0xff] }
 0x885   :  { %7526 = vmatprep.subr.bf16.mxu1 %v7509_v23  ;;  %v7657_v23 = vld [vmem:[#allocation2 + $0xfa8] sm:$0xff] }
 0x886   :  { %7613 = vmatpush1.bf16.msra.mxu0 %v7594_v39  ;;  %v7871_v39 = vld [vmem:[#allocation2 + $0x1120] sm:$0xff] }
 0x887   :  { %7415 = vmatmul.mubr.bf16.vlgmr.msra.gmra.mrb[0].mxu1 %v7380_v0  ;;  %7740 = vmatprep.subr.bf16.mxu0 %v7725_v13  ;;  %v7656_v0 = vld [vmem:[#allocation2 + $0xfa0] sm:$0xff]  ;;  %v7874_v13 = vld [vmem:[#allocation2 + $0x1138] sm:$0xff] }
 0x888   :  { %7527 = vmatpush1.bf16.msra.mxu1 %v7508_v5  ;;  %7558 = vmatprep.mubr.bf16.mxu1 %v11937_v22  ;;  %v7658_v5 = vld [vmem:[#allocation2 + $0xfb0] sm:$0xff] }
 0x889   :  { %7528 = vmatprep.subr.bf16.mxu1 %v7511_v33  ;;  %7631 = vmatmul.mubr.bf16.vlgmr.msra.gmra.mrb[20].mxu0 %v7596_v58  ;;  %v7661_v33 = vld [vmem:[#allocation2 + $0xfc8] sm:$0xff]  ;;  %v7663_v58 = vld [vmem:[#allocation2 + $0xfd8] sm:$0xff] }
 0x88a   :  { %7741 = vmatpush1.bf16.msra.mxu0 %v7724_v17  ;;  %7772 = vmatprep.mubr.bf16.mxu0 %v11937_v22  ;;  %v7876_v17 = vld [vmem:[#allocation2 + $0x1148] sm:$0xff] }
 0x88b   :  { %7742 = vmatprep.subr.bf16.mxu0 %v7727_v60  ;;  %v7662_v60 = vld [vmem:[#allocation2 + $0xfd0] sm:$0xff] }
 0x88c   :  { %7529 = vmatpush1.bf16.msra.mxu1 %v7510_v47  ;;  %v7660_v47 = vld [vmem:[#allocation2 + $0xfc0] sm:$0xff] }
 0x88d   :  { %7530 = vmatprep.subr.bf16.mxu1 %v7513_v28  ;;  %v7873_v28 = vld [vmem:[#allocation2 + $0x1130] sm:$0xff] }
 0x88e   :  { %7743 = vmatpush1.bf16.msra.mxu0 %v7726_v57 }
 0x88f   :  { %7744 = vmatprep.subr.bf16.mxu0 %v7729_v19  ;;  %v7875_v19 = vld [vmem:[#allocation2 + $0x1140] sm:$0xff] }
 0x890   :  { %7531 = vmatpush1.bf16.msra.mxu1 %v7512_v8 }
 0x891   :  { %7532 = vmatprep.subr.bf16.mxu1 %v7515_v14  ;;  %v7665_v14 = vld [vmem:[#allocation2 + $0xfe8] sm:$0xff] }
 0x892   :  { %7745 = vmatpush1.bf16.msra.mxu0 %v7728_v21  ;;  %v7878_v21 = vld [vmem:[#allocation2 + $0x1158] sm:$0xff] }
 0x893   :  { %7746 = vmatprep.subr.bf16.mxu0 %v7731_v24 }
 0x894   :  { %7533 = vmatpush1.bf16.msra.mxu1 %v7514_v11 }
 0x895   :  { %7534 = vmatprep.subr.bf16.mxu1 %v7517_v34 }
 0x896   :  { %7747 = vmatpush1.bf16.msra.mxu0 %v7730_v3 }
 0x897   :  { %7748 = vmatprep.subr.bf16.mxu0 %v7733_v52  ;;  %v7667_v52 = vld [vmem:[#allocation2 + $0xff8] sm:$0xff] }
 0x898   :  { %7535 = vmatpush1.bf16.msra.mxu1 %v7516_v6  ;;  %v7664_v6 = vld [vmem:[#allocation2 + $0xfe0] sm:$0xff] }
 0x899   :  { %7536 = vmatprep.subr.bf16.mxu1 %v7519_v49 }
 0x89a   :  { %v6554_v37 = vpop.f32.mrb[232].mxu1  ;;  %7749 = vmatpush1.bf16.msra.mxu0 %v7732_v63  ;;  %v7666_v63 = vld [vmem:[#allocation2 + $0xff0] sm:$0xff] }
 0x89b   :  { %v6556_v15 = vpop.f32.mrb[233].mxu1  ;;  %7750 = vmatprep.subr.bf16.mxu0 %v7735_v10  ;;  %v7795_v10 = vld [vmem:[#allocation2 + $0x1088] sm:$0xff] }
 0x89c   :  { %v6563_v18 = vcombine.low %v6554_v37, %v6556_v15  ;;  %v6558_v29 = vpop.f32.mrb[234].mxu1  ;;  %7537 = vmatpush1.bf16.msra.mxu1 %v7518_v32  ;;  %v11439_v20 = vpop.f32.mrb[252].mxu0  ;;  %v7877_v32 = vld [vmem:[#allocation2 + $0x1150] sm:$0xff]  ;;  %v7880_v15 = vld [vmem:[#allocation2 + $0x1168] sm:$0xff] }
 0x89d   :  { %v6559_v48 = vpop.f32.mrb[235].mxu1  ;;  %7538 = vmatprep.subr.bf16.mxu1 %v7521_v40  ;;  %v11441_v44 = vpop.f32.mrb[253].mxu0 }
 0x89e   :  { %v6570_v25 = vrot.slane %v6563_v18, %v11299_v7  ;;  %v6778_v42 = vcombine.low %v11439_v20, %v11441_v44  ;;  %7751 = vmatpush1.bf16.msra.mxu0 %v7734_v43  ;;  %v6773_v31 = vpop.f32.mrb[254].mxu0  ;;  %v7882_v43 = vld [vmem:[#allocation2 + $0x1178] sm:$0xff]  ;;  %v7883_v44 = vrot.slane %v11207_v26, 2 }
 0x89f   :  { %7752 = vmatprep.subr.bf16.mxu0 %v7737_v51  ;;  %v6774_v62 = vpop.f32.mrb[255].mxu0  ;;  %v7797_v20 = vld [vmem:[#allocation2 + $0x1098] sm:$0xff]  ;;  %v7881_v51 = vld [vmem:[#allocation2 + $0x1170] sm:$0xff]  ;;  %v7803_v31 = vld [vmem:[#allocation2 + $0x10c8] sm:$0xff] }
 0x8a0   :  { %v6572_v45 = vadd.f32 %v6570_v25, %v11425_v61  ;;  %7539 = vmatpush1.bf16.msra.mxu1 %v7520_v1  ;;  %v7654_v61 = vld [vmem:[#allocation2 + $0xf90] sm:$0xff]  ;;  %v6785_v3 = vrot.slane %v6778_v42, %v11299_v7  ;;  %v7668_v25 = vrot.slane %v11250_v30, 7  ;;  %v7799_v30 = vld [vmem:[#allocation2 + $0x10a8] sm:$0xff] }
 0x8a1   :  { %7540 = vmatprep.subr.bf16.mxu1 %v7523_v41  ;;  %v7800_v42 = vld [vmem:[#allocation2 + $0x10b0] sm:$0xff] }
 0x8a2   :  { %v11443_v53 = vadd.f32 %v6640_v36, %v6572_v45  ;;  %7753 = vmatpush1.bf16.msra.mxu0 %v7736_v54  ;;  %v7879_v36 = vld [vmem:[#allocation2 + $0x1160] sm:$0xff]  ;;  %v7805_v54 = vld [vmem:[#allocation2 + $0x10d8] sm:$0xff]  ;;  %v7804_v62 = vld [vmem:[#allocation2 + $0x10d0] sm:$0xff] }
 0x8a3   :  { %7754 = vmatprep.subr.bf16.mxu0 %v7739_v46  ;;  %v7794_v45 = vld [vmem:[#allocation2 + $0x1080] sm:$0xff] }
 0x8a4   :  { %7541 = vmatpush1.bf16.msra.mxu1 %v7522_v56  ;;  %v7796_v56 = vld [vmem:[#allocation2 + $0x1090] sm:$0xff] }
 0x8a5   :  { %7670 = vmatprep.subr.bf16.mxu1 %v7653_v2  ;;  %v7801_v2 = vld [vmem:[#allocation2 + $0x10b8] sm:$0xff] }
 0x8a6   :  { %7755 = vmatpush1.bf16.msra.mxu0 %v7738_v4 }
 0x8a7   :  { %7559 = vmatmul.mubr.bf16.vlgmr.msra.gmra.mrb[4].mxu1 %v7524_v9  ;;  %7885 = vmatprep.subr.bf16.mxu0 %v7868_v55  ;;  %v7802_v9 = vld [vmem:[#allocation2 + $0x10c0] sm:$0xff] }
 0x8a8   :  { %7671 = vmatpush1.bf16.msra.mxu1 %v7652_v35  ;;  %7702 = vmatprep.mubr.bf16.mxu1 %v11937_v22  ;;  %v7807_v35 = vld [vmem:[#allocation2 + $0x10e8] sm:$0xff] }
 0x8a9   :  { %7672 = vmatprep.subr.bf16.mxu1 %v7655_v38  ;;  %7773 = vmatmul.mubr.bf16.vlgmr.msra.gmra.mrb[24].mxu0 %v11207_v26 }
 0x8aa   :  { %7886 = vmatpush1.bf16.msra.mxu0 %v7867_v50  ;;  %7917 = vmatprep.mubr.bf16.mxu0 %v11937_v22 }
 0x8ab   :  { %7887 = vmatprep.subr.bf16.mxu0 %v7870_v59 }
 0x8ac   :  { %7673 = vmatpush1.bf16.msra.mxu1 %v7654_v61 }
 0x8ad   :  { %7674 = vmatprep.subr.bf16.mxu1 %v7657_v23  ;;  %v7806_v23 = vld [vmem:[#allocation2 + $0x10e0] sm:$0xff] }
 0x8ae   :  { %7888 = vmatpush1.bf16.msra.mxu0 %v7869_v16 }
 0x8af   :  { %7889 = vmatprep.subr.bf16.mxu0 %v7872_v27  ;;  %v7808_v27 = vld [vmem:[#allocation2 + $0x10f0] sm:$0xff] }
 0x8b0   :  { %7675 = vmatpush1.bf16.msra.mxu1 %v7656_v0  ;;  %v7809_v0 = vld [vmem:[#allocation2 + $0x10f8] sm:$0xff] }
 0x8b1   :  { %7676 = vmatprep.subr.bf16.mxu1 %v7659_v12 }
 0x8b2   :  { %7890 = vmatpush1.bf16.msra.mxu0 %v7871_v39  ;;  %v7940_v39 = vld [vmem:[#allocation2 + $0x1188] sm:$0xff] }
 0x8b3   :  { %7891 = vmatprep.subr.bf16.mxu0 %v7874_v13 }
 0x8b4   :  { %7677 = vmatpush1.bf16.msra.mxu1 %v7658_v5 }
 0x8b5   :  { %7678 = vmatprep.subr.bf16.mxu1 %v7661_v33 }
 0x8b6   :  { %7892 = vmatpush1.bf16.msra.mxu0 %v7873_v28 }
 0x8b7   :  { %7893 = vmatprep.subr.bf16.mxu0 %v7876_v17  ;;  %v7939_v17 = vld [vmem:[#allocation2 + $0x1180] sm:$0xff] }
 0x8b8   :  { %7679 = vmatpush1.bf16.msra.mxu1 %v7660_v47 }
 0x8b9   :  { %7680 = vmatprep.subr.bf16.mxu1 %v7663_v58  ;;  %v7811_v58 = vrot.slane %v11207_v26, 1 }
 0x8ba   :  { %v6697_v8 = vpop.f32.mrb[236].mxu1  ;;  %7894 = vmatpush1.bf16.msra.mxu0 %v7875_v19  ;;  %v7946_v19 = vld [vmem:[#allocation2 + $0x11b8] sm:$0xff] }
 0x8bb   :  { %v6699_v57 = vpop.f32.mrb[237].mxu1  ;;  %7895 = vmatprep.subr.bf16.mxu0 %v7878_v21  ;;  %v7947_v21 = vld [vmem:[#allocation2 + $0x11c0] sm:$0xff] }
 0x8bc   :  { %v6706_v11 = vcombine.low %v6697_v8, %v6699_v57  ;;  %v6701_v34 = vpop.f32.mrb[238].mxu1  ;;  %7681 = vmatpush1.bf16.msra.mxu1 %v7662_v60  ;;  %v6913_v40 = vpop.f32.mrb[0].mxu0  ;;  %v7942_v60 = vld [vmem:[#allocation2 + $0x1198] sm:$0xff]  ;;  %v7941_v8 = vld [vmem:[#allocation2 + $0x1190] sm:$0xff]  ;;  %v7943_v57 = vld [vmem:[#allocation2 + $0x11a0] sm:$0xff] }
 0x8bd   :  { %v6702_v24 = vpop.f32.mrb[239].mxu1  ;;  %7682 = vmatprep.subr.bf16.mxu1 %v7665_v14  ;;  %v6915_v18 = vpop.f32.mrb[1].mxu0  ;;  %v7944_v14 = vld [vmem:[#allocation2 + $0x11a8] sm:$0xff] }
 0x8be   :  { %v6713_v49 = vrot.slane %v6706_v11, %v11299_v7  ;;  %v6922_v48 = vcombine.low %v6913_v40, %v6915_v18  ;;  %7896 = vmatpush1.bf16.msra.mxu0 %v7877_v32  ;;  %v6917_v1 = vpop.f32.mrb[2].mxu0  ;;  %v7945_v11 = vld [vmem:[#allocation2 + $0x11b0] sm:$0xff]  ;;  %v7948_v34 = vld [vmem:[#allocation2 + $0x11c8] sm:$0xff]  ;;  %v7950_v24 = vld [vmem:[#allocation2 + $0x11d8] sm:$0xff] }
 0x8bf   :  { %7897 = vmatprep.subr.bf16.mxu0 %v7880_v15  ;;  %v6918_v41 = vpop.f32.mrb[3].mxu0  ;;  %v7951_v40 = vld [vmem:[#allocation2 + $0x11e0] sm:$0xff]  ;;  %v7954_v18 = vld [vmem:[#allocation2 + $0x11f8] sm:$0xff] }
 0x8c0   :  { %v6715_v37 = vadd.f32 %v6713_v49, %v11443_v53  ;;  %7683 = vmatpush1.bf16.msra.mxu1 %v7664_v6  ;;  %v7798_v53 = vld [vmem:[#allocation2 + $0x10a0] sm:$0xff]  ;;  %v6929_v59 = vrot.slane %v6922_v48, %v11299_v7  ;;  %v7949_v6 = vld [vmem:[#allocation2 + $0x11d0] sm:$0xff] }
 0x8c1   :  { %7684 = vmatprep.subr.bf16.mxu1 %v7667_v52  ;;  %v7953_v48 = vld [vmem:[#allocation2 + $0x11f0] sm:$0xff] }
 0x8c2   :  { %v6787_v29 = vadd.f32 %v6785_v3, %v6715_v37  ;;  %7898 = vmatpush1.bf16.msra.mxu0 %v7879_v36 }
 0x8c3   :  { %7899 = vmatprep.subr.bf16.mxu0 %v7882_v43  ;;  %v7955_v43 = vrot.slane %v11207_v26, 3 }
 0x8c4   :  { %7685 = vmatpush1.bf16.msra.mxu1 %v7666_v63 }
 0x8c5   :  { %7813 = vmatprep.subr.bf16.mxu1 %v7795_v10 }
 0x8c6   :  { %7900 = vmatpush1.bf16.msra.mxu0 %v7881_v51 }
 0x8c7   :  { %7703 = vmatmul.mubr.bf16.vlgmr.msra.gmra.mrb[8].mxu1 %v7668_v25 }
 0x8c8   :  { %7814 = vmatpush1.bf16.msra.mxu1 %v7794_v45  ;;  %7845 = vmatprep.mubr.bf16.mxu1 %v11937_v22 }
 0x8c9   :  { %7815 = vmatprep.subr.bf16.mxu1 %v7797_v20  ;;  %7918 = vmatmul.mubr.bf16.vlgmr.msra.gmra.mrb[28].mxu0 %v7883_v44 }
 0x8cc   :  { %7816 = vmatpush1.bf16.msra.mxu1 %v7796_v56 }
 0x8cd   :  { %7817 = vmatprep.subr.bf16.mxu1 %v7799_v30 }
 0x8d0   :  { %7818 = vmatpush1.bf16.msra.mxu1 %v7798_v53 }
 0x8d1   :  { %7819 = vmatprep.subr.bf16.mxu1 %v7801_v2 }
 0x8d4   :  { %7820 = vmatpush1.bf16.msra.mxu1 %v7800_v42 }
 0x8d5   :  { %7821 = vmatprep.subr.bf16.mxu1 %v7803_v31 }
 0x8d8   :  { %7822 = vmatpush1.bf16.msra.mxu1 %v7802_v9 }
 0x8d9   :  { %7823 = vmatprep.subr.bf16.mxu1 %v7805_v54 }
 0x8da   :  { %v6841_v46 = vpop.f32.mrb[240].mxu1 }
 0x8db   :  { %v6843_v38 = vpop.f32.mrb[241].mxu1 }
 0x8dc   :  { %v6850_v4 = vcombine.low %v6841_v46, %v6843_v38  ;;  %v6845_v55 = vpop.f32.mrb[242].mxu1  ;;  %7824 = vmatpush1.bf16.msra.mxu1 %v7804_v62  ;;  %v7057_v16 = vpop.f32.mrb[4].mxu0 }
 0x8dd   :  { %v6846_v61 = vpop.f32.mrb[243].mxu1  ;;  %7825 = vmatprep.subr.bf16.mxu1 %v7807_v35  ;;  %v7059_v5 = vpop.f32.mrb[5].mxu0 }
 0x8de   :  { %v6857_v50 = vrot.slane %v6850_v4, %v11299_v7  ;;  %v7066_v13 = vcombine.low %v7057_v16, %v7059_v5  ;;  %v7061_v47 = vpop.f32.mrb[6].mxu0 }
 0x8df   :  { %v7062_v28 = vpop.f32.mrb[7].mxu0 }
 0x8e0   :  { %v6859_v12 = vadd.f32 %v6857_v50, %v6787_v29  ;;  %7826 = vmatpush1.bf16.msra.mxu1 %v7806_v23  ;;  %v7073_v63 = vrot.slane %v7066_v13, %v11299_v7 }
 0x8e1   :  { %7827 = vmatprep.subr.bf16.mxu1 %v7809_v0 }
 0x8e2   :  { %v6931_v33 = vadd.f32 %v6929_v59, %v6859_v12 }
 0x8e4   :  { %7828 = vmatpush1.bf16.msra.mxu1 %v7808_v27 }
 0x8e5   :  { %7957 = vmatprep.subr.bf16.mxu1 %v7940_v39 }
 0x8e7   :  { %7846 = vmatmul.mubr.bf16.vlgmr.msra.gmra.mrb[12].mxu1 %v7811_v58 }
 0x8e8   :  { %7958 = vmatpush1.bf16.msra.mxu1 %v7939_v17  ;;  %7989 = vmatprep.mubr.bf16.mxu1 %v11937_v22  ;;  %v7952_v22 = vld [vmem:[#allocation2 + $0x11e8] sm:$0xff] }
 0x8e9   :  { %7959 = vmatprep.subr.bf16.mxu1 %v7942_v60 }
 0x8ec   :  { %7960 = vmatpush1.bf16.msra.mxu1 %v7941_v8 }
 0x8ed   :  { %7961 = vmatprep.subr.bf16.mxu1 %v7944_v14 }
 0x8f0   :  { %7962 = vmatpush1.bf16.msra.mxu1 %v7943_v57 }
 0x8f1   :  { %7963 = vmatprep.subr.bf16.mxu1 %v7946_v19 }
 0x8f4   :  { %7964 = vmatpush1.bf16.msra.mxu1 %v7945_v11 }
 0x8f5   :  { %7965 = vmatprep.subr.bf16.mxu1 %v7948_v34 }
 0x8f8   :  { %7966 = vmatpush1.bf16.msra.mxu1 %v7947_v21 }
 0x8f9   :  { %7967 = vmatprep.subr.bf16.mxu1 %v7950_v24 }
 0x8fa   :  { %v6985_v49 = vpop.f32.mrb[244].mxu1 }
 0x8fb   :  { %v6987_v3 = vpop.f32.mrb[245].mxu1 }
 0x8fc   :  { %v6994_v52 = vcombine.low %v6985_v49, %v6987_v3  ;;  %v6989_v32 = vpop.f32.mrb[246].mxu1  ;;  %7968 = vmatpush1.bf16.msra.mxu1 %v7949_v6  ;;  %v7199_v10 = vpop.f32.mrb[8].mxu0 }
 0x8fd   :  { %v6990_v37 = vpop.f32.mrb[247].mxu1  ;;  %7969 = vmatprep.subr.bf16.mxu1 %v7952_v22  ;;  %v7201_v1 = vpop.f32.mrb[9].mxu0 }
 0x8fe   :  { %v7001_v15 = vrot.slane %v6994_v52, %v11299_v7  ;;  %v7208_v36 = vcombine.low %v7199_v10, %v7201_v1  ;;  %v7203_v41 = vpop.f32.mrb[10].mxu0 }
 0x8ff   :  { %v7204_v45 = vpop.f32.mrb[11].mxu0 }
 0x900   :  { %v7003_v29 = vadd.f32 %v7001_v15, %v6931_v33  ;;  %7970 = vmatpush1.bf16.msra.mxu1 %v7951_v40  ;;  %v7215_v2 = vrot.slane %v7208_v36, %v11299_v7 }
 0x901   :  { %7971 = vmatprep.subr.bf16.mxu1 %v7954_v18 }
 0x902   :  { %v7075_v25 = vadd.f32 %v7073_v63, %v7003_v29 }
 0x904   :  { %7972 = vmatpush1.bf16.msra.mxu1 %v7953_v48 }
 0x907   :  { %7990 = vmatmul.mubr.bf16.vlgmr.msra.gmra.mrb[16].mxu1 %v7955_v43 }
 0x91a   :  { %v7129_v20 = vpop.f32.mrb[248].mxu1 }
 0x91b   :  { %v7131_v51 = vpop.f32.mrb[249].mxu1 }
 0x91c   :  { %v7138_v56 = vcombine.low %v7129_v20, %v7131_v51  ;;  %v7133_v44 = vpop.f32.mrb[250].mxu1  ;;  %v7344_v31 = vpop.f32.mrb[12].mxu0 }
 0x91d   :  { %v7134_v30 = vpop.f32.mrb[251].mxu1  ;;  %v7346_v9 = vpop.f32.mrb[13].mxu0 }
 0x91e   :  { %v7145_v53 = vrot.slane %v7138_v56, %v11299_v7  ;;  %v7353_v62 = vcombine.low %v7344_v31, %v7346_v9  ;;  %v7348_v46 = vpop.f32.mrb[14].mxu0 }
 0x91f   :  { %v7349_v35 = vpop.f32.mrb[15].mxu0 }
 0x920   :  { %v7147_v42 = vadd.f32 %v7145_v53, %v7075_v25  ;;  %v7360_v50 = vrot.slane %v7353_v62, %v11299_v7 }
 0x922   :  { %v7217_v54 = vadd.f32 %v7215_v2, %v7147_v42 }
 0x93a   :  { %v7272_v26 = vpop.f32.mrb[252].mxu1 }
 0x93b   :  { %v7274_v38 = vpop.f32.mrb[253].mxu1 }
 0x93c   :  { %v7281_v4 = vcombine.low %v7272_v26, %v7274_v38  ;;  %v7276_v55 = vpop.f32.mrb[254].mxu1  ;;  %v7488_v0 = vpop.f32.mrb[16].mxu0 }
 0x93d   :  { %v7277_v61 = vpop.f32.mrb[255].mxu1  ;;  %v7490_v12 = vpop.f32.mrb[17].mxu0 }
 0x93e   :  { %v7288_v23 = vrot.slane %v7281_v4, %v11299_v7  ;;  %v7497_v27 = vcombine.low %v7488_v0, %v7490_v12  ;;  %v7492_v5 = vpop.f32.mrb[18].mxu0 }
 0x93f   :  { %v7493_v33 = vpop.f32.mrb[19].mxu0 }
 0x940   :  { %v7290_v59 = vadd.f32 %v7288_v23, %v7217_v54  ;;  %v7504_v60 = vrot.slane %v7497_v27, %v11299_v7 }
 0x942   :  { %v7362_v16 = vadd.f32 %v7360_v50, %v7290_v59 }
 0x95a   :  { %v7416_v39 = vpop.f32.mrb[0].mxu1 }
 0x95b   :  { %v7418_v13 = vpop.f32.mrb[1].mxu1 }
 0x95c   :  { %v7425_v47 = vcombine.low %v7416_v39, %v7418_v13  ;;  %v7420_v58 = vpop.f32.mrb[2].mxu1  ;;  %v7632_v14 = vpop.f32.mrb[20].mxu0 }
 0x95d   :  { %v7421_v28 = vpop.f32.mrb[3].mxu1  ;;  %v7634_v57 = vpop.f32.mrb[21].mxu0 }
 0x95e   :  { %v7432_v17 = vrot.slane %v7425_v47, %v11299_v7  ;;  %v7641_v11 = vcombine.low %v7632_v14, %v7634_v57  ;;  %v7636_v34 = vpop.f32.mrb[22].mxu0 }
 0x95f   :  { %v7637_v21 = vpop.f32.mrb[23].mxu0 }
 0x960   :  { %v7434_v8 = vadd.f32 %v7432_v17, %v7362_v16  ;;  %v7648_v32 = vrot.slane %v7641_v11, %v11299_v7 }
 0x962   :  { %v7506_v19 = vadd.f32 %v7504_v60, %v7434_v8 }
 0x97a   :  { %v7560_v24 = vpop.f32.mrb[4].mxu1 }
 0x97b   :  { %v7562_v6 = vpop.f32.mrb[5].mxu1 }
 0x97c   :  { %v7569_v49 = vcombine.low %v7560_v24, %v7562_v6  ;;  %v7564_v22 = vpop.f32.mrb[6].mxu1  ;;  %v7774_v40 = vpop.f32.mrb[24].mxu0 }
 0x97d   :  { %v7565_v3 = vpop.f32.mrb[7].mxu1  ;;  %v7776_v15 = vpop.f32.mrb[25].mxu0 }
 0x97e   :  { %v7576_v52 = vrot.slane %v7569_v49, %v11299_v7  ;;  %v7783_v18 = vcombine.low %v7774_v40, %v7776_v15  ;;  %v7778_v29 = vpop.f32.mrb[26].mxu0 }
 0x97f   :  { %v7779_v10 = vpop.f32.mrb[27].mxu0 }
 0x980   :  { %v7578_v37 = vadd.f32 %v7576_v52, %v7506_v19  ;;  %v7790_v45 = vrot.slane %v7783_v18, %v11299_v7 }
 0x982   :  { %v7650_v63 = vadd.f32 %v7648_v32, %v7578_v37 }
 0x99a   :  { %v7704_v48 = vpop.f32.mrb[8].mxu1 }
 0x99b   :  { %v7706_v1 = vpop.f32.mrb[9].mxu1 }
 0x99c   :  { %v7713_v25 = vcombine.low %v7704_v48, %v7706_v1  ;;  %v7708_v36 = vpop.f32.mrb[10].mxu1  ;;  %v7919_v51 = vpop.f32.mrb[28].mxu0 }
 0x99d   :  { %v7709_v41 = vpop.f32.mrb[11].mxu1  ;;  %v7921_v56 = vpop.f32.mrb[29].mxu0 }
 0x99e   :  { %v7720_v43 = vrot.slane %v7713_v25, %v11299_v7  ;;  %v7928_v30 = vcombine.low %v7919_v51, %v7921_v56  ;;  %v7923_v53 = vpop.f32.mrb[30].mxu0 }
 0x99f   :  { %v7924_v2 = vpop.f32.mrb[31].mxu0 }
 0x9a0   :  { %v7722_v20 = vadd.f32 %v7720_v43, %v7650_v63  ;;  %v7935_v35 = vrot.slane %v7928_v30, %v11299_v7 }
 0x9a2   :  { %v7792_v44 = vadd.f32 %v7790_v45, %v7722_v20 }
 0x9ba   :  { %v7847_v42 = vpop.f32.mrb[12].mxu1 }
 0x9bb   :  { %v7849_v31 = vpop.f32.mrb[13].mxu1 }
 0x9bc   :  { %v7856_v9 = vcombine.low %v7847_v42, %v7849_v31  ;;  %v7851_v54 = vpop.f32.mrb[14].mxu1 }
 0x9bd   :  { %v7852_v62 = vpop.f32.mrb[15].mxu1 }
 0x9be   :  { %v7863_v46 = vrot.slane %v7856_v9, %v11299_v7 }
 0x9c0   :  { %v7865_v26 = vadd.f32 %v7863_v46, %v7792_v44 }
 0x9c2   :  { %v7937_v38 = vadd.f32 %v7935_v35, %v7865_v26 }
 0x9da   :  { %v7991_v4 = vpop.f32.mrb[16].mxu1 }
 0x9db   :  { %v7993_v55 = vpop.f32.mrb[17].mxu1 }
 0x9dc   :  { %v8000_v61 = vcombine.low %v7991_v4, %v7993_v55  ;;  %v7995_v23 = vpop.f32.mrb[18].mxu1 }
 0x9dd   :  { %v7996_v50 = vpop.f32.mrb[19].mxu1 }
 0x9de   :  { %v8007_v59 = vrot.slane %v8000_v61, %v11299_v7 }
 0x9e0   :  { %v8009_v0 = vadd.f32 %v8007_v59, %v7937_v38 }
 0x9e2   :  { %v8010_v12 = vmax.f32 %v8009_v0, 0.0 }
 0x9e4   :  { %8011 = vst [vmem:[#allocation16] sm:$0xf] %v8010_v12 }
 0x9e5   :  { %9235 = shalt.err (!%p9232_p4)
}
 0x9e6   :  { %s9236_s26 = scalar_lea.hbm %s11502_s10, 64 }
 0x9e7   :  { %p9237_p5 = scmp.ne.s32.totalorder %s11502_s10, %s9236_s26  ;;  %p9240_p6 = scmp.lt.u32.totalorder %s9236_s26, %s11502_s10 }
 0x9e9   :  { %p9242_p7 = pnand %p9240_p6, %p9237_p5 }
 0x9eb   :  { %9245 = shalt.err (!%p9242_p7)
}
 0x9ec   :  { %8021 = dma.vmem_to_hbm [thread:$0]  %s8019_s7, 64, %s11502_s10, [#allocation6]  }
 0x9ed   :  { %9256 = dma.done.wait [#allocation6], 64  }
 0x9ee   :  { %9257 = vsyncadd [#allocation6], 4294967232 }
 0x9ef   :  { %8025 = vsyncpa [#allocation5], 1 }
 0x9f0   :  { %8026 = vsyncpa [#allocation8], 1 }
 0x9f1   :  { %8027 = vsyncpa [#allocation11], 1 }
 0x9f2   :  { %8028 = vsyncpa [#allocation14], 1 }
 0x9f3   :  { %8029 = vsyncpa [#allocation6], 1 }
 0x9f4   :  { %8030 = vsyncmov [#allocation3] }
 0x9f7   :  { %s8031_s6 = vpop.sfrf %8030 }
 0x9f8   :  { %p8352_p8 = scmp.ne.s32.totalorder %s8031_s6, 0 }
 0x9fa   :  { %8035 = shalt.err (%p8352_p8)  }

</bundles_post_ra>
